<compile_context>
chip_gen: v7x
topology: tpu7x:2x2x1
jax: 0.10.0
libtpu: 0.0.40
codegen_flags: <defaults>
</compile_context>

<pallas_src>
import jax
import jax.numpy as jnp
from jax.experimental import pallas as pl
from jax.experimental.pallas import tpu as pltpu

EXT = 128   # zero lane-margin around each flattened padded image
HID = 128   # fc1 width (fixed by the PyTorch module)


def _even_select(n_in, n_out):
    """(n_in, n_out) f32 0/1 matrix with a single 1 per column at row 2*j.
    Right-multiplying by it extracts the even-indexed lanes exactly."""
    r = jax.lax.broadcasted_iota(jnp.int32, (n_in, n_out), 0)
    c = jax.lax.broadcasted_iota(jnp.int32, (n_in, n_out), 1)
    return (r == 2 * c).astype(jnp.float32)


def _make_kernel(C, H, W):
    HA, WA = H, W                 # stage-1 spatial size
    HB, WB = H // 2, W // 2       # stage-2
    HC, WC = H // 4, W // 4       # stage-3
    HD, WD = H // 8, W // 8       # pooled stage-3 (feeds the MLP head)
    WPB, WPC = WB + 2, WC + 2
    C3 = 4 * C

    def kernel(x_ref, cw1_ref, cw2_ref, cw3_ref, fw1_ref, fb1_ref,
               fw2_ref, fb2_ref, o_ref,
               col1, col2, col3, pad2, pad3, feat):
        f32 = jnp.float32

        # Fresh zero borders / margins for the in-VMEM padded activations.
        pad2[...] = jnp.zeros(pad2.shape, pad2.dtype)
        pad3[...] = jnp.zeros(pad3.shape, pad3.dtype)

        def conv_pool(read_tap, col_ref, cw_ref, cin, h, w, write_row):
            """3x3 'same' conv (one K=9*cin MXU matmul, lanes = padded H*W)
            fused with the following 2x2 / stride-2 max pooling."""
            wp = w + 2
            L = (h + 2) * wp
            # im2col: each of the 9 taps is a pure lane shift of the
            # flattened padded image, written as a cin-row block.
            for t in range(9):
                ky, kx = divmod(t, 3)
                s = (ky - 1) * wp + (kx - 1)
                col_ref[t * cin:(t + 1) * cin, :] = (
                    read_tap(EXT + s, L).astype(jnp.bfloat16))
            # Conv: a single lane-dense matmul, f32 accumulation.
            conv = jnp.dot(cw_ref[...], col_ref[...],
                           preferred_element_type=f32)           # (cout, L)
            # 2x2 window max at every padded position via lane-shifted maxes.
            mx = jnp.maximum(conv[:, :L - 1], conv[:, 1:])        # x pairs
            my = jnp.maximum(mx[:, :L - 1 - wp], mx[:, wp:])      # y pairs
            # Stride-2 subsample per pooled row via an exact selection matmul.
            sel = _even_select(w, w // 2)
            for y2 in range(h // 2):
                base = (2 * y2 + 1) * wp + 1
                prow = jnp.dot(my[:, base:base + w], sel,
                               preferred_element_type=f32)        # (cout, w//2)
                write_row(y2, prow)

        # ---- stage 1: (C, H, W) -> (C, H/2, W/2), into pad2's interior ----
        def wr_pad2(y2, prow):
            start = EXT + (y2 + 1) * WPB + 1
            pad2[:, start:start + WB] = prow

        conv_pool(lambda off, n: x_ref[0, :, off:off + n],
                  col1, cw1_ref, C, HA, WA, wr_pad2)

        # ---- stage 2: (C, H/2, W/2) -> (2C, H/4, W/4), into pad3 ----
        def wr_pad3(y2, prow):
            start = EXT + (y2 + 1) * WPC + 1
            pad3[:, start:start + WC] = prow

        conv_pool(lambda off, n: pad2[:, off:off + n],
                  col2, cw2_ref, C, HB, WB, wr_pad3)

        # ---- stage 3: (2C, H/4, W/4) -> (4C, H/8, W/8), flat features.
        # (channel, y*WD + x) ordering == nn.Flatten on NCHW. ----
        def wr_feat(y2, prow):
            feat[:, y2 * WD:(y2 + 1) * WD] = prow

        conv_pool(lambda off, n: pad3[:, off:off + n],
                  col3, cw3_ref, 2 * C, HC, WC, wr_feat)

        # ---- head: Linear(4C*HD*WD, 128) -> Sigmoid -> Linear(128, K)
        # -> Softmax.  Dropout(0.5) is identity at inference. ----
        feats = feat[...].astype(jnp.bfloat16)                    # (4C, HD*WD)
        h = jnp.zeros((1, HID), f32)
        for ch in range(C3):
            h = h + jnp.dot(feats[ch:ch + 1, :], fw1_ref[ch],
                            preferred_element_type=f32)
        h = h + fb1_ref[...]
        # Numerically-stable sigmoid (exp on the EUP, no inf intermediates).
        e = jnp.exp(-jnp.abs(h))
        sig = jnp.where(h >= 0.0, 1.0 / (1.0 + e), e / (1.0 + e))
        logits = jnp.dot(sig.astype(jnp.bfloat16), fw2_ref[...],
                         preferred_element_type=f32) + fb2_ref[...]
        m = jnp.max(logits, axis=-1, keepdims=True)
        ex = jnp.exp(logits - m)
        denom = jnp.sum(ex, axis=-1, keepdims=True)
        # Exact reciprocal keeps sum(probs) == 1 to f32 precision.
        o_ref[0] = ex * pl.reciprocal(denom)

    return kernel


@jax.jit
def model_forward(x_nchw, params):
    """Inference forward pass of the PyTorch `Model`."""
    N, C, H, W = x_nchw.shape
    K = params["fc2_w"].shape[0]
    C3 = 4 * C
    S = (H // 8) * (W // 8)
    bf16, f32 = jnp.bfloat16, jnp.float32

    # --- parameter re-layout (tiny, matches PyTorch semantics exactly) ---
    def conv_cols(w):  # (cout, cin, 3, 3) -> (cout, 9*cin), tap-major columns
        cout, cin = w.shape[0], w.shape[1]
        return jnp.transpose(w, (0, 2, 3, 1)).reshape(cout, 9 * cin).astype(bf16)

    cw1 = conv_cols(params["conv1_w"])
    cw2 = conv_cols(params["conv2_w"])
    cw3 = conv_cols(params["conv3_w"])
    # fc1 weight columns are indexed c*S + s (NCHW flatten) -> (4C, S, 128).
    fw1 = params["fc1_w"].T.reshape(C3, S, HID).astype(bf16)
    fb1 = params["fc1_b"].reshape(1, HID).astype(f32)
    fw2 = params["fc2_w"].T.astype(bf16)                     # (128, K)
    fb2 = params["fc2_b"].reshape(1, K).astype(f32)

    # Single cheap XLA prologue: zero-pad spatial by 1, flatten, add EXT-lane
    # zero margins so every in-kernel conv tap is a pure lane shift.
    HP, WP = H + 2, W + 2
    xp = jnp.pad(x_nchw.astype(f32), ((0, 0), (0, 0), (1, 1), (1, 1)))
    xflat = jnp.pad(xp.reshape(N, C, HP * WP), ((0, 0), (0, 0), (EXT, EXT)))

    LA = HP * WP
    LB = (H // 2 + 2) * (W // 2 + 2)
    LC = (H // 4 + 2) * (W // 4 + 2)

    kernel = _make_kernel(C, H, W)
    out = pl.pallas_call(
        kernel,
        out_shape=jax.ShapeDtypeStruct((N, 1, K), f32),
        grid_spec=pltpu.PrefetchScalarGridSpec(
            num_scalar_prefetch=0,
            grid=(N,),
            in_specs=[
                pl.BlockSpec((1, C, xflat.shape[-1]), lambda n: (n, 0, 0)),
                pl.BlockSpec(cw1.shape, lambda n: (0, 0)),
                pl.BlockSpec(cw2.shape, lambda n: (0, 0)),
                pl.BlockSpec(cw3.shape, lambda n: (0, 0)),
                pl.BlockSpec(fw1.shape, lambda n: (0, 0, 0)),
                pl.BlockSpec(fb1.shape, lambda n: (0, 0)),
                pl.BlockSpec(fw2.shape, lambda n: (0, 0)),
                pl.BlockSpec(fb2.shape, lambda n: (0, 0)),
            ],
            out_specs=pl.BlockSpec((1, 1, K), lambda n: (n, 0, 0)),
            scratch_shapes=[
                pltpu.VMEM((9 * C, LA), bf16),            # col1 (im2col, L1)
                pltpu.VMEM((9 * C, LB), bf16),            # col2
                pltpu.VMEM((9 * 2 * C, LC), bf16),        # col3
                pltpu.VMEM((C, 2 * EXT + LB), f32),       # padded act, stage 2
                pltpu.VMEM((2 * C, 2 * EXT + LC), f32),   # padded act, stage 3
                pltpu.VMEM((C3, S), f32),                 # flat features
            ],
        ),
        compiler_params=pltpu.CompilerParams(
            # Batch axis is independent; on v7x megacore it can be split
            # across the two TensorCores.
            dimension_semantics=("parallel",)),
    )(xflat, cw1, cw2, cw3, fw1, fb1, fw2, fb2)
    return out[:, 0, :]


def init_params(key, input_channels, num_classes, spatial=64):
    """Parameters in PyTorch layouts: Conv2d (out,in,3,3); Linear (out,in)."""
    C = input_channels
    F = 4 * C * (spatial // 8) * (spatial // 8)
    ks = jax.random.split(key, 7)

    def w(k_, shape, fan_in):
        return jax.random.normal(k_, shape, jnp.float32) / jnp.sqrt(fan_in)

    return {
        "conv1_w": w(ks[0], (C, C, 3, 3), 9 * C),
        "conv2_w": w(ks[1], (2 * C, C, 3, 3), 9 * C),
        "conv3_w": w(ks[2], (4 * C, 2 * C, 3, 3), 9 * 2 * C),
        "fc1_w": w(ks[3], (HID, F), F),
        "fc1_b": 0.01 * jax.random.normal(ks[4], (HID,), jnp.float32),
        "fc2_w": w(ks[5], (num_classes, HID), HID),
        "fc2_b": 0.01 * jax.random.normal(ks[6], (num_classes,), jnp.float32),
    }


def _reference_forward(x, params):
    """Pure-JAX/XLA reference with the same bf16 rounding points as the kernel."""
    f32, bf16 = jnp.float32, jnp.bfloat16
    r = lambda a: a.astype(bf16).astype(f32)

    def conv(h, w):
        return jax.lax.conv_general_dilated(
            r(h), r(w), window_strides=(1, 1), padding="SAME",
            dimension_numbers=("NCHW", "OIHW", "NCHW"))

    def pool(h):
        n, c, hh, ww = h.shape
        return h.reshape(n, c, hh // 2, 2, ww // 2, 2).max(axis=(3, 5))

    h = pool(conv(x.astype(f32), params["conv1_w"]))
    h = pool(conv(h, params["conv2_w"]))
    h = pool(conv(h, params["conv3_w"]))
    h = h.reshape(h.shape[0], -1)                         # NCHW flatten
    h = r(h) @ r(params["fc1_w"]).T + params["fc1_b"]
    h = jax.nn.sigmoid(h)
    logits = r(h) @ r(params["fc2_w"]).T + params["fc2_b"]
    return jax.nn.softmax(logits, axis=-1)


if __name__ == "__main__":
    input_channels = 4
    num_classes = 2
    # Spatial size is dictated by Linear(4C*4*4*16, 128): (H/8)*(W/8) == 64.
    H = W = 64
    key = jax.random.PRNGKey(0)
    kx, kp = jax.random.split(key)
    x = jax.random.normal(kx, (2, input_channels, H, W), jnp.float32)
    params = init_params(kp, input_channels, num_classes)

    out = jax.block_until_ready(model_forward(x, params))
    ref = jax.block_until_ready(_reference_forward(x, params))

    assert out.shape == (2, num_classes)
    assert bool(jnp.all(jnp.isfinite(out)))
    assert bool(jnp.allclose(jnp.sum(out, axis=1), 1.0, atol=1e-5))
    assert bool(jnp.allclose(out, ref, atol=5e-3)), (out, ref)
    print("KERNEL_OK")
</pallas_src>

<mosaic_0001>
module attributes {stable_mosaic.version = 11 : i64} {
  func.func @kernel(%arg0: i32, %arg1: memref<1x4x4612xf32, #tpu.memory_space<vmem>>, %arg2: memref<4x36xbf16, #tpu.memory_space<vmem>>, %arg3: memref<8x36xbf16, #tpu.memory_space<vmem>>, %arg4: memref<16x72xbf16, #tpu.memory_space<vmem>>, %arg5: memref<16x64x128xbf16, #tpu.memory_space<vmem>>, %arg6: memref<1x128xf32, #tpu.memory_space<vmem>>, %arg7: memref<128x2xbf16, #tpu.memory_space<vmem>>, %arg8: memref<1x2xf32, #tpu.memory_space<vmem>>, %arg9: memref<1x1x2xf32, #tpu.memory_space<vmem>>, %arg10: memref<36x4356xbf16, #tpu.memory_space<vmem>>, %arg11: memref<36x1156xbf16, #tpu.memory_space<vmem>>, %arg12: memref<72x324xbf16, #tpu.memory_space<vmem>>, %arg13: memref<4x1412xf32, #tpu.memory_space<vmem>>, %arg14: memref<8x580xf32, #tpu.memory_space<vmem>>, %arg15: memref<16x64xf32, #tpu.memory_space<vmem>>) attributes {dimension_semantics = [#tpu.dimension_semantics<parallel>], iteration_bounds = array<i64: 2>, scalar_prefetch = 0 : i64, scratch_operands = 6 : i64, tpu.core_type = #tpu.core_type<tc>, window_params = [{transform_indices = @transform_0, window_bounds = array<i64: 1, 4, 4612>}, {pipeline_mode = #tpu.pipeline_mode<synchronous>, transform_indices = @transform_1, window_bounds = array<i64: 4, 36>}, {pipeline_mode = #tpu.pipeline_mode<synchronous>, transform_indices = @transform_2, window_bounds = array<i64: 8, 36>}, {pipeline_mode = #tpu.pipeline_mode<synchronous>, transform_indices = @transform_3, window_bounds = array<i64: 16, 72>}, {pipeline_mode = #tpu.pipeline_mode<synchronous>, transform_indices = @transform_4, window_bounds = array<i64: 16, 64, 128>}, {pipeline_mode = #tpu.pipeline_mode<synchronous>, transform_indices = @transform_5, window_bounds = array<i64: 1, 128>}, {pipeline_mode = #tpu.pipeline_mode<synchronous>, transform_indices = @transform_6, window_bounds = array<i64: 128, 2>}, {pipeline_mode = #tpu.pipeline_mode<synchronous>, transform_indices = @transform_7, window_bounds = array<i64: 1, 2>}, {transform_indices = @transform_8, window_bounds = array<i64: 1, 1, 2>}]} {
    %cst = arith.constant 0.000000e+00 : f32
    %0 = vector.broadcast %cst : f32 to vector<4x1412xf32>
    %c0 = arith.constant 0 : index
    %c0_0 = arith.constant 0 : index
    %1 = vector.load %arg13[%c0, %c0_0] : memref<4x1412xf32, #tpu.memory_space<vmem>>, vector<4x1412xf32>
    tpu.vector_store %arg13[%c0, %c0_0], %0 {strides = array<i32>} : memref<4x1412xf32, #tpu.memory_space<vmem>>, vector<4x1412xf32>,
    %cst_1 = arith.constant 0.000000e+00 : f32
    %2 = vector.broadcast %cst_1 : f32 to vector<8x580xf32>
    %c0_2 = arith.constant 0 : index
    %c0_3 = arith.constant 0 : index
    %3 = vector.load %arg14[%c0_2, %c0_3] : memref<8x580xf32, #tpu.memory_space<vmem>>, vector<8x580xf32>
    tpu.vector_store %arg14[%c0_2, %c0_3], %2 {strides = array<i32>} : memref<8x580xf32, #tpu.memory_space<vmem>>, vector<8x580xf32>,
    %c0_4 = arith.constant 0 : index
    %c0_5 = arith.constant 0 : index
    %c61 = arith.constant 61 : index
    %4 = vector.load %arg1[%c0_4, %c0_5, %c61] : memref<1x4x4612xf32, #tpu.memory_space<vmem>>, vector<1x4x4356xf32>
    %5 = vector.shape_cast %4 : vector<1x4x4356xf32> to vector<4x4356xf32>
    %6 = arith.truncf %5 : vector<4x4356xf32> to vector<4x4356xbf16>
    %c0_6 = arith.constant 0 : index
    %c0_7 = arith.constant 0 : index
    %7 = vector.load %arg10[%c0_6, %c0_7] : memref<36x4356xbf16, #tpu.memory_space<vmem>>, vector<4x4356xbf16>
    tpu.vector_store %arg10[%c0_6, %c0_7], %6 {strides = array<i32>} : memref<36x4356xbf16, #tpu.memory_space<vmem>>, vector<4x4356xbf16>,
    %c0_8 = arith.constant 0 : index
    %c0_9 = arith.constant 0 : index
    %c62 = arith.constant 62 : index
    %8 = vector.load %arg1[%c0_8, %c0_9, %c62] : memref<1x4x4612xf32, #tpu.memory_space<vmem>>, vector<1x4x4356xf32>
    %9 = vector.shape_cast %8 : vector<1x4x4356xf32> to vector<4x4356xf32>
    %10 = arith.truncf %9 : vector<4x4356xf32> to vector<4x4356xbf16>
    %c4 = arith.constant 4 : index
    %c0_10 = arith.constant 0 : index
    %11 = vector.load %arg10[%c4, %c0_10] : memref<36x4356xbf16, #tpu.memory_space<vmem>>, vector<4x4356xbf16>
    tpu.vector_store %arg10[%c4, %c0_10], %10 {strides = array<i32>} : memref<36x4356xbf16, #tpu.memory_space<vmem>>, vector<4x4356xbf16>,
    %c0_11 = arith.constant 0 : index
    %c0_12 = arith.constant 0 : index
    %c63 = arith.constant 63 : index
    %12 = vector.load %arg1[%c0_11, %c0_12, %c63] : memref<1x4x4612xf32, #tpu.memory_space<vmem>>, vector<1x4x4356xf32>
    %13 = vector.shape_cast %12 : vector<1x4x4356xf32> to vector<4x4356xf32>
    %14 = arith.truncf %13 : vector<4x4356xf32> to vector<4x4356xbf16>
    %c8 = arith.constant 8 : index
    %c0_13 = arith.constant 0 : index
    %15 = vector.load %arg10[%c8, %c0_13] : memref<36x4356xbf16, #tpu.memory_space<vmem>>, vector<4x4356xbf16>
    tpu.vector_store %arg10[%c8, %c0_13], %14 {strides = array<i32>} : memref<36x4356xbf16, #tpu.memory_space<vmem>>, vector<4x4356xbf16>,
    %c0_14 = arith.constant 0 : index
    %c0_15 = arith.constant 0 : index
    %c127 = arith.constant 127 : index
    %16 = vector.load %arg1[%c0_14, %c0_15, %c127] : memref<1x4x4612xf32, #tpu.memory_space<vmem>>, vector<1x4x4356xf32>
    %17 = vector.shape_cast %16 : vector<1x4x4356xf32> to vector<4x4356xf32>
    %18 = arith.truncf %17 : vector<4x4356xf32> to vector<4x4356xbf16>
    %c12 = arith.constant 12 : index
    %c0_16 = arith.constant 0 : index
    %19 = vector.load %arg10[%c12, %c0_16] : memref<36x4356xbf16, #tpu.memory_space<vmem>>, vector<4x4356xbf16>
    tpu.vector_store %arg10[%c12, %c0_16], %18 {strides = array<i32>} : memref<36x4356xbf16, #tpu.memory_space<vmem>>, vector<4x4356xbf16>,
    %c0_17 = arith.constant 0 : index
    %c0_18 = arith.constant 0 : index
    %c128 = arith.constant 128 : index
    %20 = vector.load %arg1[%c0_17, %c0_18, %c128] : memref<1x4x4612xf32, #tpu.memory_space<vmem>>, vector<1x4x4356xf32>
    %21 = vector.shape_cast %20 : vector<1x4x4356xf32> to vector<4x4356xf32>
    %22 = arith.truncf %21 : vector<4x4356xf32> to vector<4x4356xbf16>
    %c16 = arith.constant 16 : index
    %c0_19 = arith.constant 0 : index
    %23 = vector.load %arg10[%c16, %c0_19] : memref<36x4356xbf16, #tpu.memory_space<vmem>>, vector<4x4356xbf16>
    tpu.vector_store %arg10[%c16, %c0_19], %22 {strides = array<i32>} : memref<36x4356xbf16, #tpu.memory_space<vmem>>, vector<4x4356xbf16>,
    %c0_20 = arith.constant 0 : index
    %c0_21 = arith.constant 0 : index
    %c129 = arith.constant 129 : index
    %24 = vector.load %arg1[%c0_20, %c0_21, %c129] : memref<1x4x4612xf32, #tpu.memory_space<vmem>>, vector<1x4x4356xf32>
    %25 = vector.shape_cast %24 : vector<1x4x4356xf32> to vector<4x4356xf32>
    %26 = arith.truncf %25 : vector<4x4356xf32> to vector<4x4356xbf16>
    %c20 = arith.constant 20 : index
    %c0_22 = arith.constant 0 : index
    %27 = vector.load %arg10[%c20, %c0_22] : memref<36x4356xbf16, #tpu.memory_space<vmem>>, vector<4x4356xbf16>
    tpu.vector_store %arg10[%c20, %c0_22], %26 {strides = array<i32>} : memref<36x4356xbf16, #tpu.memory_space<vmem>>, vector<4x4356xbf16>,
    %c0_23 = arith.constant 0 : index
    %c0_24 = arith.constant 0 : index
    %c193 = arith.constant 193 : index
    %28 = vector.load %arg1[%c0_23, %c0_24, %c193] : memref<1x4x4612xf32, #tpu.memory_space<vmem>>, vector<1x4x4356xf32>
    %29 = vector.shape_cast %28 : vector<1x4x4356xf32> to vector<4x4356xf32>
    %30 = arith.truncf %29 : vector<4x4356xf32> to vector<4x4356xbf16>
    %c24 = arith.constant 24 : index
    %c0_25 = arith.constant 0 : index
    %31 = vector.load %arg10[%c24, %c0_25] : memref<36x4356xbf16, #tpu.memory_space<vmem>>, vector<4x4356xbf16>
    tpu.vector_store %arg10[%c24, %c0_25], %30 {strides = array<i32>} : memref<36x4356xbf16, #tpu.memory_space<vmem>>, vector<4x4356xbf16>,
    %c0_26 = arith.constant 0 : index
    %c0_27 = arith.constant 0 : index
    %c194 = arith.constant 194 : index
    %32 = vector.load %arg1[%c0_26, %c0_27, %c194] : memref<1x4x4612xf32, #tpu.memory_space<vmem>>, vector<1x4x4356xf32>
    %33 = vector.shape_cast %32 : vector<1x4x4356xf32> to vector<4x4356xf32>
    %34 = arith.truncf %33 : vector<4x4356xf32> to vector<4x4356xbf16>
    %c28 = arith.constant 28 : index
    %c0_28 = arith.constant 0 : index
    %35 = vector.load %arg10[%c28, %c0_28] : memref<36x4356xbf16, #tpu.memory_space<vmem>>, vector<4x4356xbf16>
    tpu.vector_store %arg10[%c28, %c0_28], %34 {strides = array<i32>} : memref<36x4356xbf16, #tpu.memory_space<vmem>>, vector<4x4356xbf16>,
    %c0_29 = arith.constant 0 : index
    %c0_30 = arith.constant 0 : index
    %c195 = arith.constant 195 : index
    %36 = vector.load %arg1[%c0_29, %c0_30, %c195] : memref<1x4x4612xf32, #tpu.memory_space<vmem>>, vector<1x4x4356xf32>
    %37 = vector.shape_cast %36 : vector<1x4x4356xf32> to vector<4x4356xf32>
    %38 = arith.truncf %37 : vector<4x4356xf32> to vector<4x4356xbf16>
    %c32 = arith.constant 32 : index
    %c0_31 = arith.constant 0 : index
    %39 = vector.load %arg10[%c32, %c0_31] : memref<36x4356xbf16, #tpu.memory_space<vmem>>, vector<4x4356xbf16>
    tpu.vector_store %arg10[%c32, %c0_31], %38 {strides = array<i32>} : memref<36x4356xbf16, #tpu.memory_space<vmem>>, vector<4x4356xbf16>,
    %c0_32 = arith.constant 0 : index
    %c0_33 = arith.constant 0 : index
    %40 = vector.load %arg2[%c0_32, %c0_33] : memref<4x36xbf16, #tpu.memory_space<vmem>>, vector<4x36xbf16>
    %c0_34 = arith.constant 0 : index
    %c0_35 = arith.constant 0 : index
    %41 = vector.load %arg10[%c0_34, %c0_35] : memref<36x4356xbf16, #tpu.memory_space<vmem>>, vector<36x4356xbf16>
    %cst_36 = arith.constant dense<0.000000e+00> : vector<4x4356xf32>
    %42 = tpu.matmul %40, %41, %cst_36 {dimension_numbers = #tpu.dot_dimension_numbers<[1], [0], [0], [1], [0, 0, 1, 1], [], []>} : vector<4x36xbf16>, vector<36x4356xbf16>, vector<4x4356xf32> -> vector<4x4356xf32>
    %43 = vector.extract_strided_slice %42 {offsets = [0, 0], sizes = [4, 4355], strides = [1, 1]} : vector<4x4356xf32> to vector<4x4355xf32>
    %44 = vector.extract_strided_slice %42 {offsets = [0, 1], sizes = [4, 4355], strides = [1, 1]} : vector<4x4356xf32> to vector<4x4355xf32>
    %45 = arith.maximumf %43, %44 : vector<4x4355xf32>
    %46 = vector.extract_strided_slice %45 {offsets = [0, 0], sizes = [4, 4289], strides = [1, 1]} : vector<4x4355xf32> to vector<4x4289xf32>
    %47 = vector.extract_strided_slice %45 {offsets = [0, 66], sizes = [4, 4289], strides = [1, 1]} : vector<4x4355xf32> to vector<4x4289xf32>
    %48 = arith.maximumf %46, %47 : vector<4x4289xf32>
    %49 = tpu.iota {dimensions = array<i32: 0>} : vector<64x32xi32>
    %50 = tpu.iota {dimensions = array<i32: 1>} : vector<64x32xi32>
    %c2_i32 = arith.constant 2 : i32
    %51 = vector.broadcast %c2_i32 : i32 to vector<64x32xi32>
    %52 = arith.muli %51, %50 : vector<64x32xi32>
    %53 = arith.cmpi eq, %49, %52 : vector<64x32xi32>
    %54 = arith.extui %53 : vector<64x32xi1> to vector<64x32xi32>
    %55 = arith.sitofp %54 : vector<64x32xi32> to vector<64x32xf32>
    %56 = vector.extract_strided_slice %48 {offsets = [0, 67], sizes = [4, 64], strides = [1, 1]} : vector<4x4289xf32> to vector<4x64xf32>
    %cst_37 = arith.constant dense<0.000000e+00> : vector<4x32xf32>
    %57 = tpu.matmul %56, %55, %cst_37 {dimension_numbers = #tpu.dot_dimension_numbers<[1], [0], [0], [1], [0, 0, 1, 1], [], []>} : vector<4x64xf32>, vector<64x32xf32>, vector<4x32xf32> -> vector<4x32xf32>
    %c0_38 = arith.constant 0 : index
    %c163 = arith.constant 163 : index
    %58 = vector.load %arg13[%c0_38, %c163] : memref<4x1412xf32, #tpu.memory_space<vmem>>, vector<4x32xf32>
    tpu.vector_store %arg13[%c0_38, %c163], %57 {strides = array<i32>} : memref<4x1412xf32, #tpu.memory_space<vmem>>, vector<4x32xf32>,
    %59 = vector.extract_strided_slice %48 {offsets = [0, 199], sizes = [4, 64], strides = [1, 1]} : vector<4x4289xf32> to vector<4x64xf32>
    %cst_39 = arith.constant dense<0.000000e+00> : vector<4x32xf32>
    %60 = tpu.matmul %59, %55, %cst_39 {dimension_numbers = #tpu.dot_dimension_numbers<[1], [0], [0], [1], [0, 0, 1, 1], [], []>} : vector<4x64xf32>, vector<64x32xf32>, vector<4x32xf32> -> vector<4x32xf32>
    %c0_40 = arith.constant 0 : index
    %c197 = arith.constant 197 : index
    %61 = vector.load %arg13[%c0_40, %c197] : memref<4x1412xf32, #tpu.memory_space<vmem>>, vector<4x32xf32>
    tpu.vector_store %arg13[%c0_40, %c197], %60 {strides = array<i32>} : memref<4x1412xf32, #tpu.memory_space<vmem>>, vector<4x32xf32>,
    %62 = vector.extract_strided_slice %48 {offsets = [0, 331], sizes = [4, 64], strides = [1, 1]} : vector<4x4289xf32> to vector<4x64xf32>
    %cst_41 = arith.constant dense<0.000000e+00> : vector<4x32xf32>
    %63 = tpu.matmul %62, %55, %cst_41 {dimension_numbers = #tpu.dot_dimension_numbers<[1], [0], [0], [1], [0, 0, 1, 1], [], []>} : vector<4x64xf32>, vector<64x32xf32>, vector<4x32xf32> -> vector<4x32xf32>
    %c0_42 = arith.constant 0 : index
    %c231 = arith.constant 231 : index
    %64 = vector.load %arg13[%c0_42, %c231] : memref<4x1412xf32, #tpu.memory_space<vmem>>, vector<4x32xf32>
    tpu.vector_store %arg13[%c0_42, %c231], %63 {strides = array<i32>} : memref<4x1412xf32, #tpu.memory_space<vmem>>, vector<4x32xf32>,
    %65 = vector.extract_strided_slice %48 {offsets = [0, 463], sizes = [4, 64], strides = [1, 1]} : vector<4x4289xf32> to vector<4x64xf32>
    %cst_43 = arith.constant dense<0.000000e+00> : vector<4x32xf32>
    %66 = tpu.matmul %65, %55, %cst_43 {dimension_numbers = #tpu.dot_dimension_numbers<[1], [0], [0], [1], [0, 0, 1, 1], [], []>} : vector<4x64xf32>, vector<64x32xf32>, vector<4x32xf32> -> vector<4x32xf32>
    %c0_44 = arith.constant 0 : index
    %c265 = arith.constant 265 : index
    %67 = vector.load %arg13[%c0_44, %c265] : memref<4x1412xf32, #tpu.memory_space<vmem>>, vector<4x32xf32>
    tpu.vector_store %arg13[%c0_44, %c265], %66 {strides = array<i32>} : memref<4x1412xf32, #tpu.memory_space<vmem>>, vector<4x32xf32>,
    %68 = vector.extract_strided_slice %48 {offsets = [0, 595], sizes = [4, 64], strides = [1, 1]} : vector<4x4289xf32> to vector<4x64xf32>
    %cst_45 = arith.constant dense<0.000000e+00> : vector<4x32xf32>
    %69 = tpu.matmul %68, %55, %cst_45 {dimension_numbers = #tpu.dot_dimension_numbers<[1], [0], [0], [1], [0, 0, 1, 1], [], []>} : vector<4x64xf32>, vector<64x32xf32>, vector<4x32xf32> -> vector<4x32xf32>
    %c0_46 = arith.constant 0 : index
    %c299 = arith.constant 299 : index
    %70 = vector.load %arg13[%c0_46, %c299] : memref<4x1412xf32, #tpu.memory_space<vmem>>, vector<4x32xf32>
    tpu.vector_store %arg13[%c0_46, %c299], %69 {strides = array<i32>} : memref<4x1412xf32, #tpu.memory_space<vmem>>, vector<4x32xf32>,
    %71 = vector.extract_strided_slice %48 {offsets = [0, 727], sizes = [4, 64], strides = [1, 1]} : vector<4x4289xf32> to vector<4x64xf32>
    %cst_47 = arith.constant dense<0.000000e+00> : vector<4x32xf32>
    %72 = tpu.matmul %71, %55, %cst_47 {dimension_numbers = #tpu.dot_dimension_numbers<[1], [0], [0], [1], [0, 0, 1, 1], [], []>} : vector<4x64xf32>, vector<64x32xf32>, vector<4x32xf32> -> vector<4x32xf32>
    %c0_48 = arith.constant 0 : index
    %c333 = arith.constant 333 : index
    %73 = vector.load %arg13[%c0_48, %c333] : memref<4x1412xf32, #tpu.memory_space<vmem>>, vector<4x32xf32>
    tpu.vector_store %arg13[%c0_48, %c333], %72 {strides = array<i32>} : memref<4x1412xf32, #tpu.memory_space<vmem>>, vector<4x32xf32>,
    %74 = vector.extract_strided_slice %48 {offsets = [0, 859], sizes = [4, 64], strides = [1, 1]} : vector<4x4289xf32> to vector<4x64xf32>
    %cst_49 = arith.constant dense<0.000000e+00> : vector<4x32xf32>
    %75 = tpu.matmul %74, %55, %cst_49 {dimension_numbers = #tpu.dot_dimension_numbers<[1], [0], [0], [1], [0, 0, 1, 1], [], []>} : vector<4x64xf32>, vector<64x32xf32>, vector<4x32xf32> -> vector<4x32xf32>
    %c0_50 = arith.constant 0 : index
    %c367 = arith.constant 367 : index
    %76 = vector.load %arg13[%c0_50, %c367] : memref<4x1412xf32, #tpu.memory_space<vmem>>, vector<4x32xf32>
    tpu.vector_store %arg13[%c0_50, %c367], %75 {strides = array<i32>} : memref<4x1412xf32, #tpu.memory_space<vmem>>, vector<4x32xf32>,
    %77 = vector.extract_strided_slice %48 {offsets = [0, 991], sizes = [4, 64], strides = [1, 1]} : vector<4x4289xf32> to vector<4x64xf32>
    %cst_51 = arith.constant dense<0.000000e+00> : vector<4x32xf32>
    %78 = tpu.matmul %77, %55, %cst_51 {dimension_numbers = #tpu.dot_dimension_numbers<[1], [0], [0], [1], [0, 0, 1, 1], [], []>} : vector<4x64xf32>, vector<64x32xf32>, vector<4x32xf32> -> vector<4x32xf32>
    %c0_52 = arith.constant 0 : index
    %c401 = arith.constant 401 : index
    %79 = vector.load %arg13[%c0_52, %c401] : memref<4x1412xf32, #tpu.memory_space<vmem>>, vector<4x32xf32>
    tpu.vector_store %arg13[%c0_52, %c401], %78 {strides = array<i32>} : memref<4x1412xf32, #tpu.memory_space<vmem>>, vector<4x32xf32>,
    %80 = vector.extract_strided_slice %48 {offsets = [0, 1123], sizes = [4, 64], strides = [1, 1]} : vector<4x4289xf32> to vector<4x64xf32>
    %cst_53 = arith.constant dense<0.000000e+00> : vector<4x32xf32>
    %81 = tpu.matmul %80, %55, %cst_53 {dimension_numbers = #tpu.dot_dimension_numbers<[1], [0], [0], [1], [0, 0, 1, 1], [], []>} : vector<4x64xf32>, vector<64x32xf32>, vector<4x32xf32> -> vector<4x32xf32>
    %c0_54 = arith.constant 0 : index
    %c435 = arith.constant 435 : index
    %82 = vector.load %arg13[%c0_54, %c435] : memref<4x1412xf32, #tpu.memory_space<vmem>>, vector<4x32xf32>
    tpu.vector_store %arg13[%c0_54, %c435], %81 {strides = array<i32>} : memref<4x1412xf32, #tpu.memory_space<vmem>>, vector<4x32xf32>,
    %83 = vector.extract_strided_slice %48 {offsets = [0, 1255], sizes = [4, 64], strides = [1, 1]} : vector<4x4289xf32> to vector<4x64xf32>
    %cst_55 = arith.constant dense<0.000000e+00> : vector<4x32xf32>
    %84 = tpu.matmul %83, %55, %cst_55 {dimension_numbers = #tpu.dot_dimension_numbers<[1], [0], [0], [1], [0, 0, 1, 1], [], []>} : vector<4x64xf32>, vector<64x32xf32>, vector<4x32xf32> -> vector<4x32xf32>
    %c0_56 = arith.constant 0 : index
    %c469 = arith.constant 469 : index
    %85 = vector.load %arg13[%c0_56, %c469] : memref<4x1412xf32, #tpu.memory_space<vmem>>, vector<4x32xf32>
    tpu.vector_store %arg13[%c0_56, %c469], %84 {strides = array<i32>} : memref<4x1412xf32, #tpu.memory_space<vmem>>, vector<4x32xf32>,
    %86 = vector.extract_strided_slice %48 {offsets = [0, 1387], sizes = [4, 64], strides = [1, 1]} : vector<4x4289xf32> to vector<4x64xf32>
    %cst_57 = arith.constant dense<0.000000e+00> : vector<4x32xf32>
    %87 = tpu.matmul %86, %55, %cst_57 {dimension_numbers = #tpu.dot_dimension_numbers<[1], [0], [0], [1], [0, 0, 1, 1], [], []>} : vector<4x64xf32>, vector<64x32xf32>, vector<4x32xf32> -> vector<4x32xf32>
    %c0_58 = arith.constant 0 : index
    %c503 = arith.constant 503 : index
    %88 = vector.load %arg13[%c0_58, %c503] : memref<4x1412xf32, #tpu.memory_space<vmem>>, vector<4x32xf32>
    tpu.vector_store %arg13[%c0_58, %c503], %87 {strides = array<i32>} : memref<4x1412xf32, #tpu.memory_space<vmem>>, vector<4x32xf32>,
    %89 = vector.extract_strided_slice %48 {offsets = [0, 1519], sizes = [4, 64], strides = [1, 1]} : vector<4x4289xf32> to vector<4x64xf32>
    %cst_59 = arith.constant dense<0.000000e+00> : vector<4x32xf32>
    %90 = tpu.matmul %89, %55, %cst_59 {dimension_numbers = #tpu.dot_dimension_numbers<[1], [0], [0], [1], [0, 0, 1, 1], [], []>} : vector<4x64xf32>, vector<64x32xf32>, vector<4x32xf32> -> vector<4x32xf32>
    %c0_60 = arith.constant 0 : index
    %c537 = arith.constant 537 : index
    %91 = vector.load %arg13[%c0_60, %c537] : memref<4x1412xf32, #tpu.memory_space<vmem>>, vector<4x32xf32>
    tpu.vector_store %arg13[%c0_60, %c537], %90 {strides = array<i32>} : memref<4x1412xf32, #tpu.memory_space<vmem>>, vector<4x32xf32>,
    %92 = vector.extract_strided_slice %48 {offsets = [0, 1651], sizes = [4, 64], strides = [1, 1]} : vector<4x4289xf32> to vector<4x64xf32>
    %cst_61 = arith.constant dense<0.000000e+00> : vector<4x32xf32>
    %93 = tpu.matmul %92, %55, %cst_61 {dimension_numbers = #tpu.dot_dimension_numbers<[1], [0], [0], [1], [0, 0, 1, 1], [], []>} : vector<4x64xf32>, vector<64x32xf32>, vector<4x32xf32> -> vector<4x32xf32>
    %c0_62 = arith.constant 0 : index
    %c571 = arith.constant 571 : index
    %94 = vector.load %arg13[%c0_62, %c571] : memref<4x1412xf32, #tpu.memory_space<vmem>>, vector<4x32xf32>
    tpu.vector_store %arg13[%c0_62, %c571], %93 {strides = array<i32>} : memref<4x1412xf32, #tpu.memory_space<vmem>>, vector<4x32xf32>,
    %95 = vector.extract_strided_slice %48 {offsets = [0, 1783], sizes = [4, 64], strides = [1, 1]} : vector<4x4289xf32> to vector<4x64xf32>
    %cst_63 = arith.constant dense<0.000000e+00> : vector<4x32xf32>
    %96 = tpu.matmul %95, %55, %cst_63 {dimension_numbers = #tpu.dot_dimension_numbers<[1], [0], [0], [1], [0, 0, 1, 1], [], []>} : vector<4x64xf32>, vector<64x32xf32>, vector<4x32xf32> -> vector<4x32xf32>
    %c0_64 = arith.constant 0 : index
    %c605 = arith.constant 605 : index
    %97 = vector.load %arg13[%c0_64, %c605] : memref<4x1412xf32, #tpu.memory_space<vmem>>, vector<4x32xf32>
    tpu.vector_store %arg13[%c0_64, %c605], %96 {strides = array<i32>} : memref<4x1412xf32, #tpu.memory_space<vmem>>, vector<4x32xf32>,
    %98 = vector.extract_strided_slice %48 {offsets = [0, 1915], sizes = [4, 64], strides = [1, 1]} : vector<4x4289xf32> to vector<4x64xf32>
    %cst_65 = arith.constant dense<0.000000e+00> : vector<4x32xf32>
    %99 = tpu.matmul %98, %55, %cst_65 {dimension_numbers = #tpu.dot_dimension_numbers<[1], [0], [0], [1], [0, 0, 1, 1], [], []>} : vector<4x64xf32>, vector<64x32xf32>, vector<4x32xf32> -> vector<4x32xf32>
    %c0_66 = arith.constant 0 : index
    %c639 = arith.constant 639 : index
    %100 = vector.load %arg13[%c0_66, %c639] : memref<4x1412xf32, #tpu.memory_space<vmem>>, vector<4x32xf32>
    tpu.vector_store %arg13[%c0_66, %c639], %99 {strides = array<i32>} : memref<4x1412xf32, #tpu.memory_space<vmem>>, vector<4x32xf32>,
    %101 = vector.extract_strided_slice %48 {offsets = [0, 2047], sizes = [4, 64], strides = [1, 1]} : vector<4x4289xf32> to vector<4x64xf32>
    %cst_67 = arith.constant dense<0.000000e+00> : vector<4x32xf32>
    %102 = tpu.matmul %101, %55, %cst_67 {dimension_numbers = #tpu.dot_dimension_numbers<[1], [0], [0], [1], [0, 0, 1, 1], [], []>} : vector<4x64xf32>, vector<64x32xf32>, vector<4x32xf32> -> vector<4x32xf32>
    %c0_68 = arith.constant 0 : index
    %c673 = arith.constant 673 : index
    %103 = vector.load %arg13[%c0_68, %c673] : memref<4x1412xf32, #tpu.memory_space<vmem>>, vector<4x32xf32>
    tpu.vector_store %arg13[%c0_68, %c673], %102 {strides = array<i32>} : memref<4x1412xf32, #tpu.memory_space<vmem>>, vector<4x32xf32>,
    %104 = vector.extract_strided_slice %48 {offsets = [0, 2179], sizes = [4, 64], strides = [1, 1]} : vector<4x4289xf32> to vector<4x64xf32>
    %cst_69 = arith.constant dense<0.000000e+00> : vector<4x32xf32>
    %105 = tpu.matmul %104, %55, %cst_69 {dimension_numbers = #tpu.dot_dimension_numbers<[1], [0], [0], [1], [0, 0, 1, 1], [], []>} : vector<4x64xf32>, vector<64x32xf32>, vector<4x32xf32> -> vector<4x32xf32>
    %c0_70 = arith.constant 0 : index
    %c707 = arith.constant 707 : index
    %106 = vector.load %arg13[%c0_70, %c707] : memref<4x1412xf32, #tpu.memory_space<vmem>>, vector<4x32xf32>
    tpu.vector_store %arg13[%c0_70, %c707], %105 {strides = array<i32>} : memref<4x1412xf32, #tpu.memory_space<vmem>>, vector<4x32xf32>,
    %107 = vector.extract_strided_slice %48 {offsets = [0, 2311], sizes = [4, 64], strides = [1, 1]} : vector<4x4289xf32> to vector<4x64xf32>
    %cst_71 = arith.constant dense<0.000000e+00> : vector<4x32xf32>
    %108 = tpu.matmul %107, %55, %cst_71 {dimension_numbers = #tpu.dot_dimension_numbers<[1], [0], [0], [1], [0, 0, 1, 1], [], []>} : vector<4x64xf32>, vector<64x32xf32>, vector<4x32xf32> -> vector<4x32xf32>
    %c0_72 = arith.constant 0 : index
    %c741 = arith.constant 741 : index
    %109 = vector.load %arg13[%c0_72, %c741] : memref<4x1412xf32, #tpu.memory_space<vmem>>, vector<4x32xf32>
    tpu.vector_store %arg13[%c0_72, %c741], %108 {strides = array<i32>} : memref<4x1412xf32, #tpu.memory_space<vmem>>, vector<4x32xf32>,
    %110 = vector.extract_strided_slice %48 {offsets = [0, 2443], sizes = [4, 64], strides = [1, 1]} : vector<4x4289xf32> to vector<4x64xf32>
    %cst_73 = arith.constant dense<0.000000e+00> : vector<4x32xf32>
    %111 = tpu.matmul %110, %55, %cst_73 {dimension_numbers = #tpu.dot_dimension_numbers<[1], [0], [0], [1], [0, 0, 1, 1], [], []>} : vector<4x64xf32>, vector<64x32xf32>, vector<4x32xf32> -> vector<4x32xf32>
    %c0_74 = arith.constant 0 : index
    %c775 = arith.constant 775 : index
    %112 = vector.load %arg13[%c0_74, %c775] : memref<4x1412xf32, #tpu.memory_space<vmem>>, vector<4x32xf32>
    tpu.vector_store %arg13[%c0_74, %c775], %111 {strides = array<i32>} : memref<4x1412xf32, #tpu.memory_space<vmem>>, vector<4x32xf32>,
    %113 = vector.extract_strided_slice %48 {offsets = [0, 2575], sizes = [4, 64], strides = [1, 1]} : vector<4x4289xf32> to vector<4x64xf32>
    %cst_75 = arith.constant dense<0.000000e+00> : vector<4x32xf32>
    %114 = tpu.matmul %113, %55, %cst_75 {dimension_numbers = #tpu.dot_dimension_numbers<[1], [0], [0], [1], [0, 0, 1, 1], [], []>} : vector<4x64xf32>, vector<64x32xf32>, vector<4x32xf32> -> vector<4x32xf32>
    %c0_76 = arith.constant 0 : index
    %c809 = arith.constant 809 : index
    %115 = vector.load %arg13[%c0_76, %c809] : memref<4x1412xf32, #tpu.memory_space<vmem>>, vector<4x32xf32>
    tpu.vector_store %arg13[%c0_76, %c809], %114 {strides = array<i32>} : memref<4x1412xf32, #tpu.memory_space<vmem>>, vector<4x32xf32>,
    %116 = vector.extract_strided_slice %48 {offsets = [0, 2707], sizes = [4, 64], strides = [1, 1]} : vector<4x4289xf32> to vector<4x64xf32>
    %cst_77 = arith.constant dense<0.000000e+00> : vector<4x32xf32>
    %117 = tpu.matmul %116, %55, %cst_77 {dimension_numbers = #tpu.dot_dimension_numbers<[1], [0], [0], [1], [0, 0, 1, 1], [], []>} : vector<4x64xf32>, vector<64x32xf32>, vector<4x32xf32> -> vector<4x32xf32>
    %c0_78 = arith.constant 0 : index
    %c843 = arith.constant 843 : index
    %118 = vector.load %arg13[%c0_78, %c843] : memref<4x1412xf32, #tpu.memory_space<vmem>>, vector<4x32xf32>
    tpu.vector_store %arg13[%c0_78, %c843], %117 {strides = array<i32>} : memref<4x1412xf32, #tpu.memory_space<vmem>>, vector<4x32xf32>,
    %119 = vector.extract_strided_slice %48 {offsets = [0, 2839], sizes = [4, 64], strides = [1, 1]} : vector<4x4289xf32> to vector<4x64xf32>
    %cst_79 = arith.constant dense<0.000000e+00> : vector<4x32xf32>
    %120 = tpu.matmul %119, %55, %cst_79 {dimension_numbers = #tpu.dot_dimension_numbers<[1], [0], [0], [1], [0, 0, 1, 1], [], []>} : vector<4x64xf32>, vector<64x32xf32>, vector<4x32xf32> -> vector<4x32xf32>
    %c0_80 = arith.constant 0 : index
    %c877 = arith.constant 877 : index
    %121 = vector.load %arg13[%c0_80, %c877] : memref<4x1412xf32, #tpu.memory_space<vmem>>, vector<4x32xf32>
    tpu.vector_store %arg13[%c0_80, %c877], %120 {strides = array<i32>} : memref<4x1412xf32, #tpu.memory_space<vmem>>, vector<4x32xf32>,
    %122 = vector.extract_strided_slice %48 {offsets = [0, 2971], sizes = [4, 64], strides = [1, 1]} : vector<4x4289xf32> to vector<4x64xf32>
    %cst_81 = arith.constant dense<0.000000e+00> : vector<4x32xf32>
    %123 = tpu.matmul %122, %55, %cst_81 {dimension_numbers = #tpu.dot_dimension_numbers<[1], [0], [0], [1], [0, 0, 1, 1], [], []>} : vector<4x64xf32>, vector<64x32xf32>, vector<4x32xf32> -> vector<4x32xf32>
    %c0_82 = arith.constant 0 : index
    %c911 = arith.constant 911 : index
    %124 = vector.load %arg13[%c0_82, %c911] : memref<4x1412xf32, #tpu.memory_space<vmem>>, vector<4x32xf32>
    tpu.vector_store %arg13[%c0_82, %c911], %123 {strides = array<i32>} : memref<4x1412xf32, #tpu.memory_space<vmem>>, vector<4x32xf32>,
    %125 = vector.extract_strided_slice %48 {offsets = [0, 3103], sizes = [4, 64], strides = [1, 1]} : vector<4x4289xf32> to vector<4x64xf32>
    %cst_83 = arith.constant dense<0.000000e+00> : vector<4x32xf32>
    %126 = tpu.matmul %125, %55, %cst_83 {dimension_numbers = #tpu.dot_dimension_numbers<[1], [0], [0], [1], [0, 0, 1, 1], [], []>} : vector<4x64xf32>, vector<64x32xf32>, vector<4x32xf32> -> vector<4x32xf32>
    %c0_84 = arith.constant 0 : index
    %c945 = arith.constant 945 : index
    %127 = vector.load %arg13[%c0_84, %c945] : memref<4x1412xf32, #tpu.memory_space<vmem>>, vector<4x32xf32>
    tpu.vector_store %arg13[%c0_84, %c945], %126 {strides = array<i32>} : memref<4x1412xf32, #tpu.memory_space<vmem>>, vector<4x32xf32>,
    %128 = vector.extract_strided_slice %48 {offsets = [0, 3235], sizes = [4, 64], strides = [1, 1]} : vector<4x4289xf32> to vector<4x64xf32>
    %cst_85 = arith.constant dense<0.000000e+00> : vector<4x32xf32>
    %129 = tpu.matmul %128, %55, %cst_85 {dimension_numbers = #tpu.dot_dimension_numbers<[1], [0], [0], [1], [0, 0, 1, 1], [], []>} : vector<4x64xf32>, vector<64x32xf32>, vector<4x32xf32> -> vector<4x32xf32>
    %c0_86 = arith.constant 0 : index
    %c979 = arith.constant 979 : index
    %130 = vector.load %arg13[%c0_86, %c979] : memref<4x1412xf32, #tpu.memory_space<vmem>>, vector<4x32xf32>
    tpu.vector_store %arg13[%c0_86, %c979], %129 {strides = array<i32>} : memref<4x1412xf32, #tpu.memory_space<vmem>>, vector<4x32xf32>,
    %131 = vector.extract_strided_slice %48 {offsets = [0, 3367], sizes = [4, 64], strides = [1, 1]} : vector<4x4289xf32> to vector<4x64xf32>
    %cst_87 = arith.constant dense<0.000000e+00> : vector<4x32xf32>
    %132 = tpu.matmul %131, %55, %cst_87 {dimension_numbers = #tpu.dot_dimension_numbers<[1], [0], [0], [1], [0, 0, 1, 1], [], []>} : vector<4x64xf32>, vector<64x32xf32>, vector<4x32xf32> -> vector<4x32xf32>
    %c0_88 = arith.constant 0 : index
    %c1013 = arith.constant 1013 : index
    %133 = vector.load %arg13[%c0_88, %c1013] : memref<4x1412xf32, #tpu.memory_space<vmem>>, vector<4x32xf32>
    tpu.vector_store %arg13[%c0_88, %c1013], %132 {strides = array<i32>} : memref<4x1412xf32, #tpu.memory_space<vmem>>, vector<4x32xf32>,
    %134 = vector.extract_strided_slice %48 {offsets = [0, 3499], sizes = [4, 64], strides = [1, 1]} : vector<4x4289xf32> to vector<4x64xf32>
    %cst_89 = arith.constant dense<0.000000e+00> : vector<4x32xf32>
    %135 = tpu.matmul %134, %55, %cst_89 {dimension_numbers = #tpu.dot_dimension_numbers<[1], [0], [0], [1], [0, 0, 1, 1], [], []>} : vector<4x64xf32>, vector<64x32xf32>, vector<4x32xf32> -> vector<4x32xf32>
    %c0_90 = arith.constant 0 : index
    %c1047 = arith.constant 1047 : index
    %136 = vector.load %arg13[%c0_90, %c1047] : memref<4x1412xf32, #tpu.memory_space<vmem>>, vector<4x32xf32>
    tpu.vector_store %arg13[%c0_90, %c1047], %135 {strides = array<i32>} : memref<4x1412xf32, #tpu.memory_space<vmem>>, vector<4x32xf32>,
    %137 = vector.extract_strided_slice %48 {offsets = [0, 3631], sizes = [4, 64], strides = [1, 1]} : vector<4x4289xf32> to vector<4x64xf32>
    %cst_91 = arith.constant dense<0.000000e+00> : vector<4x32xf32>
    %138 = tpu.matmul %137, %55, %cst_91 {dimension_numbers = #tpu.dot_dimension_numbers<[1], [0], [0], [1], [0, 0, 1, 1], [], []>} : vector<4x64xf32>, vector<64x32xf32>, vector<4x32xf32> -> vector<4x32xf32>
    %c0_92 = arith.constant 0 : index
    %c1081 = arith.constant 1081 : index
    %139 = vector.load %arg13[%c0_92, %c1081] : memref<4x1412xf32, #tpu.memory_space<vmem>>, vector<4x32xf32>
    tpu.vector_store %arg13[%c0_92, %c1081], %138 {strides = array<i32>} : memref<4x1412xf32, #tpu.memory_space<vmem>>, vector<4x32xf32>,
    %140 = vector.extract_strided_slice %48 {offsets = [0, 3763], sizes = [4, 64], strides = [1, 1]} : vector<4x4289xf32> to vector<4x64xf32>
    %cst_93 = arith.constant dense<0.000000e+00> : vector<4x32xf32>
    %141 = tpu.matmul %140, %55, %cst_93 {dimension_numbers = #tpu.dot_dimension_numbers<[1], [0], [0], [1], [0, 0, 1, 1], [], []>} : vector<4x64xf32>, vector<64x32xf32>, vector<4x32xf32> -> vector<4x32xf32>
    %c0_94 = arith.constant 0 : index
    %c1115 = arith.constant 1115 : index
    %142 = vector.load %arg13[%c0_94, %c1115] : memref<4x1412xf32, #tpu.memory_space<vmem>>, vector<4x32xf32>
    tpu.vector_store %arg13[%c0_94, %c1115], %141 {strides = array<i32>} : memref<4x1412xf32, #tpu.memory_space<vmem>>, vector<4x32xf32>,
    %143 = vector.extract_strided_slice %48 {offsets = [0, 3895], sizes = [4, 64], strides = [1, 1]} : vector<4x4289xf32> to vector<4x64xf32>
    %cst_95 = arith.constant dense<0.000000e+00> : vector<4x32xf32>
    %144 = tpu.matmul %143, %55, %cst_95 {dimension_numbers = #tpu.dot_dimension_numbers<[1], [0], [0], [1], [0, 0, 1, 1], [], []>} : vector<4x64xf32>, vector<64x32xf32>, vector<4x32xf32> -> vector<4x32xf32>
    %c0_96 = arith.constant 0 : index
    %c1149 = arith.constant 1149 : index
    %145 = vector.load %arg13[%c0_96, %c1149] : memref<4x1412xf32, #tpu.memory_space<vmem>>, vector<4x32xf32>
    tpu.vector_store %arg13[%c0_96, %c1149], %144 {strides = array<i32>} : memref<4x1412xf32, #tpu.memory_space<vmem>>, vector<4x32xf32>,
    %146 = vector.extract_strided_slice %48 {offsets = [0, 4027], sizes = [4, 64], strides = [1, 1]} : vector<4x4289xf32> to vector<4x64xf32>
    %cst_97 = arith.constant dense<0.000000e+00> : vector<4x32xf32>
    %147 = tpu.matmul %146, %55, %cst_97 {dimension_numbers = #tpu.dot_dimension_numbers<[1], [0], [0], [1], [0, 0, 1, 1], [], []>} : vector<4x64xf32>, vector<64x32xf32>, vector<4x32xf32> -> vector<4x32xf32>
    %c0_98 = arith.constant 0 : index
    %c1183 = arith.constant 1183 : index
    %148 = vector.load %arg13[%c0_98, %c1183] : memref<4x1412xf32, #tpu.memory_space<vmem>>, vector<4x32xf32>
    tpu.vector_store %arg13[%c0_98, %c1183], %147 {strides = array<i32>} : memref<4x1412xf32, #tpu.memory_space<vmem>>, vector<4x32xf32>,
    %149 = vector.extract_strided_slice %48 {offsets = [0, 4159], sizes = [4, 64], strides = [1, 1]} : vector<4x4289xf32> to vector<4x64xf32>
    %cst_99 = arith.constant dense<0.000000e+00> : vector<4x32xf32>
    %150 = tpu.matmul %149, %55, %cst_99 {dimension_numbers = #tpu.dot_dimension_numbers<[1], [0], [0], [1], [0, 0, 1, 1], [], []>} : vector<4x64xf32>, vector<64x32xf32>, vector<4x32xf32> -> vector<4x32xf32>
    %c0_100 = arith.constant 0 : index
    %c1217 = arith.constant 1217 : index
    %151 = vector.load %arg13[%c0_100, %c1217] : memref<4x1412xf32, #tpu.memory_space<vmem>>, vector<4x32xf32>
    tpu.vector_store %arg13[%c0_100, %c1217], %150 {strides = array<i32>} : memref<4x1412xf32, #tpu.memory_space<vmem>>, vector<4x32xf32>,
    %c0_101 = arith.constant 0 : index
    %c93 = arith.constant 93 : index
    %152 = vector.load %arg13[%c0_101, %c93] : memref<4x1412xf32, #tpu.memory_space<vmem>>, vector<4x1156xf32>
    %153 = arith.truncf %152 : vector<4x1156xf32> to vector<4x1156xbf16>
    %c0_102 = arith.constant 0 : index
    %c0_103 = arith.constant 0 : index
    %154 = vector.load %arg11[%c0_102, %c0_103] : memref<36x1156xbf16, #tpu.memory_space<vmem>>, vector<4x1156xbf16>
    tpu.vector_store %arg11[%c0_102, %c0_103], %153 {strides = array<i32>} : memref<36x1156xbf16, #tpu.memory_space<vmem>>, vector<4x1156xbf16>,
    %c0_104 = arith.constant 0 : index
    %c94 = arith.constant 94 : index
    %155 = vector.load %arg13[%c0_104, %c94] : memref<4x1412xf32, #tpu.memory_space<vmem>>, vector<4x1156xf32>
    %156 = arith.truncf %155 : vector<4x1156xf32> to vector<4x1156xbf16>
    %c4_105 = arith.constant 4 : index
    %c0_106 = arith.constant 0 : index
    %157 = vector.load %arg11[%c4_105, %c0_106] : memref<36x1156xbf16, #tpu.memory_space<vmem>>, vector<4x1156xbf16>
    tpu.vector_store %arg11[%c4_105, %c0_106], %156 {strides = array<i32>} : memref<36x1156xbf16, #tpu.memory_space<vmem>>, vector<4x1156xbf16>,
    %c0_107 = arith.constant 0 : index
    %c95 = arith.constant 95 : index
    %158 = vector.load %arg13[%c0_107, %c95] : memref<4x1412xf32, #tpu.memory_space<vmem>>, vector<4x1156xf32>
    %159 = arith.truncf %158 : vector<4x1156xf32> to vector<4x1156xbf16>
    %c8_108 = arith.constant 8 : index
    %c0_109 = arith.constant 0 : index
    %160 = vector.load %arg11[%c8_108, %c0_109] : memref<36x1156xbf16, #tpu.memory_space<vmem>>, vector<4x1156xbf16>
    tpu.vector_store %arg11[%c8_108, %c0_109], %159 {strides = array<i32>} : memref<36x1156xbf16, #tpu.memory_space<vmem>>, vector<4x1156xbf16>,
    %c0_110 = arith.constant 0 : index
    %c127_111 = arith.constant 127 : index
    %161 = vector.load %arg13[%c0_110, %c127_111] : memref<4x1412xf32, #tpu.memory_space<vmem>>, vector<4x1156xf32>
    %162 = arith.truncf %161 : vector<4x1156xf32> to vector<4x1156xbf16>
    %c12_112 = arith.constant 12 : index
    %c0_113 = arith.constant 0 : index
    %163 = vector.load %arg11[%c12_112, %c0_113] : memref<36x1156xbf16, #tpu.memory_space<vmem>>, vector<4x1156xbf16>
    tpu.vector_store %arg11[%c12_112, %c0_113], %162 {strides = array<i32>} : memref<36x1156xbf16, #tpu.memory_space<vmem>>, vector<4x1156xbf16>,
    %c0_114 = arith.constant 0 : index
    %c128_115 = arith.constant 128 : index
    %164 = vector.load %arg13[%c0_114, %c128_115] : memref<4x1412xf32, #tpu.memory_space<vmem>>, vector<4x1156xf32>
    %165 = arith.truncf %164 : vector<4x1156xf32> to vector<4x1156xbf16>
    %c16_116 = arith.constant 16 : index
    %c0_117 = arith.constant 0 : index
    %166 = vector.load %arg11[%c16_116, %c0_117] : memref<36x1156xbf16, #tpu.memory_space<vmem>>, vector<4x1156xbf16>
    tpu.vector_store %arg11[%c16_116, %c0_117], %165 {strides = array<i32>} : memref<36x1156xbf16, #tpu.memory_space<vmem>>, vector<4x1156xbf16>,
    %c0_118 = arith.constant 0 : index
    %c129_119 = arith.constant 129 : index
    %167 = vector.load %arg13[%c0_118, %c129_119] : memref<4x1412xf32, #tpu.memory_space<vmem>>, vector<4x1156xf32>
    %168 = arith.truncf %167 : vector<4x1156xf32> to vector<4x1156xbf16>
    %c20_120 = arith.constant 20 : index
    %c0_121 = arith.constant 0 : index
    %169 = vector.load %arg11[%c20_120, %c0_121] : memref<36x1156xbf16, #tpu.memory_space<vmem>>, vector<4x1156xbf16>
    tpu.vector_store %arg11[%c20_120, %c0_121], %168 {strides = array<i32>} : memref<36x1156xbf16, #tpu.memory_space<vmem>>, vector<4x1156xbf16>,
    %c0_122 = arith.constant 0 : index
    %c161 = arith.constant 161 : index
    %170 = vector.load %arg13[%c0_122, %c161] : memref<4x1412xf32, #tpu.memory_space<vmem>>, vector<4x1156xf32>
    %171 = arith.truncf %170 : vector<4x1156xf32> to vector<4x1156xbf16>
    %c24_123 = arith.constant 24 : index
    %c0_124 = arith.constant 0 : index
    %172 = vector.load %arg11[%c24_123, %c0_124] : memref<36x1156xbf16, #tpu.memory_space<vmem>>, vector<4x1156xbf16>
    tpu.vector_store %arg11[%c24_123, %c0_124], %171 {strides = array<i32>} : memref<36x1156xbf16, #tpu.memory_space<vmem>>, vector<4x1156xbf16>,
    %c0_125 = arith.constant 0 : index
    %c162 = arith.constant 162 : index
    %173 = vector.load %arg13[%c0_125, %c162] : memref<4x1412xf32, #tpu.memory_space<vmem>>, vector<4x1156xf32>
    %174 = arith.truncf %173 : vector<4x1156xf32> to vector<4x1156xbf16>
    %c28_126 = arith.constant 28 : index
    %c0_127 = arith.constant 0 : index
    %175 = vector.load %arg11[%c28_126, %c0_127] : memref<36x1156xbf16, #tpu.memory_space<vmem>>, vector<4x1156xbf16>
    tpu.vector_store %arg11[%c28_126, %c0_127], %174 {strides = array<i32>} : memref<36x1156xbf16, #tpu.memory_space<vmem>>, vector<4x1156xbf16>,
    %c0_128 = arith.constant 0 : index
    %c163_129 = arith.constant 163 : index
    %176 = vector.load %arg13[%c0_128, %c163_129] : memref<4x1412xf32, #tpu.memory_space<vmem>>, vector<4x1156xf32>
    %177 = arith.truncf %176 : vector<4x1156xf32> to vector<4x1156xbf16>
    %c32_130 = arith.constant 32 : index
    %c0_131 = arith.constant 0 : index
    %178 = vector.load %arg11[%c32_130, %c0_131] : memref<36x1156xbf16, #tpu.memory_space<vmem>>, vector<4x1156xbf16>
    tpu.vector_store %arg11[%c32_130, %c0_131], %177 {strides = array<i32>} : memref<36x1156xbf16, #tpu.memory_space<vmem>>, vector<4x1156xbf16>,
    %c0_132 = arith.constant 0 : index
    %c0_133 = arith.constant 0 : index
    %179 = vector.load %arg3[%c0_132, %c0_133] : memref<8x36xbf16, #tpu.memory_space<vmem>>, vector<8x36xbf16>
    %c0_134 = arith.constant 0 : index
    %c0_135 = arith.constant 0 : index
    %180 = vector.load %arg11[%c0_134, %c0_135] : memref<36x1156xbf16, #tpu.memory_space<vmem>>, vector<36x1156xbf16>
    %cst_136 = arith.constant dense<0.000000e+00> : vector<8x1156xf32>
    %181 = tpu.matmul %179, %180, %cst_136 {dimension_numbers = #tpu.dot_dimension_numbers<[1], [0], [0], [1], [0, 0, 1, 1], [], []>} : vector<8x36xbf16>, vector<36x1156xbf16>, vector<8x1156xf32> -> vector<8x1156xf32>
    %182 = vector.extract_strided_slice %181 {offsets = [0, 0], sizes = [8, 1155], strides = [1, 1]} : vector<8x1156xf32> to vector<8x1155xf32>
    %183 = vector.extract_strided_slice %181 {offsets = [0, 1], sizes = [8, 1155], strides = [1, 1]} : vector<8x1156xf32> to vector<8x1155xf32>
    %184 = arith.maximumf %182, %183 : vector<8x1155xf32>
    %185 = vector.extract_strided_slice %184 {offsets = [0, 0], sizes = [8, 1121], strides = [1, 1]} : vector<8x1155xf32> to vector<8x1121xf32>
    %186 = vector.extract_strided_slice %184 {offsets = [0, 34], sizes = [8, 1121], strides = [1, 1]} : vector<8x1155xf32> to vector<8x1121xf32>
    %187 = arith.maximumf %185, %186 : vector<8x1121xf32>
    %188 = tpu.iota {dimensions = array<i32: 0>} : vector<32x16xi32>
    %189 = tpu.iota {dimensions = array<i32: 1>} : vector<32x16xi32>
    %c2_i32_137 = arith.constant 2 : i32
    %190 = vector.broadcast %c2_i32_137 : i32 to vector<32x16xi32>
    %191 = arith.muli %190, %189 : vector<32x16xi32>
    %192 = arith.cmpi eq, %188, %191 : vector<32x16xi32>
    %193 = arith.extui %192 : vector<32x16xi1> to vector<32x16xi32>
    %194 = arith.sitofp %193 : vector<32x16xi32> to vector<32x16xf32>
    %195 = vector.extract_strided_slice %187 {offsets = [0, 35], sizes = [8, 32], strides = [1, 1]} : vector<8x1121xf32> to vector<8x32xf32>
    %cst_138 = arith.constant dense<0.000000e+00> : vector<8x16xf32>
    %196 = tpu.matmul %195, %194, %cst_138 {dimension_numbers = #tpu.dot_dimension_numbers<[1], [0], [0], [1], [0, 0, 1, 1], [], []>} : vector<8x32xf32>, vector<32x16xf32>, vector<8x16xf32> -> vector<8x16xf32>
    %c0_139 = arith.constant 0 : index
    %c147 = arith.constant 147 : index
    %197 = vector.load %arg14[%c0_139, %c147] : memref<8x580xf32, #tpu.memory_space<vmem>>, vector<8x16xf32>
    tpu.vector_store %arg14[%c0_139, %c147], %196 {strides = array<i32>} : memref<8x580xf32, #tpu.memory_space<vmem>>, vector<8x16xf32>,
    %198 = vector.extract_strided_slice %187 {offsets = [0, 103], sizes = [8, 32], strides = [1, 1]} : vector<8x1121xf32> to vector<8x32xf32>
    %cst_140 = arith.constant dense<0.000000e+00> : vector<8x16xf32>
    %199 = tpu.matmul %198, %194, %cst_140 {dimension_numbers = #tpu.dot_dimension_numbers<[1], [0], [0], [1], [0, 0, 1, 1], [], []>} : vector<8x32xf32>, vector<32x16xf32>, vector<8x16xf32> -> vector<8x16xf32>
    %c0_141 = arith.constant 0 : index
    %c165 = arith.constant 165 : index
    %200 = vector.load %arg14[%c0_141, %c165] : memref<8x580xf32, #tpu.memory_space<vmem>>, vector<8x16xf32>
    tpu.vector_store %arg14[%c0_141, %c165], %199 {strides = array<i32>} : memref<8x580xf32, #tpu.memory_space<vmem>>, vector<8x16xf32>,
    %201 = vector.extract_strided_slice %187 {offsets = [0, 171], sizes = [8, 32], strides = [1, 1]} : vector<8x1121xf32> to vector<8x32xf32>
    %cst_142 = arith.constant dense<0.000000e+00> : vector<8x16xf32>
    %202 = tpu.matmul %201, %194, %cst_142 {dimension_numbers = #tpu.dot_dimension_numbers<[1], [0], [0], [1], [0, 0, 1, 1], [], []>} : vector<8x32xf32>, vector<32x16xf32>, vector<8x16xf32> -> vector<8x16xf32>
    %c0_143 = arith.constant 0 : index
    %c183 = arith.constant 183 : index
    %203 = vector.load %arg14[%c0_143, %c183] : memref<8x580xf32, #tpu.memory_space<vmem>>, vector<8x16xf32>
    tpu.vector_store %arg14[%c0_143, %c183], %202 {strides = array<i32>} : memref<8x580xf32, #tpu.memory_space<vmem>>, vector<8x16xf32>,
    %204 = vector.extract_strided_slice %187 {offsets = [0, 239], sizes = [8, 32], strides = [1, 1]} : vector<8x1121xf32> to vector<8x32xf32>
    %cst_144 = arith.constant dense<0.000000e+00> : vector<8x16xf32>
    %205 = tpu.matmul %204, %194, %cst_144 {dimension_numbers = #tpu.dot_dimension_numbers<[1], [0], [0], [1], [0, 0, 1, 1], [], []>} : vector<8x32xf32>, vector<32x16xf32>, vector<8x16xf32> -> vector<8x16xf32>
    %c0_145 = arith.constant 0 : index
    %c201 = arith.constant 201 : index
    %206 = vector.load %arg14[%c0_145, %c201] : memref<8x580xf32, #tpu.memory_space<vmem>>, vector<8x16xf32>
    tpu.vector_store %arg14[%c0_145, %c201], %205 {strides = array<i32>} : memref<8x580xf32, #tpu.memory_space<vmem>>, vector<8x16xf32>,
    %207 = vector.extract_strided_slice %187 {offsets = [0, 307], sizes = [8, 32], strides = [1, 1]} : vector<8x1121xf32> to vector<8x32xf32>
    %cst_146 = arith.constant dense<0.000000e+00> : vector<8x16xf32>
    %208 = tpu.matmul %207, %194, %cst_146 {dimension_numbers = #tpu.dot_dimension_numbers<[1], [0], [0], [1], [0, 0, 1, 1], [], []>} : vector<8x32xf32>, vector<32x16xf32>, vector<8x16xf32> -> vector<8x16xf32>
    %c0_147 = arith.constant 0 : index
    %c219 = arith.constant 219 : index
    %209 = vector.load %arg14[%c0_147, %c219] : memref<8x580xf32, #tpu.memory_space<vmem>>, vector<8x16xf32>
    tpu.vector_store %arg14[%c0_147, %c219], %208 {strides = array<i32>} : memref<8x580xf32, #tpu.memory_space<vmem>>, vector<8x16xf32>,
    %210 = vector.extract_strided_slice %187 {offsets = [0, 375], sizes = [8, 32], strides = [1, 1]} : vector<8x1121xf32> to vector<8x32xf32>
    %cst_148 = arith.constant dense<0.000000e+00> : vector<8x16xf32>
    %211 = tpu.matmul %210, %194, %cst_148 {dimension_numbers = #tpu.dot_dimension_numbers<[1], [0], [0], [1], [0, 0, 1, 1], [], []>} : vector<8x32xf32>, vector<32x16xf32>, vector<8x16xf32> -> vector<8x16xf32>
    %c0_149 = arith.constant 0 : index
    %c237 = arith.constant 237 : index
    %212 = vector.load %arg14[%c0_149, %c237] : memref<8x580xf32, #tpu.memory_space<vmem>>, vector<8x16xf32>
    tpu.vector_store %arg14[%c0_149, %c237], %211 {strides = array<i32>} : memref<8x580xf32, #tpu.memory_space<vmem>>, vector<8x16xf32>,
    %213 = vector.extract_strided_slice %187 {offsets = [0, 443], sizes = [8, 32], strides = [1, 1]} : vector<8x1121xf32> to vector<8x32xf32>
    %cst_150 = arith.constant dense<0.000000e+00> : vector<8x16xf32>
    %214 = tpu.matmul %213, %194, %cst_150 {dimension_numbers = #tpu.dot_dimension_numbers<[1], [0], [0], [1], [0, 0, 1, 1], [], []>} : vector<8x32xf32>, vector<32x16xf32>, vector<8x16xf32> -> vector<8x16xf32>
    %c0_151 = arith.constant 0 : index
    %c255 = arith.constant 255 : index
    %215 = vector.load %arg14[%c0_151, %c255] : memref<8x580xf32, #tpu.memory_space<vmem>>, vector<8x16xf32>
    tpu.vector_store %arg14[%c0_151, %c255], %214 {strides = array<i32>} : memref<8x580xf32, #tpu.memory_space<vmem>>, vector<8x16xf32>,
    %216 = vector.extract_strided_slice %187 {offsets = [0, 511], sizes = [8, 32], strides = [1, 1]} : vector<8x1121xf32> to vector<8x32xf32>
    %cst_152 = arith.constant dense<0.000000e+00> : vector<8x16xf32>
    %217 = tpu.matmul %216, %194, %cst_152 {dimension_numbers = #tpu.dot_dimension_numbers<[1], [0], [0], [1], [0, 0, 1, 1], [], []>} : vector<8x32xf32>, vector<32x16xf32>, vector<8x16xf32> -> vector<8x16xf32>
    %c0_153 = arith.constant 0 : index
    %c273 = arith.constant 273 : index
    %218 = vector.load %arg14[%c0_153, %c273] : memref<8x580xf32, #tpu.memory_space<vmem>>, vector<8x16xf32>
    tpu.vector_store %arg14[%c0_153, %c273], %217 {strides = array<i32>} : memref<8x580xf32, #tpu.memory_space<vmem>>, vector<8x16xf32>,
    %219 = vector.extract_strided_slice %187 {offsets = [0, 579], sizes = [8, 32], strides = [1, 1]} : vector<8x1121xf32> to vector<8x32xf32>
    %cst_154 = arith.constant dense<0.000000e+00> : vector<8x16xf32>
    %220 = tpu.matmul %219, %194, %cst_154 {dimension_numbers = #tpu.dot_dimension_numbers<[1], [0], [0], [1], [0, 0, 1, 1], [], []>} : vector<8x32xf32>, vector<32x16xf32>, vector<8x16xf32> -> vector<8x16xf32>
    %c0_155 = arith.constant 0 : index
    %c291 = arith.constant 291 : index
    %221 = vector.load %arg14[%c0_155, %c291] : memref<8x580xf32, #tpu.memory_space<vmem>>, vector<8x16xf32>
    tpu.vector_store %arg14[%c0_155, %c291], %220 {strides = array<i32>} : memref<8x580xf32, #tpu.memory_space<vmem>>, vector<8x16xf32>,
    %222 = vector.extract_strided_slice %187 {offsets = [0, 647], sizes = [8, 32], strides = [1, 1]} : vector<8x1121xf32> to vector<8x32xf32>
    %cst_156 = arith.constant dense<0.000000e+00> : vector<8x16xf32>
    %223 = tpu.matmul %222, %194, %cst_156 {dimension_numbers = #tpu.dot_dimension_numbers<[1], [0], [0], [1], [0, 0, 1, 1], [], []>} : vector<8x32xf32>, vector<32x16xf32>, vector<8x16xf32> -> vector<8x16xf32>
    %c0_157 = arith.constant 0 : index
    %c309 = arith.constant 309 : index
    %224 = vector.load %arg14[%c0_157, %c309] : memref<8x580xf32, #tpu.memory_space<vmem>>, vector<8x16xf32>
    tpu.vector_store %arg14[%c0_157, %c309], %223 {strides = array<i32>} : memref<8x580xf32, #tpu.memory_space<vmem>>, vector<8x16xf32>,
    %225 = vector.extract_strided_slice %187 {offsets = [0, 715], sizes = [8, 32], strides = [1, 1]} : vector<8x1121xf32> to vector<8x32xf32>
    %cst_158 = arith.constant dense<0.000000e+00> : vector<8x16xf32>
    %226 = tpu.matmul %225, %194, %cst_158 {dimension_numbers = #tpu.dot_dimension_numbers<[1], [0], [0], [1], [0, 0, 1, 1], [], []>} : vector<8x32xf32>, vector<32x16xf32>, vector<8x16xf32> -> vector<8x16xf32>
    %c0_159 = arith.constant 0 : index
    %c327 = arith.constant 327 : index
    %227 = vector.load %arg14[%c0_159, %c327] : memref<8x580xf32, #tpu.memory_space<vmem>>, vector<8x16xf32>
    tpu.vector_store %arg14[%c0_159, %c327], %226 {strides = array<i32>} : memref<8x580xf32, #tpu.memory_space<vmem>>, vector<8x16xf32>,
    %228 = vector.extract_strided_slice %187 {offsets = [0, 783], sizes = [8, 32], strides = [1, 1]} : vector<8x1121xf32> to vector<8x32xf32>
    %cst_160 = arith.constant dense<0.000000e+00> : vector<8x16xf32>
    %229 = tpu.matmul %228, %194, %cst_160 {dimension_numbers = #tpu.dot_dimension_numbers<[1], [0], [0], [1], [0, 0, 1, 1], [], []>} : vector<8x32xf32>, vector<32x16xf32>, vector<8x16xf32> -> vector<8x16xf32>
    %c0_161 = arith.constant 0 : index
    %c345 = arith.constant 345 : index
    %230 = vector.load %arg14[%c0_161, %c345] : memref<8x580xf32, #tpu.memory_space<vmem>>, vector<8x16xf32>
    tpu.vector_store %arg14[%c0_161, %c345], %229 {strides = array<i32>} : memref<8x580xf32, #tpu.memory_space<vmem>>, vector<8x16xf32>,
    %231 = vector.extract_strided_slice %187 {offsets = [0, 851], sizes = [8, 32], strides = [1, 1]} : vector<8x1121xf32> to vector<8x32xf32>
    %cst_162 = arith.constant dense<0.000000e+00> : vector<8x16xf32>
    %232 = tpu.matmul %231, %194, %cst_162 {dimension_numbers = #tpu.dot_dimension_numbers<[1], [0], [0], [1], [0, 0, 1, 1], [], []>} : vector<8x32xf32>, vector<32x16xf32>, vector<8x16xf32> -> vector<8x16xf32>
    %c0_163 = arith.constant 0 : index
    %c363 = arith.constant 363 : index
    %233 = vector.load %arg14[%c0_163, %c363] : memref<8x580xf32, #tpu.memory_space<vmem>>, vector<8x16xf32>
    tpu.vector_store %arg14[%c0_163, %c363], %232 {strides = array<i32>} : memref<8x580xf32, #tpu.memory_space<vmem>>, vector<8x16xf32>,
    %234 = vector.extract_strided_slice %187 {offsets = [0, 919], sizes = [8, 32], strides = [1, 1]} : vector<8x1121xf32> to vector<8x32xf32>
    %cst_164 = arith.constant dense<0.000000e+00> : vector<8x16xf32>
    %235 = tpu.matmul %234, %194, %cst_164 {dimension_numbers = #tpu.dot_dimension_numbers<[1], [0], [0], [1], [0, 0, 1, 1], [], []>} : vector<8x32xf32>, vector<32x16xf32>, vector<8x16xf32> -> vector<8x16xf32>
    %c0_165 = arith.constant 0 : index
    %c381 = arith.constant 381 : index
    %236 = vector.load %arg14[%c0_165, %c381] : memref<8x580xf32, #tpu.memory_space<vmem>>, vector<8x16xf32>
    tpu.vector_store %arg14[%c0_165, %c381], %235 {strides = array<i32>} : memref<8x580xf32, #tpu.memory_space<vmem>>, vector<8x16xf32>,
    %237 = vector.extract_strided_slice %187 {offsets = [0, 987], sizes = [8, 32], strides = [1, 1]} : vector<8x1121xf32> to vector<8x32xf32>
    %cst_166 = arith.constant dense<0.000000e+00> : vector<8x16xf32>
    %238 = tpu.matmul %237, %194, %cst_166 {dimension_numbers = #tpu.dot_dimension_numbers<[1], [0], [0], [1], [0, 0, 1, 1], [], []>} : vector<8x32xf32>, vector<32x16xf32>, vector<8x16xf32> -> vector<8x16xf32>
    %c0_167 = arith.constant 0 : index
    %c399 = arith.constant 399 : index
    %239 = vector.load %arg14[%c0_167, %c399] : memref<8x580xf32, #tpu.memory_space<vmem>>, vector<8x16xf32>
    tpu.vector_store %arg14[%c0_167, %c399], %238 {strides = array<i32>} : memref<8x580xf32, #tpu.memory_space<vmem>>, vector<8x16xf32>,
    %240 = vector.extract_strided_slice %187 {offsets = [0, 1055], sizes = [8, 32], strides = [1, 1]} : vector<8x1121xf32> to vector<8x32xf32>
    %cst_168 = arith.constant dense<0.000000e+00> : vector<8x16xf32>
    %241 = tpu.matmul %240, %194, %cst_168 {dimension_numbers = #tpu.dot_dimension_numbers<[1], [0], [0], [1], [0, 0, 1, 1], [], []>} : vector<8x32xf32>, vector<32x16xf32>, vector<8x16xf32> -> vector<8x16xf32>
    %c0_169 = arith.constant 0 : index
    %c417 = arith.constant 417 : index
    %242 = vector.load %arg14[%c0_169, %c417] : memref<8x580xf32, #tpu.memory_space<vmem>>, vector<8x16xf32>
    tpu.vector_store %arg14[%c0_169, %c417], %241 {strides = array<i32>} : memref<8x580xf32, #tpu.memory_space<vmem>>, vector<8x16xf32>,
    %c0_170 = arith.constant 0 : index
    %c109 = arith.constant 109 : index
    %243 = vector.load %arg14[%c0_170, %c109] : memref<8x580xf32, #tpu.memory_space<vmem>>, vector<8x324xf32>
    %244 = arith.truncf %243 : vector<8x324xf32> to vector<8x324xbf16>
    %c0_171 = arith.constant 0 : index
    %c0_172 = arith.constant 0 : index
    %245 = vector.load %arg12[%c0_171, %c0_172] : memref<72x324xbf16, #tpu.memory_space<vmem>>, vector<8x324xbf16>
    tpu.vector_store %arg12[%c0_171, %c0_172], %244 {strides = array<i32>} : memref<72x324xbf16, #tpu.memory_space<vmem>>, vector<8x324xbf16>,
    %c0_173 = arith.constant 0 : index
    %c110 = arith.constant 110 : index
    %246 = vector.load %arg14[%c0_173, %c110] : memref<8x580xf32, #tpu.memory_space<vmem>>, vector<8x324xf32>
    %247 = arith.truncf %246 : vector<8x324xf32> to vector<8x324xbf16>
    %c8_174 = arith.constant 8 : index
    %c0_175 = arith.constant 0 : index
    %248 = vector.load %arg12[%c8_174, %c0_175] : memref<72x324xbf16, #tpu.memory_space<vmem>>, vector<8x324xbf16>
    tpu.vector_store %arg12[%c8_174, %c0_175], %247 {strides = array<i32>} : memref<72x324xbf16, #tpu.memory_space<vmem>>, vector<8x324xbf16>,
    %c0_176 = arith.constant 0 : index
    %c111 = arith.constant 111 : index
    %249 = vector.load %arg14[%c0_176, %c111] : memref<8x580xf32, #tpu.memory_space<vmem>>, vector<8x324xf32>
    %250 = arith.truncf %249 : vector<8x324xf32> to vector<8x324xbf16>
    %c16_177 = arith.constant 16 : index
    %c0_178 = arith.constant 0 : index
    %251 = vector.load %arg12[%c16_177, %c0_178] : memref<72x324xbf16, #tpu.memory_space<vmem>>, vector<8x324xbf16>
    tpu.vector_store %arg12[%c16_177, %c0_178], %250 {strides = array<i32>} : memref<72x324xbf16, #tpu.memory_space<vmem>>, vector<8x324xbf16>,
    %c0_179 = arith.constant 0 : index
    %c127_180 = arith.constant 127 : index
    %252 = vector.load %arg14[%c0_179, %c127_180] : memref<8x580xf32, #tpu.memory_space<vmem>>, vector<8x324xf32>
    %253 = arith.truncf %252 : vector<8x324xf32> to vector<8x324xbf16>
    %c24_181 = arith.constant 24 : index
    %c0_182 = arith.constant 0 : index
    %254 = vector.load %arg12[%c24_181, %c0_182] : memref<72x324xbf16, #tpu.memory_space<vmem>>, vector<8x324xbf16>
    tpu.vector_store %arg12[%c24_181, %c0_182], %253 {strides = array<i32>} : memref<72x324xbf16, #tpu.memory_space<vmem>>, vector<8x324xbf16>,
    %c0_183 = arith.constant 0 : index
    %c128_184 = arith.constant 128 : index
    %255 = vector.load %arg14[%c0_183, %c128_184] : memref<8x580xf32, #tpu.memory_space<vmem>>, vector<8x324xf32>
    %256 = arith.truncf %255 : vector<8x324xf32> to vector<8x324xbf16>
    %c32_185 = arith.constant 32 : index
    %c0_186 = arith.constant 0 : index
    %257 = vector.load %arg12[%c32_185, %c0_186] : memref<72x324xbf16, #tpu.memory_space<vmem>>, vector<8x324xbf16>
    tpu.vector_store %arg12[%c32_185, %c0_186], %256 {strides = array<i32>} : memref<72x324xbf16, #tpu.memory_space<vmem>>, vector<8x324xbf16>,
    %c0_187 = arith.constant 0 : index
    %c129_188 = arith.constant 129 : index
    %258 = vector.load %arg14[%c0_187, %c129_188] : memref<8x580xf32, #tpu.memory_space<vmem>>, vector<8x324xf32>
    %259 = arith.truncf %258 : vector<8x324xf32> to vector<8x324xbf16>
    %c40 = arith.constant 40 : index
    %c0_189 = arith.constant 0 : index
    %260 = vector.load %arg12[%c40, %c0_189] : memref<72x324xbf16, #tpu.memory_space<vmem>>, vector<8x324xbf16>
    tpu.vector_store %arg12[%c40, %c0_189], %259 {strides = array<i32>} : memref<72x324xbf16, #tpu.memory_space<vmem>>, vector<8x324xbf16>,
    %c0_190 = arith.constant 0 : index
    %c145 = arith.constant 145 : index
    %261 = vector.load %arg14[%c0_190, %c145] : memref<8x580xf32, #tpu.memory_space<vmem>>, vector<8x324xf32>
    %262 = arith.truncf %261 : vector<8x324xf32> to vector<8x324xbf16>
    %c48 = arith.constant 48 : index
    %c0_191 = arith.constant 0 : index
    %263 = vector.load %arg12[%c48, %c0_191] : memref<72x324xbf16, #tpu.memory_space<vmem>>, vector<8x324xbf16>
    tpu.vector_store %arg12[%c48, %c0_191], %262 {strides = array<i32>} : memref<72x324xbf16, #tpu.memory_space<vmem>>, vector<8x324xbf16>,
    %c0_192 = arith.constant 0 : index
    %c146 = arith.constant 146 : index
    %264 = vector.load %arg14[%c0_192, %c146] : memref<8x580xf32, #tpu.memory_space<vmem>>, vector<8x324xf32>
    %265 = arith.truncf %264 : vector<8x324xf32> to vector<8x324xbf16>
    %c56 = arith.constant 56 : index
    %c0_193 = arith.constant 0 : index
    %266 = vector.load %arg12[%c56, %c0_193] : memref<72x324xbf16, #tpu.memory_space<vmem>>, vector<8x324xbf16>
    tpu.vector_store %arg12[%c56, %c0_193], %265 {strides = array<i32>} : memref<72x324xbf16, #tpu.memory_space<vmem>>, vector<8x324xbf16>,
    %c0_194 = arith.constant 0 : index
    %c147_195 = arith.constant 147 : index
    %267 = vector.load %arg14[%c0_194, %c147_195] : memref<8x580xf32, #tpu.memory_space<vmem>>, vector<8x324xf32>
    %268 = arith.truncf %267 : vector<8x324xf32> to vector<8x324xbf16>
    %c64 = arith.constant 64 : index
    %c0_196 = arith.constant 0 : index
    %269 = vector.load %arg12[%c64, %c0_196] : memref<72x324xbf16, #tpu.memory_space<vmem>>, vector<8x324xbf16>
    tpu.vector_store %arg12[%c64, %c0_196], %268 {strides = array<i32>} : memref<72x324xbf16, #tpu.memory_space<vmem>>, vector<8x324xbf16>,
    %c0_197 = arith.constant 0 : index
    %c0_198 = arith.constant 0 : index
    %270 = vector.load %arg4[%c0_197, %c0_198] : memref<16x72xbf16, #tpu.memory_space<vmem>>, vector<16x72xbf16>
    %c0_199 = arith.constant 0 : index
    %c0_200 = arith.constant 0 : index
    %271 = vector.load %arg12[%c0_199, %c0_200] : memref<72x324xbf16, #tpu.memory_space<vmem>>, vector<72x324xbf16>
    %cst_201 = arith.constant dense<0.000000e+00> : vector<16x324xf32>
    %272 = tpu.matmul %270, %271, %cst_201 {dimension_numbers = #tpu.dot_dimension_numbers<[1], [0], [0], [1], [0, 0, 1, 1], [], []>} : vector<16x72xbf16>, vector<72x324xbf16>, vector<16x324xf32> -> vector<16x324xf32>
    %273 = vector.extract_strided_slice %272 {offsets = [0, 0], sizes = [16, 323], strides = [1, 1]} : vector<16x324xf32> to vector<16x323xf32>
    %274 = vector.extract_strided_slice %272 {offsets = [0, 1], sizes = [16, 323], strides = [1, 1]} : vector<16x324xf32> to vector<16x323xf32>
    %275 = arith.maximumf %273, %274 : vector<16x323xf32>
    %276 = vector.extract_strided_slice %275 {offsets = [0, 0], sizes = [16, 305], strides = [1, 1]} : vector<16x323xf32> to vector<16x305xf32>
    %277 = vector.extract_strided_slice %275 {offsets = [0, 18], sizes = [16, 305], strides = [1, 1]} : vector<16x323xf32> to vector<16x305xf32>
    %278 = arith.maximumf %276, %277 : vector<16x305xf32>
    %279 = tpu.iota {dimensions = array<i32: 0>} : vector<16x8xi32>
    %280 = tpu.iota {dimensions = array<i32: 1>} : vector<16x8xi32>
    %c2_i32_202 = arith.constant 2 : i32
    %281 = vector.broadcast %c2_i32_202 : i32 to vector<16x8xi32>
    %282 = arith.muli %281, %280 : vector<16x8xi32>
    %283 = arith.cmpi eq, %279, %282 : vector<16x8xi32>
    %284 = arith.extui %283 : vector<16x8xi1> to vector<16x8xi32>
    %285 = arith.sitofp %284 : vector<16x8xi32> to vector<16x8xf32>
    %286 = vector.extract_strided_slice %278 {offsets = [0, 19], sizes = [16, 16], strides = [1, 1]} : vector<16x305xf32> to vector<16x16xf32>
    %cst_203 = arith.constant dense<0.000000e+00> : vector<16x8xf32>
    %287 = tpu.matmul %286, %285, %cst_203 {dimension_numbers = #tpu.dot_dimension_numbers<[1], [0], [0], [1], [0, 0, 1, 1], [], []>} : vector<16x16xf32>, vector<16x8xf32>, vector<16x8xf32> -> vector<16x8xf32>
    %c0_204 = arith.constant 0 : index
    %c0_205 = arith.constant 0 : index
    %288 = vector.load %arg15[%c0_204, %c0_205] : memref<16x64xf32, #tpu.memory_space<vmem>>, vector<16x8xf32>
    tpu.vector_store %arg15[%c0_204, %c0_205], %287 {strides = array<i32>} : memref<16x64xf32, #tpu.memory_space<vmem>>, vector<16x8xf32>,
    %289 = vector.extract_strided_slice %278 {offsets = [0, 55], sizes = [16, 16], strides = [1, 1]} : vector<16x305xf32> to vector<16x16xf32>
    %cst_206 = arith.constant dense<0.000000e+00> : vector<16x8xf32>
    %290 = tpu.matmul %289, %285, %cst_206 {dimension_numbers = #tpu.dot_dimension_numbers<[1], [0], [0], [1], [0, 0, 1, 1], [], []>} : vector<16x16xf32>, vector<16x8xf32>, vector<16x8xf32> -> vector<16x8xf32>
    %c0_207 = arith.constant 0 : index
    %c8_208 = arith.constant 8 : index
    %291 = vector.load %arg15[%c0_207, %c8_208] : memref<16x64xf32, #tpu.memory_space<vmem>>, vector<16x8xf32>
    tpu.vector_store %arg15[%c0_207, %c8_208], %290 {strides = array<i32>} : memref<16x64xf32, #tpu.memory_space<vmem>>, vector<16x8xf32>,
    %292 = vector.extract_strided_slice %278 {offsets = [0, 91], sizes = [16, 16], strides = [1, 1]} : vector<16x305xf32> to vector<16x16xf32>
    %cst_209 = arith.constant dense<0.000000e+00> : vector<16x8xf32>
    %293 = tpu.matmul %292, %285, %cst_209 {dimension_numbers = #tpu.dot_dimension_numbers<[1], [0], [0], [1], [0, 0, 1, 1], [], []>} : vector<16x16xf32>, vector<16x8xf32>, vector<16x8xf32> -> vector<16x8xf32>
    %c0_210 = arith.constant 0 : index
    %c16_211 = arith.constant 16 : index
    %294 = vector.load %arg15[%c0_210, %c16_211] : memref<16x64xf32, #tpu.memory_space<vmem>>, vector<16x8xf32>
    tpu.vector_store %arg15[%c0_210, %c16_211], %293 {strides = array<i32>} : memref<16x64xf32, #tpu.memory_space<vmem>>, vector<16x8xf32>,
    %295 = vector.extract_strided_slice %278 {offsets = [0, 127], sizes = [16, 16], strides = [1, 1]} : vector<16x305xf32> to vector<16x16xf32>
    %cst_212 = arith.constant dense<0.000000e+00> : vector<16x8xf32>
    %296 = tpu.matmul %295, %285, %cst_212 {dimension_numbers = #tpu.dot_dimension_numbers<[1], [0], [0], [1], [0, 0, 1, 1], [], []>} : vector<16x16xf32>, vector<16x8xf32>, vector<16x8xf32> -> vector<16x8xf32>
    %c0_213 = arith.constant 0 : index
    %c24_214 = arith.constant 24 : index
    %297 = vector.load %arg15[%c0_213, %c24_214] : memref<16x64xf32, #tpu.memory_space<vmem>>, vector<16x8xf32>
    tpu.vector_store %arg15[%c0_213, %c24_214], %296 {strides = array<i32>} : memref<16x64xf32, #tpu.memory_space<vmem>>, vector<16x8xf32>,
    %298 = vector.extract_strided_slice %278 {offsets = [0, 163], sizes = [16, 16], strides = [1, 1]} : vector<16x305xf32> to vector<16x16xf32>
    %cst_215 = arith.constant dense<0.000000e+00> : vector<16x8xf32>
    %299 = tpu.matmul %298, %285, %cst_215 {dimension_numbers = #tpu.dot_dimension_numbers<[1], [0], [0], [1], [0, 0, 1, 1], [], []>} : vector<16x16xf32>, vector<16x8xf32>, vector<16x8xf32> -> vector<16x8xf32>
    %c0_216 = arith.constant 0 : index
    %c32_217 = arith.constant 32 : index
    %300 = vector.load %arg15[%c0_216, %c32_217] : memref<16x64xf32, #tpu.memory_space<vmem>>, vector<16x8xf32>
    tpu.vector_store %arg15[%c0_216, %c32_217], %299 {strides = array<i32>} : memref<16x64xf32, #tpu.memory_space<vmem>>, vector<16x8xf32>,
    %301 = vector.extract_strided_slice %278 {offsets = [0, 199], sizes = [16, 16], strides = [1, 1]} : vector<16x305xf32> to vector<16x16xf32>
    %cst_218 = arith.constant dense<0.000000e+00> : vector<16x8xf32>
    %302 = tpu.matmul %301, %285, %cst_218 {dimension_numbers = #tpu.dot_dimension_numbers<[1], [0], [0], [1], [0, 0, 1, 1], [], []>} : vector<16x16xf32>, vector<16x8xf32>, vector<16x8xf32> -> vector<16x8xf32>
    %c0_219 = arith.constant 0 : index
    %c40_220 = arith.constant 40 : index
    %303 = vector.load %arg15[%c0_219, %c40_220] : memref<16x64xf32, #tpu.memory_space<vmem>>, vector<16x8xf32>
    tpu.vector_store %arg15[%c0_219, %c40_220], %302 {strides = array<i32>} : memref<16x64xf32, #tpu.memory_space<vmem>>, vector<16x8xf32>,
    %304 = vector.extract_strided_slice %278 {offsets = [0, 235], sizes = [16, 16], strides = [1, 1]} : vector<16x305xf32> to vector<16x16xf32>
    %cst_221 = arith.constant dense<0.000000e+00> : vector<16x8xf32>
    %305 = tpu.matmul %304, %285, %cst_221 {dimension_numbers = #tpu.dot_dimension_numbers<[1], [0], [0], [1], [0, 0, 1, 1], [], []>} : vector<16x16xf32>, vector<16x8xf32>, vector<16x8xf32> -> vector<16x8xf32>
    %c0_222 = arith.constant 0 : index
    %c48_223 = arith.constant 48 : index
    %306 = vector.load %arg15[%c0_222, %c48_223] : memref<16x64xf32, #tpu.memory_space<vmem>>, vector<16x8xf32>
    tpu.vector_store %arg15[%c0_222, %c48_223], %305 {strides = array<i32>} : memref<16x64xf32, #tpu.memory_space<vmem>>, vector<16x8xf32>,
    %307 = vector.extract_strided_slice %278 {offsets = [0, 271], sizes = [16, 16], strides = [1, 1]} : vector<16x305xf32> to vector<16x16xf32>
    %cst_224 = arith.constant dense<0.000000e+00> : vector<16x8xf32>
    %308 = tpu.matmul %307, %285, %cst_224 {dimension_numbers = #tpu.dot_dimension_numbers<[1], [0], [0], [1], [0, 0, 1, 1], [], []>} : vector<16x16xf32>, vector<16x8xf32>, vector<16x8xf32> -> vector<16x8xf32>
    %c0_225 = arith.constant 0 : index
    %c56_226 = arith.constant 56 : index
    %309 = vector.load %arg15[%c0_225, %c56_226] : memref<16x64xf32, #tpu.memory_space<vmem>>, vector<16x8xf32>
    tpu.vector_store %arg15[%c0_225, %c56_226], %308 {strides = array<i32>} : memref<16x64xf32, #tpu.memory_space<vmem>>, vector<16x8xf32>,
    %c0_227 = arith.constant 0 : index
    %c0_228 = arith.constant 0 : index
    %310 = vector.load %arg15[%c0_227, %c0_228] : memref<16x64xf32, #tpu.memory_space<vmem>>, vector<16x64xf32>
    %311 = arith.truncf %310 : vector<16x64xf32> to vector<16x64xbf16>
    %cst_229 = arith.constant 0.000000e+00 : f32
    %312 = vector.broadcast %cst_229 : f32 to vector<1x128xf32>
    %313 = vector.extract_strided_slice %311 {offsets = [0, 0], sizes = [1, 64], strides = [1, 1]} : vector<16x64xbf16> to vector<1x64xbf16>
    %c0_230 = arith.constant 0 : index
    %c0_231 = arith.constant 0 : index
    %c0_232 = arith.constant 0 : index
    %314 = vector.load %arg5[%c0_230, %c0_231, %c0_232] : memref<16x64x128xbf16, #tpu.memory_space<vmem>>, vector<1x64x128xbf16>
    %315 = vector.shape_cast %314 : vector<1x64x128xbf16> to vector<64x128xbf16>
    %cst_233 = arith.constant dense<0.000000e+00> : vector<1x128xf32>
    %316 = tpu.matmul %313, %315, %cst_233 {dimension_numbers = #tpu.dot_dimension_numbers<[1], [0], [0], [1], [0, 0, 1, 1], [], []>} : vector<1x64xbf16>, vector<64x128xbf16>, vector<1x128xf32> -> vector<1x128xf32>
    %317 = arith.addf %312, %316 : vector<1x128xf32>
    %318 = vector.extract_strided_slice %311 {offsets = [1, 0], sizes = [1, 64], strides = [1, 1]} : vector<16x64xbf16> to vector<1x64xbf16>
    %c1 = arith.constant 1 : index
    %c0_234 = arith.constant 0 : index
    %c0_235 = arith.constant 0 : index
    %319 = vector.load %arg5[%c1, %c0_234, %c0_235] : memref<16x64x128xbf16, #tpu.memory_space<vmem>>, vector<1x64x128xbf16>
    %320 = vector.shape_cast %319 : vector<1x64x128xbf16> to vector<64x128xbf16>
    %cst_236 = arith.constant dense<0.000000e+00> : vector<1x128xf32>
    %321 = tpu.matmul %318, %320, %cst_236 {dimension_numbers = #tpu.dot_dimension_numbers<[1], [0], [0], [1], [0, 0, 1, 1], [], []>} : vector<1x64xbf16>, vector<64x128xbf16>, vector<1x128xf32> -> vector<1x128xf32>
    %322 = arith.addf %317, %321 : vector<1x128xf32>
    %323 = vector.extract_strided_slice %311 {offsets = [2, 0], sizes = [1, 64], strides = [1, 1]} : vector<16x64xbf16> to vector<1x64xbf16>
    %c2 = arith.constant 2 : index
    %c0_237 = arith.constant 0 : index
    %c0_238 = arith.constant 0 : index
    %324 = vector.load %arg5[%c2, %c0_237, %c0_238] : memref<16x64x128xbf16, #tpu.memory_space<vmem>>, vector<1x64x128xbf16>
    %325 = vector.shape_cast %324 : vector<1x64x128xbf16> to vector<64x128xbf16>
    %cst_239 = arith.constant dense<0.000000e+00> : vector<1x128xf32>
    %326 = tpu.matmul %323, %325, %cst_239 {dimension_numbers = #tpu.dot_dimension_numbers<[1], [0], [0], [1], [0, 0, 1, 1], [], []>} : vector<1x64xbf16>, vector<64x128xbf16>, vector<1x128xf32> -> vector<1x128xf32>
    %327 = arith.addf %322, %326 : vector<1x128xf32>
    %328 = vector.extract_strided_slice %311 {offsets = [3, 0], sizes = [1, 64], strides = [1, 1]} : vector<16x64xbf16> to vector<1x64xbf16>
    %c3 = arith.constant 3 : index
    %c0_240 = arith.constant 0 : index
    %c0_241 = arith.constant 0 : index
    %329 = vector.load %arg5[%c3, %c0_240, %c0_241] : memref<16x64x128xbf16, #tpu.memory_space<vmem>>, vector<1x64x128xbf16>
    %330 = vector.shape_cast %329 : vector<1x64x128xbf16> to vector<64x128xbf16>
    %cst_242 = arith.constant dense<0.000000e+00> : vector<1x128xf32>
    %331 = tpu.matmul %328, %330, %cst_242 {dimension_numbers = #tpu.dot_dimension_numbers<[1], [0], [0], [1], [0, 0, 1, 1], [], []>} : vector<1x64xbf16>, vector<64x128xbf16>, vector<1x128xf32> -> vector<1x128xf32>
    %332 = arith.addf %327, %331 : vector<1x128xf32>
    %333 = vector.extract_strided_slice %311 {offsets = [4, 0], sizes = [1, 64], strides = [1, 1]} : vector<16x64xbf16> to vector<1x64xbf16>
    %c4_243 = arith.constant 4 : index
    %c0_244 = arith.constant 0 : index
    %c0_245 = arith.constant 0 : index
    %334 = vector.load %arg5[%c4_243, %c0_244, %c0_245] : memref<16x64x128xbf16, #tpu.memory_space<vmem>>, vector<1x64x128xbf16>
    %335 = vector.shape_cast %334 : vector<1x64x128xbf16> to vector<64x128xbf16>
    %cst_246 = arith.constant dense<0.000000e+00> : vector<1x128xf32>
    %336 = tpu.matmul %333, %335, %cst_246 {dimension_numbers = #tpu.dot_dimension_numbers<[1], [0], [0], [1], [0, 0, 1, 1], [], []>} : vector<1x64xbf16>, vector<64x128xbf16>, vector<1x128xf32> -> vector<1x128xf32>
    %337 = arith.addf %332, %336 : vector<1x128xf32>
    %338 = vector.extract_strided_slice %311 {offsets = [5, 0], sizes = [1, 64], strides = [1, 1]} : vector<16x64xbf16> to vector<1x64xbf16>
    %c5 = arith.constant 5 : index
    %c0_247 = arith.constant 0 : index
    %c0_248 = arith.constant 0 : index
    %339 = vector.load %arg5[%c5, %c0_247, %c0_248] : memref<16x64x128xbf16, #tpu.memory_space<vmem>>, vector<1x64x128xbf16>
    %340 = vector.shape_cast %339 : vector<1x64x128xbf16> to vector<64x128xbf16>
    %cst_249 = arith.constant dense<0.000000e+00> : vector<1x128xf32>
    %341 = tpu.matmul %338, %340, %cst_249 {dimension_numbers = #tpu.dot_dimension_numbers<[1], [0], [0], [1], [0, 0, 1, 1], [], []>} : vector<1x64xbf16>, vector<64x128xbf16>, vector<1x128xf32> -> vector<1x128xf32>
    %342 = arith.addf %337, %341 : vector<1x128xf32>
    %343 = vector.extract_strided_slice %311 {offsets = [6, 0], sizes = [1, 64], strides = [1, 1]} : vector<16x64xbf16> to vector<1x64xbf16>
    %c6 = arith.constant 6 : index
    %c0_250 = arith.constant 0 : index
    %c0_251 = arith.constant 0 : index
    %344 = vector.load %arg5[%c6, %c0_250, %c0_251] : memref<16x64x128xbf16, #tpu.memory_space<vmem>>, vector<1x64x128xbf16>
    %345 = vector.shape_cast %344 : vector<1x64x128xbf16> to vector<64x128xbf16>
    %cst_252 = arith.constant dense<0.000000e+00> : vector<1x128xf32>
    %346 = tpu.matmul %343, %345, %cst_252 {dimension_numbers = #tpu.dot_dimension_numbers<[1], [0], [0], [1], [0, 0, 1, 1], [], []>} : vector<1x64xbf16>, vector<64x128xbf16>, vector<1x128xf32> -> vector<1x128xf32>
    %347 = arith.addf %342, %346 : vector<1x128xf32>
    %348 = vector.extract_strided_slice %311 {offsets = [7, 0], sizes = [1, 64], strides = [1, 1]} : vector<16x64xbf16> to vector<1x64xbf16>
    %c7 = arith.constant 7 : index
    %c0_253 = arith.constant 0 : index
    %c0_254 = arith.constant 0 : index
    %349 = vector.load %arg5[%c7, %c0_253, %c0_254] : memref<16x64x128xbf16, #tpu.memory_space<vmem>>, vector<1x64x128xbf16>
    %350 = vector.shape_cast %349 : vector<1x64x128xbf16> to vector<64x128xbf16>
    %cst_255 = arith.constant dense<0.000000e+00> : vector<1x128xf32>
    %351 = tpu.matmul %348, %350, %cst_255 {dimension_numbers = #tpu.dot_dimension_numbers<[1], [0], [0], [1], [0, 0, 1, 1], [], []>} : vector<1x64xbf16>, vector<64x128xbf16>, vector<1x128xf32> -> vector<1x128xf32>
    %352 = arith.addf %347, %351 : vector<1x128xf32>
    %353 = vector.extract_strided_slice %311 {offsets = [8, 0], sizes = [1, 64], strides = [1, 1]} : vector<16x64xbf16> to vector<1x64xbf16>
    %c8_256 = arith.constant 8 : index
    %c0_257 = arith.constant 0 : index
    %c0_258 = arith.constant 0 : index
    %354 = vector.load %arg5[%c8_256, %c0_257, %c0_258] : memref<16x64x128xbf16, #tpu.memory_space<vmem>>, vector<1x64x128xbf16>
    %355 = vector.shape_cast %354 : vector<1x64x128xbf16> to vector<64x128xbf16>
    %cst_259 = arith.constant dense<0.000000e+00> : vector<1x128xf32>
    %356 = tpu.matmul %353, %355, %cst_259 {dimension_numbers = #tpu.dot_dimension_numbers<[1], [0], [0], [1], [0, 0, 1, 1], [], []>} : vector<1x64xbf16>, vector<64x128xbf16>, vector<1x128xf32> -> vector<1x128xf32>
    %357 = arith.addf %352, %356 : vector<1x128xf32>
    %358 = vector.extract_strided_slice %311 {offsets = [9, 0], sizes = [1, 64], strides = [1, 1]} : vector<16x64xbf16> to vector<1x64xbf16>
    %c9 = arith.constant 9 : index
    %c0_260 = arith.constant 0 : index
    %c0_261 = arith.constant 0 : index
    %359 = vector.load %arg5[%c9, %c0_260, %c0_261] : memref<16x64x128xbf16, #tpu.memory_space<vmem>>, vector<1x64x128xbf16>
    %360 = vector.shape_cast %359 : vector<1x64x128xbf16> to vector<64x128xbf16>
    %cst_262 = arith.constant dense<0.000000e+00> : vector<1x128xf32>
    %361 = tpu.matmul %358, %360, %cst_262 {dimension_numbers = #tpu.dot_dimension_numbers<[1], [0], [0], [1], [0, 0, 1, 1], [], []>} : vector<1x64xbf16>, vector<64x128xbf16>, vector<1x128xf32> -> vector<1x128xf32>
    %362 = arith.addf %357, %361 : vector<1x128xf32>
    %363 = vector.extract_strided_slice %311 {offsets = [10, 0], sizes = [1, 64], strides = [1, 1]} : vector<16x64xbf16> to vector<1x64xbf16>
    %c10 = arith.constant 10 : index
    %c0_263 = arith.constant 0 : index
    %c0_264 = arith.constant 0 : index
    %364 = vector.load %arg5[%c10, %c0_263, %c0_264] : memref<16x64x128xbf16, #tpu.memory_space<vmem>>, vector<1x64x128xbf16>
    %365 = vector.shape_cast %364 : vector<1x64x128xbf16> to vector<64x128xbf16>
    %cst_265 = arith.constant dense<0.000000e+00> : vector<1x128xf32>
    %366 = tpu.matmul %363, %365, %cst_265 {dimension_numbers = #tpu.dot_dimension_numbers<[1], [0], [0], [1], [0, 0, 1, 1], [], []>} : vector<1x64xbf16>, vector<64x128xbf16>, vector<1x128xf32> -> vector<1x128xf32>
    %367 = arith.addf %362, %366 : vector<1x128xf32>
    %368 = vector.extract_strided_slice %311 {offsets = [11, 0], sizes = [1, 64], strides = [1, 1]} : vector<16x64xbf16> to vector<1x64xbf16>
    %c11 = arith.constant 11 : index
    %c0_266 = arith.constant 0 : index
    %c0_267 = arith.constant 0 : index
    %369 = vector.load %arg5[%c11, %c0_266, %c0_267] : memref<16x64x128xbf16, #tpu.memory_space<vmem>>, vector<1x64x128xbf16>
    %370 = vector.shape_cast %369 : vector<1x64x128xbf16> to vector<64x128xbf16>
    %cst_268 = arith.constant dense<0.000000e+00> : vector<1x128xf32>
    %371 = tpu.matmul %368, %370, %cst_268 {dimension_numbers = #tpu.dot_dimension_numbers<[1], [0], [0], [1], [0, 0, 1, 1], [], []>} : vector<1x64xbf16>, vector<64x128xbf16>, vector<1x128xf32> -> vector<1x128xf32>
    %372 = arith.addf %367, %371 : vector<1x128xf32>
    %373 = vector.extract_strided_slice %311 {offsets = [12, 0], sizes = [1, 64], strides = [1, 1]} : vector<16x64xbf16> to vector<1x64xbf16>
    %c12_269 = arith.constant 12 : index
    %c0_270 = arith.constant 0 : index
    %c0_271 = arith.constant 0 : index
    %374 = vector.load %arg5[%c12_269, %c0_270, %c0_271] : memref<16x64x128xbf16, #tpu.memory_space<vmem>>, vector<1x64x128xbf16>
    %375 = vector.shape_cast %374 : vector<1x64x128xbf16> to vector<64x128xbf16>
    %cst_272 = arith.constant dense<0.000000e+00> : vector<1x128xf32>
    %376 = tpu.matmul %373, %375, %cst_272 {dimension_numbers = #tpu.dot_dimension_numbers<[1], [0], [0], [1], [0, 0, 1, 1], [], []>} : vector<1x64xbf16>, vector<64x128xbf16>, vector<1x128xf32> -> vector<1x128xf32>
    %377 = arith.addf %372, %376 : vector<1x128xf32>
    %378 = vector.extract_strided_slice %311 {offsets = [13, 0], sizes = [1, 64], strides = [1, 1]} : vector<16x64xbf16> to vector<1x64xbf16>
    %c13 = arith.constant 13 : index
    %c0_273 = arith.constant 0 : index
    %c0_274 = arith.constant 0 : index
    %379 = vector.load %arg5[%c13, %c0_273, %c0_274] : memref<16x64x128xbf16, #tpu.memory_space<vmem>>, vector<1x64x128xbf16>
    %380 = vector.shape_cast %379 : vector<1x64x128xbf16> to vector<64x128xbf16>
    %cst_275 = arith.constant dense<0.000000e+00> : vector<1x128xf32>
    %381 = tpu.matmul %378, %380, %cst_275 {dimension_numbers = #tpu.dot_dimension_numbers<[1], [0], [0], [1], [0, 0, 1, 1], [], []>} : vector<1x64xbf16>, vector<64x128xbf16>, vector<1x128xf32> -> vector<1x128xf32>
    %382 = arith.addf %377, %381 : vector<1x128xf32>
    %383 = vector.extract_strided_slice %311 {offsets = [14, 0], sizes = [1, 64], strides = [1, 1]} : vector<16x64xbf16> to vector<1x64xbf16>
    %c14 = arith.constant 14 : index
    %c0_276 = arith.constant 0 : index
    %c0_277 = arith.constant 0 : index
    %384 = vector.load %arg5[%c14, %c0_276, %c0_277] : memref<16x64x128xbf16, #tpu.memory_space<vmem>>, vector<1x64x128xbf16>
    %385 = vector.shape_cast %384 : vector<1x64x128xbf16> to vector<64x128xbf16>
    %cst_278 = arith.constant dense<0.000000e+00> : vector<1x128xf32>
    %386 = tpu.matmul %383, %385, %cst_278 {dimension_numbers = #tpu.dot_dimension_numbers<[1], [0], [0], [1], [0, 0, 1, 1], [], []>} : vector<1x64xbf16>, vector<64x128xbf16>, vector<1x128xf32> -> vector<1x128xf32>
    %387 = arith.addf %382, %386 : vector<1x128xf32>
    %388 = vector.extract_strided_slice %311 {offsets = [15, 0], sizes = [1, 64], strides = [1, 1]} : vector<16x64xbf16> to vector<1x64xbf16>
    %c15 = arith.constant 15 : index
    %c0_279 = arith.constant 0 : index
    %c0_280 = arith.constant 0 : index
    %389 = vector.load %arg5[%c15, %c0_279, %c0_280] : memref<16x64x128xbf16, #tpu.memory_space<vmem>>, vector<1x64x128xbf16>
    %390 = vector.shape_cast %389 : vector<1x64x128xbf16> to vector<64x128xbf16>
    %cst_281 = arith.constant dense<0.000000e+00> : vector<1x128xf32>
    %391 = tpu.matmul %388, %390, %cst_281 {dimension_numbers = #tpu.dot_dimension_numbers<[1], [0], [0], [1], [0, 0, 1, 1], [], []>} : vector<1x64xbf16>, vector<64x128xbf16>, vector<1x128xf32> -> vector<1x128xf32>
    %392 = arith.addf %387, %391 : vector<1x128xf32>
    %c0_282 = arith.constant 0 : index
    %c0_283 = arith.constant 0 : index
    %393 = vector.load %arg6[%c0_282, %c0_283] : memref<1x128xf32, #tpu.memory_space<vmem>>, vector<1x128xf32>
    %394 = arith.addf %392, %393 : vector<1x128xf32>
    %395 = math.absf %394 : vector<1x128xf32>
    %cst_284 = arith.constant 0.000000e+00 : f32
    %396 = vector.broadcast %cst_284 : f32 to vector<1x128xf32>
    %397 = arith.subf %396, %395 : vector<1x128xf32>
    %398 = math.exp %397 : vector<1x128xf32>
    %cst_285 = arith.constant 0.000000e+00 : f32
    %399 = vector.broadcast %cst_285 : f32 to vector<1x128xf32>
    %400 = arith.cmpf oge, %394, %399 : vector<1x128xf32>
    %cst_286 = arith.constant 1.000000e+00 : f32
    %401 = vector.broadcast %cst_286 : f32 to vector<1x128xf32>
    %402 = arith.addf %401, %398 : vector<1x128xf32>
    %cst_287 = arith.constant 1.000000e+00 : f32
    %403 = vector.broadcast %cst_287 : f32 to vector<1x128xf32>
    %404 = arith.divf %403, %402 : vector<1x128xf32>
    %cst_288 = arith.constant 1.000000e+00 : f32
    %405 = vector.broadcast %cst_288 : f32 to vector<1x128xf32>
    %406 = arith.addf %405, %398 : vector<1x128xf32>
    %407 = arith.divf %398, %406 : vector<1x128xf32>
    %408 = arith.select %400, %404, %407 : vector<1x128xi1>, vector<1x128xf32>
    %409 = arith.truncf %408 : vector<1x128xf32> to vector<1x128xbf16>
    %c0_289 = arith.constant 0 : index
    %c0_290 = arith.constant 0 : index
    %410 = vector.load %arg7[%c0_289, %c0_290] : memref<128x2xbf16, #tpu.memory_space<vmem>>, vector<128x2xbf16>
    %cst_291 = arith.constant dense<0.000000e+00> : vector<1x2xf32>
    %411 = tpu.matmul %409, %410, %cst_291 {dimension_numbers = #tpu.dot_dimension_numbers<[1], [0], [0], [1], [0, 0, 1, 1], [], []>} : vector<1x128xbf16>, vector<128x2xbf16>, vector<1x2xf32> -> vector<1x2xf32>
    %c0_292 = arith.constant 0 : index
    %c0_293 = arith.constant 0 : index
    %412 = vector.load %arg8[%c0_292, %c0_293] : memref<1x2xf32, #tpu.memory_space<vmem>>, vector<1x2xf32>
    %413 = arith.addf %411, %412 : vector<1x2xf32>
    %cst_294 = arith.constant dense<0xFF800000> : vector<1xf32>
    %414 = vector.multi_reduction <maximumf>, %413, %cst_294 [1] : vector<1x2xf32> to vector<1xf32>
    %415 = vector.shape_cast %414 : vector<1xf32> to vector<1x1xf32>
    %416 = vector.broadcast %415 : vector<1x1xf32> to vector<1x2xf32>
    %417 = arith.subf %413, %416 : vector<1x2xf32>
    %418 = math.exp %417 : vector<1x2xf32>
    %cst_295 = arith.constant dense<0.000000e+00> : vector<1xf32>
    %419 = vector.multi_reduction <add>, %418, %cst_295 [1] : vector<1x2xf32> to vector<1xf32>
    %420 = vector.shape_cast %419 : vector<1xf32> to vector<1x1xf32>
    %421 = tpu.reciprocal %420 : vector<1x1xf32> -> vector<1x1xf32>
    %422 = vector.broadcast %421 : vector<1x1xf32> to vector<1x2xf32>
    %423 = arith.mulf %418, %422 : vector<1x2xf32>
    %c0_296 = arith.constant 0 : index
    %c0_297 = arith.constant 0 : index
    %c0_298 = arith.constant 0 : index
    %424 = vector.load %arg9[%c0_296, %c0_297, %c0_298] : memref<1x1x2xf32, #tpu.memory_space<vmem>>, vector<1x1x2xf32>
    %425 = vector.shape_cast %424 : vector<1x1x2xf32> to vector<1x2xf32>
    %426 = vector.shape_cast %423 : vector<1x2xf32> to vector<1x1x2xf32>
    tpu.vector_store %arg9[%c0_296, %c0_297, %c0_298], %426 {strides = array<i32>} : memref<1x1x2xf32, #tpu.memory_space<vmem>>, vector<1x1x2xf32>,
    return
  }
  func.func @transform_0(%arg0: i32) -> (i32, i32, i32) {
    %c0_i32 = arith.constant 0 : i32
    %c0_i32_0 = arith.constant 0 : i32
    %c0_i32_1 = arith.constant 0 : i32
    return %arg0, %c0_i32, %c0_i32_0 : i32, i32, i32
  }
  func.func @transform_1(%arg0: i32) -> (i32, i32) {
    %c0_i32 = arith.constant 0 : i32
    %c0_i32_0 = arith.constant 0 : i32
    %c0_i32_1 = arith.constant 0 : i32
    return %c0_i32, %c0_i32_0 : i32, i32
  }
  func.func @transform_2(%arg0: i32) -> (i32, i32) {
    %c0_i32 = arith.constant 0 : i32
    %c0_i32_0 = arith.constant 0 : i32
    %c0_i32_1 = arith.constant 0 : i32
    return %c0_i32, %c0_i32_0 : i32, i32
  }
  func.func @transform_3(%arg0: i32) -> (i32, i32) {
    %c0_i32 = arith.constant 0 : i32
    %c0_i32_0 = arith.constant 0 : i32
    %c0_i32_1 = arith.constant 0 : i32
    return %c0_i32, %c0_i32_0 : i32, i32
  }
  func.func @transform_4(%arg0: i32) -> (i32, i32, i32) {
    %c0_i32 = arith.constant 0 : i32
    %c0_i32_0 = arith.constant 0 : i32
    %c0_i32_1 = arith.constant 0 : i32
    %c0_i32_2 = arith.constant 0 : i32
    return %c0_i32, %c0_i32_0, %c0_i32_1 : i32, i32, i32
  }
  func.func @transform_5(%arg0: i32) -> (i32, i32) {
    %c0_i32 = arith.constant 0 : i32
    %c0_i32_0 = arith.constant 0 : i32
    %c0_i32_1 = arith.constant 0 : i32
    return %c0_i32, %c0_i32_0 : i32, i32
  }
  func.func @transform_6(%arg0: i32) -> (i32, i32) {
    %c0_i32 = arith.constant 0 : i32
    %c0_i32_0 = arith.constant 0 : i32
    %c0_i32_1 = arith.constant 0 : i32
    return %c0_i32, %c0_i32_0 : i32, i32
  }
  func.func @transform_7(%arg0: i32) -> (i32, i32) {
    %c0_i32 = arith.constant 0 : i32
    %c0_i32_0 = arith.constant 0 : i32
    %c0_i32_1 = arith.constant 0 : i32
    return %c0_i32, %c0_i32_0 : i32, i32
  }
  func.func @transform_8(%arg0: i32) -> (i32, i32, i32) {
    %c0_i32 = arith.constant 0 : i32
    %c0_i32_0 = arith.constant 0 : i32
    %c0_i32_1 = arith.constant 0 : i32
    return %arg0, %c0_i32, %c0_i32_0 : i32, i32, i32
  }
}

</mosaic_0001>

<bundles_post_ra>
// kernel: model_forward.1
= control target key start
LH: loop header
LB: loop body
LE: loop exit
PB: predicated region body
PF: predicated region fallthrough
CT: control target
= control target key end

     0   :  { %13 = vsyncpa [#allocation9], 0  ;;  %s20971_s0 = inlined_call_operand.vmem [shape: f32[2,4,4612], index: 0, kind: input, shape index: {}]   ;;  %s20972_s1 = inlined_call_operand.vmem [shape: bf16[4,36], index: 1, kind: input, shape index: {}]   ;;  %s20973_s2 = inlined_call_operand.vmem [shape: bf16[8,36], index: 2, kind: input, shape index: {}]   ;;  %s20974_s3 = inlined_call_operand.vmem [shape: bf16[16,72], index: 3, kind: input, shape index: {}]   ;;  %s20975_s4 = inlined_call_operand.vmem [shape: bf16[16,64,128], index: 4, kind: input, shape index: {}]   ;;  %s20976_s5 = inlined_call_operand.vmem [shape: f32[1,128], index: 5, kind: input, shape index: {}]   ;;  %s20977_s6 = inlined_call_operand.vmem [shape: bf16[128,2], index: 6, kind: input, shape index: {}]   ;;  %s20978_s7 = inlined_call_operand.vmem [shape: f32[1,2], index: 7, kind: input, shape index: {}]   ;;  %s20979_s8 = inlined_call_operand.hbm [shape: f32[2,1,2], index: 8, kind: output, shape index: {}]  }
   0x1   :  { %15 = vsyncpa [#allocation9 + $0x1], 0  ;;  %s17017_s27 = smov 0   ;;  %s17019_s28 = smov 0  }
   0x2   :  { %s17021_s29 = smov 0   ;;  %s17023_s30 = smov 0  }
   0x3 LB: > { %s17038_s9 = sadd.s32 4294967295, %s16897_s30   ;;  %s13036_s10 = sadd.s32 4294967294, %s16897_s30   ;;  %s16897_s30 = sphi %s17023_s30, %s21177_s30   ;;  %s16893_s29 = sphi %s17021_s29, %s21176_s29   ;;  %s16889_s28 = sphi %s17019_s28, %s21175_s28   ;;  %s16885_s27 = sphi %s17017_s27, %s21174_s27  }
   0x4   : > { %s17042_s11 = sadd.s32 1, %s16897_s30   ;;  %s201_s12 = sadd.s32 1, %s16893_s29 }
   0x5   : > { %s198_s13 = ssub.s32 %s16897_s30, %s17042_s11  ;;  %p211_p0 = scmp.ne.s32.totalorder %s16893_s29, %s16889_s28 }
   0x6   : > { %p199_p1 = scmp.eq.s32.totalorder %s198_s13, 0  ;;  %p212_p2 = scmp.eq.s32.totalorder %s17038_s9, 1 }
   0x7   : > { %p217_p3 = scmp.ne.s32.totalorder %s16889_s28, %s16885_s27  ;;  %p218_p4 = scmp.eq.s32.totalorder %s13036_s10, 1 }
   0x8   : > { %s17053_s14 = scalar_select %p199_p1, %s16893_s29, %s201_s12  }
   0x9   : > { %p17055_p5 = por %p212_p2, %p211_p0  ;;  %p17059_p6 = por %p218_p4, %p217_p3 }
   0xa   : > { %p13039_p7 = scmp.ge.s32.totalorder %s16897_s30, 1  ;;  %p265_p8 = scmp.lt.s32.totalorder %s16897_s30, 3 }
   0xc   : > { %p266_p9 = pnand %p13039_p7, %p265_p8 }
   0xd   : > { %p298_p10 = scmp.lt.s32.totalorder (!%p266_p9), %s17038_s9, 1  ;;  %s21013_s22 = smov (!%p266_p9), 65   ;;  %v16907_v24 = vmov (!%p266_p9), 0   ;;  %vm21023_vm0 = vcmask (!%p266_p9), 1043456   ;;  %vm567_vm1 = vcmask (!%p266_p9), 547840   ;;  %vm903_vm2 = vcmask (!%p266_p9), 539648  }
   0xe   : > { %269 = sbr.rel (%p266_p9) target bundleno = 4630 (0x1216), region = 52  ;;  %s16900_s23 = smov (!%p266_p9), 67   ;;  %3838 = vmatprep.mubr.bf16.mxu0 (!%p266_p9), %v16907_v24  ;;  %3961 = vmatprep.mubr.bf16.mxu1 (!%p266_p9), %v16907_v24  ;;  %vm1221_vm3 = vcmask (!%p266_p9), 531456   ;;  %vm21019_vm4 = vcmask (!%p266_p9), 7168   ;;  %vm2126_vm5 = vcmask (!%p266_p9), 1039360   ;;  %vm2443_vm6 = vcmask (!%p266_p9), 515072  }
   0xf   : > { %s16901_s24 = smov (!%p266_p9), 66   ;;  %s20988_s25 = smov (!%p266_p9), 1   ;;  %vm2778_vm7 = vcmask (!%p266_p9), 506880   ;;  %vm3095_vm8 = vcmask (!%p266_p9), 498688   ;;  %vm21022_vm9 = vcmask (!%p266_p9), 1041408   ;;  %vm21018_vm10 = vcmask (!%p266_p9), 293888  }
  0x10   : > { %s21034_s26 = smov (!%p266_p9), 127   ;;  %s16904_s10 = smov (!%p266_p9), 63   ;;  %vm636_vm11 = vcmask (!%p266_p9), 25600   ;;  %vm972_vm12 = vcmask (!%p266_p9), 27650   ;;  %vm21016_vm13 = vmmov (!%p266_p9), 0  }
  0x11   : > { %s16905_s12 = smov (!%p266_p9), 62   ;;  %s20987_s13 = smov (!%p266_p9), 61  }
  0x12   : > { %s20980_s19 = smov (!%p266_p9), 45   ;;  %s21008_s20 = smov (!%p266_p9), 41  }
  0x15   : > { %s299_s17 = scalar_select %p298_p10, %s17038_s9, 1 }
  0x17   : > { %s16398_s18 = smul.u32 148, %s299_s17  ;;  %s20983_s17 = smov 53  }
  0x19   : > { %s17070_s21 = scalar_lea.vmem %s20971_s0, %s16398_s18  ;;  %s21003_s18 = smov 49  }
  0x1a   : > { %v975_v0 = vld [vmem:[%s17070_s21 + $0x8] sm:$0xff]  ;;  %v319_v1 = vld [vmem:[%s17070_s21] sm:$0xff]  ;;  %v2198_v7 = vld [vmem:[%s17070_s21 + $0x14] sm:$0xff] }
  0x1b   : > { %v1862_v2 = vld [vmem:[%s17070_s21 + $0xc] sm:$0xff]  ;;  %v1010_v3 = vcombine.high %v975_v0, %v975_v0  ;;  %v354_v4 = vcombine.high %v319_v1, %v319_v1  ;;  %v1861_v6 = vld [vmem:[%s17070_s21 + $0x4] sm:$0xff]  ;;  %v2233_v9 = vcombine.high %v2198_v7, %v2198_v7  ;;  %v641_v23 = vld [vmem:[%s17070_s21 + $0x18] sm:$0xff] }
  0x1c   : > { %v1897_v5 = vcombine.high %v1862_v2, %v1862_v2  ;;  %v1896_v8 = vcombine.high %v1861_v6, %v1861_v6  ;;  %v640_v19 = vld [vmem:[%s17070_s21 + $0x10] sm:$0xff]  ;;  %v676_v26 = vcombine.high %v641_v23, %v641_v23  ;;  %v2199_v27 = vld [vmem:[%s17070_s21 + $0x1c] sm:$0xff]  ;;  %v2200_v36 = vld [vmem:[%s17070_s21 + $0x24] sm:$0xff] }
  0x1d   : > { %v14122_v10 = vpack.c.bf16 %v1010_v3, %v975_v0  ;;  %v14085_v11 = vpack.c.bf16 %v354_v4, %v319_v1  ;;  %v14195_v14 = vpack.c.bf16 %v2233_v9, %v2198_v7  ;;  %v675_v20 = vcombine.high %v640_v19, %v640_v19  ;;  %v642_v32 = vld [vmem:[%s17070_s21 + $0x20] sm:$0xff]  ;;  %v643_v43 = vld [vmem:[%s17070_s21 + $0x28] sm:$0xff]  ;;  %v644_v54 = vld [vmem:[%s17070_s21 + $0x30] sm:$0xff] }
  0x1e   : > { %v14176_v12 = vpack.c.bf16 %v1897_v5, %v1862_v2  ;;  %v14175_v13 = vpack.c.bf16 %v1896_v8, %v1861_v6  ;;  %v14106_v28 = vpack.c.bf16 %v676_v26, %v641_v23  ;;  %v2234_v30 = vcombine.high %v2199_v27, %v2199_v27  ;;  %v1636_v37 = vld [vmem:[%s17070_s21 + $0x1c] sm:$0xff]  ;;  %v2201_v47 = vld [vmem:[%s17070_s21 + $0x2c] sm:$0xff]  ;;  %v1637_v48 = vld [vmem:[%s17070_s21 + $0x24] sm:$0xff] }
  0x1f   : > { %1168 = vrot.lane.b32.xlu1 %v14122_v10, %s21013_s22  ;;  %511 = vrot.lane.b32.xlu0 %v14085_v11, %s16900_s23  ;;  %v830_v15 = vrot.slane %v14085_v11, 6  ;;  %1845 = vst [vmem:[#allocation2 + $0x128] sm:$0x33] %v14195_v14  ;;  %v831_v16 = vrot.slane %v14122_v10, 6  ;;  %v14105_v21 = vpack.c.bf16 %v675_v20, %v640_v19  ;;  %v2055_v25 = vrot.slane %v14195_v14, 6  ;;  %v2202_v58 = vld [vmem:[%s17070_s21 + $0x34] sm:$0xff] }
  0x20   : > { %1844 = vst [vmem:[#allocation2 + $0x120] sm:$0x33] %v14176_v12  ;;  %1843 = vst [vmem:[#allocation2 + $0x118] sm:$0x33] %v14175_v13  ;;  %v2054_v17 = vrot.slane %v14176_v12, 6  ;;  %v2053_v18 = vrot.slane %v14175_v13, 6  ;;  %v14196_v31 = vpack.c.bf16 %v2234_v30, %v2199_v27  ;;  %v677_v34 = vcombine.high %v642_v32, %v642_v32 }
  0x21   : > { %v832_v22 = vrot.slane %v14105_v21, 6  ;;  %v833_v29 = vrot.slane %v14106_v28, 6  ;;  %v2235_v39 = vcombine.high %v2200_v36, %v2200_v36  ;;  %v1671_v40 = vcombine.high %v1636_v37, %v1636_v37  ;;  %v1638_v59 = vld [vmem:[%s17070_s21 + $0x2c] sm:$0xff]  ;;  %v645_v1 = vld [vmem:[%s17070_s21 + $0x38] sm:$0xff] }
  0x22   : > { %v2056_v33 = vrot.slane %v14196_v31, 6  ;;  %v14107_v35 = vpack.c.bf16 %v677_v34, %v642_v32  ;;  %v678_v45 = vcombine.high %v643_v43, %v643_v43  ;;  %v2236_v50 = vcombine.high %v2201_v47, %v2201_v47  ;;  %v2203_v5 = vld [vmem:[%s17070_s21 + $0x3c] sm:$0xff]  ;;  %v1639_v6 = vld [vmem:[%s17070_s21 + $0x34] sm:$0xff] }
  0x23   : > { %848 = vrot.lane.b32.xlu1 %v830_v15, %s16901_s24  ;;  %513 = vrot.lane.b32.xlu0 %v14122_v10, %s16900_s23  ;;  %v14160_v41 = vpack.c.bf16 %v1671_v40, %v1636_v37  ;;  %v14197_v42 = vpack.c.bf16 %v2235_v39, %v2200_v36  ;;  %v1672_v51 = vcombine.high %v1637_v48, %v1637_v48 }
  0x24   : > { %v834_v38 = vrot.slane %v14107_v35, 6  ;;  %v14108_v46 = vpack.c.bf16 %v678_v45, %v643_v43  ;;  %v14198_v53 = vpack.c.bf16 %v2236_v50, %v2201_v47  ;;  %v679_v56 = vcombine.high %v644_v54, %v644_v54 }
  0x25   : > { %1846 = vst [vmem:[#allocation2 + $0x130] sm:$0x33] %v14160_v41  ;;  %v2057_v44 = vrot.slane %v14197_v42, 6  ;;  %v14161_v52 = vpack.c.bf16 %v1672_v51, %v1637_v48  ;;  %v2237_v61 = vcombine.high %v2202_v58, %v2202_v58  ;;  %v1673_v62 = vcombine.high %v1638_v59, %v1638_v59 }
  0x26   : > { %v835_v49 = vrot.slane %v14108_v46, 6  ;;  %v2058_v55 = vrot.slane %v14198_v53, 6  ;;  %v14109_v57 = vpack.c.bf16 %v679_v56, %v644_v54  ;;  %v680_v3 = vcombine.high %v645_v1, %v645_v1 }
  0x27   : > { %850 = vrot.lane.b32.xlu1 %v831_v16, %s16901_s24  ;;  %1166 = vrot.lane.b32.xlu0 %v14085_v11, %s21013_s22  ;;  %1847 = vst [vmem:[#allocation2 + $0x138] sm:$0x33] %v14161_v52  ;;  %v14162_v63 = vpack.c.bf16 %v1673_v62, %v1638_v59  ;;  %v14199_v0 = vpack.c.bf16 %v2237_v61, %v2202_v58 }
  0x28   : > { %v836_v60 = vrot.slane %v14109_v57, 6  ;;  %v14110_v4 = vpack.c.bf16 %v680_v3, %v645_v1  ;;  %v2238_v8 = vcombine.high %v2203_v5, %v2203_v5  ;;  %v1674_v9 = vcombine.high %v1639_v6, %v1639_v6 }
  0x29   : > { %1848 = vst [vmem:[#allocation2 + $0x140] sm:$0x33] %v14162_v63  ;;  %v2059_v2 = vrot.slane %v14199_v0, 6 }
  0x2a   : > { %v837_v7 = vrot.slane %v14110_v4, 6  ;;  %v14163_v10 = vpack.c.bf16 %v1674_v9, %v1639_v6  ;;  %v14200_v11 = vpack.c.bf16 %v2238_v8, %v2203_v5 }
  0x2b   : > { %1509 = vrot.lane.b32.xlu1 %v831_v16, %s20988_s25  ;;  %1507 = vrot.lane.b32.xlu0 %v830_v15, %s20988_s25 }
  0x2c   : > { %1849 = vst [vmem:[#allocation2 + $0x148] sm:$0x33] %v14163_v10  ;;  %v2060_v15 = vrot.slane %v14200_v11, 6 }
  0x2f   : > { %2073 = vrot.lane.b32.xlu1 %v2054_v17, %s21034_s26  ;;  %2071 = vrot.lane.b32.xlu0 %v2053_v18, %s21034_s26 }
  0x33   : > { %2390 = vrot.lane.b32.xlu1 %v14176_v12, %s16904_s10  ;;  %2388 = vrot.lane.b32.xlu0 %v14175_v13, %s16904_s10 }
  0x37   : > { %2725 = vrot.lane.b32.xlu1 %v2054_v17, %s16905_s12  ;;  %2723 = vrot.lane.b32.xlu0 %v2053_v18, %s16905_s12 }
  0x3b   : > { %3042 = vrot.lane.b32.xlu1 %v14176_v12, %s20987_s13  ;;  %3040 = vrot.lane.b32.xlu0 %v14175_v13, %s20987_s13  ;;  %v646_v12 = vld [vmem:[%s17070_s21 + $0x40] sm:$0xff] }
  0x3c   : > { %v681_v16 = vcombine.high %v646_v12, %v646_v12 }
  0x3f   : > { %852 = vrot.lane.b32.xlu1 %v832_v22, %s16901_s24  ;;  %515 = vrot.lane.b32.xlu0 %v14105_v21, %s16900_s23 }
  0x43   : > { %1511 = vrot.lane.b32.xlu1 %v832_v22, %s20988_s25  ;;  %1170 = vrot.lane.b32.xlu0 %v14105_v21, %s21013_s22  ;;  %v14111_v21 = vpack.c.bf16 %v681_v16, %v646_v12  ;;  %v1640_v12 = vld [vmem:[%s17070_s21 + $0x3c] sm:$0xff]  ;;  %v648_v16 = vld [vmem:[%s17070_s21 + $0x50] sm:$0xff] }
  0x45   : > { %v838_v32 = vrot.slane %v14111_v21, 6 }
  0x47   : > { %2392 = vrot.lane.b32.xlu1 %v14195_v14, %s16904_s10  ;;  %2075 = vrot.lane.b32.xlu0 %v2055_v25, %s21034_s26 }
  0x4b   : > { %3044 = vrot.lane.b32.xlu1 %v14195_v14, %s20987_s13  ;;  %2727 = vrot.lane.b32.xlu0 %v2055_v25, %s16905_s12  ;;  %v2204_v25 = vld [vmem:[%s17070_s21 + $0x44] sm:$0xff] }
  0x4f   : > { %854 = vrot.lane.b32.xlu1 %v833_v29, %s16901_s24  ;;  %517 = vrot.lane.b32.xlu0 %v14106_v28, %s16900_s23 }
  0x53   : > { %1513 = vrot.lane.b32.xlu1 %v833_v29, %s20988_s25  ;;  %1172 = vrot.lane.b32.xlu0 %v14106_v28, %s21013_s22 }
  0x57   : > { %2394 = vrot.lane.b32.xlu1 %v14196_v31, %s16904_s10  ;;  %2077 = vrot.lane.b32.xlu0 %v2056_v33, %s21034_s26 }
  0x5b   : > { %3046 = vrot.lane.b32.xlu1 %v14196_v31, %s20987_s13  ;;  %2729 = vrot.lane.b32.xlu0 %v2056_v33, %s16905_s12  ;;  %v2239_v33 = vcombine.high %v2204_v25, %v2204_v25 }
  0x5f   : > { %856 = vrot.lane.b32.xlu1 %v834_v38, %s16901_s24  ;;  %519 = vrot.lane.b32.xlu0 %v14107_v35, %s16900_s23 }
  0x63   : > { %1515 = vrot.lane.b32.xlu1 %v834_v38, %s20988_s25  ;;  %1174 = vrot.lane.b32.xlu0 %v14107_v35, %s21013_s22 }
  0x67   : > { %2396 = vrot.lane.b32.xlu1 %v14197_v42, %s16904_s10  ;;  %2079 = vrot.lane.b32.xlu0 %v2057_v44, %s21034_s26 }
  0x6b   : > { %3048 = vrot.lane.b32.xlu1 %v14197_v42, %s20987_s13  ;;  %2731 = vrot.lane.b32.xlu0 %v2057_v44, %s16905_s12  ;;  %v14201_v42 = vpack.c.bf16 %v2239_v33, %v2204_v25  ;;  %v647_v44 = vld [vmem:[%s17070_s21 + $0x48] sm:$0xff] }
  0x6c   : > { %v682_v51 = vcombine.high %v647_v44, %v647_v44 }
  0x6d   : > { %v2061_v50 = vrot.slane %v14201_v42, 6 }
  0x6e   : > { %v14112_v58 = vpack.c.bf16 %v682_v51, %v647_v44  ;;  %v2206_v51 = vld [vmem:[%s17070_s21 + $0x54] sm:$0xff] }
  0x6f   : > { %858 = vrot.lane.b32.xlu1 %v835_v49, %s16901_s24  ;;  %521 = vrot.lane.b32.xlu0 %v14108_v46, %s16900_s23 }
  0x73   : > { %1517 = vrot.lane.b32.xlu1 %v835_v49, %s20988_s25  ;;  %1176 = vrot.lane.b32.xlu0 %v14108_v46, %s21013_s22 }
  0x77   : > { %2398 = vrot.lane.b32.xlu1 %v14198_v53, %s16904_s10  ;;  %2081 = vrot.lane.b32.xlu0 %v2058_v55, %s21034_s26 }
  0x7b   : > { %3050 = vrot.lane.b32.xlu1 %v14198_v53, %s20987_s13  ;;  %2733 = vrot.lane.b32.xlu0 %v2058_v55, %s16905_s12 }
  0x7f   : > { %860 = vrot.lane.b32.xlu1 %v836_v60, %s16901_s24  ;;  %523 = vrot.lane.b32.xlu0 %v14109_v57, %s16900_s23 }
  0x83   : > { %1519 = vrot.lane.b32.xlu1 %v836_v60, %s20988_s25  ;;  %1178 = vrot.lane.b32.xlu0 %v14109_v57, %s21013_s22  ;;  %v2205_v60 = vld [vmem:[%s17070_s21 + $0x4c] sm:$0xff] }
  0x84   : > { %v2240_v6 = vcombine.high %v2205_v60, %v2205_v60 }
  0x87   : > { %2400 = vrot.lane.b32.xlu1 %v14199_v0, %s16904_s10  ;;  %2083 = vrot.lane.b32.xlu0 %v2059_v2, %s21034_s26 }
  0x8b   : > { %3052 = vrot.lane.b32.xlu1 %v14199_v0, %s20987_s13  ;;  %2735 = vrot.lane.b32.xlu0 %v2059_v2, %s16905_s12 }
  0x8f   : > { %862 = vrot.lane.b32.xlu1 %v837_v7, %s16901_s24  ;;  %525 = vrot.lane.b32.xlu0 %v14110_v4, %s16900_s23 }
  0x91   : > { %v17153_v13 = vpop.permute.xlu1 %1168  ;;  %v512_v14 = vpop.permute.xlu0 %511 }
  0x92   : > { %v547_v19 = vrot.slane %v512_v14, 4  ;;  %v1203_v29 = vrot.slane %v17153_v13, 4 }
  0x93   : > { %1521 = vrot.lane.b32.xlu1 %v837_v7, %s20988_s25  ;;  %1180 = vrot.lane.b32.xlu0 %v14110_v4, %s21013_s22  ;;  %v839_v4 = vrot.slane %v14112_v58, 6 }
  0x95   : > { %v849_v17 = vpop.permute.xlu1 %848  ;;  %v17157_v18 = vpop.permute.xlu0 %513 }
  0x96   : > { %v548_v20 = vrot.slane %v17157_v18, 4  ;;  %v884_v22 = vrot.slane %v849_v17, 4 }
  0x97   : > { %2402 = vrot.lane.b32.xlu1 %v14200_v11, %s16904_s10  ;;  %2085 = vrot.lane.b32.xlu0 %v2060_v15, %s21034_s26 }
  0x98   : > { %v566_v23 = vsel %vm21023_vm0, %v547_v19, %v548_v20 }
  0x99   : > { %v568_v26 = vsel %vm567_vm1, %v512_v14, %v566_v23  ;;  %v17167_v27 = vpop.permute.xlu1 %850  ;;  %v1167_v28 = vpop.permute.xlu0 %1166 }
  0x9a   : > { %619 = vst [vmem:[#allocation2] sm:$0x33] %v568_v26  ;;  %v885_v30 = vrot.slane %v17167_v27, 4  ;;  %v1202_v31 = vrot.slane %v1167_v28, 4 }
  0x9b   : > { %3054 = vrot.lane.b32.xlu1 %v14200_v11, %s20987_s13  ;;  %2737 = vrot.lane.b32.xlu0 %v2060_v15, %s16905_s12  ;;  %v14202_v15 = vpack.c.bf16 %v2240_v6, %v2205_v60 }
  0x9c   : > { %v902_v34 = vsel %vm21023_vm0, %v884_v22, %v885_v30  ;;  %v1220_v35 = vsel %vm21023_vm0, %v1202_v31, %v1203_v29 }
  0x9d   : > { %v904_v36 = vsel %vm903_vm2, %v849_v17, %v902_v34  ;;  %v1222_v37 = vsel %vm1221_vm3, %v1167_v28, %v1220_v35  ;;  %v17181_v38 = vpop.permute.xlu1 %1509  ;;  %v1508_v39 = vpop.permute.xlu0 %1507  ;;  %v1675_v17 = vcombine.high %v1640_v12, %v1640_v12  ;;  %v683_v28 = vcombine.high %v648_v16, %v648_v16 }
  0x9e   : > { %955 = vst [vmem:[#allocation2] sm:$0xcc] %v904_v36  ;;  %1273 = vst [vmem:[#allocation2 + $0x8c] sm:$0x33] %v1222_v37  ;;  %v1544_v40 = vrot.slane %v17181_v38, 4  ;;  %v1543_v41 = vrot.slane %v1508_v39, 4 }
  0x9f   : > { %864 = vrot.lane.b32.xlu1 %v838_v32, %s16901_s24  ;;  %527 = vrot.lane.b32.xlu0 %v14111_v21, %s16900_s23  ;;  %v14164_v26 = vpack.c.bf16 %v1675_v17, %v1640_v12  ;;  %v2062_v33 = vrot.slane %v14202_v15, 6 }
  0xa0   : > { %v1561_v43 = vsel %vm21023_vm0, %v1543_v41, %v1544_v40 }
  0xa1   : > { %v1563_v45 = vsel %vm21019_vm4, %v1508_v39, %v1561_v43  ;;  %v17191_v46 = vpop.permute.xlu1 %2073  ;;  %v2072_v47 = vpop.permute.xlu0 %2071  ;;  %1850 = vst [vmem:[#allocation2 + $0x150] sm:$0x33] %v14164_v26 }
  0xa2   : > { %1615 = vst [vmem:[#allocation2 + $0x8c] sm:$0xcc] %v1563_v45  ;;  %v2108_v48 = vrot.slane %v17191_v46, 4  ;;  %v2107_v49 = vrot.slane %v2072_v47, 4 }
  0xa3   : > { %1523 = vrot.lane.b32.xlu1 %v838_v32, %s20988_s25  ;;  %1182 = vrot.lane.b32.xlu0 %v14111_v21, %s21013_s22 }
  0xa4   : > { %v2125_v52 = vsel %vm21023_vm0, %v2107_v49, %v2108_v48 }
  0xa5   : > { %v2127_v53 = vsel %vm2126_vm5, %v2072_v47, %v2125_v52  ;;  %v17200_v54 = vpop.permute.xlu1 %2390  ;;  %v2389_v55 = vpop.permute.xlu0 %2388 }
  0xa6   : > { %2178 = vst [vmem:[#allocation2 + $0x118] sm:$0xcc] %v2127_v53  ;;  %v2425_v56 = vrot.slane %v17200_v54, 4  ;;  %v2424_v57 = vrot.slane %v2389_v55, 4 }
  0xa7   : > { %2404 = vrot.lane.b32.xlu1 %v14201_v42, %s16904_s10  ;;  %2087 = vrot.lane.b32.xlu0 %v2061_v50, %s21034_s26 }
  0xa8   : > { %v2442_v59 = vsel %vm21023_vm0, %v2424_v57, %v2425_v56 }
  0xa9   : > { %v2444_v61 = vsel %vm2443_vm6, %v2389_v55, %v2442_v59  ;;  %v17210_v62 = vpop.permute.xlu1 %2725  ;;  %v2724_v63 = vpop.permute.xlu0 %2723  ;;  %v16526_v0 = vld [vmem:[#allocation2 + $0x4] ss:$140 sps:$4 sm:$0xff]   ;;  %v16528_v1 = vld [vmem:[#allocation2] ss:$140 sps:$4 sm:$0xff]   ;;  %v2241_v59 = vcombine.high %v2206_v51, %v2206_v51 }
  0xaa   : > { %2495 = vst [vmem:[#allocation2 + $0x1a4] sm:$0x33] %v2444_v61  ;;  %v2760_v2 = vrot.slane %v17210_v62, 4  ;;  %v2759_v3 = vrot.slane %v2724_v63, 4  ;;  %3806 = vmatprep.subr.bf16.mxu0 %v16526_v0 }
  0xab   : > { %3056 = vrot.lane.b32.xlu1 %v14201_v42, %s20987_s13  ;;  %3807 = vmatpush1.bf16.msra.mxu0 %v16528_v1 }
  0xac   : > { %v2777_v5 = vsel %vm21023_vm0, %v2759_v3, %v2760_v2  ;;  %2739 = vrot.lane.b32.xlu0 %v2061_v50, %s16905_s12 }
  0xad   : > { %v2779_v7 = vsel %vm2778_vm7, %v2724_v63, %v2777_v5  ;;  %v17219_v8 = vpop.permute.xlu1 %3042  ;;  %v3041_v9 = vpop.permute.xlu0 %3040  ;;  %v649_v5 = vld [vmem:[%s17070_s21 + $0x58] sm:$0xff] }
  0xae   : > { %2830 = vst [vmem:[#allocation2 + $0x1a4] sm:$0xcc] %v2779_v7  ;;  %v3077_v10 = vrot.slane %v17219_v8, 4  ;;  %v3076_v11 = vrot.slane %v3041_v9, 4 }
  0xaf   : > { %866 = vrot.lane.b32.xlu1 %v839_v4, %s16901_s24 }
  0xb0   : > { %v3094_v14 = vsel %vm21023_vm0, %v3076_v11, %v3077_v10  ;;  %529 = vrot.lane.b32.xlu0 %v14112_v58, %s16900_s23 }
  0xb1   : > { %v3096_v19 = vsel %vm3095_vm8, %v3041_v9, %v3094_v14  ;;  %v17230_v21 = vpop.permute.xlu1 %852  ;;  %v17232_v22 = vpop.permute.xlu0 %515 }
  0xb2   : > { %3147 = vst [vmem:[#allocation2 + $0x230] sm:$0x33] %v3096_v19  ;;  %v886_v23 = vrot.slane %v17230_v21, 4  ;;  %v549_v25 = vrot.slane %v17232_v22, 4 }
  0xb3   : > { %1525 = vrot.lane.b32.xlu1 %v839_v4, %s20988_s25  ;;  %v14203_v4 = vpack.c.bf16 %v2241_v59, %v2206_v51 }
  0xb4   : > { %v905_v31 = vsel %vm21023_vm0, %v885_v30, %v886_v23  ;;  %v569_v32 = vsel %vm21023_vm0, %v548_v20, %v549_v25  ;;  %1184 = vrot.lane.b32.xlu0 %v14112_v58, %s21013_s22  ;;  %v3202_v30 = vld [vmem:[#allocation2 + $0x118] sm:$0xff] }
  0xb5   : > { %v906_v34 = vsel %vm903_vm2, %v17167_v27, %v905_v31  ;;  %v570_v35 = vsel %vm567_vm1, %v17157_v18, %v569_v32  ;;  %v17252_v36 = vpop.permute.xlu1 %1511  ;;  %v17254_v37 = vpop.permute.xlu0 %1170  ;;  %v3220_v39 = vld [vmem:[#allocation2 + $0x1a4] sm:$0xff]  ;;  %v17259_v27 = vpack.c.bf16 %v683_v28, %v648_v16  ;;  %v2063_v19 = vrot.slane %v14203_v4, 6 }
  0xb6   : > { %v16529_v41 = vld [vmem:[#allocation2 + $0x11c] ss:$140 sps:$4 sm:$0xff]   ;;  %956 = vst [vmem:[#allocation2 + $0x8] sm:$0xcc] %v906_v34  ;;  %620 = vst [vmem:[#allocation2 + $0x8] sm:$0x33] %v570_v35  ;;  %v13238_v43 = vcombine.low %v3202_v30, %v3220_v39 }
  0xb7   : > { %v1545_v20 = vrot.slane %v17252_v36, 4  ;;  %v1204_v42 = vrot.slane %v17254_v37, 4  ;;  %3808 = vmatprep.subr.bf16.mxu0 %v16529_v41  ;;  %2406 = vrot.lane.b32.xlu1 %v14202_v15, %s16904_s10 }
  0xb8   : > { %3809 = vmatpush1.bf16.msra.mxu0 %v13238_v43  ;;  %2089 = vrot.lane.b32.xlu0 %v2062_v33, %s21034_s26 }
  0xb9   : > { %v1564_v18 = vsel %vm21023_vm0, %v1544_v40, %v1545_v20  ;;  %v1223_v44 = vsel %vm21023_vm0, %v1203_v29, %v1204_v42  ;;  %v17276_v49 = vpop.permute.xlu1 %2392  ;;  %v17278_v50 = vpop.permute.xlu0 %2075  ;;  %v3238_v40 = vld [vmem:[#allocation2 + $0x230] sm:$0x33] }
  0xba   : > { %v1565_v45 = vsel %vm21019_vm4, %v17181_v38, %v1564_v18  ;;  %v1224_v47 = vsel %vm1221_vm3, %v17153_v13, %v1223_v44  ;;  %v2426_v29 = vrot.slane %v17276_v49, 4  ;;  %v2109_v52 = vrot.slane %v17278_v50, 4  ;;  %v1872_v18 = vld [vmem:[%s17070_s21 + $0x5c] sm:$0xff] }
  0xbb   : > { %1616 = vst [vmem:[#allocation2 + $0x94] sm:$0xcc] %v1565_v45  ;;  %1274 = vst [vmem:[#allocation2 + $0x94] sm:$0x33] %v1224_v47  ;;  %v13274_v53 = vcombine.high %v3238_v40, %v3238_v40  ;;  %v13273_v55 = vcombine.low %v3238_v40, %v3238_v40  ;;  %3058 = vrot.lane.b32.xlu1 %v14202_v15, %s20987_s13  ;;  %v840_v38 = vrot.slane %v17259_v27, 6 }
  0xbc   : > { %v2445_v13 = vsel %vm21023_vm0, %v2425_v56, %v2426_v29  ;;  %v2128_v57 = vsel %vm21023_vm0, %v2108_v48, %v2109_v52  ;;  %2741 = vrot.lane.b32.xlu0 %v2062_v33, %s16905_s12  ;;  %v17309_v48 = vld [vmem:[%s20972_s1] sm:$0x3] }
  0xbd   : > { %13308 = vmatprep.subr.msk.bf16.mxu0 %vm21022_vm9, %v13274_v53  ;;  %v3702_v58 = vsel %vm21022_vm9, %v13273_v55, 0  ;;  %v2446_v60 = vsel %vm2443_vm6, %v17200_v54, %v2445_v13  ;;  %v2129_v56 = vsel %vm2126_vm5, %v17191_v46, %v2128_v57  ;;  %v17302_v61 = vpop.permute.xlu1 %3044  ;;  %v17304_v63 = vpop.permute.xlu0 %2727  ;;  %v1641_v46 = vld [vmem:[%s17070_s21 + $0x44] sm:$0xff]  ;;  %v1642_v57 = vld [vmem:[%s17070_s21 + $0x4c] sm:$0xff] }
  0xbe   : > { %3811 = vmatpush1.bf16.msra.mxu0 %v3702_v58  ;;  %2496 = vst [vmem:[#allocation2 + $0x1ac] sm:$0x33] %v2446_v60  ;;  %2179 = vst [vmem:[#allocation2 + $0x120] sm:$0xcc] %v2129_v56  ;;  %v3078_v0 = vrot.slane %v17302_v61, 4  ;;  %v2761_v54 = vrot.slane %v17304_v63, 4  ;;  %v1676_v12 = vcombine.high %v1641_v46, %v1641_v46 }
  0xbf   : > { %868 = vrot.lane.b32.xlu1 %v840_v38, %s16901_s24 }
  0xc0   : > { %v3097_v1 = vsel %vm21023_vm0, %v3077_v10, %v3078_v0  ;;  %v2780_v3 = vsel %vm21023_vm0, %v2760_v2, %v2761_v54  ;;  %531 = vrot.lane.b32.xlu0 %v17259_v27, %s16900_s23 }
  0xc1   : > { %13309 = vmatmul.mubr.msk.bf16.vlgmr.msra.gmra.mrb[0].mxu0 %vm21018_vm10, %v17309_v48  ;;  %v3098_v6 = vsel %vm3095_vm8, %v17219_v8, %v3097_v1  ;;  %v2781_v7 = vsel %vm2778_vm7, %v17210_v62, %v2780_v3  ;;  %v17334_v9 = vpop.permute.xlu1 %854  ;;  %v17336_v10 = vpop.permute.xlu0 %517  ;;  %v684_v8 = vcombine.high %v649_v5, %v649_v5  ;;  %v14165_v62 = vpack.c.bf16 %v1676_v12, %v1641_v46 }
  0xc2   : > { %v16534_v11 = vld [vmem:[#allocation2 + $0x8] ss:$140 sps:$4 sm:$0xff]   ;;  %v16536_v2 = vld [vmem:[#allocation2 + $0xc] ss:$140 sps:$4 sm:$0xff]   ;;  %3879 = vmatprep.mubr.bf16.mxu0 %v16907_v24  ;;  %3148 = vst [vmem:[#allocation2 + $0x238] sm:$0x33] %v3098_v6 }
  0xc3   : > { %2831 = vst [vmem:[#allocation2 + $0x1ac] sm:$0xcc] %v2781_v7  ;;  %v887_v14 = vrot.slane %v17334_v9, 4  ;;  %v550_v15 = vrot.slane %v17336_v10, 4  ;;  %3847 = vmatprep.subr.bf16.mxu0 %v16536_v2  ;;  %1527 = vrot.lane.b32.xlu1 %v840_v38, %s20988_s25  ;;  %1851 = vst [vmem:[#allocation2 + $0x158] sm:$0x33] %v14165_v62  ;;  %v17365_v33 = vpack.c.bf16 %v684_v8, %v649_v5 }
  0xc4   : > { %3848 = vmatpush1.bf16.msra.mxu0 %v16534_v11  ;;  %1186 = vrot.lane.b32.xlu0 %v17259_v27, %s21013_s22  ;;  %v1643_v62 = vld [vmem:[%s17070_s21 + $0x54] sm:$0xff] }
  0xc5   : > { %v907_v16 = vsel %vm21023_vm0, %v886_v23, %v887_v14  ;;  %v571_v17 = vsel %vm21023_vm0, %v549_v25, %v550_v15  ;;  %v17358_v31 = vpop.permute.xlu1 %1513  ;;  %v17360_v23 = vpop.permute.xlu0 %1172 }
  0xc6   : > { %v908_v26 = vsel %vm903_vm2, %v17230_v21, %v907_v16  ;;  %v572_v28 = vsel %vm567_vm1, %v17232_v22, %v571_v17  ;;  %v1546_v25 = vrot.slane %v17358_v31, 4  ;;  %v1205_v32 = vrot.slane %v17360_v23, 4 }
  0xc7   : > { %957 = vst [vmem:[#allocation2 + $0x10] sm:$0xcc] %v908_v26  ;;  %621 = vst [vmem:[#allocation2 + $0x10] sm:$0x33] %v572_v28  ;;  %2408 = vrot.lane.b32.xlu1 %v14203_v4, %s16904_s10  ;;  %v1678_v17 = vcombine.high %v1643_v62, %v1643_v62 }
  0xc8   : > { %v1566_v21 = vsel %vm21023_vm0, %v1545_v20, %v1546_v25  ;;  %v1225_v22 = vsel %vm21023_vm0, %v1204_v42, %v1205_v32  ;;  %2091 = vrot.lane.b32.xlu0 %v2063_v19, %s21034_s26 }
  0xc9   : > { %v1567_v34 = vsel %vm21019_vm4, %v17252_v36, %v1566_v21  ;;  %v1226_v35 = vsel %vm1221_vm3, %v17254_v37, %v1225_v22  ;;  %v17382_v30 = vpop.permute.xlu1 %2394  ;;  %v17384_v39 = vpop.permute.xlu0 %2077  ;;  %v3239_v27 = vld [vmem:[#allocation2 + $0x238] sm:$0x33]  ;;  %v841_v37 = vrot.slane %v17365_v33, 6 }
  0xca   : > { %v16538_v41 = vld [vmem:[#allocation2 + $0x120] ss:$140 sps:$4 sm:$0xff]   ;;  %v16540_v20 = vld [vmem:[#allocation2 + $0x124] ss:$140 sps:$4 sm:$0xff]   ;;  %1617 = vst [vmem:[#allocation2 + $0x9c] sm:$0xcc] %v1567_v34  ;;  %v13276_v44 = vcombine.high %v3239_v27, %v3239_v27  ;;  %v13275_v36 = vcombine.low %v3239_v27, %v3239_v27  ;;  %v14167_v27 = vpack.c.bf16 %v1678_v17, %v1643_v62 }
  0xcb   : > { %1275 = vst [vmem:[#allocation2 + $0x9c] sm:$0x33] %v1226_v35  ;;  %v2427_v43 = vrot.slane %v17382_v30, 4  ;;  %v2110_v42 = vrot.slane %v17384_v39, 4  ;;  %3849 = vmatprep.subr.bf16.mxu0 %v16540_v20  ;;  %3060 = vrot.lane.b32.xlu1 %v14203_v4, %s20987_s13  ;;  %v2208_v20 = vld [vmem:[%s17070_s21 + $0x64] sm:$0xff] }
  0xcc   : > { %3850 = vmatpush1.bf16.msra.mxu0 %v16538_v41  ;;  %2743 = vrot.lane.b32.xlu0 %v2063_v19, %s16905_s12  ;;  %v3708_v13 = vsel %vm21022_vm9, %v13275_v36, 0  ;;  %1853 = vst [vmem:[#allocation2 + $0x168] sm:$0x33] %v14167_v27 }
  0xcd   : > { %v2447_v45 = vsel %vm21023_vm0, %v2426_v29, %v2427_v43  ;;  %v2130_v47 = vsel %vm21023_vm0, %v2109_v52, %v2110_v42  ;;  %v17406_v53 = vpop.permute.xlu1 %3046  ;;  %v17408_v55 = vpop.permute.xlu0 %2729  ;;  %13310 = vmatprep.subr.msk.bf16.mxu0 %vm21022_vm9, %v13276_v44  ;;  %v1907_v29 = vcombine.high %v1872_v18, %v1872_v18 }
  0xce   : > { %v2448_v40 = vsel %vm2443_vm6, %v17276_v49, %v2447_v45  ;;  %v2131_v51 = vsel %vm2126_vm5, %v17278_v50, %v2130_v47  ;;  %v3079_v52 = vrot.slane %v17406_v53, 4  ;;  %v2762_v38 = vrot.slane %v17408_v55, 4 }
  0xcf   : > { %2497 = vst [vmem:[#allocation2 + $0x1b4] sm:$0x33] %v2448_v40  ;;  %2180 = vst [vmem:[#allocation2 + $0x128] sm:$0xcc] %v2131_v51  ;;  %870 = vrot.lane.b32.xlu1 %v841_v37, %s16901_s24  ;;  %v17436_v1 = vpack.c.bf16 %v1907_v29, %v1872_v18 }
  0xd0   : > { %v3099_v49 = vsel %vm21023_vm0, %v3078_v0, %v3079_v52  ;;  %v2782_v50 = vsel %vm21023_vm0, %v2761_v54, %v2762_v38  ;;  %3852 = vmatpush1.bf16.msra.mxu0 %v3708_v13  ;;  %533 = vrot.lane.b32.xlu0 %v17365_v33, %s16900_s23  ;;  %v1677_v54 = vcombine.high %v1642_v57, %v1642_v57 }
  0xd1   : > { %v3100_v58 = vsel %vm3095_vm8, %v17302_v61, %v3099_v49  ;;  %v2783_v59 = vsel %vm2778_vm7, %v17304_v63, %v2782_v50  ;;  %v17432_v60 = vpop.permute.xlu1 %856  ;;  %v17434_v56 = vpop.permute.xlu0 %519  ;;  %v650_v61 = vld [vmem:[%s17070_s21 + $0x60] sm:$0xff] }
  0xd2   : > { %v16544_v0 = vld [vmem:[#allocation2 + $0x10] ss:$140 sps:$4 sm:$0xff]   ;;  %v16546_v46 = vld [vmem:[#allocation2 + $0x14] ss:$140 sps:$4 sm:$0xff]   ;;  %3149 = vst [vmem:[#allocation2 + $0x240] sm:$0x33] %v3100_v58  ;;  %v14166_v63 = vpack.c.bf16 %v1677_v54, %v1642_v57  ;;  %v685_v8 = vcombine.high %v650_v61, %v650_v61 }
  0xd3   : > { %2832 = vst [vmem:[#allocation2 + $0x1b4] sm:$0xcc] %v2783_v59  ;;  %v888_v3 = vrot.slane %v17432_v60, 4  ;;  %v551_v4 = vrot.slane %v17434_v56, 4  ;;  %13311 = vmatmul.mubr.msk.bf16.vlgmr.msra.gmra.mrb[4].mxu0 %vm21018_vm10, %v17309_v48  ;;  %3888 = vmatprep.subr.bf16.mxu0 %v16546_v46 }
  0xd4   : > { %3889 = vmatpush1.bf16.msra.mxu0 %v16544_v0  ;;  %3920 = vmatprep.mubr.bf16.mxu0 %v16907_v24  ;;  %1852 = vst [vmem:[#allocation2 + $0x160] sm:$0x33] %v14166_v63  ;;  %v14115_v41 = vpack.c.bf16 %v685_v8, %v650_v61 }
  0xd5   : > { %v909_v5 = vsel %vm21023_vm0, %v887_v14, %v888_v3  ;;  %v573_v6 = vsel %vm21023_vm0, %v550_v15, %v551_v4  ;;  %v17458_v2 = vpop.permute.xlu1 %1515  ;;  %v17460_v12 = vpop.permute.xlu0 %1174  ;;  %1529 = vrot.lane.b32.xlu1 %v841_v37, %s20988_s25  ;;  %1188 = vrot.lane.b32.xlu0 %v17365_v33, %s21013_s22  ;;  %v2064_v14 = vrot.slane %v17436_v1, 6 }
  0xd6   : > { %v910_v7 = vsel %vm903_vm2, %v17334_v9, %v909_v5  ;;  %v574_v11 = vsel %vm567_vm1, %v17336_v10, %v573_v6  ;;  %v1547_v15 = vrot.slane %v17458_v2, 4  ;;  %v1206_v9 = vrot.slane %v17460_v12, 4  ;;  %v2212_v10 = vld [vmem:[%s17070_s21 + $0x84] sm:$0xff] }
  0xd7   : > { %958 = vst [vmem:[#allocation2 + $0x18] sm:$0xcc] %v910_v7  ;;  %622 = vst [vmem:[#allocation2 + $0x18] sm:$0x33] %v574_v11  ;;  %v2247_v16 = vcombine.high %v2212_v10, %v2212_v10 }
  0xd8   : > { %v1568_v19 = vsel %vm21023_vm0, %v1546_v25, %v1547_v15  ;;  %v1227_v26 = vsel %vm21023_vm0, %v1205_v32, %v1206_v9 }
  0xd9   : > { %v1569_v28 = vsel %vm21019_vm4, %v17358_v31, %v1568_v19  ;;  %v1228_v33 = vsel %vm1221_vm3, %v17360_v23, %v1227_v26  ;;  %v17484_v21 = vpop.permute.xlu1 %2396  ;;  %v17486_v22 = vpop.permute.xlu0 %2079  ;;  %2093 = vrot.lane.b32.xlu0 %v2064_v14, %s21034_s26  ;;  %2410 = vrot.lane.b32.xlu1 %v17436_v1, %s16904_s10  ;;  %v17491_v25 = vpack.c.bf16 %v2247_v16, %v2212_v10  ;;  %v3240_v23 = vld [vmem:[#allocation2 + $0x240] sm:$0x33] }
  0xda   : > { %v16548_v34 = vld [vmem:[#allocation2 + $0x128] ss:$140 sps:$4 sm:$0xff]   ;;  %v16550_v35 = vld [vmem:[#allocation2 + $0x12c] ss:$140 sps:$4 sm:$0xff]   ;;  %1618 = vst [vmem:[#allocation2 + $0xa4] sm:$0xcc] %v1569_v28  ;;  %v13278_v18 = vcombine.high %v3240_v23, %v3240_v23  ;;  %v13277_v44 = vcombine.low %v3240_v23, %v3240_v23 }
  0xdb   : > { %1276 = vst [vmem:[#allocation2 + $0xa4] sm:$0x33] %v1228_v33  ;;  %v2428_v31 = vrot.slane %v17484_v21, 4  ;;  %v2111_v32 = vrot.slane %v17486_v22, 4  ;;  %3890 = vmatprep.subr.bf16.mxu0 %v16550_v35  ;;  %1859 = vst [vmem:[#allocation2 + $0x198] sm:$0x33] %v17491_v25 }
  0xdc   : > { %3891 = vmatpush1.bf16.msra.mxu0 %v16548_v34  ;;  %v2209_v33 = vld [vmem:[%s17070_s21 + $0x6c] sm:$0xff] }
  0xdd   : > { %v2449_v36 = vsel %vm21023_vm0, %v2427_v43, %v2428_v31  ;;  %v2132_v37 = vsel %vm21023_vm0, %v2110_v42, %v2111_v32  ;;  %v17511_v40 = vpop.permute.xlu1 %3048  ;;  %v17513_v51 = vpop.permute.xlu0 %2731  ;;  %13312 = vmatprep.subr.msk.bf16.mxu0 %vm21022_vm9, %v13278_v18  ;;  %2745 = vrot.lane.b32.xlu0 %v2064_v14, %s16905_s12  ;;  %v2243_v43 = vcombine.high %v2208_v20, %v2208_v20 }
  0xde   : > { %v2450_v45 = vsel %vm2443_vm6, %v17382_v30, %v2449_v36  ;;  %v2133_v47 = vsel %vm2126_vm5, %v17384_v39, %v2132_v37  ;;  %v3080_v42 = vrot.slane %v17511_v40, 4  ;;  %v2763_v29 = vrot.slane %v17513_v51, 4  ;;  %3062 = vrot.lane.b32.xlu1 %v17436_v1, %s20987_s13  ;;  %v3169_v0 = vld [vmem:[#allocation2 + $0x18] sm:$0xff] }
  0xdf   : > { %2498 = vst [vmem:[#allocation2 + $0x1bc] sm:$0x33] %v2450_v45  ;;  %2181 = vst [vmem:[#allocation2 + $0x130] sm:$0xcc] %v2133_v47  ;;  %v842_v30 = vrot.slane %v14115_v41, 6  ;;  %v3714_v39 = vsel %vm21022_vm9, %v13277_v44, 0  ;;  %v14205_v1 = vpack.c.bf16 %v2243_v43, %v2208_v20 }
  0xe0   : > { %v3101_v13 = vsel %vm21023_vm0, %v3079_v52, %v3080_v42  ;;  %v2784_v49 = vsel %vm21023_vm0, %v2762_v38, %v2763_v29  ;;  %3893 = vmatpush1.bf16.msra.mxu0 %v3714_v39 }
  0xe1   : > { %v3102_v50 = vsel %vm3095_vm8, %v17406_v53, %v3101_v13  ;;  %v2785_v57 = vsel %vm2778_vm7, %v17408_v55, %v2784_v49  ;;  %v17536_v58 = vpop.permute.xlu1 %858  ;;  %v17538_v59 = vpop.permute.xlu0 %521  ;;  %535 = vrot.lane.b32.xlu0 %v14115_v41, %s16900_s23  ;;  %v651_v55 = vld [vmem:[%s17070_s21 + $0x68] sm:$0xff] }
  0xe2   : > { %v3187_v52 = vld [vmem:[#allocation2 + $0xa4] sm:$0xff]  ;;  %3150 = vst [vmem:[#allocation2 + $0x248] sm:$0x33] %v3102_v50  ;;  %2833 = vst [vmem:[#allocation2 + $0x1bc] sm:$0xcc] %v2785_v57  ;;  %v889_v38 = vrot.slane %v17536_v58, 4  ;;  %872 = vrot.lane.b32.xlu1 %v842_v30, %s16901_s24  ;;  %v686_v8 = vcombine.high %v651_v55, %v651_v55 }
  0xe3   : > { %v16554_v46 = vld [vmem:[#allocation2 + $0x1c] ss:$140 sps:$4 sm:$0xff]   ;;  %v552_v53 = vrot.slane %v17538_v59, 4  ;;  %v13209_v54 = vcombine.low %v3169_v0, %v3187_v52  ;;  %13313 = vmatmul.mubr.msk.bf16.vlgmr.msra.gmra.mrb[8].mxu0 %vm21018_vm10, %v17309_v48 }
  0xe4   : > { %3929 = vmatprep.subr.bf16.mxu1 %v16554_v46  ;;  %v911_v61 = vsel %vm21023_vm0, %v888_v3, %v889_v38  ;;  %4002 = vmatprep.mubr.bf16.mxu0 %v16907_v24  ;;  %v2065_v3 = vrot.slane %v14205_v1, 6 }
  0xe5   : > { %v575_v63 = vsel %vm21023_vm0, %v551_v4, %v552_v53  ;;  %3930 = vmatpush1.bf16.msra.mxu1 %v13209_v54  ;;  %v912_v5 = vsel %vm903_vm2, %v17432_v60, %v911_v61  ;;  %v17562_v7 = vpop.permute.xlu1 %1517  ;;  %v17564_v11 = vpop.permute.xlu0 %1176  ;;  %1190 = vrot.lane.b32.xlu0 %v14115_v41, %s21013_s22 }
  0xe6   : > { %v576_v6 = vsel %vm567_vm1, %v17434_v56, %v575_v63  ;;  %959 = vst [vmem:[#allocation2 + $0x20] sm:$0xcc] %v912_v5  ;;  %v1548_v4 = vrot.slane %v17562_v7, 4  ;;  %v1207_v14 = vrot.slane %v17564_v11, 4  ;;  %1531 = vrot.lane.b32.xlu1 %v842_v30, %s20988_s25 }
  0xe7   : > { %623 = vst [vmem:[#allocation2 + $0x20] sm:$0x33] %v576_v6 }
  0xe8   : > { %v1570_v60 = vsel %vm21023_vm0, %v1547_v15, %v1548_v4  ;;  %v1229_v56 = vsel %vm21023_vm0, %v1206_v9, %v1207_v14 }
  0xe9   : > { %v1571_v10 = vsel %vm21019_vm4, %v17458_v2, %v1570_v60  ;;  %v1230_v62 = vsel %vm1221_vm3, %v17460_v12, %v1229_v56  ;;  %v17584_v16 = vpop.permute.xlu1 %2398  ;;  %v17586_v17 = vpop.permute.xlu0 %2081  ;;  %v16558_v19 = vld [vmem:[#allocation2 + $0x134] ss:$140 sps:$4 sm:$0xff]   ;;  %v16560_v26 = vld [vmem:[#allocation2 + $0x130] ss:$140 sps:$4 sm:$0xff]   ;;  %2095 = vrot.lane.b32.xlu0 %v2065_v3, %s21034_s26  ;;  %v3241_v28 = vld [vmem:[#allocation2 + $0x248] sm:$0x33]  ;;  %v14116_v2 = vpack.c.bf16 %v686_v8, %v651_v55 }
  0xea   : > { %1619 = vst [vmem:[#allocation2 + $0xac] sm:$0xcc] %v1571_v10  ;;  %1277 = vst [vmem:[#allocation2 + $0xac] sm:$0x33] %v1230_v62  ;;  %v2429_v15 = vrot.slane %v17584_v16, 4  ;;  %v2112_v9 = vrot.slane %v17586_v17, 4  ;;  %2412 = vrot.lane.b32.xlu1 %v14205_v1, %s16904_s10  ;;  %3931 = vmatprep.subr.bf16.mxu1 %v16558_v19  ;;  %v13280_v12 = vcombine.high %v3241_v28, %v3241_v28 }
  0xeb   : > { %v13279_v34 = vcombine.low %v3241_v28, %v3241_v28  ;;  %3932 = vmatpush1.bf16.msra.mxu1 %v16560_v26  ;;  %v2210_v60 = vld [vmem:[%s17070_s21 + $0x74] sm:$0xff] }
  0xec   : > { %v2451_v35 = vsel %vm21023_vm0, %v2428_v31, %v2429_v15  ;;  %v2134_v23 = vsel %vm21023_vm0, %v2111_v32, %v2112_v9  ;;  %13314 = vmatprep.subr.msk.bf16.mxu1 %vm21022_vm9, %v13280_v12  ;;  %v2244_v31 = vcombine.high %v2209_v33, %v2209_v33 }
  0xed   : > { %v2452_v41 = vsel %vm2443_vm6, %v17484_v21, %v2451_v35  ;;  %v2135_v20 = vsel %vm2126_vm5, %v17486_v22, %v2134_v23  ;;  %v17607_v27 = vpop.permute.xlu1 %3050  ;;  %v17609_v18 = vpop.permute.xlu0 %2733  ;;  %2747 = vrot.lane.b32.xlu0 %v2065_v3, %s16905_s12  ;;  %v843_v21 = vrot.slane %v14116_v2, 6  ;;  %v3720_v22 = vsel %vm21022_vm9, %v13279_v34, 0 }
  0xee   : > { %2499 = vst [vmem:[#allocation2 + $0x1c4] sm:$0x33] %v2452_v41  ;;  %2182 = vst [vmem:[#allocation2 + $0x138] sm:$0xcc] %v2135_v20  ;;  %v3081_v32 = vrot.slane %v17607_v27, 4  ;;  %v2764_v44 = vrot.slane %v17609_v18, 4  ;;  %3064 = vrot.lane.b32.xlu1 %v14205_v1, %s20987_s13  ;;  %v14206_v13 = vpack.c.bf16 %v2244_v31, %v2209_v33 }
  0xef   : > { %3934 = vmatpush1.bf16.msra.mxu1 %v3720_v22 }
  0xf0   : > { %v3103_v36 = vsel %vm21023_vm0, %v3080_v42, %v3081_v32  ;;  %v2786_v37 = vsel %vm21023_vm0, %v2763_v29, %v2764_v44  ;;  %v2066_v1 = vrot.slane %v14206_v13, 6 }
  0xf1   : > { %v3104_v45 = vsel %vm3095_vm8, %v17511_v40, %v3103_v36  ;;  %v2787_v47 = vsel %vm2778_vm7, %v17513_v51, %v2786_v37  ;;  %v17631_v43 = vpop.permute.xlu1 %860  ;;  %v17633_v30 = vpop.permute.xlu0 %523  ;;  %v16564_v39 = vld [vmem:[#allocation2 + $0x20] ss:$140 sps:$4 sm:$0xff]   ;;  %v16566_v42 = vld [vmem:[#allocation2 + $0x24] ss:$140 sps:$4 sm:$0xff]   ;;  %537 = vrot.lane.b32.xlu0 %v14116_v2, %s16900_s23 }
  0xf2   : > { %3151 = vst [vmem:[#allocation2 + $0x250] sm:$0x33] %v3104_v45  ;;  %2834 = vst [vmem:[#allocation2 + $0x1c4] sm:$0xcc] %v2787_v47  ;;  %v890_v29 = vrot.slane %v17631_v43, 4  ;;  %v553_v49 = vrot.slane %v17633_v30, 4  ;;  %874 = vrot.lane.b32.xlu1 %v843_v21, %s16901_s24  ;;  %13315 = vmatmul.mubr.msk.bf16.vlgmr.msra.gmra.mrb[0].mxu1 %vm21018_vm10, %v17309_v48 }
  0xf3   : > { %3970 = vmatprep.subr.bf16.mxu0 %v16566_v42  ;;  %v652_v40 = vld [vmem:[%s17070_s21 + $0x70] sm:$0xff]  ;;  %4043 = vmatprep.mubr.bf16.mxu1 %v16907_v24 }
  0xf4   : > { %v913_v51 = vsel %vm21023_vm0, %v889_v38, %v890_v29  ;;  %v577_v50 = vsel %vm21023_vm0, %v552_v53, %v553_v49  ;;  %3971 = vmatpush1.bf16.msra.mxu0 %v16564_v39  ;;  %v687_v54 = vcombine.high %v652_v40, %v652_v40 }
  0xf5   : > { %v914_v57 = vsel %vm903_vm2, %v17536_v58, %v913_v51  ;;  %v578_v0 = vsel %vm567_vm1, %v17538_v59, %v577_v50  ;;  %v17657_v52 = vpop.permute.xlu1 %1519  ;;  %v17659_v46 = vpop.permute.xlu0 %1178  ;;  %1192 = vrot.lane.b32.xlu0 %v14116_v2, %s21013_s22 }
  0xf6   : > { %960 = vst [vmem:[#allocation2 + $0x28] sm:$0xcc] %v914_v57  ;;  %624 = vst [vmem:[#allocation2 + $0x28] sm:$0x33] %v578_v0  ;;  %v1549_v38 = vrot.slane %v17657_v52, 4  ;;  %v1208_v53 = vrot.slane %v17659_v46, 4  ;;  %1533 = vrot.lane.b32.xlu1 %v843_v21, %s20988_s25 }
  0xf8   : > { %v1572_v58 = vsel %vm21023_vm0, %v1548_v4, %v1549_v38  ;;  %v1231_v59 = vsel %vm21023_vm0, %v1207_v14, %v1208_v53 }
  0xf9   : > { %v1573_v55 = vsel %vm21019_vm4, %v17562_v7, %v1572_v58  ;;  %v1232_v61 = vsel %vm1221_vm3, %v17564_v11, %v1231_v59  ;;  %v17679_v63 = vpop.permute.xlu1 %2400  ;;  %v17681_v5 = vpop.permute.xlu0 %2083  ;;  %v16569_v6 = vld [vmem:[#allocation2 + $0x138] ss:$140 sps:$4 sm:$0xff]   ;;  %v16571_v3 = vld [vmem:[#allocation2 + $0x13c] ss:$140 sps:$4 sm:$0xff]   ;;  %2097 = vrot.lane.b32.xlu0 %v2066_v1, %s21034_s26  ;;  %v3242_v8 = vld [vmem:[#allocation2 + $0x250] sm:$0x33]  ;;  %v14117_v7 = vpack.c.bf16 %v687_v54, %v652_v40 }
  0xfa   : > { %1620 = vst [vmem:[#allocation2 + $0xb4] sm:$0xcc] %v1573_v55  ;;  %1278 = vst [vmem:[#allocation2 + $0xb4] sm:$0x33] %v1232_v61  ;;  %v2430_v4 = vrot.slane %v17679_v63, 4  ;;  %v2113_v14 = vrot.slane %v17681_v5, 4  ;;  %2414 = vrot.lane.b32.xlu1 %v14206_v13, %s16904_s10  ;;  %3972 = vmatprep.subr.bf16.mxu0 %v16571_v3  ;;  %v13282_v11 = vcombine.high %v3242_v8, %v3242_v8 }
  0xfb   : > { %v13281_v56 = vcombine.low %v3242_v8, %v3242_v8  ;;  %3973 = vmatpush1.bf16.msra.mxu0 %v16569_v6  ;;  %v2211_v58 = vld [vmem:[%s17070_s21 + $0x7c] sm:$0xff] }
  0xfc   : > { %v2453_v10 = vsel %vm21023_vm0, %v2429_v15, %v2430_v4  ;;  %v2136_v62 = vsel %vm21023_vm0, %v2112_v9, %v2113_v14  ;;  %13316 = vmatprep.subr.msk.bf16.mxu0 %vm21022_vm9, %v13282_v11  ;;  %v2245_v15 = vcombine.high %v2210_v60, %v2210_v60 }
  0xfd   : > { %v2454_v19 = vsel %vm2443_vm6, %v17584_v16, %v2453_v10  ;;  %v2137_v26 = vsel %vm2126_vm5, %v17586_v17, %v2136_v62  ;;  %v17702_v28 = vpop.permute.xlu1 %3052  ;;  %v17704_v2 = vpop.permute.xlu0 %2735  ;;  %2749 = vrot.lane.b32.xlu0 %v2066_v1, %s16905_s12  ;;  %v844_v16 = vrot.slane %v14117_v7, 6  ;;  %v3726_v17 = vsel %vm21022_vm9, %v13281_v56, 0 }
  0xfe   : > { %2500 = vst [vmem:[#allocation2 + $0x1cc] sm:$0x33] %v2454_v19  ;;  %2183 = vst [vmem:[#allocation2 + $0x140] sm:$0xcc] %v2137_v26  ;;  %v3082_v9 = vrot.slane %v17702_v28, 4  ;;  %v2765_v33 = vrot.slane %v17704_v2, 4  ;;  %3066 = vrot.lane.b32.xlu1 %v14206_v13, %s20987_s13  ;;  %v14207_v21 = vpack.c.bf16 %v2245_v15, %v2210_v60 }
  0xff   : > { %3975 = vmatpush1.bf16.msra.mxu0 %v3726_v17 }
 0x100   : > { %v3105_v12 = vsel %vm21023_vm0, %v3081_v32, %v3082_v9  ;;  %v2788_v34 = vsel %vm21023_vm0, %v2764_v44, %v2765_v33  ;;  %v2067_v42 = vrot.slane %v14207_v21, 6 }
 0x101   : > { %v3106_v35 = vsel %vm3095_vm8, %v17607_v27, %v3105_v12  ;;  %v2789_v23 = vsel %vm2778_vm7, %v17609_v18, %v2788_v34  ;;  %v17726_v41 = vpop.permute.xlu1 %862  ;;  %v17728_v20 = vpop.permute.xlu0 %525  ;;  %v16574_v31 = vld [vmem:[#allocation2 + $0x28] ss:$140 sps:$4 sm:$0xff]   ;;  %v16576_v32 = vld [vmem:[#allocation2 + $0x2c] ss:$140 sps:$4 sm:$0xff]   ;;  %539 = vrot.lane.b32.xlu0 %v14117_v7, %s16900_s23 }
 0x102   : > { %3152 = vst [vmem:[#allocation2 + $0x258] sm:$0x33] %v3106_v35  ;;  %2835 = vst [vmem:[#allocation2 + $0x1cc] sm:$0xcc] %v2789_v23  ;;  %v891_v44 = vrot.slane %v17726_v41, 4  ;;  %v554_v22 = vrot.slane %v17728_v20, 4  ;;  %876 = vrot.lane.b32.xlu1 %v844_v16, %s16901_s24  ;;  %13317 = vmatmul.mubr.msk.bf16.vlgmr.msra.gmra.mrb[12].mxu0 %vm21018_vm10, %v17309_v48 }
 0x103   : > { %4011 = vmatprep.subr.bf16.mxu1 %v16576_v32  ;;  %v653_v27 = vld [vmem:[%s17070_s21 + $0x78] sm:$0xff]  ;;  %4084 = vmatprep.mubr.bf16.mxu0 %v16907_v24 }
 0x104   : > { %v915_v18 = vsel %vm21023_vm0, %v890_v29, %v891_v44  ;;  %v579_v36 = vsel %vm21023_vm0, %v553_v49, %v554_v22  ;;  %4012 = vmatpush1.bf16.msra.mxu1 %v16574_v31  ;;  %v688_v49 = vcombine.high %v653_v27, %v653_v27 }
 0x105   : > { %v916_v37 = vsel %vm903_vm2, %v17631_v43, %v915_v18  ;;  %v580_v45 = vsel %vm567_vm1, %v17633_v30, %v579_v36  ;;  %v17752_v47 = vpop.permute.xlu1 %1521  ;;  %v17754_v39 = vpop.permute.xlu0 %1180  ;;  %1194 = vrot.lane.b32.xlu0 %v14117_v7, %s21013_s22 }
 0x106   : > { %961 = vst [vmem:[#allocation2 + $0x30] sm:$0xcc] %v916_v37  ;;  %625 = vst [vmem:[#allocation2 + $0x30] sm:$0x33] %v580_v45  ;;  %v1550_v13 = vrot.slane %v17752_v47, 4  ;;  %v1209_v29 = vrot.slane %v17754_v39, 4  ;;  %1535 = vrot.lane.b32.xlu1 %v844_v16, %s20988_s25 }
 0x108   : > { %v1574_v43 = vsel %vm21023_vm0, %v1549_v38, %v1550_v13  ;;  %v1233_v30 = vsel %vm21023_vm0, %v1208_v53, %v1209_v29 }
 0x109   : > { %v1575_v40 = vsel %vm21019_vm4, %v17657_v52, %v1574_v43  ;;  %v1234_v51 = vsel %vm1221_vm3, %v17659_v46, %v1233_v30  ;;  %v17774_v50 = vpop.permute.xlu1 %2402  ;;  %v17776_v57 = vpop.permute.xlu0 %2085  ;;  %v16578_v0 = vld [vmem:[#allocation2 + $0x140] ss:$140 sps:$4 sm:$0xff]   ;;  %v16580_v1 = vld [vmem:[#allocation2 + $0x144] ss:$140 sps:$4 sm:$0xff]   ;;  %2099 = vrot.lane.b32.xlu0 %v2067_v42, %s21034_s26  ;;  %v3243_v54 = vld [vmem:[#allocation2 + $0x258] sm:$0x33]  ;;  %v14118_v52 = vpack.c.bf16 %v688_v49, %v653_v27 }
 0x10a   : > { %1621 = vst [vmem:[#allocation2 + $0xbc] sm:$0xcc] %v1575_v40  ;;  %1279 = vst [vmem:[#allocation2 + $0xbc] sm:$0x33] %v1234_v51  ;;  %v2431_v38 = vrot.slane %v17774_v50, 4  ;;  %v2114_v53 = vrot.slane %v17776_v57, 4  ;;  %2416 = vrot.lane.b32.xlu1 %v14207_v21, %s16904_s10  ;;  %4013 = vmatprep.subr.bf16.mxu1 %v16580_v1  ;;  %v13284_v46 = vcombine.high %v3243_v54, %v3243_v54 }
 0x10b   : > { %v13283_v59 = vcombine.low %v3243_v54, %v3243_v54  ;;  %4014 = vmatpush1.bf16.msra.mxu1 %v16578_v0 }
 0x10c   : > { %v2455_v55 = vsel %vm21023_vm0, %v2430_v4, %v2431_v38  ;;  %v2138_v61 = vsel %vm21023_vm0, %v2113_v14, %v2114_v53  ;;  %13318 = vmatprep.subr.msk.bf16.mxu1 %vm21022_vm9, %v13284_v46  ;;  %v2246_v4 = vcombine.high %v2211_v58, %v2211_v58 }
 0x10d   : > { %v2456_v6 = vsel %vm2443_vm6, %v17679_v63, %v2455_v55  ;;  %v2139_v3 = vsel %vm2126_vm5, %v17681_v5, %v2138_v61  ;;  %v17797_v8 = vpop.permute.xlu1 %3054  ;;  %v17799_v7 = vpop.permute.xlu0 %2737  ;;  %2751 = vrot.lane.b32.xlu0 %v2067_v42, %s16905_s12  ;;  %v845_v63 = vrot.slane %v14118_v52, 6  ;;  %v3732_v5 = vsel %vm21022_vm9, %v13283_v59, 0 }
 0x10e   : > { %2501 = vst [vmem:[#allocation2 + $0x1d4] sm:$0x33] %v2456_v6  ;;  %2184 = vst [vmem:[#allocation2 + $0x148] sm:$0xcc] %v2139_v3  ;;  %v3083_v14 = vrot.slane %v17797_v8, 4  ;;  %v2766_v60 = vrot.slane %v17799_v7, 4  ;;  %3068 = vrot.lane.b32.xlu1 %v14207_v21, %s20987_s13 }
 0x10f   : > { %4016 = vmatpush1.bf16.msra.mxu1 %v3732_v5 }
 0x110   : > { %v3107_v11 = vsel %vm21023_vm0, %v3082_v9, %v3083_v14  ;;  %v2790_v56 = vsel %vm21023_vm0, %v2765_v33, %v2766_v60  ;;  %v14208_v9 = vpack.c.bf16 %v2246_v4, %v2211_v58 }
 0x111   : > { %v3108_v10 = vsel %vm3095_vm8, %v17702_v28, %v3107_v11  ;;  %v2791_v62 = vsel %vm2778_vm7, %v17704_v2, %v2790_v56  ;;  %v16583_v19 = vld [vmem:[#allocation2 + $0x30] ss:$140 sps:$4 sm:$0xff]   ;;  %v16585_v26 = vld [vmem:[#allocation2 + $0x34] ss:$140 sps:$4 sm:$0xff]   ;;  %v17821_v15 = vpop.permute.xlu1 %864  ;;  %v17823_v16 = vpop.permute.xlu0 %527  ;;  %541 = vrot.lane.b32.xlu0 %v14118_v52, %s16900_s23 }
 0x112   : > { %3153 = vst [vmem:[#allocation2 + $0x260] sm:$0x33] %v3108_v10  ;;  %2836 = vst [vmem:[#allocation2 + $0x1d4] sm:$0xcc] %v2791_v62  ;;  %v892_v33 = vrot.slane %v17821_v15, 4  ;;  %v555_v17 = vrot.slane %v17823_v16, 4  ;;  %878 = vrot.lane.b32.xlu1 %v845_v63, %s16901_s24  ;;  %13319 = vmatmul.mubr.msk.bf16.vlgmr.msra.gmra.mrb[4].mxu1 %vm21018_vm10, %v17309_v48 }
 0x113   : > { %4052 = vmatprep.subr.bf16.mxu0 %v16585_v26  ;;  %v654_v28 = vld [vmem:[%s17070_s21 + $0x80] sm:$0xff]  ;;  %4125 = vmatprep.mubr.bf16.mxu1 %v16907_v24  ;;  %v2068_v32 = vrot.slane %v14208_v9, 6  ;;  %v655_v10 = vld [vmem:[%s17070_s21 + $0x88] sm:$0xf] }
 0x114   : > { %4053 = vmatpush1.bf16.msra.mxu0 %v16583_v19  ;;  %v917_v2 = vsel %vm21023_vm0, %v891_v44, %v892_v33  ;;  %v581_v12 = vsel %vm21023_vm0, %v554_v22, %v555_v17  ;;  %v689_v22 = vcombine.high %v654_v28, %v654_v28  ;;  %v1308_v62 = vld [vmem:[%s17070_s21 + $0x88] sm:$0xff] }
 0x115   : > { %v918_v34 = vsel %vm903_vm2, %v17726_v41, %v917_v2  ;;  %v582_v35 = vsel %vm567_vm1, %v17728_v20, %v581_v12  ;;  %v17847_v23 = vpop.permute.xlu1 %1523  ;;  %v17849_v31 = vpop.permute.xlu0 %1182  ;;  %1196 = vrot.lane.b32.xlu0 %v14118_v52, %s21013_s22  ;;  %v1344_v2 = vcombine.high %v1308_v62, %v1308_v62 }
 0x116   : > { %962 = vst [vmem:[#allocation2 + $0x38] sm:$0xcc] %v918_v34  ;;  %626 = vst [vmem:[#allocation2 + $0x38] sm:$0x33] %v582_v35  ;;  %v1551_v21 = vrot.slane %v17847_v23, 4  ;;  %v1210_v44 = vrot.slane %v17849_v31, 4  ;;  %1537 = vrot.lane.b32.xlu1 %v845_v63, %s20988_s25  ;;  %v14119_v43 = vpack.c.bf16 %v689_v22, %v654_v28 }
 0x117   : > { %v336_v28 = vld [vmem:[%s17070_s21 + $0x88] sm:$0xf] }
 0x118   : > { %v1576_v41 = vsel %vm21023_vm0, %v1550_v13, %v1551_v21  ;;  %v1235_v20 = vsel %vm21023_vm0, %v1209_v29, %v1210_v44 }
 0x119   : > { %v16587_v27 = vld [vmem:[#allocation2 + $0x148] ss:$140 sps:$4 sm:$0xff]   ;;  %v16589_v18 = vld [vmem:[#allocation2 + $0x14c] ss:$140 sps:$4 sm:$0xff]   ;;  %v1577_v36 = vsel %vm21019_vm4, %v17752_v47, %v1576_v41  ;;  %v1236_v37 = vsel %vm1221_vm3, %v17754_v39, %v1235_v20  ;;  %v17869_v45 = vpop.permute.xlu1 %2404  ;;  %v17871_v42 = vpop.permute.xlu0 %2087  ;;  %2101 = vrot.lane.b32.xlu0 %v2068_v32, %s21034_s26  ;;  %v3244_v13 = vld [vmem:[#allocation2 + $0x260] sm:$0x33]  ;;  %v14102_v41 = vpack.c.bf16 %v336_v28, %v336_v28 }
 0x11a   : > { %1622 = vst [vmem:[#allocation2 + $0xc4] sm:$0xcc] %v1577_v36  ;;  %1280 = vst [vmem:[#allocation2 + $0xc4] sm:$0x33] %v1236_v37  ;;  %v2432_v49 = vrot.slane %v17869_v45, 4  ;;  %v2115_v29 = vrot.slane %v17871_v42, 4  ;;  %2418 = vrot.lane.b32.xlu1 %v14208_v9, %s16904_s10  ;;  %4054 = vmatprep.subr.bf16.mxu0 %v16589_v18  ;;  %v13286_v47 = vcombine.high %v3244_v13, %v3244_v13 }
 0x11b   : > { %v13285_v30 = vcombine.low %v3244_v13, %v3244_v13  ;;  %4055 = vmatpush1.bf16.msra.mxu0 %v16587_v27  ;;  %v14156_v36 = vpack.c.bf16 %v1344_v2, %v1308_v62  ;;  %v991_v37 = vld [vmem:[%s17070_s21 + $0x88] sm:$0xf] }
 0x11c   : > { %v2457_v39 = vsel %vm21023_vm0, %v2431_v38, %v2432_v49  ;;  %v2140_v40 = vsel %vm21023_vm0, %v2114_v53, %v2115_v29  ;;  %13320 = vmatprep.subr.msk.bf16.mxu0 %vm21022_vm9, %v13286_v47  ;;  %v846_v53 = vrot.slane %v14119_v43, 6  ;;  %v1878_v47 = vld [vmem:[%s17070_s21 + $0x8c] sm:$0xf] }
 0x11d   : > { %v2458_v51 = vsel %vm2443_vm6, %v17774_v50, %v2457_v39  ;;  %v2141_v0 = vsel %vm2126_vm5, %v17776_v57, %v2140_v40  ;;  %v17892_v1 = vpop.permute.xlu1 %3056  ;;  %2753 = vrot.lane.b32.xlu0 %v2068_v32, %s16905_s12  ;;  %v3738_v52 = vsel %vm21022_vm9, %v13285_v30, 0  ;;  %v14138_v39 = vpack.c.bf16 %v991_v37, %v991_v37 }
 0x11e   : > { %2502 = vst [vmem:[#allocation2 + $0x1dc] sm:$0x33] %v2458_v51  ;;  %2185 = vst [vmem:[#allocation2 + $0x150] sm:$0xcc] %v2141_v0  ;;  %v3084_v38 = vrot.slane %v17892_v1, 4  ;;  %v17896_v54 = vpop.permute.xlu0 %2739  ;;  %3070 = vrot.lane.b32.xlu1 %v14208_v9, %s20987_s13  ;;  %v1506_v0 = vrot.slane %v14156_v36, 6 }
 0x11f   : > { %v2767_v50 = vrot.slane %v17896_v54, 4  ;;  %4057 = vmatpush1.bf16.msra.mxu0 %v3738_v52 }
 0x120   : > { %v3109_v57 = vsel %vm21023_vm0, %v3083_v14, %v3084_v38 }
 0x121   : > { %v3110_v58 = vsel %vm3095_vm8, %v17797_v8, %v3109_v57  ;;  %v2792_v46 = vsel %vm21023_vm0, %v2766_v60, %v2767_v50  ;;  %v17913_v59 = vpop.permute.xlu1 %866  ;;  %v16595_v55 = vld [vmem:[#allocation2 + $0x38] ss:$140 sps:$4 sm:$0xff]   ;;  %v16597_v61 = vld [vmem:[#allocation2 + $0x3c] ss:$140 sps:$4 sm:$0xff]   ;;  %543 = vrot.lane.b32.xlu0 %v14119_v43, %s16900_s23 }
 0x122   : > { %3154 = vst [vmem:[#allocation2 + $0x268] sm:$0x33] %v3110_v58  ;;  %v2793_v6 = vsel %vm2778_vm7, %v17799_v7, %v2792_v46  ;;  %v893_v3 = vrot.slane %v17913_v59, 4  ;;  %v17919_v4 = vpop.permute.xlu0 %529  ;;  %880 = vrot.lane.b32.xlu1 %v846_v53, %s16901_s24  ;;  %4093 = vmatprep.subr.bf16.mxu1 %v16597_v61  ;;  %v1644_v61 = vld [vmem:[%s17070_s21 + $0x5c] sm:$0xff] }
 0x123   : > { %2837 = vst [vmem:[#allocation2 + $0x1dc] sm:$0xcc] %v2793_v6  ;;  %v556_v8 = vrot.slane %v17919_v4, 4  ;;  %13321 = vmatmul.mubr.msk.bf16.vlgmr.msra.gmra.mrb[16].mxu0 %vm21018_vm10, %v17309_v48  ;;  %4094 = vmatpush1.bf16.msra.mxu1 %v16595_v55  ;;  %v2069_v48 = vrot.slane %v17491_v25, 6  ;;  %v2213_v55 = vld [vmem:[%s17070_s21 + $0x8c] sm:$0xf] }
 0x124   : > { %v919_v7 = vsel %vm21023_vm0, %v892_v33, %v893_v3  ;;  %4166 = vmatprep.mubr.bf16.mxu0 %v16907_v24 }
 0x125   : > { %v920_v14 = vsel %vm903_vm2, %v17821_v15, %v919_v7  ;;  %v583_v60 = vsel %vm21023_vm0, %v555_v17, %v556_v8  ;;  %v17938_v63 = vpop.permute.xlu1 %1525  ;;  %1198 = vrot.lane.b32.xlu0 %v14119_v43, %s21013_s22  ;;  %v14120_v17 = vpack.c.bf16 %v655_v10, %v655_v10  ;;  %v1679_v7 = vcombine.high %v1644_v61, %v1644_v61 }
 0x126   : > { %963 = vst [vmem:[#allocation2 + $0x40] sm:$0xcc] %v920_v14  ;;  %v584_v5 = vsel %vm567_vm1, %v17823_v16, %v583_v60  ;;  %v1552_v11 = vrot.slane %v17938_v63, 4  ;;  %v17945_v56 = vpop.permute.xlu0 %1184  ;;  %1539 = vrot.lane.b32.xlu1 %v846_v53, %s20988_s25  ;;  %v14192_v53 = vpack.c.bf16 %v1878_v47, %v1878_v47 }
 0x127   : > { %627 = vst [vmem:[#allocation2 + $0x40] sm:$0x33] %v584_v5  ;;  %v1211_v19 = vrot.slane %v17945_v56, 4  ;;  %v847_v43 = vrot.slane %v14120_v17, 6 }
 0x128   : > { %v1578_v26 = vsel %vm21023_vm0, %v1551_v21, %v1552_v11 }
 0x129   : > { %v1579_v15 = vsel %vm21019_vm4, %v17847_v23, %v1578_v26  ;;  %v1237_v16 = vsel %vm21023_vm0, %v1210_v44, %v1211_v19  ;;  %v17963_v9 = vpop.permute.xlu1 %2406  ;;  %v3245_v33 = vld [vmem:[#allocation2 + $0x268] sm:$0x33]  ;;  %2103 = vrot.lane.b32.xlu0 %v2069_v48, %s21034_s26 }
 0x12a   : > { %1623 = vst [vmem:[#allocation2 + $0xcc] sm:$0xcc] %v1579_v15  ;;  %v1238_v12 = vsel %vm1221_vm3, %v17849_v31, %v1237_v16  ;;  %v2433_v34 = vrot.slane %v17963_v9, 4  ;;  %v17970_v35 = vpop.permute.xlu0 %2089  ;;  %v16600_v23 = vld [vmem:[#allocation2 + $0x150] ss:$140 sps:$4 sm:$0xff]   ;;  %v13288_v21 = vcombine.high %v3245_v33, %v3245_v33  ;;  %v13287_v44 = vcombine.low %v3245_v33, %v3245_v33  ;;  %2420 = vrot.lane.b32.xlu1 %v17491_v25, %s16904_s10 }
 0x12b   : > { %v16602_v32 = vld [vmem:[#allocation2 + $0x154] ss:$140 sps:$4 sm:$0xff]   ;;  %1281 = vst [vmem:[#allocation2 + $0xcc] sm:$0x33] %v1238_v12  ;;  %v2116_v22 = vrot.slane %v17970_v35, 4  ;;  %v14168_v15 = vpack.c.bf16 %v1679_v7, %v1644_v61 }
 0x12c   : > { %v2459_v31 = vsel %vm21023_vm0, %v2432_v49, %v2433_v34  ;;  %4095 = vmatprep.subr.bf16.mxu1 %v16602_v32  ;;  %v2865_v26 = vld [vmem:[%s17070_s21 + $0x8c] sm:$0xf] }
 0x12d   : > { %v2460_v20 = vsel %vm2443_vm6, %v17869_v45, %v2459_v31  ;;  %v2142_v27 = vsel %vm21023_vm0, %v2115_v29, %v2116_v22  ;;  %v17987_v18 = vpop.permute.xlu1 %3058  ;;  %4096 = vmatpush1.bf16.msra.mxu1 %v16600_v23  ;;  %2755 = vrot.lane.b32.xlu0 %v2069_v48, %s16905_s12  ;;  %v3744_v29 = vsel %vm21022_vm9, %v13287_v44, 0  ;;  %v2070_v48 = vrot.slane %v14192_v53, 6  ;;  %1854 = vst [vmem:[#allocation2 + $0x170] sm:$0x33] %v14168_v15 }
 0x12e   : > { %2503 = vst [vmem:[#allocation2 + $0x1e4] sm:$0x33] %v2460_v20  ;;  %v2143_v13 = vsel %vm2126_vm5, %v17871_v42, %v2142_v27  ;;  %v3085_v49 = vrot.slane %v17987_v18, 4  ;;  %v17994_v45 = vpop.permute.xlu0 %2741  ;;  %13322 = vmatprep.subr.msk.bf16.mxu1 %vm21022_vm9, %v13288_v21  ;;  %3072 = vrot.lane.b32.xlu1 %v17491_v25, %s20987_s13  ;;  %v14246_v23 = vpack.c.bf16 %v2865_v26, %v2865_v26 }
 0x12f   : > { %2186 = vst [vmem:[#allocation2 + $0x158] sm:$0xcc] %v2143_v13  ;;  %v2768_v30 = vrot.slane %v17994_v45, 4 }
 0x130   : > { %v3111_v42 = vsel %vm21023_vm0, %v3084_v38, %v3085_v49  ;;  %v2530_v38 = vld [vmem:[%s17070_s21 + $0x8c] sm:$0xf] }
 0x131   : > { %v3112_v40 = vsel %vm3095_vm8, %v17892_v1, %v3111_v42  ;;  %v2794_v25 = vsel %vm21023_vm0, %v2767_v50, %v2768_v30  ;;  %v18014_v51 = vpop.permute.xlu1 %868  ;;  %4098 = vmatpush1.bf16.msra.mxu1 %v3744_v29  ;;  %545 = vrot.lane.b32.xlu0 %v14102_v41, %s16900_s23  ;;  %v14228_v5 = vpack.c.bf16 %v2530_v38, %v2530_v38 }
 0x132   : > { %3155 = vst [vmem:[#allocation2 + $0x270] sm:$0x33] %v3112_v40  ;;  %v2795_v1 = vsel %vm2778_vm7, %v17896_v54, %v2794_v25  ;;  %v894_v52 = vrot.slane %v18014_v51, 4  ;;  %v18021_v57 = vpop.permute.xlu0 %531  ;;  %v16604_v58 = vld [vmem:[#allocation2 + $0x40] ss:$140 sps:$4 sm:$0xff]   ;;  %882 = vrot.lane.b32.xlu1 %v847_v43, %s16901_s24  ;;  %s21031_s24 = smov 33  }
 0x133   : > { %v16606_v50 = vld [vmem:[#allocation2 + $0x44] ss:$140 sps:$4 sm:$0xff]   ;;  %2838 = vst [vmem:[#allocation2 + $0x1e4] sm:$0xcc] %v2795_v1  ;;  %v557_v46 = vrot.slane %v18021_v57, 4  ;;  %v2722_v12 = vrot.slane %v14228_v5, 6 }
 0x134   : > { %v921_v6 = vsel %vm21023_vm0, %v893_v3, %v894_v52  ;;  %4134 = vmatprep.subr.bf16.mxu0 %v16606_v50  ;;  %v18035_v54 = vld [vmem:[%s20972_s1] sm:$0x3] }
 0x135   : > { %13323 = vmatmul.mubr.msk.bf16.vlgmr.msra.gmra.mrb[8].mxu1 %vm21018_vm10, %v18035_v54  ;;  %v922_v14 = vsel %vm903_vm2, %v17913_v59, %v921_v6  ;;  %v585_v3 = vsel %vm21023_vm0, %v556_v8, %v557_v46  ;;  %v18046_v60 = vpop.permute.xlu1 %1527  ;;  %4135 = vmatpush1.bf16.msra.mxu0 %v16604_v58  ;;  %v14210_v8 = vpack.c.bf16 %v2213_v55, %v2213_v55 }
 0x136   : > { %1200 = vrot.lane.b32.xlu0 %v14138_v39, %s21013_s22  ;;  %964 = vst [vmem:[#allocation2 + $0x48] sm:$0xcc] %v922_v14  ;;  %v586_v10 = vsel %vm567_vm1, %v17919_v4, %v585_v3  ;;  %v1553_v62 = vrot.slane %v18046_v60, 4  ;;  %v18052_v59 = vpop.permute.xlu0 %1186  ;;  %1541 = vrot.lane.b32.xlu1 %v1506_v0, %s20988_s25  ;;  %v1645_v0 = vld [vmem:[%s17070_s21 + $0x64] sm:$0xff] }
 0x137   : > { %4207 = vmatprep.mubr.bf16.mxu1 %v16907_v24  ;;  %628 = vst [vmem:[#allocation2 + $0x48] sm:$0x33] %v586_v10  ;;  %v1212_v16 = vrot.slane %v18052_v59, 4 }
 0x138   : > { %v1580_v4 = vsel %vm21023_vm0, %v1552_v11, %v1553_v62 }
 0x139   : > { %v1581_v33 = vsel %vm21019_vm4, %v17938_v63, %v1580_v4  ;;  %v1239_v17 = vsel %vm21023_vm0, %v1211_v19, %v1212_v16  ;;  %v18070_v28 = vpop.permute.xlu1 %2408  ;;  %v3246_v2 = vld [vmem:[#allocation2 + $0x270] sm:$0x33] }
 0x13a   : > { %2105 = vrot.lane.b32.xlu0 %v2070_v48, %s21034_s26  ;;  %1624 = vst [vmem:[#allocation2 + $0xd4] sm:$0xcc] %v1581_v33  ;;  %v1240_v11 = vsel %vm1221_vm3, %v17945_v56, %v1239_v17  ;;  %v2434_v32 = vrot.slane %v18070_v28, 4  ;;  %v18076_v63 = vpop.permute.xlu0 %2091  ;;  %v16611_v21 = vld [vmem:[#allocation2 + $0x158] ss:$140 sps:$4 sm:$0xff]   ;;  %v13290_v31 = vcombine.high %v3246_v2, %v3246_v2  ;;  %v13289_v41 = vcombine.low %v3246_v2, %v3246_v2 }
 0x13b   : > { %v16613_v44 = vld [vmem:[#allocation2 + $0x15c] ss:$140 sps:$4 sm:$0xff]   ;;  %2422 = vrot.lane.b32.xlu1 %v14210_v8, %s16904_s10  ;;  %1282 = vst [vmem:[#allocation2 + $0xd4] sm:$0x33] %v1240_v11  ;;  %v2117_v19 = vrot.slane %v18076_v63, 4  ;;  %v1646_v11 = vld [vmem:[%s17070_s21 + $0x6c] sm:$0xff] }
 0x13c   : > { %v2461_v20 = vsel %vm21023_vm0, %v2433_v34, %v2434_v32  ;;  %4136 = vmatprep.subr.bf16.mxu0 %v16613_v44  ;;  %s20996_s10 = smov 57  }
 0x13d   : > { %v2462_v56 = vsel %vm2443_vm6, %v17963_v9, %v2461_v20  ;;  %v2144_v27 = vsel %vm21023_vm0, %v2116_v22, %v2117_v19  ;;  %v18092_v36 = vpop.permute.xlu1 %3060  ;;  %4137 = vmatpush1.bf16.msra.mxu0 %v16611_v21  ;;  %v3750_v9 = vsel %vm21022_vm9, %v13289_v41, 0 }
 0x13e   : > { %2757 = vrot.lane.b32.xlu0 %v2722_v12, %s16905_s12  ;;  %2504 = vst [vmem:[#allocation2 + $0x1ec] sm:$0x33] %v2462_v56  ;;  %v2145_v37 = vsel %vm2126_vm5, %v17970_v35, %v2144_v27  ;;  %v3086_v34 = vrot.slane %v18092_v36, 4  ;;  %v18098_v13 = vpop.permute.xlu0 %2743  ;;  %13324 = vmatprep.subr.msk.bf16.mxu0 %vm21022_vm9, %v13290_v31  ;;  %v1681_v31 = vcombine.high %v1646_v11, %v1646_v11 }
 0x13f   : > { %3074 = vrot.lane.b32.xlu1 %v14246_v23, %s20987_s13  ;;  %2187 = vst [vmem:[#allocation2 + $0x160] sm:$0xcc] %v2145_v37  ;;  %v2769_v22 = vrot.slane %v18098_v13, 4 }
 0x140   : > { %v3113_v35 = vsel %vm21023_vm0, %v3085_v49, %v3086_v34  ;;  %v14170_v27 = vpack.c.bf16 %v1681_v31, %v1646_v11 }
 0x141   : > { %v3114_v29 = vsel %vm3095_vm8, %v17987_v18, %v3113_v35  ;;  %v2796_v43 = vsel %vm21023_vm0, %v2768_v30, %v2769_v22  ;;  %v18116_v47 = vpop.permute.xlu1 %870  ;;  %4139 = vmatpush1.bf16.msra.mxu0 %v3750_v9 }
 0x142   : > { %3156 = vst [vmem:[#allocation2 + $0x278] sm:$0x33] %v3114_v29  ;;  %v2797_v42 = vsel %vm2778_vm7, %v17994_v45, %v2796_v43  ;;  %v895_v39 = vrot.slane %v18116_v47, 4  ;;  %v18121_v40 = vpop.permute.xlu0 %533  ;;  %v16615_v49 = vld [vmem:[#allocation2 + $0x48] ss:$140 sps:$4 sm:$0xff]   ;;  %v1680_v45 = vcombine.high %v1645_v0, %v1645_v0 }
 0x143   : > { %v16617_v25 = vld [vmem:[#allocation2 + $0x4c] ss:$140 sps:$4 sm:$0xff]   ;;  %2839 = vst [vmem:[#allocation2 + $0x1ec] sm:$0xcc] %v2797_v42  ;;  %v558_v18 = vrot.slane %v18121_v40, 4 }
 0x144   : > { %v923_v30 = vsel %vm21023_vm0, %v894_v52, %v895_v39  ;;  %4175 = vmatprep.subr.bf16.mxu1 %v16617_v25  ;;  %13325 = vmatmul.mubr.msk.bf16.vlgmr.msra.gmra.mrb[20].mxu0 %vm21018_vm10, %v18035_v54  ;;  %v14169_v52 = vpack.c.bf16 %v1680_v45, %v1645_v0  ;;  %1856 = vst [vmem:[#allocation2 + $0x180] sm:$0x33] %v14170_v27 }
 0x145   : > { %v924_v53 = vsel %vm903_vm2, %v18014_v51, %v923_v30  ;;  %v587_v38 = vsel %vm21023_vm0, %v557_v46, %v558_v18  ;;  %4176 = vmatpush1.bf16.msra.mxu1 %v16615_v49  ;;  %4248 = vmatprep.mubr.bf16.mxu0 %v16907_v24 }
 0x146   : > { %965 = vst [vmem:[#allocation2 + $0x50] sm:$0xcc] %v924_v53  ;;  %v588_v1 = vsel %vm567_vm1, %v18021_v57, %v587_v38  ;;  %1855 = vst [vmem:[#allocation2 + $0x178] sm:$0x33] %v14169_v52 }
 0x147   : > { %629 = vst [vmem:[#allocation2 + $0x50] sm:$0x33] %v588_v1  ;;  %v18142_v58 = vpop.permute.xlu1 %1529  ;;  %v18144_v50 = vpop.permute.xlu0 %1188 }
 0x148   : > { %v1554_v51 = vrot.slane %v18142_v58, 4  ;;  %v1213_v55 = vrot.slane %v18144_v50, 4 }
 0x149   : > { %v3247_v61 = vld [vmem:[#allocation2 + $0x278] sm:$0x33] }
 0x14a   : > { %v1582_v46 = vsel %vm21023_vm0, %v1553_v62, %v1554_v51  ;;  %v1241_v57 = vsel %vm21023_vm0, %v1212_v16, %v1213_v55  ;;  %v16622_v6 = vld [vmem:[#allocation2 + $0x160] ss:$140 sps:$4 sm:$0xff]   ;;  %v16624_v7 = vld [vmem:[#allocation2 + $0x164] ss:$140 sps:$4 sm:$0xff]   ;;  %v13292_v14 = vcombine.high %v3247_v61, %v3247_v61  ;;  %v13291_v3 = vcombine.low %v3247_v61, %v3247_v61 }
 0x14b   : > { %v1583_v48 = vsel %vm21019_vm4, %v18046_v60, %v1582_v46  ;;  %v1242_v5 = vsel %vm1221_vm3, %v18052_v59, %v1241_v57  ;;  %v18162_v10 = vpop.permute.xlu0 %2093  ;;  %v18164_v8 = vpop.permute.xlu1 %2410  ;;  %4177 = vmatprep.subr.bf16.mxu1 %v16624_v7  ;;  %v1647_v7 = vld [vmem:[%s17070_s21 + $0x74] sm:$0xff] }
 0x14c   : > { %1625 = vst [vmem:[#allocation2 + $0xdc] sm:$0xcc] %v1583_v48  ;;  %1283 = vst [vmem:[#allocation2 + $0xdc] sm:$0x33] %v1242_v5  ;;  %v2118_v62 = vrot.slane %v18162_v10, 4  ;;  %v2435_v26 = vrot.slane %v18164_v8, 4  ;;  %4178 = vmatpush1.bf16.msra.mxu1 %v16622_v6  ;;  %v1682_v5 = vcombine.high %v1647_v7, %v1647_v7 }
 0x14d   : > { %13326 = vmatprep.subr.msk.bf16.mxu1 %vm21022_vm9, %v13292_v14  ;;  %v3756_v15 = vsel %vm21022_vm9, %v13291_v3, 0 }
 0x14e   : > { %v2146_v60 = vsel %vm21023_vm0, %v2117_v19, %v2118_v62  ;;  %v2463_v59 = vsel %vm21023_vm0, %v2434_v32, %v2435_v26 }
 0x14f   : > { %v2147_v16 = vsel %vm2126_vm5, %v18076_v63, %v2146_v60  ;;  %v2464_v4 = vsel %vm2443_vm6, %v18070_v28, %v2463_v59  ;;  %v18184_v33 = vpop.permute.xlu0 %2745 }
 0x150   : > { %2188 = vst [vmem:[#allocation2 + $0x168] sm:$0xcc] %v2147_v16  ;;  %2505 = vst [vmem:[#allocation2 + $0x1f4] sm:$0x33] %v2464_v4  ;;  %v2770_v17 = vrot.slane %v18184_v33, 4  ;;  %v18187_v2 = vpop.permute.xlu1 %3062  ;;  %4180 = vmatpush1.bf16.msra.mxu1 %v3756_v15  ;;  %v14171_v15 = vpack.c.bf16 %v1682_v5, %v1647_v7 }
 0x151   : > { %v3087_v12 = vrot.slane %v18187_v2, 4 }
 0x152   : > { %v2798_v23 = vsel %vm21023_vm0, %v2769_v22, %v2770_v17  ;;  %1857 = vst [vmem:[#allocation2 + $0x188] sm:$0x33] %v14171_v15 }
 0x153   : > { %v2799_v28 = vsel %vm2778_vm7, %v18098_v13, %v2798_v23  ;;  %v16626_v32 = vld [vmem:[#allocation2 + $0x50] ss:$140 sps:$4 sm:$0xff]   ;;  %v16628_v63 = vld [vmem:[#allocation2 + $0x54] ss:$140 sps:$4 sm:$0xff]   ;;  %v3115_v21 = vsel %vm21023_vm0, %v3086_v34, %v3087_v12  ;;  %v18203_v44 = vpop.permute.xlu0 %535  ;;  %13327 = vmatmul.mubr.msk.bf16.vlgmr.msra.gmra.mrb[12].mxu1 %vm21018_vm10, %v18035_v54 }
 0x154   : > { %2840 = vst [vmem:[#allocation2 + $0x1f4] sm:$0xcc] %v2799_v28  ;;  %v3116_v41 = vsel %vm3095_vm8, %v18092_v36, %v3115_v21  ;;  %v18209_v19 = vpop.permute.xlu1 %872  ;;  %v559_v20 = vrot.slane %v18203_v44, 4  ;;  %4216 = vmatprep.subr.bf16.mxu0 %v16628_v63  ;;  %4289 = vmatprep.mubr.bf16.mxu1 %v16907_v24  ;;  %v1650_v28 = vld [vmem:[%s17070_s21 + $0x8c] sm:$0xf] }
 0x155   : > { %3157 = vst [vmem:[#allocation2 + $0x280] sm:$0x33] %v3116_v41  ;;  %v896_v56 = vrot.slane %v18209_v19, 4  ;;  %4217 = vmatpush1.bf16.msra.mxu0 %v16626_v32  ;;  %v1648_v32 = vld [vmem:[%s17070_s21 + $0x7c] sm:$0xff]  ;;  %v14174_v21 = vpack.c.bf16 %v1650_v28, %v1650_v28  ;;  %s20981_s21 = smov 37  }
 0x156   : > { %v589_v36 = vsel %vm21023_vm0, %v558_v18, %v559_v20 }
 0x157   : > { %v925_v37 = vsel %vm21023_vm0, %v895_v39, %v896_v56  ;;  %v590_v34 = vsel %vm567_vm1, %v18121_v40, %v589_v36  ;;  %v18226_v13 = vpop.permute.xlu0 %1190  ;;  %1860 = vst.msk [vmem:[#allocation2 + $0x1a0] sm:$0x3] %vm636_vm11, %v14174_v21 }
 0x158   : > { %v926_v9 = vsel %vm903_vm2, %v18116_v47, %v925_v37  ;;  %630 = vst [vmem:[#allocation2 + $0x58] sm:$0x33] %v590_v34  ;;  %v18230_v22 = vpop.permute.xlu1 %1531  ;;  %v1214_v35 = vrot.slane %v18226_v13, 4 }
 0x159   : > { %966 = vst [vmem:[#allocation2 + $0x58] sm:$0xcc] %v926_v9  ;;  %v1555_v29 = vrot.slane %v18230_v22, 4 }
 0x15a   : > { %v1243_v43 = vsel %vm21023_vm0, %v1213_v55, %v1214_v35 }
 0x15b   : > { %v16633_v42 = vld [vmem:[#allocation2 + $0x168] ss:$140 sps:$4 sm:$0xff]   ;;  %v16635_v39 = vld [vmem:[#allocation2 + $0x16c] ss:$140 sps:$4 sm:$0xff]   ;;  %v1584_v47 = vsel %vm21023_vm0, %v1554_v51, %v1555_v29  ;;  %v1244_v40 = vsel %vm1221_vm3, %v18144_v50, %v1243_v43  ;;  %v18246_v49 = vpop.permute.xlu0 %2095 }
 0x15c   : > { %v3248_v25 = vld [vmem:[#allocation2 + $0x280] sm:$0x33]  ;;  %v1585_v18 = vsel %vm21019_vm4, %v18142_v58, %v1584_v47  ;;  %1284 = vst [vmem:[#allocation2 + $0xe4] sm:$0x33] %v1244_v40  ;;  %v18250_v0 = vpop.permute.xlu1 %2412  ;;  %v2119_v30 = vrot.slane %v18246_v49, 4  ;;  %4218 = vmatprep.subr.bf16.mxu0 %v16635_v39 }
 0x15d   : > { %v13294_v45 = vcombine.high %v3248_v25, %v3248_v25  ;;  %v13293_v53 = vcombine.low %v3248_v25, %v3248_v25  ;;  %1626 = vst [vmem:[#allocation2 + $0xe4] sm:$0xcc] %v1585_v18  ;;  %v2436_v38 = vrot.slane %v18250_v0, 4  ;;  %4219 = vmatpush1.bf16.msra.mxu0 %v16633_v42 }
 0x15e   : > { %v2148_v1 = vsel %vm21023_vm0, %v2118_v62, %v2119_v30 }
 0x15f   : > { %13328 = vmatprep.subr.msk.bf16.mxu0 %vm21022_vm9, %v13294_v45  ;;  %v3762_v52 = vsel %vm21022_vm9, %v13293_v53, 0  ;;  %v2465_v58 = vsel %vm21023_vm0, %v2435_v26, %v2436_v38  ;;  %v2149_v50 = vsel %vm2126_vm5, %v18162_v10, %v2148_v1  ;;  %v18268_v51 = vpop.permute.xlu0 %2747 }
 0x160   : > { %v2466_v55 = vsel %vm2443_vm6, %v18164_v8, %v2465_v58  ;;  %2189 = vst [vmem:[#allocation2 + $0x170] sm:$0xcc] %v2149_v50  ;;  %v18272_v61 = vpop.permute.xlu1 %3064  ;;  %v2771_v46 = vrot.slane %v18268_v51, 4 }
 0x161   : > { %2506 = vst [vmem:[#allocation2 + $0x1fc] sm:$0x33] %v2466_v55  ;;  %v3088_v57 = vrot.slane %v18272_v61, 4  ;;  %4221 = vmatpush1.bf16.msra.mxu0 %v3762_v52 }
 0x162   : > { %v2800_v6 = vsel %vm21023_vm0, %v2770_v17, %v2771_v46 }
 0x163   : > { %v3117_v14 = vsel %vm21023_vm0, %v3087_v12, %v3088_v57  ;;  %v2801_v3 = vsel %vm2778_vm7, %v18184_v33, %v2800_v6  ;;  %v18289_v48 = vpop.permute.xlu0 %537 }
 0x164   : > { %v3118_v10 = vsel %vm3095_vm8, %v18187_v2, %v3117_v14  ;;  %2841 = vst [vmem:[#allocation2 + $0x1fc] sm:$0xcc] %v2801_v3  ;;  %v18293_v8 = vpop.permute.xlu1 %874  ;;  %v560_v62 = vrot.slane %v18289_v48, 4  ;;  %v16639_v26 = vld [vmem:[#allocation2 + $0x58] ss:$140 sps:$4 sm:$0xff]   ;;  %13329 = vmatmul.mubr.msk.bf16.vlgmr.msra.gmra.mrb[24].mxu0 %vm21018_vm10, %v18035_v54 }
 0x165   : > { %v16641_v60 = vld [vmem:[#allocation2 + $0x5c] ss:$140 sps:$4 sm:$0xff]   ;;  %3158 = vst [vmem:[#allocation2 + $0x288] sm:$0x33] %v3118_v10  ;;  %v897_v59 = vrot.slane %v18293_v8, 4  ;;  %4330 = vmatprep.mubr.bf16.mxu0 %v16907_v24 }
 0x166   : > { %v591_v16 = vsel %vm21023_vm0, %v559_v20, %v560_v62  ;;  %4257 = vmatprep.subr.bf16.mxu1 %v16641_v60 }
 0x167   : > { %v927_v4 = vsel %vm21023_vm0, %v896_v56, %v897_v59  ;;  %v592_v33 = vsel %vm567_vm1, %v18203_v44, %v591_v16  ;;  %4258 = vmatpush1.bf16.msra.mxu1 %v16639_v26  ;;  %v18312_v17 = vpop.permute.xlu0 %1192  ;;  %v1683_v44 = vcombine.high %v1648_v32, %v1648_v32 }
 0x168   : > { %v928_v2 = vsel %vm903_vm2, %v18209_v19, %v927_v4  ;;  %631 = vst [vmem:[#allocation2 + $0x60] sm:$0x33] %v592_v33  ;;  %v18316_v12 = vpop.permute.xlu1 %1533  ;;  %v1215_v23 = vrot.slane %v18312_v17, 4 }
 0x169   : > { %967 = vst [vmem:[#allocation2 + $0x60] sm:$0xcc] %v928_v2  ;;  %v1556_v11 = vrot.slane %v18316_v12, 4  ;;  %v14172_v9 = vpack.c.bf16 %v1683_v44, %v1648_v32 }
 0x16a   : > { %v1245_v63 = vsel %vm21023_vm0, %v1214_v35, %v1215_v23 }
 0x16b   : > { %v1586_v31 = vsel %vm21023_vm0, %v1555_v29, %v1556_v11  ;;  %v1246_v41 = vsel %vm1221_vm3, %v18226_v13, %v1245_v63  ;;  %v18334_v19 = vpop.permute.xlu0 %2097  ;;  %v16643_v20 = vld [vmem:[#allocation2 + $0x170] ss:$140 sps:$4 sm:$0xff]   ;;  %v16645_v56 = vld [vmem:[#allocation2 + $0x174] ss:$140 sps:$4 sm:$0xff]   ;;  %1858 = vst [vmem:[#allocation2 + $0x190] sm:$0x33] %v14172_v9 }
 0x16c   : > { %v1587_v27 = vsel %vm21019_vm4, %v18230_v22, %v1586_v31  ;;  %1285 = vst [vmem:[#allocation2 + $0xec] sm:$0x33] %v1246_v41  ;;  %v18338_v36 = vpop.permute.xlu1 %2414  ;;  %v2120_v37 = vrot.slane %v18334_v19, 4  ;;  %v3249_v34 = vld [vmem:[#allocation2 + $0x288] sm:$0x33]  ;;  %4259 = vmatprep.subr.bf16.mxu1 %v16645_v56 }
 0x16d   : > { %1627 = vst [vmem:[#allocation2 + $0xec] sm:$0xcc] %v1587_v27  ;;  %v2437_v13 = vrot.slane %v18338_v36, 4  ;;  %v13296_v35 = vcombine.high %v3249_v34, %v3249_v34  ;;  %v13295_v29 = vcombine.low %v3249_v34, %v3249_v34  ;;  %4260 = vmatpush1.bf16.msra.mxu1 %v16643_v20 }
 0x16e   : > { %v2150_v22 = vsel %vm21023_vm0, %v2119_v30, %v2120_v37 }
 0x16f   : > { %v2467_v43 = vsel %vm21023_vm0, %v2436_v38, %v2437_v13  ;;  %v2151_v42 = vsel %vm2126_vm5, %v18246_v49, %v2150_v22  ;;  %v18355_v39 = vpop.permute.xlu0 %2749  ;;  %13330 = vmatprep.subr.msk.bf16.mxu1 %vm21022_vm9, %v13296_v35  ;;  %v3768_v47 = vsel %vm21022_vm9, %v13295_v29, 0 }
 0x170   : > { %v2468_v40 = vsel %vm2443_vm6, %v18250_v0, %v2467_v43  ;;  %2190 = vst [vmem:[#allocation2 + $0x178] sm:$0xcc] %v2151_v42  ;;  %v18361_v25 = vpop.permute.xlu1 %3066  ;;  %v2772_v18 = vrot.slane %v18355_v39, 4 }
 0x171   : > { %2507 = vst [vmem:[#allocation2 + $0x204] sm:$0x33] %v2468_v40  ;;  %v3089_v30 = vrot.slane %v18361_v25, 4  ;;  %4262 = vmatpush1.bf16.msra.mxu1 %v3768_v47 }
 0x172   : > { %v2802_v49 = vsel %vm21023_vm0, %v2771_v46, %v2772_v18 }
 0x173   : > { %v3119_v45 = vsel %vm21023_vm0, %v3088_v57, %v3089_v30  ;;  %v2803_v0 = vsel %vm2778_vm7, %v18268_v51, %v2802_v49  ;;  %v18373_v53 = vpop.permute.xlu0 %539 }
 0x174   : > { %v3120_v38 = vsel %vm3095_vm8, %v18272_v61, %v3119_v45  ;;  %2842 = vst [vmem:[#allocation2 + $0x204] sm:$0xcc] %v2803_v0  ;;  %v18377_v1 = vpop.permute.xlu1 %876  ;;  %v561_v52 = vrot.slane %v18373_v53, 4  ;;  %v16646_v58 = vld [vmem:[#allocation2 + $0x60] ss:$140 sps:$4 sm:$0xff]   ;;  %13331 = vmatmul.mubr.msk.bf16.vlgmr.msra.gmra.mrb[16].mxu1 %vm21018_vm10, %v18035_v54 }
 0x175   : > { %v16648_v50 = vld [vmem:[#allocation2 + $0x64] ss:$140 sps:$4 sm:$0xff]   ;;  %3159 = vst [vmem:[#allocation2 + $0x290] sm:$0x33] %v3120_v38  ;;  %v898_v55 = vrot.slane %v18377_v1, 4  ;;  %4371 = vmatprep.mubr.bf16.mxu1 %v16907_v24 }
 0x176   : > { %v593_v51 = vsel %vm21023_vm0, %v560_v62, %v561_v52  ;;  %4298 = vmatprep.subr.bf16.mxu0 %v16648_v50 }
 0x177   : > { %v929_v61 = vsel %vm21023_vm0, %v897_v59, %v898_v55  ;;  %v594_v46 = vsel %vm567_vm1, %v18289_v48, %v593_v51  ;;  %4299 = vmatpush1.bf16.msra.mxu0 %v16646_v58  ;;  %v18394_v57 = vpop.permute.xlu0 %1194 }
 0x178   : > { %v930_v6 = vsel %vm903_vm2, %v18293_v8, %v929_v61  ;;  %632 = vst [vmem:[#allocation2 + $0x68] sm:$0x33] %v594_v46  ;;  %v18398_v7 = vpop.permute.xlu1 %1535  ;;  %v1216_v14 = vrot.slane %v18394_v57, 4 }
 0x179   : > { %968 = vst [vmem:[#allocation2 + $0x68] sm:$0xcc] %v930_v6  ;;  %v1557_v3 = vrot.slane %v18398_v7, 4 }
 0x17a   : > { %v1247_v5 = vsel %vm21023_vm0, %v1215_v23, %v1216_v14 }
 0x17b   : > { %v1588_v48 = vsel %vm21023_vm0, %v1556_v11, %v1557_v3  ;;  %v1248_v10 = vsel %vm1221_vm3, %v18312_v17, %v1247_v5  ;;  %v18410_v8 = vpop.permute.xlu0 %2099  ;;  %v16652_v62 = vld [vmem:[#allocation2 + $0x178] ss:$140 sps:$4 sm:$0xff]   ;;  %v16654_v26 = vld [vmem:[#allocation2 + $0x17c] ss:$140 sps:$4 sm:$0xff]  }
 0x17c   : > { %v1589_v60 = vsel %vm21019_vm4, %v18316_v12, %v1588_v48  ;;  %1286 = vst [vmem:[#allocation2 + $0xf4] sm:$0x33] %v1248_v10  ;;  %v18414_v59 = vpop.permute.xlu1 %2416  ;;  %v2121_v15 = vrot.slane %v18410_v8, 4  ;;  %v3250_v16 = vld [vmem:[#allocation2 + $0x290] sm:$0x33]  ;;  %4300 = vmatprep.subr.bf16.mxu0 %v16654_v26 }
 0x17d   : > { %1628 = vst [vmem:[#allocation2 + $0xf4] sm:$0xcc] %v1589_v60  ;;  %v2438_v4 = vrot.slane %v18414_v59, 4  ;;  %v13298_v33 = vcombine.high %v3250_v16, %v3250_v16  ;;  %v13297_v2 = vcombine.low %v3250_v16, %v3250_v16  ;;  %4301 = vmatpush1.bf16.msra.mxu0 %v16652_v62 }
 0x17e   : > { %v2152_v17 = vsel %vm21023_vm0, %v2120_v37, %v2121_v15 }
 0x17f   : > { %v2469_v12 = vsel %vm21023_vm0, %v2437_v13, %v2438_v4  ;;  %v2153_v23 = vsel %vm2126_vm5, %v18334_v19, %v2152_v17  ;;  %v18430_v11 = vpop.permute.xlu0 %2751  ;;  %13332 = vmatprep.subr.msk.bf16.mxu0 %vm21022_vm9, %v13298_v33  ;;  %v3774_v28 = vsel %vm21022_vm9, %v13297_v2, 0 }
 0x180   : > { %v2470_v32 = vsel %vm2443_vm6, %v18338_v36, %v2469_v12  ;;  %2191 = vst [vmem:[#allocation2 + $0x180] sm:$0xcc] %v2153_v23  ;;  %v18436_v63 = vpop.permute.xlu1 %3068  ;;  %v2773_v21 = vrot.slane %v18430_v11, 4 }
 0x181   : > { %2508 = vst [vmem:[#allocation2 + $0x20c] sm:$0x33] %v2470_v32  ;;  %v3090_v44 = vrot.slane %v18436_v63, 4  ;;  %4303 = vmatpush1.bf16.msra.mxu0 %v3774_v28 }
 0x182   : > { %v2804_v31 = vsel %vm21023_vm0, %v2772_v18, %v2773_v21 }
 0x183   : > { %v3121_v41 = vsel %vm21023_vm0, %v3089_v30, %v3090_v44  ;;  %v2805_v19 = vsel %vm2778_vm7, %v18355_v39, %v2804_v31  ;;  %v18448_v20 = vpop.permute.xlu0 %541 }
 0x184   : > { %v3122_v56 = vsel %vm3095_vm8, %v18361_v25, %v3121_v41  ;;  %2843 = vst [vmem:[#allocation2 + $0x20c] sm:$0xcc] %v2805_v19  ;;  %v18452_v27 = vpop.permute.xlu1 %878  ;;  %v562_v36 = vrot.slane %v18448_v20, 4  ;;  %v16655_v37 = vld [vmem:[#allocation2 + $0x68] ss:$140 sps:$4 sm:$0xff]   ;;  %13333 = vmatmul.mubr.msk.bf16.vlgmr.msra.gmra.mrb[28].mxu0 %vm21018_vm10, %v18035_v54 }
 0x185   : > { %v16657_v34 = vld [vmem:[#allocation2 + $0x6c] ss:$140 sps:$4 sm:$0xff]   ;;  %3160 = vst [vmem:[#allocation2 + $0x298] sm:$0x33] %v3122_v56  ;;  %v899_v9 = vrot.slane %v18452_v27, 4  ;;  %4412 = vmatprep.mubr.bf16.mxu0 %v16907_v24 }
 0x186   : > { %v595_v13 = vsel %vm21023_vm0, %v561_v52, %v562_v36  ;;  %4339 = vmatprep.subr.bf16.mxu1 %v16657_v34  ;;  %v16908_v52 = vmov 0.0  }
 0x187   : > { %v931_v35 = vsel %vm21023_vm0, %v898_v55, %v899_v9  ;;  %v596_v29 = vsel %vm567_vm1, %v18373_v53, %v595_v13  ;;  %4340 = vmatpush1.bf16.msra.mxu1 %v16655_v37  ;;  %v18469_v22 = vpop.permute.xlu0 %1196  ;;  %304 = vst [vmem:[#allocation5] sm:$0xff] %v16908_v52  ;;  %305 = vst [vmem:[#allocation5 + $0x8] sm:$0xff] %v16908_v52 }
 0x188   : > { %v932_v43 = vsel %vm903_vm2, %v18377_v1, %v931_v35  ;;  %633 = vst [vmem:[#allocation2 + $0x70] sm:$0x33] %v596_v29  ;;  %v18473_v42 = vpop.permute.xlu1 %1537  ;;  %v1217_v39 = vrot.slane %v18469_v22, 4  ;;  %306 = vst [vmem:[#allocation5 + $0x10] sm:$0xff] %v16908_v52 }
 0x189   : > { %969 = vst [vmem:[#allocation2 + $0x70] sm:$0xcc] %v932_v43  ;;  %v1558_v47 = vrot.slane %v18473_v42, 4  ;;  %307 = vst [vmem:[#allocation5 + $0x18] sm:$0xff] %v16908_v52 }
 0x18a   : > { %v1249_v40 = vsel %vm21023_vm0, %v1216_v14, %v1217_v39  ;;  %308 = vst [vmem:[#allocation5 + $0x20] sm:$0xff] %v16908_v52  ;;  %313 = vst [vmem:[#allocation6] sm:$0xff] %v16908_v52 }
 0x18b   : > { %v1590_v25 = vsel %vm21023_vm0, %v1557_v3, %v1558_v47  ;;  %v1250_v18 = vsel %vm1221_vm3, %v18394_v57, %v1249_v40  ;;  %v18485_v30 = vpop.permute.xlu0 %2101  ;;  %v16661_v49 = vld [vmem:[#allocation2 + $0x180] ss:$140 sps:$4 sm:$0xff]   ;;  %v16663_v45 = vld [vmem:[#allocation2 + $0x184] ss:$140 sps:$4 sm:$0xff]   ;;  %314 = vst [vmem:[#allocation6 + $0x8] sm:$0xff] %v16908_v52  ;;  %315 = vst [vmem:[#allocation6 + $0x10] sm:$0xff] %v16908_v52 }
 0x18c   : > { %v1591_v0 = vsel %vm21019_vm4, %v18398_v7, %v1590_v25  ;;  %1287 = vst [vmem:[#allocation2 + $0xfc] sm:$0x33] %v1250_v18  ;;  %v18489_v53 = vpop.permute.xlu1 %2418  ;;  %v2122_v38 = vrot.slane %v18485_v30, 4  ;;  %v3251_v1 = vld [vmem:[#allocation2 + $0x298] sm:$0x33]  ;;  %316 = vst [vmem:[#allocation6 + $0x18] sm:$0xff] %v16908_v52  ;;  %4341 = vmatprep.subr.bf16.mxu1 %v16663_v45 }
 0x18d   : > { %1629 = vst [vmem:[#allocation2 + $0xfc] sm:$0xcc] %v1591_v0  ;;  %v2439_v58 = vrot.slane %v18489_v53, 4  ;;  %v13300_v50 = vcombine.high %v3251_v1, %v3251_v1  ;;  %v13299_v55 = vcombine.low %v3251_v1, %v3251_v1  ;;  %4342 = vmatpush1.bf16.msra.mxu1 %v16661_v49 }
 0x18e   : > { %v2154_v51 = vsel %vm21023_vm0, %v2121_v15, %v2122_v38 }
 0x18f   : > { %v2471_v61 = vsel %vm21023_vm0, %v2438_v4, %v2439_v58  ;;  %v2155_v46 = vsel %vm2126_vm5, %v18410_v8, %v2154_v51  ;;  %v18514_v57 = vpop.permute.xlu0 %2753  ;;  %13334 = vmatprep.subr.msk.bf16.mxu1 %vm21022_vm9, %v13300_v50  ;;  %v3780_v6 = vsel %vm21022_vm9, %v13299_v55, 0 }
 0x190   : > { %v2472_v7 = vsel %vm2443_vm6, %v18414_v59, %v2471_v61  ;;  %2192 = vst [vmem:[#allocation2 + $0x188] sm:$0xcc] %v2155_v46  ;;  %v18520_v14 = vpop.permute.xlu1 %3070  ;;  %v2774_v3 = vrot.slane %v18514_v57, 4 }
 0x191   : > { %2509 = vst [vmem:[#allocation2 + $0x214] sm:$0x33] %v2472_v7  ;;  %v3091_v5 = vrot.slane %v18520_v14, 4  ;;  %4344 = vmatpush1.bf16.msra.mxu1 %v3780_v6 }
 0x192   : > { %v2806_v48 = vsel %vm21023_vm0, %v2773_v21, %v2774_v3 }
 0x193   : > { %v3123_v8 = vsel %vm21023_vm0, %v3090_v44, %v3091_v5  ;;  %v2807_v62 = vsel %vm2778_vm7, %v18430_v11, %v2806_v48  ;;  %v18538_v26 = vpop.permute.xlu0 %543 }
 0x194   : > { %v18529_v10 = vpop.f32.mrb[0].mxu0  ;;  %v3124_v59 = vsel %vm3095_vm8, %v18436_v63, %v3123_v8  ;;  %2844 = vst [vmem:[#allocation2 + $0x214] sm:$0xcc] %v2807_v62  ;;  %v18546_v15 = vpop.permute.xlu1 %880  ;;  %v563_v16 = vrot.slane %v18538_v26, 4  ;;  %v16664_v4 = vld [vmem:[#allocation2 + $0x70] ss:$140 sps:$4 sm:$0xff]   ;;  %13335 = vmatmul.mubr.msk.bf16.vlgmr.msra.gmra.mrb[20].mxu1 %vm21018_vm10, %v18035_v54 }
 0x195   : > { %v18540_v60 = vpop.f32.mrb[1].mxu0  ;;  %4578 = vrot.lane.b32.xlu0 %v18529_v10, %s21034_s26  ;;  %3161 = vst [vmem:[#allocation2 + $0x2a0] sm:$0x33] %v3124_v59  ;;  %v900_v2 = vrot.slane %v18546_v15, 4  ;;  %v16666_v17 = vld [vmem:[#allocation2 + $0x74] ss:$140 sps:$4 sm:$0xff]   ;;  %4453 = vmatprep.mubr.bf16.mxu1 %v16907_v24 }
 0x196   : > { %4580 = vrot.lane.b32.xlu1 %v18540_v60, %s21034_s26  ;;  %v3844_v33 = vpop.f32.mrb[2].mxu0  ;;  %v597_v23 = vsel %vm21023_vm0, %v562_v36, %v563_v16  ;;  %4380 = vmatprep.subr.bf16.mxu0 %v16666_v17 }
 0x197   : > { %v3845_v12 = vpop.f32.mrb[3].mxu0  ;;  %v933_v11 = vsel %vm21023_vm0, %v899_v9, %v900_v2  ;;  %v598_v28 = vsel %vm567_vm1, %v18448_v20, %v597_v23  ;;  %v18567_v32 = vpop.permute.xlu0 %1198  ;;  %4381 = vmatpush1.bf16.msra.mxu0 %v16664_v4 }
 0x198   : > { %v934_v63 = vsel %vm903_vm2, %v18452_v27, %v933_v11  ;;  %634 = vst [vmem:[#allocation2 + $0x78] sm:$0x33] %v598_v28  ;;  %v18571_v21 = vpop.permute.xlu1 %1539  ;;  %v1218_v44 = vrot.slane %v18567_v32, 4 }
 0x199   : > { %970 = vst [vmem:[#allocation2 + $0x78] sm:$0xcc] %v934_v63  ;;  %v1559_v31 = vrot.slane %v18571_v21, 4 }
 0x19a   : > { %v1251_v41 = vsel %vm21023_vm0, %v1217_v39, %v1218_v44 }
 0x19b   : > { %v1592_v19 = vsel %vm21023_vm0, %v1558_v47, %v1559_v31  ;;  %v1252_v20 = vsel %vm1221_vm3, %v18469_v22, %v1251_v41  ;;  %v18587_v56 = vpop.permute.xlu0 %2103  ;;  %v16670_v27 = vld [vmem:[#allocation2 + $0x188] ss:$140 sps:$4 sm:$0xff]   ;;  %v16672_v36 = vld [vmem:[#allocation2 + $0x18c] ss:$140 sps:$4 sm:$0xff]  }
 0x19c   : > { %v1593_v37 = vsel %vm21019_vm4, %v18473_v42, %v1592_v19  ;;  %1288 = vst [vmem:[#allocation2 + $0x104] sm:$0x33] %v1252_v20  ;;  %v18591_v34 = vpop.permute.xlu1 %2420  ;;  %v2123_v9 = vrot.slane %v18587_v56, 4  ;;  %v3252_v13 = vld [vmem:[#allocation2 + $0x2a0] sm:$0x33]  ;;  %4382 = vmatprep.subr.bf16.mxu0 %v16672_v36 }
 0x19d   : > { %1630 = vst [vmem:[#allocation2 + $0x104] sm:$0xcc] %v1593_v37  ;;  %v2440_v35 = vrot.slane %v18591_v34, 4  ;;  %v13302_v29 = vcombine.high %v3252_v13, %v3252_v13  ;;  %v13301_v43 = vcombine.low %v3252_v13, %v3252_v13  ;;  %4383 = vmatpush1.bf16.msra.mxu0 %v16670_v27 }
 0x19e   : > { %v2156_v22 = vsel %vm21023_vm0, %v2122_v38, %v2123_v9 }
 0x19f   : > { %v2473_v42 = vsel %vm21023_vm0, %v2439_v58, %v2440_v35  ;;  %v2157_v39 = vsel %vm2126_vm5, %v18485_v30, %v2156_v22  ;;  %v18607_v47 = vpop.permute.xlu0 %2755  ;;  %13336 = vmatprep.subr.msk.bf16.mxu0 %vm21022_vm9, %v13302_v29  ;;  %v3786_v40 = vsel %vm21022_vm9, %v13301_v43, 0 }
 0x1a0   : > { %v2474_v25 = vsel %vm2443_vm6, %v18489_v53, %v2473_v42  ;;  %2193 = vst [vmem:[#allocation2 + $0x190] sm:$0xcc] %v2157_v39  ;;  %v18613_v18 = vpop.permute.xlu1 %3072  ;;  %v2775_v49 = vrot.slane %v18607_v47, 4  ;;  %v16830_v42 = vld [vmem:[%s20972_s1] sm:$0x3] }
 0x1a1   : > { %2510 = vst [vmem:[#allocation2 + $0x21c] sm:$0x33] %v2474_v25  ;;  %v3092_v45 = vrot.slane %v18613_v18, 4  ;;  %4385 = vmatpush1.bf16.msra.mxu0 %v3786_v40 }
 0x1a2   : > { %v2808_v30 = vsel %vm21023_vm0, %v2774_v3, %v2775_v49 }
 0x1a3   : > { %v3125_v0 = vsel %vm21023_vm0, %v3091_v5, %v3092_v45  ;;  %v2809_v53 = vsel %vm2778_vm7, %v18514_v57, %v2808_v30  ;;  %v546_v38 = vpop.permute.xlu0 %545 }
 0x1a4   : > { %v3126_v1 = vsel %vm3095_vm8, %v18520_v14, %v3125_v0  ;;  %2845 = vst [vmem:[#allocation2 + $0x21c] sm:$0xcc] %v2809_v53  ;;  %v883_v58 = vpop.permute.xlu1 %882  ;;  %v564_v50 = vrot.slane %v546_v38, 4  ;;  %637 = vst.msk [vmem:[#allocation2 + $0x88] sm:$0x3] %vm636_vm11, %v546_v38  ;;  %13337 = vmatmul.mubr.msk.bf16.vlgmr.msra.gmra.mrb[32].mxu0 %vm21018_vm10, %v18035_v54 }
 0x1a5   : > { %v16673_v55 = vld [vmem:[#allocation2 + $0x78] ss:$140 sps:$4 sm:$0xff]   ;;  %v16675_v51 = vld [vmem:[#allocation2 + $0x7c] ss:$140 sps:$4 sm:$0xff]   ;;  %3162 = vst [vmem:[#allocation2 + $0x2a8] sm:$0x33] %v3126_v1  ;;  %4494 = vmatprep.mubr.bf16.mxu0 %v16907_v24 }
 0x1a6   : > { %v901_v61 = vrot.slane %v883_v58, 4  ;;  %973 = vst.msk [vmem:[#allocation2 + $0x88] sm:$0xc] %vm972_vm12, %v883_v58  ;;  %v18635_v46 = vpop.f32.mrb[4].mxu0  ;;  %v599_v57 = vsel %vm21023_vm0, %v563_v16, %v564_v50  ;;  %4421 = vmatprep.subr.bf16.mxu1 %v16675_v51 }
 0x1a7   : > { %v18641_v6 = vpop.f32.mrb[5].mxu0  ;;  %4582 = vrot.lane.b32.xlu0 %v18635_v46, %s21034_s26  ;;  %v600_v54 = vsel %vm567_vm1, %v18538_v26, %v599_v57  ;;  %4422 = vmatpush1.bf16.msra.mxu1 %v16673_v55 }
 0x1a8   : > { %v935_v7 = vsel %vm21023_vm0, %v900_v2, %v901_v61  ;;  %v1201_v14 = vpop.permute.xlu0 %1200  ;;  %4584 = vrot.lane.b32.xlu1 %v18641_v6, %s21034_s26  ;;  %v3885_v3 = vpop.f32.mrb[6].mxu0  ;;  %635 = vst [vmem:[#allocation2 + $0x80] sm:$0x33] %v600_v54 }
 0x1a9   : > { %v936_v5 = vsel %vm903_vm2, %v18546_v15, %v935_v7  ;;  %v1542_v48 = vpop.permute.xlu1 %1541  ;;  %v1219_v8 = vrot.slane %v1201_v14, 4  ;;  %1290 = vst.msk [vmem:[#allocation2 + $0x114] sm:$0x3] %vm636_vm11, %v1201_v14  ;;  %v3886_v62 = vpop.f32.mrb[7].mxu0 }
 0x1aa   : > { %971 = vst [vmem:[#allocation2 + $0x80] sm:$0xcc] %v936_v5  ;;  %v1560_v59 = vrot.slane %v1542_v48, 4 }
 0x1ab   : > { %v1253_v26 = vsel %vm21023_vm0, %v1218_v44, %v1219_v8  ;;  %v16678_v2 = vld [vmem:[#allocation2 + $0x190] ss:$140 sps:$4 sm:$0xff]   ;;  %v16680_v17 = vld [vmem:[#allocation2 + $0x194] ss:$140 sps:$4 sm:$0xff]  }
 0x1ac   : > { %v1594_v16 = vsel %vm21023_vm0, %v1559_v31, %v1560_v59  ;;  %v1596_v4 = vsel %vm21019_vm4, %v1542_v48, %v1560_v59  ;;  %v1254_v15 = vsel %vm1221_vm3, %v18567_v32, %v1253_v26  ;;  %v2106_v33 = vpop.permute.xlu0 %2105  ;;  %v3253_v28 = vld [vmem:[#allocation2 + $0x2a8] sm:$0x33]  ;;  %4423 = vmatprep.subr.bf16.mxu1 %v16680_v17 }
 0x1ad   : > { %v1595_v12 = vsel %vm21019_vm4, %v18571_v21, %v1594_v16  ;;  %1632 = vst.msk [vmem:[#allocation2 + $0x114] sm:$0xc] %vm972_vm12, %v1596_v4  ;;  %1289 = vst [vmem:[#allocation2 + $0x10c] sm:$0x33] %v1254_v15  ;;  %v2124_v23 = vrot.slane %v2106_v33, 4  ;;  %v2423_v11 = vpop.permute.xlu1 %2422  ;;  %v13304_v32 = vcombine.high %v3253_v28, %v3253_v28  ;;  %v13303_v44 = vcombine.low %v3253_v28, %v3253_v28 }
 0x1ae   : > { %2195 = vst.msk [vmem:[#allocation2 + $0x1a0] sm:$0xc] %vm972_vm12, %v2106_v33  ;;  %1631 = vst [vmem:[#allocation2 + $0x10c] sm:$0xcc] %v1595_v12  ;;  %v2441_v63 = vrot.slane %v2423_v11, 4  ;;  %4424 = vmatpush1.bf16.msra.mxu1 %v16678_v2 }
 0x1af   : > { %2512 = vst.msk [vmem:[#allocation2 + $0x22c] sm:$0x3] %vm636_vm11, %v2423_v11  ;;  %v2158_v31 = vsel %vm21023_vm0, %v2123_v9, %v2124_v23  ;;  %13338 = vmatprep.subr.msk.bf16.mxu1 %vm21022_vm9, %v13304_v32  ;;  %v3792_v20 = vsel %vm21022_vm9, %v13303_v44, 0 }
 0x1b0   : > { %v2159_v21 = vsel %vm2126_vm5, %v18587_v56, %v2158_v31  ;;  %v2475_v41 = vsel %vm21023_vm0, %v2440_v35, %v2441_v63  ;;  %v2758_v19 = vpop.permute.xlu0 %2757 }
 0x1b1   : > { %2194 = vst [vmem:[#allocation2 + $0x198] sm:$0xcc] %v2159_v21  ;;  %v2476_v27 = vsel %vm2443_vm6, %v18591_v34, %v2475_v41  ;;  %v2776_v36 = vrot.slane %v2758_v19, 4  ;;  %2847 = vst.msk [vmem:[#allocation2 + $0x22c] sm:$0xc] %vm972_vm12, %v2758_v19  ;;  %v3075_v37 = vpop.permute.xlu1 %3074 }
 0x1b2   : > { %2511 = vst [vmem:[#allocation2 + $0x224] sm:$0x33] %v2476_v27  ;;  %v3093_v9 = vrot.slane %v3075_v37, 4  ;;  %3164 = vst.msk [vmem:[#allocation2 + $0x2b8] sm:$0x3] %vm636_vm11, %v3075_v37  ;;  %4426 = vmatpush1.bf16.msra.mxu1 %v3792_v20 }
 0x1b3   : > { %v2810_v56 = vsel %vm21023_vm0, %v2775_v49, %v2776_v36  ;;  %14810 = vmatprep.subr.bf16.mxu1 %v16908_v52 }
 0x1b4   : > { %v2811_v13 = vsel %vm2778_vm7, %v18607_v47, %v2810_v56  ;;  %v3127_v34 = vsel %vm21023_vm0, %v3092_v45, %v3093_v9  ;;  %v16689_v35 = vld [vmem:[#allocation2 + $0x88] ss:$140 sps:$4 sm:$0xff]  }
 0x1b5   : > { %2846 = vst [vmem:[#allocation2 + $0x224] sm:$0xcc] %v2811_v13  ;;  %v3128_v29 = vsel %vm3095_vm8, %v18613_v18, %v3127_v34  ;;  %v16681_v43 = vld [vmem:[#allocation2 + $0x80] ss:$140 sps:$4 sm:$0xff]   ;;  %v16683_v22 = vld [vmem:[#allocation2 + $0x84] ss:$140 sps:$4 sm:$0xff]   ;;  %13339 = vmatmul.mubr.msk.bf16.vlgmr.msra.gmra.mrb[24].mxu1 %vm21018_vm10, %v16830_v42 }
 0x1b6   : > { %3163 = vst [vmem:[#allocation2 + $0x2b0] sm:$0x33] %v3128_v29  ;;  %v18698_v39 = vpop.f32.mrb[8].mxu0  ;;  %4462 = vmatprep.subr.bf16.mxu0 %v16683_v22  ;;  %14811 = vmatpush3.bf16.msra.mxu1 %v16689_v35 }
 0x1b7   : > { %v18700_v47 = vpop.f32.mrb[9].mxu0  ;;  %4586 = vrot.lane.b32.xlu0 %v18698_v39, %s21034_s26  ;;  %4463 = vmatpush1.bf16.msra.mxu0 %v16681_v43 }
 0x1b8   : > { %v16692_v40 = vld [vmem:[#allocation2 + $0x1a0] ss:$140 sps:$4 sm:$0xff]   ;;  %4588 = vrot.lane.b32.xlu1 %v18700_v47, %s21034_s26  ;;  %v3926_v25 = vpop.f32.mrb[10].mxu0  ;;  %14812 = vmatprep.subr.bf16.mxu1 %v16908_v52 }
 0x1b9   : > { %v16693_v18 = vld [vmem:[#allocation2 + $0x2b8] ss:$0 sps:$4 sm:$0x33]   ;;  %v3927_v49 = vpop.f32.mrb[11].mxu0  ;;  %14816 = vmatprep.mubr.msk.bf16.mxu1 %vm21016_vm13, %v16908_v52 }
 0x1ba   : > { %14813 = vmatpush3.bf16.msra.mxu1 %v16692_v40  ;;  %v3804_v0 = vsel %vm21022_vm9, %v16693_v18, 0 }
 0x1bb   : > { %14814 = vmatprep.subr.bf16.mxu1 %v16908_v52 }
 0x1bc   : > { %v16686_v45 = vld [vmem:[#allocation2 + $0x198] ss:$140 sps:$4 sm:$0xff]   ;;  %v16688_v30 = vld [vmem:[#allocation2 + $0x19c] ss:$140 sps:$4 sm:$0xff]  }
 0x1bd   : > { %v3254_v53 = vld [vmem:[#allocation2 + $0x2b0] sm:$0x33]  ;;  %4464 = vmatprep.subr.bf16.mxu0 %v16688_v30 }
 0x1be   : > { %v13306_v38 = vcombine.high %v3254_v53, %v3254_v53  ;;  %v13305_v1 = vcombine.low %v3254_v53, %v3254_v53  ;;  %4465 = vmatpush1.bf16.msra.mxu0 %v16686_v45  ;;  %14815 = vmatpush3.bf16.msra.mxu1 %v3804_v0 }
 0x1c0   : > { %13340 = vmatprep.subr.msk.bf16.mxu0 %vm21022_vm9, %v13306_v38  ;;  %v3798_v58 = vsel %vm21022_vm9, %v13305_v1, 0  ;;  %vm5504_vm9 = vcmask 888424  }
 0x1c1   : > { %14817 = vmatmul.mubr.msk.bf16.vlgmr.msra.gmra.mrb[28].mxu1 %vm21018_vm10, %v16830_v42 }
 0x1c2   : > { %4467 = vmatpush1.bf16.msra.mxu0 %v3798_v58  ;;  %14855 = vmatprep.mubr.msk.f32.mxu1 %vm21016_vm13, %v16908_v52 }
 0x1c5   : > { %13341 = vmatmul.mubr.msk.bf16.vlgmr.msra.gmra.mrb[36].mxu0 %vm21018_vm10, %v16830_v42  ;;  %v18712_v50 = vpop.f32.mrb[0].mxu1  ;;  %vm5334_vm10 = vcmask 330824  }
 0x1c6   : > { %v18714_v55 = vpop.f32.mrb[1].mxu1  ;;  %4590 = vrot.lane.b32.xlu0 %v18712_v50, %s21034_s26  ;;  %14836 = vmatprep.mubr.msk.f32.mxu0 %vm21016_vm13, %v16908_v52 }
 0x1c7   : > { %4592 = vrot.lane.b32.xlu1 %v18714_v55, %s21034_s26  ;;  %v3967_v51 = vpop.f32.mrb[2].mxu1 }
 0x1c8   : > { %v3968_v61 = vpop.f32.mrb[3].mxu1 }
 0x1d5   : > { %v18720_v57 = vpop.f32.mrb[12].mxu0 }
 0x1d6   : > { %v18722_v7 = vpop.f32.mrb[13].mxu0  ;;  %4594 = vrot.lane.b32.xlu0 %v18720_v57, %s21034_s26 }
 0x1d7   : > { %4596 = vrot.lane.b32.xlu1 %v18722_v7, %s21034_s26  ;;  %v4008_v54 = vpop.f32.mrb[14].mxu0 }
 0x1d8   : > { %v4009_v14 = vpop.f32.mrb[15].mxu0 }
 0x1e5   : > { %v18728_v3 = vpop.f32.mrb[4].mxu1 }
 0x1e6   : > { %v18730_v5 = vpop.f32.mrb[5].mxu1  ;;  %4598 = vrot.lane.b32.xlu0 %v18728_v3, %s21034_s26 }
 0x1e7   : > { %v4049_v48 = vpop.f32.mrb[6].mxu1 }
 0x1e8   : > { %v4050_v8 = vpop.f32.mrb[7].mxu1 }
 0x1f6   : > { %v18734_v62 = vpop.f32.mrb[16].mxu0 }
 0x1f7   : > { %v18736_v59 = vpop.f32.mrb[17].mxu0 }
 0x1f8   : > { %v4090_v26 = vpop.f32.mrb[18].mxu0 }
 0x1f9   : > { %v4091_v16 = vpop.f32.mrb[19].mxu0  ;;  %v4953_v26 = vlaneseq }
 0x1fa   : > { %v16910_v16 = vmov 0.0|0.0  }
 0x1fb   : > { %15886 = vmatprep.subr.bf16.mxu0 %v16910_v16  ;;  %15898 = vmatprep.subr.bf16.mxu1 %v16910_v16 }
 0x207   : > { %v4579_v4 = vpop.permute.xlu0 %4578 }
 0x208   : > { %v4581_v15 = vpop.permute.xlu1 %4580  ;;  %v18745_v33 = vpop.f32.mrb[8].mxu1 }
 0x209   : > { %v4649_v2 = vsel %vm2126_vm5, %v4579_v4, %v4581_v15  ;;  %v18748_v17 = vpop.f32.mrb[9].mxu1  ;;  %v4954_v4 = vshrl.u32 %v4953_v26, 7 }
 0x20a   : > { %v18751_v12 = vmax.f32 %v18529_v10, %v4649_v2  ;;  %v4131_v23 = vpop.f32.mrb[10].mxu1 }
 0x20b   : > { %v4132_v11 = vpop.f32.mrb[11].mxu1  ;;  %v4955_v2 = vadd.s32 8, %v4954_v4 }
 0x20c   : > { %4785 = vrot.lane.b32.xlu1 %v18751_v12, %s16905_s12  ;;  %v4956_v11 = vadd.s32 16, %v4954_v4 }
 0x217   : > { %v18755_v28 = vpop.f32.mrb[20].mxu0 }
 0x218   : > { %v18757_v63 = vpop.f32.mrb[21].mxu0 }
 0x219   : > { %v4583_v32 = vpop.permute.xlu0 %4582  ;;  %v4172_v44 = vpop.f32.mrb[22].mxu0 }
 0x21a   : > { %v4650_v31 = vsel %vm2126_vm5, %v4581_v15, %v4583_v32  ;;  %v4585_v21 = vpop.permute.xlu1 %4584  ;;  %v4173_v41 = vpop.f32.mrb[23].mxu0  ;;  %v4963_v15 = vand.u32 127, %v4953_v26  ;;  %v4958_v44 = vadd.s32 32, %v4954_v4 }
 0x21b   : > { %v18761_v19 = vmax.f32 %v18540_v60, %v4650_v31  ;;  %v4651_v10 = vsel %vm2126_vm5, %v4583_v32, %v4585_v21  ;;  %v4957_v32 = vadd.s32 24, %v4954_v4  ;;  %v4959_v31 = vadd.s32 40, %v4954_v4 }
 0x21c   : > { %v18765_v20 = vmax.f32 %v18635_v46, %v4651_v10  ;;  %v4964_v23 = vmul.u32 2, %v4963_v15  ;;  %v4960_v10 = vadd.s32 48, %v4954_v4 }
 0x21d   : > { %4787 = vrot.lane.b32.xlu0 %v18761_v19, %s16905_s12 }
 0x21e   : > { %4789 = vrot.lane.b32.xlu1 %v18765_v20, %s16905_s12  ;;  %vm4965_vm14 = vcmp.eq.s32.totalorder %v4954_v4, %v4964_v23  ;;  %vm4966_vm15 = vcmp.eq.s32.totalorder %v4955_v2, %v4964_v23  ;;  %vm4967_vm1 = vcmp.eq.s32.totalorder %v4956_v11, %v4964_v23  ;;  %vm4968_vm2 = vcmp.eq.s32.totalorder %v4957_v32, %v4964_v23 }
 0x21f   : > { %vm18850_vm3 = vmpackc.low %vm4966_vm15, %vm4965_vm14  ;;  %vm4969_vm11 = vcmp.eq.s32.totalorder %v4958_v44, %v4964_v23  ;;  %vm4970_vm12 = vcmp.eq.s32.totalorder %v4959_v31, %v4964_v23  ;;  %vm4971_vm15 = vcmp.eq.s32.totalorder %v4960_v10, %v4964_v23 }
 0x220   : > { %vm18861_vm6 = vmpackc.low %vm4968_vm2, %vm4967_vm1 }
 0x221   : > { %vm18875_vm14 = vmpackc.low %vm4970_vm12, %vm4969_vm11  ;;  %vm21021_vm11 = vcmask 523264   ;;  %vm5166_vm12 = vcmask 433152  }
 0x222   : > { %4600 = vrot.lane.b32.xlu1 %v18730_v5, %s21034_s26 }
 0x226   : > { %v18773_v27 = vpop.f32.mrb[12].mxu1 }
 0x227   : > { %v18775_v36 = vpop.f32.mrb[13].mxu1 }
 0x228   : > { %v4213_v37 = vpop.f32.mrb[14].mxu1 }
 0x229   : > { %v4587_v60 = vpop.permute.xlu0 %4586  ;;  %v4214_v46 = vpop.f32.mrb[15].mxu1 }
 0x22a   : > { %v4652_v9 = vsel %vm2126_vm5, %v4585_v21, %v4587_v60  ;;  %v4589_v56 = vpop.permute.xlu1 %4588  ;;  %v16911_v21 = vmov 1.0|1.0  }
 0x22b   : > { %v18779_v13 = vmax.f32 %v18641_v6, %v4652_v9  ;;  %v4653_v34 = vsel %vm2126_vm5, %v4587_v60, %v4589_v56  ;;  %15888 = vmatpush3.bf16.msk.msra.mxu0 %vm18850_vm3, %v16911_v21  ;;  %15900 = vmatpush3.bf16.msk.msra.mxu1 %vm18850_vm3, %v16911_v21  ;;  %v4961_v60 = vadd.s32 56, %v4954_v4 }
 0x22c   : > { %v18783_v35 = vmax.f32 %v18698_v39, %v4653_v34  ;;  %15889 = vmatprep.subr.bf16.mxu0 %v16910_v16  ;;  %15901 = vmatprep.subr.bf16.mxu1 %v16910_v16 }
 0x22d   : > { %4791 = vrot.lane.b32.xlu0 %v18779_v13, %s16905_s12  ;;  %vm4972_vm1 = vcmp.eq.s32.totalorder %v4961_v60, %v4964_v23 }
 0x22e   : > { %4793 = vrot.lane.b32.xlu1 %v18783_v35, %s16905_s12  ;;  %vm18889_vm2 = vmpackc.low %vm4972_vm1, %vm4971_vm15  ;;  %vm5256_vm15 = vcmask 400384   ;;  %vm5341_vm1 = vcmask 367616  }
 0x22f   : > { %15891 = vmatpush3.bf16.msk.msra.mxu0 %vm18861_vm6, %v16911_v21  ;;  %15903 = vmatpush3.bf16.msk.msra.mxu1 %vm18861_vm6, %v16911_v21 }
 0x230   : > { %15892 = vmatprep.subr.bf16.mxu0 %v16910_v16  ;;  %15904 = vmatprep.subr.bf16.mxu1 %v16910_v16 }
 0x231   : > { %4602 = vrot.lane.b32.xlu0 %v18734_v62, %s21034_s26 }
 0x232   : > { %4604 = vrot.lane.b32.xlu1 %v18736_v59, %s21034_s26 }
 0x233   : > { %15894 = vmatpush3.bf16.msk.msra.mxu0 %vm18875_vm14, %v16911_v21  ;;  %15906 = vmatpush3.bf16.msk.msra.mxu1 %vm18875_vm14, %v16911_v21 }
 0x234   : > { %15895 = vmatprep.subr.bf16.mxu0 %v16910_v16  ;;  %15907 = vmatprep.subr.bf16.mxu1 %v16910_v16 }
 0x237   : > { %v18793_v29 = vpop.f32.mrb[24].mxu0  ;;  %15897 = vmatpush3.bf16.msk.msra.mxu0 %vm18889_vm2, %v16911_v21  ;;  %15909 = vmatpush3.bf16.msk.msra.mxu1 %vm18889_vm2, %v16911_v21 }
 0x238   : > { %v4591_v6 = vpop.permute.xlu0 %4590  ;;  %v18795_v43 = vpop.f32.mrb[25].mxu0  ;;  %15910 = vmatprep.subr.bf16.mxu0 %v16910_v16  ;;  %15922 = vmatprep.subr.bf16.mxu1 %v16910_v16 }
 0x239   : > { %v4654_v22 = vsel %vm2126_vm5, %v4589_v56, %v4591_v6  ;;  %v4593_v42 = vpop.permute.xlu1 %4592  ;;  %v4254_v39 = vpop.f32.mrb[26].mxu0 }
 0x23a   : > { %v18799_v40 = vmax.f32 %v18700_v47, %v4654_v22  ;;  %v4655_v25 = vsel %vm2126_vm5, %v4591_v6, %v4593_v42  ;;  %v4255_v18 = vpop.f32.mrb[27].mxu0 }
 0x23b   : > { %v18803_v49 = vmax.f32 %v18712_v50, %v4655_v25 }
 0x23c   : > { %4795 = vrot.lane.b32.xlu0 %v18799_v40, %s16905_s12 }
 0x23d   : > { %4797 = vrot.lane.b32.xlu1 %v18803_v49, %s16905_s12 }
 0x240   : > { %4606 = vrot.lane.b32.xlu0 %v18745_v33, %s21034_s26 }
 0x241   : > { %4608 = vrot.lane.b32.xlu1 %v18748_v17, %s21034_s26 }
 0x247   : > { %v18813_v47 = vpop.f32.mrb[16].mxu1 }
 0x248   : > { %v4595_v45 = vpop.permute.xlu0 %4594  ;;  %v18815_v30 = vpop.f32.mrb[17].mxu1 }
 0x249   : > { %v4656_v0 = vsel %vm2126_vm5, %v4593_v42, %v4595_v45  ;;  %v4597_v53 = vpop.permute.xlu1 %4596  ;;  %v4295_v38 = vpop.f32.mrb[18].mxu1 }
 0x24a   : > { %v18819_v1 = vmax.f32 %v18714_v55, %v4656_v0  ;;  %v4657_v58 = vsel %vm2126_vm5, %v4595_v45, %v4597_v53  ;;  %v4296_v50 = vpop.f32.mrb[19].mxu1 }
 0x24b   : > { %v18823_v51 = vmax.f32 %v18720_v57, %v4657_v58 }
 0x24c   : > { %4799 = vrot.lane.b32.xlu0 %v18819_v1, %s16905_s12 }
 0x24d   : > { %4801 = vrot.lane.b32.xlu1 %v18823_v51, %s16905_s12 }
 0x250   : > { %4610 = vrot.lane.b32.xlu0 %v18755_v28, %s21034_s26 }
 0x251   : > { %4612 = vrot.lane.b32.xlu1 %v18757_v63, %s21034_s26 }
 0x257   : > { %v18833_v55 = vpop.f32.mrb[28].mxu0 }
 0x258   : > { %v18835_v61 = vpop.permute.xlu0 %4598  ;;  %v18837_v54 = vpop.f32.mrb[29].mxu0 }
 0x259   : > { %v4658_v57 = vsel %vm2126_vm5, %v4597_v53, %v18835_v61  ;;  %v4336_v14 = vpop.f32.mrb[30].mxu0 }
 0x25a   : > { %v18842_v48 = vmax.f32 %v18722_v7, %v4658_v57  ;;  %v4337_v8 = vpop.f32.mrb[31].mxu0 }
 0x25c   : > { %4803 = vrot.lane.b32.xlu0 %v18842_v48, %s16905_s12 }
 0x260   : > { %4614 = vrot.lane.b32.xlu0 %v18773_v27, %s21034_s26 }
 0x267   : > { %v18872_v37 = vpop.f32.mrb[20].mxu1 }
 0x268   : > { %v18880_v56 = vpop.f32.mrb[21].mxu1 }
 0x269   : > { %v4377_v46 = vpop.f32.mrb[22].mxu1 }
 0x26a   : > { %v4378_v34 = vpop.f32.mrb[23].mxu1 }
 0x277   : > { %v18919_v57 = vpop.f32.mrb[32].mxu0 }
 0x278   : > { %v18925_v8 = vpop.f32.mrb[33].mxu0 }
 0x279   : > { %v4418_v15 = vpop.f32.mrb[34].mxu0 }
 0x27e   : > { %v4786_v22 = vpop.permute.xlu1 %4785 }
 0x288   : > { %v18947_v31 = vpop.f32.mrb[24].mxu1 }
 0x289   : > { %v18953_v46 = vpop.f32.mrb[25].mxu1 }
 0x28f   : > { %v4788_v42 = vpop.permute.xlu0 %4787 }
 0x290   : > { %v4854_v39 = vsel %vm2778_vm7, %v4786_v22, %v4788_v42  ;;  %v4790_v25 = vpop.permute.xlu1 %4789 }
 0x291   : > { %v4920_v18 = vmax.f32 %v18751_v12, %v4854_v39  ;;  %v4855_v45 = vsel %vm2778_vm7, %v4788_v42, %v4790_v25  ;;  %v4459_v42 = vpop.f32.mrb[26].mxu1 }
 0x292   : > { %v4921_v0 = vmax.f32 %v18761_v19, %v4855_v45 }
 0x293   : > { %4991 = vrot.lane.b32.xlu1 %v4920_v18, %s20987_s13 }
 0x294   : > { %v4601_v53 = vpop.permute.xlu1 %4600  ;;  %4993 = vrot.lane.b32.xlu0 %v4921_v0, %s20987_s13  ;;  %s21025_s13 = smov 9  }
 0x295   : > { %v4659_v38 = vsel %vm2126_vm5, %v18835_v61, %v4601_v53 }
 0x296   : > { %v18912_v58 = vmax.f32 %v18728_v3, %v4659_v38 }
 0x297   : > { %5077 = vrot.lane.b32.xlu1 %v4921_v0, %s20996_s10 }
 0x29b   : > { %4805 = vrot.lane.b32.xlu1 %v18912_v58, %s16905_s12 }
 0x29f   : > { %4616 = vrot.lane.b32.xlu1 %v18775_v36, %s21034_s26  ;;  %v4792_v12 = vpop.permute.xlu0 %4791 }
 0x2a0   : > { %v4856_v19 = vsel %vm2778_vm7, %v4790_v25, %v4792_v12  ;;  %v4794_v50 = vpop.permute.xlu1 %4793 }
 0x2a1   : > { %v4922_v61 = vmax.f32 %v18765_v20, %v4856_v19  ;;  %v4857_v14 = vsel %vm2778_vm7, %v4792_v12, %v4794_v50  ;;  %v4419_v20 = vpop.f32.mrb[35].mxu0 }
 0x2a2   : > { %v4923_v2 = vmax.f32 %v18779_v13, %v4857_v14 }
 0x2a3   : > { %5162 = vrot.lane.b32.xlu1 %v4922_v61, %s20983_s17  ;;  %5079 = vrot.lane.b32.xlu0 %v4922_v61, %s20996_s10  ;;  %v4603_v3 = vpop.permute.xlu0 %4602  ;;  %s20999_s10 = smov 105  }
 0x2a4   : > { %v4660_v26 = vsel %vm2126_vm5, %v4601_v53, %v4603_v3  ;;  %v4605_v4 = vpop.permute.xlu1 %4604  ;;  %v18975_v53 = vpop.f32.mrb[36].mxu0 }
 0x2a5   : > { %v18930_v23 = vmax.f32 %v18730_v5, %v4660_v26  ;;  %v4661_v11 = vsel %vm2126_vm5, %v4603_v3, %v4605_v4  ;;  %v18981_v19 = vpop.f32.mrb[37].mxu0 }
 0x2a6   : > { %v18937_v32 = vmax.f32 %v18734_v62, %v4661_v11  ;;  %v4500_v14 = vpop.f32.mrb[38].mxu0 }
 0x2a7   : > { %5252 = vrot.lane.b32.xlu1 %v4923_v2, %s21003_s18  ;;  %4807 = vrot.lane.b32.xlu0 %v18930_v23, %s16905_s12 }
 0x2ab   : > { %4809 = vrot.lane.b32.xlu1 %v18937_v32, %s16905_s12  ;;  %4618 = vrot.lane.b32.xlu0 %v18793_v29, %s21034_s26 }
 0x2ae   : > { %v4796_v5 = vpop.permute.xlu0 %4795 }
 0x2af   : > { %4620 = vrot.lane.b32.xlu1 %v18795_v43, %s21034_s26  ;;  %5164 = vrot.lane.b32.xlu0 %v4923_v2, %s20983_s17  ;;  %v4858_v13 = vsel %vm2778_vm7, %v4794_v50, %v4796_v5  ;;  %v4798_v44 = vpop.permute.xlu1 %4797  ;;  %s21032_s17 = smov 17  }
 0x2b0   : > { %v4924_v62 = vmax.f32 %v18783_v35, %v4858_v13  ;;  %v4859_v10 = vsel %vm2778_vm7, %v4796_v5, %v4798_v44  ;;  %v4460_v35 = vpop.f32.mrb[27].mxu1 }
 0x2b1   : > { %v4925_v39 = vmax.f32 %v18799_v40, %v4859_v10  ;;  %v19004_v20 = vpop.f32.mrb[28].mxu1 }
 0x2b2   : > { %v4607_v60 = vpop.permute.xlu0 %4606  ;;  %v14818_v11 = vpop.f32.mrb[29].mxu1 }
 0x2b3   : > { %5337 = vrot.lane.b32.xlu1 %v4924_v62, %s20980_s19  ;;  %5254 = vrot.lane.b32.xlu0 %v4924_v62, %s21003_s18  ;;  %v4662_v34 = vsel %vm2126_vm5, %v4605_v4, %v4607_v60  ;;  %v4609_v22 = vpop.permute.xlu1 %4608  ;;  %v4540_v13 = vpop.f32.mrb[30].mxu1  ;;  %s16937_s18 = smov 81  }
 0x2b4   : > { %v18958_v25 = vmax.f32 %v18736_v59, %v4662_v34  ;;  %v4663_v18 = vsel %vm2126_vm5, %v4607_v60, %v4609_v22  ;;  %v14819_v62 = vpop.f32.mrb[31].mxu1 }
 0x2b5   : > { %v18965_v45 = vmax.f32 %v18745_v33, %v4663_v18 }
 0x2b7   : > { %5422 = vrot.lane.b32.xlu1 %v4925_v39, %s21008_s20  ;;  %4811 = vrot.lane.b32.xlu0 %v18958_v25, %s16905_s12 }
 0x2bb   : > { %4813 = vrot.lane.b32.xlu1 %v18965_v45, %s16905_s12  ;;  %4622 = vrot.lane.b32.xlu0 %v18813_v47, %s21034_s26 }
 0x2be   : > { %v4800_v59 = vpop.permute.xlu0 %4799 }
 0x2bf   : > { %4624 = vrot.lane.b32.xlu1 %v18815_v30, %s21034_s26  ;;  %5339 = vrot.lane.b32.xlu0 %v4925_v39, %s20980_s19  ;;  %v4860_v40 = vsel %vm2778_vm7, %v4798_v44, %v4800_v59  ;;  %v4802_v0 = vpop.permute.xlu1 %4801  ;;  %s16919_s19 = smov 29  }
 0x2c0   : > { %v4926_v33 = vmax.f32 %v18803_v49, %v4860_v40  ;;  %v4861_v38 = vsel %vm2778_vm7, %v4800_v59, %v4802_v0  ;;  %v4501_v49 = vpop.f32.mrb[39].mxu0 }
 0x2c1   : > { %v4927_v3 = vmax.f32 %v18819_v1, %v4861_v38 }
 0x2c2   : > { %v4611_v12 = vpop.permute.xlu0 %4610 }
 0x2c3   : > { %5507 = vrot.lane.b32.xlu1 %v4926_v33, %s20981_s21  ;;  %5424 = vrot.lane.b32.xlu0 %v4926_v33, %s21008_s20  ;;  %v4664_v50 = vsel %vm2126_vm5, %v4609_v22, %v4611_v12  ;;  %v4613_v61 = vpop.permute.xlu1 %4612  ;;  %s16941_s20 = smov 103  }
 0x2c4   : > { %v18986_v26 = vmax.f32 %v18748_v17, %v4664_v50  ;;  %v4665_v4 = vsel %vm2126_vm5, %v4611_v12, %v4613_v61 }
 0x2c5   : > { %v18993_v15 = vmax.f32 %v18755_v28, %v4665_v4 }
 0x2c7   : > { %5597 = vrot.lane.b32.xlu1 %v4927_v3, %s21031_s24  ;;  %4815 = vrot.lane.b32.xlu0 %v18986_v26, %s16905_s12 }
 0x2cb   : > { %4817 = vrot.lane.b32.xlu1 %v18993_v15, %s16905_s12  ;;  %4626 = vrot.lane.b32.xlu0 %v18833_v55, %s21034_s26 }
 0x2ce   : > { %v4804_v17 = vpop.permute.xlu0 %4803 }
 0x2cf   : > { %4628 = vrot.lane.b32.xlu1 %v18837_v54, %s21034_s26  ;;  %5509 = vrot.lane.b32.xlu0 %v4927_v3, %s20981_s21  ;;  %v4862_v1 = vsel %vm2778_vm7, %v4802_v0, %v4804_v17  ;;  %s16920_s21 = smov 25  }
 0x2d0   : > { %v4928_v2 = vmax.f32 %v18823_v51, %v4862_v1 }
 0x2d2   : > { %v4615_v28 = vpop.permute.xlu0 %4614 }
 0x2d3   : > { %5682 = vrot.lane.b32.xlu1 %v4928_v2, %s16919_s19  ;;  %5599 = vrot.lane.b32.xlu0 %v4928_v2, %s21031_s24  ;;  %v4666_v5 = vsel %vm2126_vm5, %v4613_v61, %v4615_v28  ;;  %v19092_v2 = vld [vmem:[#allocation5] sm:$0xff] }
 0x2d4   : > { %v19009_v44 = vmax.f32 %v18757_v63, %v4666_v5 }
 0x2d7   : > { %4819 = vrot.lane.b32.xlu0 %v19009_v44, %s16905_s12 }
 0x2db   : > { %4630 = vrot.lane.b32.xlu0 %v18872_v37, %s21034_s26 }
 0x305   : > { %v4992_v51 = vpop.permute.xlu1 %4991 }
 0x306   : > { %v4994_v10 = vpop.permute.xlu0 %4993 }
 0x307   : > { %v4996_v60 = vsel %vm3095_vm8, %v4992_v51, %v4994_v10  ;;  %vm5081_vm8 = vcmask 465920  }
 0x308   : > { %14837 = vmatmul.mubr.msk.f32.vlgmr.msra.gmra.mrb[40].mxu0 %vm21021_vm11, %v4996_v60 }
 0x309   : > { %v5078_v34 = vpop.permute.xlu1 %5077  ;;  %15912 = vmatpush3.bf16.msk.msra.mxu0 %vm18850_vm3, %v16911_v21  ;;  %14874 = vmatprep.mubr.msk.f32.mxu0 %vm21016_vm13, %v16908_v52 }
 0x30a   : > { %15913 = vmatprep.subr.bf16.mxu0 %v16910_v16 }
 0x30d   : > { %v4806_v63 = vpop.permute.xlu1 %4805  ;;  %15915 = vmatpush3.bf16.msk.msra.mxu0 %vm18861_vm6, %v16911_v21 }
 0x30e   : > { %v4863_v22 = vsel %vm2778_vm7, %v4804_v17, %v4806_v63  ;;  %15916 = vmatprep.subr.bf16.mxu0 %v16910_v16 }
 0x30f   : > { %v4929_v42 = vmax.f32 %v18842_v48, %v4863_v22 }
 0x311   : > { %v4617_v39 = vpop.permute.xlu1 %4616  ;;  %5767 = vrot.lane.b32.xlu1 %v4929_v42, %s16920_s21  ;;  %5684 = vrot.lane.b32.xlu0 %v4929_v42, %s16919_s19  ;;  %s20985_s19 = smov 21  }
 0x312   : > { %v4667_v35 = vsel %vm2126_vm5, %v4615_v28, %v4617_v39  ;;  %15918 = vmatpush3.bf16.msk.msra.mxu0 %vm18875_vm14, %v16911_v21 }
 0x313   : > { %v19035_v18 = vmax.f32 %v18773_v27, %v4667_v35  ;;  %15919 = vmatprep.subr.bf16.mxu0 %v16910_v16 }
 0x315   : > { %v5163_v59 = vpop.permute.xlu1 %5162  ;;  %4821 = vrot.lane.b32.xlu1 %v19035_v18, %s16905_s12  ;;  %v5080_v48 = vpop.permute.xlu0 %5079 }
 0x316   : > { %v5082_v40 = vsel %vm5081_vm8, %v5078_v34, %v5080_v48  ;;  %15921 = vmatpush3.bf16.msk.msra.mxu0 %vm18889_vm2, %v16911_v21  ;;  %vm5426_vm8 = vcmask 334848  }
 0x317   : > { %14856 = vmatmul.mubr.msk.f32.vlgmr.msra.gmra.mrb[32].mxu1 %vm21021_vm11, %v5082_v40  ;;  %15934 = vmatprep.subr.bf16.mxu0 %v16910_v16 }
 0x318   : > { %15924 = vmatpush3.bf16.msk.msra.mxu1 %vm18850_vm3, %v16911_v21  ;;  %14893 = vmatprep.mubr.msk.f32.mxu1 %vm21016_vm13, %v16908_v52 }
 0x319   : > { %v5253_v27 = vpop.permute.xlu1 %5252  ;;  %4632 = vrot.lane.b32.xlu1 %v18880_v56, %s21034_s26  ;;  %v4808_v0 = vpop.permute.xlu0 %4807  ;;  %15925 = vmatprep.subr.bf16.mxu1 %v16910_v16 }
 0x31a   : > { %v4864_v33 = vsel %vm2778_vm7, %v4806_v63, %v4808_v0 }
 0x31b   : > { %v4930_v38 = vmax.f32 %v18912_v58, %v4864_v33 }
 0x31c   : > { %15927 = vmatpush3.bf16.msk.msra.mxu1 %vm18861_vm6, %v16911_v21 }
 0x31d   : > { %v4810_v12 = vpop.permute.xlu1 %4809  ;;  %5852 = vrot.lane.b32.xlu1 %v4930_v38, %s20985_s19  ;;  %5769 = vrot.lane.b32.xlu0 %v4930_v38, %s16920_s21  ;;  %v4619_v52 = vpop.permute.xlu0 %4618 }
 0x31e   : > { %v4865_v50 = vsel %vm2778_vm7, %v4808_v0, %v4810_v12  ;;  %v4668_v61 = vsel %vm2126_vm5, %v4617_v39, %v4619_v52  ;;  %15928 = vmatprep.subr.bf16.mxu1 %v16910_v16 }
 0x31f   : > { %v4931_v14 = vmax.f32 %v18930_v23, %v4865_v50  ;;  %v19065_v58 = vmax.f32 %v18775_v36, %v4668_v61 }
 0x320   : > { %15930 = vmatpush3.bf16.msk.msra.mxu1 %vm18875_vm14, %v16911_v21 }
 0x321   : > { %v4621_v3 = vpop.permute.xlu1 %4620  ;;  %5942 = vrot.lane.b32.xlu1 %v4931_v14, %s21032_s17  ;;  %4823 = vrot.lane.b32.xlu0 %v19065_v58, %s16905_s12  ;;  %v5165_v49 = vpop.permute.xlu0 %5164 }
 0x322   : > { %v4669_v4 = vsel %vm2126_vm5, %v4619_v52, %v4621_v3  ;;  %v5167_v17 = vsel %vm5166_vm12, %v5163_v59, %v5165_v49  ;;  %15931 = vmatprep.subr.bf16.mxu1 %v16910_v16  ;;  %vm5511_vm12 = vcmask 302080  }
 0x323   : > { %v19076_v36 = vmax.f32 %v18793_v29, %v4669_v4  ;;  %14875 = vmatmul.mubr.msk.f32.vlgmr.msra.gmra.mrb[42].mxu0 %vm21021_vm11, %v5167_v17 }
 0x324   : > { %15933 = vmatpush3.bf16.msk.msra.mxu1 %vm18889_vm2, %v16911_v21  ;;  %15936 = vmatpush3.bf16.msk.msra.mxu0 %vm18850_vm3, %v16911_v21 }
 0x325   : > { %v5338_v23 = vpop.permute.xlu1 %5337  ;;  %4825 = vrot.lane.b32.xlu1 %v19076_v36, %s16905_s12  ;;  %4634 = vrot.lane.b32.xlu0 %v18919_v57, %s21034_s26  ;;  %v5255_v29 = vpop.permute.xlu0 %5254 }
 0x326   : > { %v5257_v1 = vsel %vm5256_vm15, %v5253_v27, %v5255_v29  ;;  %15937 = vmatprep.subr.bf16.mxu0 %v16910_v16  ;;  %15946 = vmatprep.subr.bf16.mxu1 %v16910_v16  ;;  %vm21020_vm15 = vcmask 269312  }
 0x327   : > { %14894 = vmatmul.mubr.msk.f32.vlgmr.msra.gmra.mrb[34].mxu1 %vm21021_vm11, %v5257_v1  ;;  %14912 = vmatprep.mubr.msk.f32.mxu0 %vm21016_vm13, %v19092_v2 }
 0x328   : > { %15939 = vmatpush3.bf16.msk.msra.mxu0 %vm18861_vm6, %v16911_v21  ;;  %15948 = vmatpush3.bf16.msk.msra.mxu1 %vm18850_vm3, %v16911_v21 }
 0x329   : > { %v5423_v28 = vpop.permute.xlu1 %5422  ;;  %4636 = vrot.lane.b32.xlu1 %v18925_v8, %s21034_s26  ;;  %5854 = vrot.lane.b32.xlu0 %v4931_v14, %s20985_s19  ;;  %v4812_v11 = vpop.permute.xlu0 %4811  ;;  %s16923_s19 = smov 13  }
 0x32a   : > { %v4866_v5 = vsel %vm2778_vm7, %v4810_v12, %v4812_v11  ;;  %15940 = vmatprep.subr.bf16.mxu0 %v16910_v16  ;;  %15949 = vmatprep.subr.bf16.mxu1 %v16910_v16 }
 0x32b   : > { %v4932_v13 = vmax.f32 %v18937_v32, %v4866_v5  ;;  %14931 = vmatprep.mubr.msk.f32.mxu1 %vm21016_vm13, %v19092_v2 }
 0x32c   : > { %15942 = vmatpush3.bf16.msk.msra.mxu0 %vm18875_vm14, %v16911_v21  ;;  %15951 = vmatpush3.bf16.msk.msra.mxu1 %vm18861_vm6, %v16911_v21 }
 0x32d   : > { %v4814_v62 = vpop.permute.xlu1 %4813  ;;  %6027 = vrot.lane.b32.xlu1 %v4932_v13, %s16923_s19  ;;  %5944 = vrot.lane.b32.xlu0 %v4932_v13, %s21032_s17  ;;  %v4623_v51 = vpop.permute.xlu0 %4622 }
 0x32e   : > { %v4867_v32 = vsel %vm2778_vm7, %v4812_v11, %v4814_v62  ;;  %v4670_v10 = vsel %vm2126_vm5, %v4621_v3, %v4623_v51  ;;  %15943 = vmatprep.subr.bf16.mxu0 %v16910_v16  ;;  %15952 = vmatprep.subr.bf16.mxu1 %v16910_v16 }
 0x32f   : > { %v4933_v60 = vmax.f32 %v18958_v25, %v4867_v32  ;;  %v19125_v34 = vmax.f32 %v18795_v43, %v4670_v10 }
 0x330   : > { %15945 = vmatpush3.bf16.msk.msra.mxu0 %vm18889_vm2, %v16911_v21  ;;  %15954 = vmatpush3.bf16.msk.msra.mxu1 %vm18875_vm14, %v16911_v21 }
 0x331   : > { %v4625_v63 = vpop.permute.xlu1 %4624  ;;  %6112 = vrot.lane.b32.xlu1 %v4933_v60, %s21025_s13  ;;  %4827 = vrot.lane.b32.xlu0 %v19125_v34, %s16905_s12  ;;  %v5340_v25 = vpop.permute.xlu0 %5339 }
 0x332   : > { %v4671_v43 = vsel %vm2126_vm5, %v4623_v51, %v4625_v63  ;;  %v5342_v22 = vsel %vm5341_vm1, %v5338_v23, %v5340_v25  ;;  %15955 = vmatprep.subr.bf16.mxu1 %v16910_v16  ;;  %15958 = vmatprep.subr.bf16.mxu0 %v16910_v16  ;;  %vm5686_vm1 = vcmask 236544  }
 0x333   : > { %v19140_v42 = vmax.f32 %v18813_v47, %v4671_v43  ;;  %14913 = vmatmul.mubr.msk.f32.vlgmr.msra.gmra.mrb[44].mxu0 %vm21021_vm11, %v5342_v22 }
 0x334   : > { %15957 = vmatpush3.bf16.msk.msra.mxu1 %vm18889_vm2, %v16911_v21  ;;  %15960 = vmatpush3.bf16.msk.msra.mxu0 %vm18850_vm3, %v16911_v21 }
 0x335   : > { %v5508_v39 = vpop.permute.xlu1 %5507  ;;  %4829 = vrot.lane.b32.xlu1 %v19140_v42, %s16905_s12  ;;  %4638 = vrot.lane.b32.xlu0 %v18947_v31, %s21034_s26  ;;  %v5425_v47 = vpop.permute.xlu0 %5424 }
 0x336   : > { %v5427_v35 = vsel %vm5426_vm8, %v5423_v28, %v5425_v47  ;;  %15961 = vmatprep.subr.bf16.mxu0 %v16910_v16  ;;  %15970 = vmatprep.subr.bf16.mxu1 %v16910_v16  ;;  %vm21015_vm8 = vcmask 203776  }
 0x337   : > { %14932 = vmatmul.mubr.msk.f32.vlgmr.msra.gmra.mrb[36].mxu1 %vm21021_vm11, %v5427_v35  ;;  %14950 = vmatprep.mubr.msk.f32.mxu0 %vm21016_vm13, %v19092_v2 }
 0x338   : > { %15963 = vmatpush3.bf16.msk.msra.mxu0 %vm18861_vm6, %v16911_v21  ;;  %15972 = vmatpush3.bf16.msk.msra.mxu1 %vm18850_vm3, %v16911_v21 }
 0x339   : > { %v5598_v59 = vpop.permute.xlu1 %5597  ;;  %4640 = vrot.lane.b32.xlu1 %v18953_v46, %s21034_s26  ;;  %6029 = vrot.lane.b32.xlu0 %v4933_v60, %s16923_s19  ;;  %v4816_v48 = vpop.permute.xlu0 %4815  ;;  %s16925_s19 = smov 5  }
 0x33a   : > { %v4868_v40 = vsel %vm2778_vm7, %v4814_v62, %v4816_v48  ;;  %15964 = vmatprep.subr.bf16.mxu0 %v16910_v16  ;;  %15973 = vmatprep.subr.bf16.mxu1 %v16910_v16 }
 0x33b   : > { %v4934_v27 = vmax.f32 %v18965_v45, %v4868_v40  ;;  %14969 = vmatprep.mubr.msk.f32.mxu1 %vm21016_vm13, %v19092_v2 }
 0x33c   : > { %15966 = vmatpush3.bf16.msk.msra.mxu0 %vm18875_vm14, %v16911_v21  ;;  %15975 = vmatpush3.bf16.msk.msra.mxu1 %vm18861_vm6, %v16911_v21 }
 0x33d   : > { %v4818_v0 = vpop.permute.xlu1 %4817  ;;  %6197 = vrot.lane.b32.xlu1 %v4934_v27, %s16925_s19  ;;  %6114 = vrot.lane.b32.xlu0 %v4934_v27, %s21025_s13  ;;  %v4627_v33 = vpop.permute.xlu0 %4626 }
 0x33e   : > { %v4869_v45 = vsel %vm2778_vm7, %v4816_v48, %v4818_v0  ;;  %v4672_v38 = vsel %vm2126_vm5, %v4625_v63, %v4627_v33  ;;  %15967 = vmatprep.subr.bf16.mxu0 %v16910_v16  ;;  %15976 = vmatprep.subr.bf16.mxu1 %v16910_v16 }
 0x33f   : > { %v4935_v12 = vmax.f32 %v18986_v26, %v4869_v45  ;;  %v19187_v52 = vmax.f32 %v18815_v30, %v4672_v38 }
 0x340   : > { %15969 = vmatpush3.bf16.msk.msra.mxu0 %vm18889_vm2, %v16911_v21  ;;  %15978 = vmatpush3.bf16.msk.msra.mxu1 %vm18875_vm14, %v16911_v21 }
 0x341   : > { %v4629_v50 = vpop.permute.xlu1 %4628  ;;  %6286 = vrot.lane.b32.xlu1 %v4935_v12, %s20988_s25  ;;  %4831 = vrot.lane.b32.xlu0 %v19187_v52, %s16905_s12  ;;  %v5510_v61 = vpop.permute.xlu0 %5509 }
 0x342   : > { %v4673_v26 = vsel %vm2126_vm5, %v4627_v33, %v4629_v50  ;;  %v5512_v30 = vsel %vm5511_vm12, %v5508_v39, %v5510_v61  ;;  %15979 = vmatprep.subr.bf16.mxu1 %v16910_v16  ;;  %15982 = vmatprep.subr.bf16.mxu0 %v16910_v16  ;;  %vm5856_vm12 = vcmask 171008  }
 0x343   : > { %v19202_v14 = vmax.f32 %v18833_v55, %v4673_v26  ;;  %14951 = vmatmul.mubr.msk.f32.vlgmr.msra.gmra.mrb[46].mxu0 %vm21021_vm11, %v5512_v30 }
 0x344   : > { %15981 = vmatpush3.bf16.msk.msra.mxu1 %vm18889_vm2, %v16911_v21  ;;  %15984 = vmatpush3.bf16.msk.msra.mxu0 %vm18850_vm3, %v16911_v21 }
 0x345   : > { %4833 = vrot.lane.b32.xlu1 %v19202_v14, %s16905_s12  ;;  %4642 = vrot.lane.b32.xlu0 %v18975_v53, %s21034_s26  ;;  %v5600_v3 = vpop.permute.xlu0 %5599 }
 0x346   : > { %v5602_v55 = vsel %vm21020_vm15, %v5598_v59, %v5600_v3  ;;  %15985 = vmatprep.subr.bf16.mxu0 %v16910_v16  ;;  %15994 = vmatprep.subr.bf16.mxu1 %v16910_v16  ;;  %vm5419_vm15 = vcmask 609624  }
 0x347   : > { %14970 = vmatmul.mubr.msk.f32.vlgmr.msra.gmra.mrb[38].mxu1 %vm21021_vm11, %v5602_v55  ;;  %14988 = vmatprep.mubr.msk.f32.mxu0 %vm21016_vm13, %v19092_v2 }
 0x348   : > { %15987 = vmatpush3.bf16.msk.msra.mxu0 %vm18861_vm6, %v16911_v21  ;;  %15996 = vmatpush3.bf16.msk.msra.mxu1 %vm18850_vm3, %v16911_v21 }
 0x349   : > { %4644 = vrot.lane.b32.xlu1 %v18981_v19, %s21034_s26  ;;  %6199 = vrot.lane.b32.xlu0 %v4935_v12, %s16925_s19  ;;  %v4820_v49 = vpop.permute.xlu0 %4819  ;;  %s20990_s19 = smov 125  }
 0x34a   : > { %v4870_v4 = vsel %vm2778_vm7, %v4818_v0, %v4820_v49  ;;  %15988 = vmatprep.subr.bf16.mxu0 %v16910_v16  ;;  %15997 = vmatprep.subr.bf16.mxu1 %v16910_v16 }
 0x34b   : > { %v4936_v17 = vmax.f32 %v18993_v15, %v4870_v4  ;;  %15007 = vmatprep.mubr.msk.f32.mxu1 %vm21016_vm13, %v19092_v2 }
 0x34c   : > { %15990 = vmatpush3.bf16.msk.msra.mxu0 %vm18875_vm14, %v16911_v21  ;;  %15999 = vmatpush3.bf16.msk.msra.mxu1 %vm18861_vm6, %v16911_v21 }
 0x34d   : > { %6288 = vrot.lane.b32.xlu0 %v4936_v17, %s20988_s25  ;;  %v4631_v23 = vpop.permute.xlu0 %4630  ;;  %15991 = vmatprep.subr.bf16.mxu0 %v16910_v16  ;;  %s20992_s25 = smov 121  }
 0x34e   : > { %v4674_v29 = vsel %vm2126_vm5, %v4629_v50, %v4631_v23  ;;  %16000 = vmatprep.subr.bf16.mxu1 %v16910_v16 }
 0x34f   : > { %v19247_v15 = vmax.f32 %v18837_v54, %v4674_v29  ;;  %v5683_v54 = vpop.permute.xlu1 %5682 }
 0x350   : > { %15993 = vmatpush3.bf16.msk.msra.mxu0 %vm18889_vm2, %v16911_v21  ;;  %16002 = vmatpush3.bf16.msk.msra.mxu1 %vm18875_vm14, %v16911_v21 }
 0x351   : > { %4835 = vrot.lane.b32.xlu0 %v19247_v15, %s16905_s12  ;;  %16003 = vmatprep.subr.bf16.mxu1 %v16910_v16 }
 0x352   : > { %16006 = vmatprep.subr.bf16.mxu0 %v16910_v16 }
 0x354   : > { %16005 = vmatpush3.bf16.msk.msra.mxu1 %vm18889_vm2, %v16911_v21 }
 0x355   : > { %4646 = vrot.lane.b32.xlu0 %v19004_v20, %s21034_s26  ;;  %16018 = vmatprep.subr.bf16.mxu1 %v16910_v16 }
 0x383   : > { %v5768_v1 = vpop.permute.xlu1 %5767  ;;  %v5685_v28 = vpop.permute.xlu0 %5684 }
 0x384   : > { %v5687_v11 = vsel %vm5686_vm1, %v5683_v54, %v5685_v28  ;;  %vm20995_vm1 = vcmask 138240  }
 0x385   : > { %14989 = vmatmul.mubr.msk.f32.vlgmr.msra.gmra.mrb[48].mxu0 %vm21021_vm11, %v5687_v11 }
 0x386   : > { %16008 = vmatpush3.bf16.msk.msra.mxu0 %vm18850_vm3, %v16911_v21  ;;  %15026 = vmatprep.mubr.msk.f32.mxu0 %vm21016_vm13, %v19092_v2 }
 0x387   : > { %v4822_v5 = vpop.permute.xlu1 %4821  ;;  %16009 = vmatprep.subr.bf16.mxu0 %v16910_v16 }
 0x388   : > { %v4871_v20 = vsel %vm2778_vm7, %v4820_v49, %v4822_v5 }
 0x389   : > { %v4937_v13 = vmax.f32 %v19009_v44, %v4871_v20 }
 0x38a   : > { %16011 = vmatpush3.bf16.msk.msra.mxu0 %vm18861_vm6, %v16911_v21 }
 0x38b   : > { %v4633_v62 = vpop.permute.xlu1 %4632  ;;  %6371 = vrot.lane.b32.xlu1 %v4937_v13, %s20990_s19  ;;  %16012 = vmatprep.subr.bf16.mxu0 %v16910_v16  ;;  %s21000_s19 = smov 117  }
 0x38c   : > { %v4675_v51 = vsel %vm2126_vm5, %v4631_v23, %v4633_v62 }
 0x38d   : > { %v19281_v32 = vmax.f32 %v18872_v37, %v4675_v51 }
 0x38e   : > { %16014 = vmatpush3.bf16.msk.msra.mxu0 %vm18875_vm14, %v16911_v21 }
 0x38f   : > { %v5853_v44 = vpop.permute.xlu1 %5852  ;;  %4837 = vrot.lane.b32.xlu1 %v19281_v32, %s16905_s12  ;;  %v5770_v10 = vpop.permute.xlu0 %5769  ;;  %16015 = vmatprep.subr.bf16.mxu0 %v16910_v16 }
 0x390   : > { %v5772_v60 = vsel %vm21015_vm8, %v5768_v1, %v5770_v10  ;;  %vm5244_vm8 = vcmask 842752  }
 0x391   : > { %15008 = vmatmul.mubr.msk.f32.vlgmr.msra.gmra.mrb[40].mxu1 %vm21021_vm11, %v5772_v60 }
 0x392   : > { %16020 = vmatpush3.bf16.msk.msra.mxu1 %vm18850_vm3, %v16911_v21  ;;  %16017 = vmatpush3.bf16.msk.msra.mxu0 %vm18889_vm2, %v16911_v21 }
 0x393   : > { %v5943_v37 = vpop.permute.xlu1 %5942  ;;  %v4824_v63 = vpop.permute.xlu0 %4823  ;;  %16021 = vmatprep.subr.bf16.mxu1 %v16910_v16  ;;  %16030 = vmatprep.subr.bf16.mxu0 %v16910_v16 }
 0x394   : > { %v4872_v25 = vsel %vm2778_vm7, %v4822_v5, %v4824_v63  ;;  %15045 = vmatprep.mubr.msk.f32.mxu1 %vm21016_vm13, %v19092_v2 }
 0x395   : > { %v4938_v43 = vmax.f32 %v19035_v18, %v4872_v25 }
 0x396   : > { %16023 = vmatpush3.bf16.msk.msra.mxu1 %vm18861_vm6, %v16911_v21 }
 0x397   : > { %v4826_v22 = vpop.permute.xlu1 %4825  ;;  %6452 = vrot.lane.b32.xlu0 %v4938_v43, %s20992_s25  ;;  %v4635_v39 = vpop.permute.xlu0 %4634  ;;  %16024 = vmatprep.subr.bf16.mxu1 %v16910_v16  ;;  %s20993_s25 = smov 113  }
 0x398   : > { %v4873_v47 = vsel %vm2778_vm7, %v4824_v63, %v4826_v22  ;;  %v4676_v35 = vsel %vm2126_vm5, %v4633_v62, %v4635_v39 }
 0x399   : > { %v4939_v59 = vmax.f32 %v19065_v58, %v4873_v47  ;;  %v19312_v48 = vmax.f32 %v18880_v56, %v4676_v35 }
 0x39a   : > { %16026 = vmatpush3.bf16.msk.msra.mxu1 %vm18875_vm14, %v16911_v21 }
 0x39b   : > { %v4637_v18 = vpop.permute.xlu1 %4636  ;;  %6538 = vrot.lane.b32.xlu1 %v4939_v59, %s21000_s19  ;;  %4839 = vrot.lane.b32.xlu0 %v19312_v48, %s16905_s12  ;;  %v5855_v40 = vpop.permute.xlu0 %5854  ;;  %s21001_s19 = smov 97  }
 0x39c   : > { %v4677_v27 = vsel %vm2126_vm5, %v4635_v39, %v4637_v18  ;;  %v5857_v0 = vsel %vm5856_vm12, %v5853_v44, %v5855_v40  ;;  %16027 = vmatprep.subr.bf16.mxu1 %v16910_v16  ;;  %vm20998_vm12 = vcmask 105472  }
 0x39d   : > { %v19323_v56 = vmax.f32 %v18919_v57, %v4677_v27  ;;  %15027 = vmatmul.mubr.msk.f32.vlgmr.msra.gmra.mrb[50].mxu0 %vm21021_vm11, %v5857_v0 }
 0x39e   : > { %16029 = vmatpush3.bf16.msk.msra.mxu1 %vm18889_vm2, %v16911_v21  ;;  %16032 = vmatpush3.bf16.msk.msra.mxu0 %vm18850_vm3, %v16911_v21 }
 0x39f   : > { %v6028_v58 = vpop.permute.xlu1 %6027  ;;  %4841 = vrot.lane.b32.xlu1 %v19323_v56, %s16905_s12  ;;  %v5945_v33 = vpop.permute.xlu0 %5944  ;;  %16033 = vmatprep.subr.bf16.mxu0 %v16910_v16 }
 0x3a0   : > { %v5947_v57 = vsel %vm20995_vm1, %v5943_v37, %v5945_v33  ;;  %16042 = vmatprep.subr.bf16.mxu1 %v16910_v16  ;;  %15064 = vmatprep.mubr.msk.f32.mxu0 %vm21016_vm13, %v19092_v2  ;;  %vm21014_vm1 = vcmask 72704  }
 0x3a1   : > { %15046 = vmatmul.mubr.msk.f32.vlgmr.msra.gmra.mrb[42].mxu1 %vm21021_vm11, %v5947_v57 }
 0x3a2   : > { %16035 = vmatpush3.bf16.msk.msra.mxu0 %vm18861_vm6, %v16911_v21  ;;  %16044 = vmatpush3.bf16.msk.msra.mxu1 %vm18850_vm3, %v16911_v21 }
 0x3a3   : > { %v6113_v45 = vpop.permute.xlu1 %6112  ;;  %v4828_v38 = vpop.permute.xlu0 %4827  ;;  %16036 = vmatprep.subr.bf16.mxu0 %v16910_v16  ;;  %16045 = vmatprep.subr.bf16.mxu1 %v16910_v16 }
 0x3a4   : > { %v4874_v12 = vsel %vm2778_vm7, %v4826_v22, %v4828_v38  ;;  %15083 = vmatprep.mubr.msk.f32.mxu1 %vm21016_vm13, %v19092_v2 }
 0x3a5   : > { %v4940_v50 = vmax.f32 %v19076_v36, %v4874_v12 }
 0x3a6   : > { %16038 = vmatpush3.bf16.msk.msra.mxu0 %vm18875_vm14, %v16911_v21  ;;  %16047 = vmatpush3.bf16.msk.msra.mxu1 %vm18861_vm6, %v16911_v21 }
 0x3a7   : > { %v4830_v61 = vpop.permute.xlu1 %4829  ;;  %6619 = vrot.lane.b32.xlu0 %v4940_v50, %s20993_s25  ;;  %v4639_v26 = vpop.permute.xlu0 %4638  ;;  %16039 = vmatprep.subr.bf16.mxu0 %v16910_v16  ;;  %s21004_s25 = smov 109  }
 0x3a8   : > { %v4875_v30 = vsel %vm2778_vm7, %v4828_v38, %v4830_v61  ;;  %v4678_v3 = vsel %vm2126_vm5, %v4637_v18, %v4639_v26  ;;  %16048 = vmatprep.subr.bf16.mxu1 %v16910_v16 }
 0x3a9   : > { %v4941_v36 = vmax.f32 %v19125_v34, %v4875_v30  ;;  %v19365_v55 = vmax.f32 %v18925_v8, %v4678_v3 }
 0x3aa   : > { %16041 = vmatpush3.bf16.msk.msra.mxu0 %vm18889_vm2, %v16911_v21  ;;  %16050 = vmatpush3.bf16.msk.msra.mxu1 %vm18875_vm14, %v16911_v21 }
 0x3ab   : > { %v4641_v49 = vpop.permute.xlu1 %4640  ;;  %6700 = vrot.lane.b32.xlu1 %v4941_v36, %s21004_s25  ;;  %4843 = vrot.lane.b32.xlu0 %v19365_v55, %s16905_s12  ;;  %v6030_v34 = vpop.permute.xlu0 %6029  ;;  %s21006_s25 = smov 73  }
 0x3ac   : > { %v4679_v8 = vsel %vm2126_vm5, %v4639_v26, %v4641_v49  ;;  %v6032_v4 = vsel %vm20998_vm12, %v6028_v58, %v6030_v34  ;;  %16051 = vmatprep.subr.bf16.mxu1 %v16910_v16  ;;  %16054 = vmatprep.subr.bf16.mxu0 %v16910_v16  ;;  %vm6201_vm12 = vcmask 39936  }
 0x3ad   : > { %v19381_v17 = vmax.f32 %v18947_v31, %v4679_v8  ;;  %15065 = vmatmul.mubr.msk.f32.vlgmr.msra.gmra.mrb[52].mxu0 %vm21021_vm11, %v6032_v4 }
 0x3ae   : > { %16053 = vmatpush3.bf16.msk.msra.mxu1 %vm18889_vm2, %v16911_v21  ;;  %16056 = vmatpush3.bf16.msk.msra.mxu0 %vm18850_vm3, %v16911_v21 }
 0x3af   : > { %v6198_v23 = vpop.permute.xlu1 %6197  ;;  %4845 = vrot.lane.b32.xlu1 %v19381_v17, %s16905_s12  ;;  %v6115_v29 = vpop.permute.xlu0 %6114  ;;  %16057 = vmatprep.subr.bf16.mxu0 %v16910_v16 }
 0x3b0   : > { %v6117_v31 = vsel %vm21014_vm1, %v6113_v45, %v6115_v29  ;;  %16066 = vmatprep.subr.bf16.mxu1 %v16910_v16  ;;  %15102 = vmatprep.mubr.msk.f32.mxu0 %vm21016_vm13, %v19092_v2  ;;  %vm5074_vm1 = vcmask 544024  }
 0x3b1   : > { %15084 = vmatmul.mubr.msk.f32.vlgmr.msra.gmra.mrb[44].mxu1 %vm21021_vm11, %v6117_v31 }
 0x3b2   : > { %16059 = vmatpush3.bf16.msk.msra.mxu0 %vm18861_vm6, %v16911_v21  ;;  %16068 = vmatpush3.bf16.msk.msra.mxu1 %vm18850_vm3, %v16911_v21 }
 0x3b3   : > { %v6287_v54 = vpop.permute.xlu1 %6286  ;;  %v4832_v1 = vpop.permute.xlu0 %4831  ;;  %16060 = vmatprep.subr.bf16.mxu0 %v16910_v16  ;;  %16069 = vmatprep.subr.bf16.mxu1 %v16910_v16 }
 0x3b4   : > { %v4876_v28 = vsel %vm2778_vm7, %v4830_v61, %v4832_v1  ;;  %15121 = vmatprep.mubr.msk.f32.mxu1 %vm21016_vm13, %v19092_v2 }
 0x3b5   : > { %v4942_v11 = vmax.f32 %v19140_v42, %v4876_v28 }
 0x3b6   : > { %16062 = vmatpush3.bf16.msk.msra.mxu0 %vm18875_vm14, %v16911_v21  ;;  %16071 = vmatpush3.bf16.msk.msra.mxu1 %vm18861_vm6, %v16911_v21 }
 0x3b7   : > { %v4834_v5 = vpop.permute.xlu1 %4833  ;;  %6781 = vrot.lane.b32.xlu0 %v4942_v11, %s20999_s10  ;;  %v4643_v20 = vpop.permute.xlu0 %4642  ;;  %16063 = vmatprep.subr.bf16.mxu0 %v16910_v16  ;;  %s16932_s10 = smov 101  }
 0x3b8   : > { %v4877_v13 = vsel %vm2778_vm7, %v4832_v1, %v4834_v5  ;;  %v4680_v62 = vsel %vm2126_vm5, %v4641_v49, %v4643_v20  ;;  %16072 = vmatprep.subr.bf16.mxu1 %v16910_v16 }
 0x3b9   : > { %v4943_v42 = vmax.f32 %v19187_v52, %v4877_v13  ;;  %v19423_v51 = vmax.f32 %v18953_v46, %v4680_v62 }
 0x3ba   : > { %16065 = vmatpush3.bf16.msk.msra.mxu0 %vm18889_vm2, %v16911_v21  ;;  %16074 = vmatpush3.bf16.msk.msra.mxu1 %vm18875_vm14, %v16911_v21 }
 0x3bb   : > { %v4645_v44 = vpop.permute.xlu1 %4644  ;;  %6867 = vrot.lane.b32.xlu1 %v4943_v42, %s16932_s10  ;;  %4847 = vrot.lane.b32.xlu0 %v19423_v51, %s16905_s12  ;;  %v6200_v52 = vpop.permute.xlu0 %6199 }
 0x3bc   : > { %v4681_v46 = vsel %vm2126_vm5, %v4643_v20, %v4645_v44  ;;  %v6202_v10 = vsel %vm6201_vm12, %v6198_v23, %v6200_v52  ;;  %16075 = vmatprep.subr.bf16.mxu1 %v16910_v16  ;;  %16078 = vmatprep.subr.bf16.mxu0 %v16910_v16  ;;  %vm5248_vm12 = vcmask 56324  }
 0x3bd   : > { %v19438_v60 = vmax.f32 %v18975_v53, %v4681_v46  ;;  %15103 = vmatmul.mubr.msk.f32.vlgmr.msra.gmra.mrb[54].mxu0 %vm21021_vm11, %v6202_v10 }
 0x3be   : > { %16077 = vmatpush3.bf16.msk.msra.mxu1 %vm18889_vm2, %v16911_v21  ;;  %16080 = vmatpush3.bf16.msk.msra.mxu0 %vm18850_vm3, %v16911_v21 }
 0x3bf   : > { %4849 = vrot.lane.b32.xlu1 %v19438_v60, %s16905_s12  ;;  %v6289_v37 = vpop.permute.xlu0 %6288  ;;  %16081 = vmatprep.subr.bf16.mxu0 %v16910_v16 }
 0x3c0   : > { %v6291_v63 = vsel %vm21019_vm4, %v6287_v54, %v6289_v37  ;;  %16090 = vmatprep.subr.bf16.mxu1 %v16910_v16  ;;  %15140 = vmatprep.mubr.msk.f32.mxu0 %vm21016_vm13, %v19092_v2  ;;  %vm5593_vm4 = vcmask 121860  }
 0x3c1   : > { %15122 = vmatmul.mubr.msk.f32.vlgmr.msra.gmra.mrb[46].mxu1 %vm21021_vm11, %v6291_v63 }
 0x3c2   : > { %16083 = vmatpush3.bf16.msk.msra.mxu0 %vm18861_vm6, %v16911_v21  ;;  %16092 = vmatpush3.bf16.msk.msra.mxu1 %vm18850_vm3, %v16911_v21 }
 0x3c3   : > { %v4836_v53 = vpop.permute.xlu0 %4835  ;;  %16084 = vmatprep.subr.bf16.mxu0 %v16910_v16  ;;  %16093 = vmatprep.subr.bf16.mxu1 %v16910_v16 }
 0x3c4   : > { %v4878_v25 = vsel %vm2778_vm7, %v4834_v5, %v4836_v53  ;;  %15159 = vmatprep.mubr.msk.f32.mxu1 %vm21016_vm13, %v19092_v2 }
 0x3c5   : > { %v4944_v43 = vmax.f32 %v19202_v14, %v4878_v25 }
 0x3c6   : > { %16086 = vmatpush3.bf16.msk.msra.mxu0 %vm18875_vm14, %v16911_v21  ;;  %16095 = vmatpush3.bf16.msk.msra.mxu1 %vm18861_vm6, %v16911_v21 }
 0x3c7   : > { %6948 = vrot.lane.b32.xlu0 %v4944_v43, %s21001_s19  ;;  %v4647_v22 = vpop.permute.xlu0 %4646  ;;  %16087 = vmatprep.subr.bf16.mxu0 %v16910_v16  ;;  %s21002_s19 = smov 89  }
 0x3c8   : > { %v4682_v39 = vsel %vm2126_vm5, %v4645_v44, %v4647_v22  ;;  %16096 = vmatprep.subr.bf16.mxu1 %v16910_v16 }
 0x3c9   : > { %v4750_v14 = vmax.f32 %v18981_v19, %v4682_v39 }
 0x3ca   : > { %16089 = vmatpush3.bf16.msk.msra.mxu0 %vm18889_vm2, %v16911_v21  ;;  %16098 = vmatpush3.bf16.msk.msra.mxu1 %vm18875_vm14, %v16911_v21 }
 0x3cb   : > { %4851 = vrot.lane.b32.xlu0 %v4750_v14, %s16905_s12  ;;  %16102 = vmatprep.subr.bf16.mxu0 %v16910_v16  ;;  %s21029_s12 = smov 93  }
 0x3cc   : > { %16099 = vmatprep.subr.bf16.mxu1 %v16910_v16 }
 0x3ce   : > { %16101 = vmatpush3.bf16.msk.msra.mxu1 %vm18889_vm2, %v16911_v21 }
 0x3cf   : > { %16114 = vmatprep.subr.bf16.mxu1 %v16910_v16 }
 0x3db   : > { %v19491_v19 = vpop.f32.mrb[40].mxu0 }
 0x3dc   : > { %v14838_v47 = vpop.f32.mrb[41].mxu0 }
 0x3ea   : > { %v19493_v35 = vpop.f32.mrb[32].mxu1 }
 0x3eb   : > { %v14857_v59 = vpop.f32.mrb[33].mxu1 }
 0x3f6   : > { %v19495_v18 = vpop.f32.mrb[42].mxu0 }
 0x3f7   : > { %v14876_v40 = vpop.f32.mrb[43].mxu0 }
 0x3fa   : > { %v19497_v27 = vpop.f32.mrb[34].mxu1 }
 0x3fb   : > { %v14895_v0 = vpop.f32.mrb[35].mxu1 }
 0x3fd   : > { %v6372_v58 = vpop.permute.xlu1 %6371 }
 0x3fe   : > { %15141 = vmatmul.mubr.msk.f32.vlgmr.msra.gmra.mrb[56].mxu0 %vm21021_vm11, %v6372_v58 }
 0x3ff   : > { %16104 = vmatpush3.bf16.msk.msra.mxu0 %vm18850_vm3, %v16911_v21  ;;  %15178 = vmatprep.mubr.msk.f32.mxu0 %vm21016_vm13, %v19092_v2 }
 0x400   : > { %16105 = vmatprep.subr.bf16.mxu0 %v16910_v16 }
 0x401   : > { %v4838_v33 = vpop.permute.xlu1 %4837 }
 0x402   : > { %v4879_v57 = vsel %vm2778_vm7, %v4836_v53, %v4838_v33 }
 0x403   : > { %v4945_v45 = vmax.f32 %v19247_v15, %v4879_v57  ;;  %16107 = vmatpush3.bf16.msk.msra.mxu0 %vm18861_vm6, %v16911_v21 }
 0x404   : > { %16108 = vmatprep.subr.bf16.mxu0 %v16910_v16 }
 0x405   : > { %7029 = vrot.lane.b32.xlu1 %v4945_v45, %s21029_s12 }
 0x406   : > { %v19513_v38 = vpop.f32.mrb[44].mxu0 }
 0x407   : > { %v14914_v12 = vpop.f32.mrb[45].mxu0  ;;  %16110 = vmatpush3.bf16.msk.msra.mxu0 %vm18875_vm14, %v16911_v21 }
 0x408   : > { %16111 = vmatprep.subr.bf16.mxu0 %v16910_v16 }
 0x409   : > { %v6453_v50 = vpop.permute.xlu0 %6452 }
 0x40a   : > { %v19519_v15 = vpop.f32.mrb[36].mxu1  ;;  %15160 = vmatmul.mubr.msk.f32.vlgmr.msra.gmra.mrb[48].mxu1 %vm21021_vm11, %v6453_v50 }
 0x40b   : > { %v14933_v61 = vpop.f32.mrb[37].mxu1  ;;  %16113 = vmatpush3.bf16.msk.msra.mxu0 %vm18889_vm2, %v16911_v21  ;;  %16116 = vmatpush3.bf16.msk.msra.mxu1 %vm18850_vm3, %v16911_v21 }
 0x40c   : > { %16117 = vmatprep.subr.bf16.mxu1 %v16910_v16  ;;  %16126 = vmatprep.subr.bf16.mxu0 %v16910_v16 }
 0x40d   : > { %v6539_v26 = vpop.permute.xlu1 %6538  ;;  %v4840_v30 = vpop.permute.xlu0 %4839  ;;  %15197 = vmatprep.mubr.msk.f32.mxu1 %vm21016_vm13, %v19092_v2 }
 0x40e   : > { %v4880_v3 = vsel %vm2778_vm7, %v4838_v33, %v4840_v30  ;;  %15179 = vmatmul.mubr.msk.f32.vlgmr.msra.gmra.mrb[58].mxu0 %vm21021_vm11, %v6539_v26 }
 0x40f   : > { %v4946_v36 = vmax.f32 %v19281_v32, %v4880_v3  ;;  %16119 = vmatpush3.bf16.msk.msra.mxu1 %vm18861_vm6, %v16911_v21  ;;  %16128 = vmatpush3.bf16.msk.msra.mxu0 %vm18850_vm3, %v16911_v21 }
 0x410   : > { %16120 = vmatprep.subr.bf16.mxu1 %v16910_v16  ;;  %16129 = vmatprep.subr.bf16.mxu0 %v16910_v16 }
 0x411   : > { %v4842_v49 = vpop.permute.xlu1 %4841  ;;  %7110 = vrot.lane.b32.xlu0 %v4946_v36, %s21002_s19  ;;  %15216 = vmatprep.mubr.msk.f32.mxu0 %vm21016_vm13, %v19092_v2  ;;  %s21028_s19 = smov 85  }
 0x412   : > { %v4881_v32 = vsel %vm2778_vm7, %v4840_v30, %v4842_v49 }
 0x413   : > { %v4947_v34 = vmax.f32 %v19312_v48, %v4881_v32  ;;  %16122 = vmatpush3.bf16.msk.msra.mxu1 %vm18875_vm14, %v16911_v21  ;;  %16131 = vmatpush3.bf16.msk.msra.mxu0 %vm18861_vm6, %v16911_v21 }
 0x414   : > { %16123 = vmatprep.subr.bf16.mxu1 %v16910_v16  ;;  %16132 = vmatprep.subr.bf16.mxu0 %v16910_v16 }
 0x415   : > { %7196 = vrot.lane.b32.xlu1 %v4947_v34, %s21028_s19 }
 0x416   : > { %v19557_v8 = vpop.f32.mrb[46].mxu0 }
 0x417   : > { %v14952_v4 = vpop.f32.mrb[47].mxu0  ;;  %16125 = vmatpush3.bf16.msk.msra.mxu1 %vm18889_vm2, %v16911_v21  ;;  %16134 = vmatpush3.bf16.msk.msra.mxu0 %vm18875_vm14, %v16911_v21 }
 0x418   : > { %16135 = vmatprep.subr.bf16.mxu0 %v16910_v16  ;;  %16138 = vmatprep.subr.bf16.mxu1 %v16910_v16 }
 0x419   : > { %v6620_v48 = vpop.permute.xlu0 %6619 }
 0x41a   : > { %v19567_v23 = vpop.f32.mrb[38].mxu1  ;;  %15198 = vmatmul.mubr.msk.f32.vlgmr.msra.gmra.mrb[50].mxu1 %vm21021_vm11, %v6620_v48 }
 0x41b   : > { %v14971_v29 = vpop.f32.mrb[39].mxu1  ;;  %16137 = vmatpush3.bf16.msk.msra.mxu0 %vm18889_vm2, %v16911_v21  ;;  %16140 = vmatpush3.bf16.msk.msra.mxu1 %vm18850_vm3, %v16911_v21 }
 0x41c   : > { %16141 = vmatprep.subr.bf16.mxu1 %v16910_v16  ;;  %16150 = vmatprep.subr.bf16.mxu0 %v16910_v16 }
 0x41d   : > { %v6701_v31 = vpop.permute.xlu1 %6700  ;;  %v4844_v54 = vpop.permute.xlu0 %4843  ;;  %15235 = vmatprep.mubr.msk.f32.mxu1 %vm21016_vm13, %v19092_v2 }
 0x41e   : > { %v4882_v1 = vsel %vm2778_vm7, %v4842_v49, %v4844_v54  ;;  %15217 = vmatmul.mubr.msk.f32.vlgmr.msra.gmra.mrb[60].mxu0 %vm21021_vm11, %v6701_v31 }
 0x41f   : > { %v4948_v28 = vmax.f32 %v19323_v56, %v4882_v1  ;;  %16143 = vmatpush3.bf16.msk.msra.mxu1 %vm18861_vm6, %v16911_v21  ;;  %16152 = vmatpush3.bf16.msk.msra.mxu0 %vm18850_vm3, %v16911_v21 }
 0x420   : > { %16144 = vmatprep.subr.bf16.mxu1 %v16910_v16  ;;  %16153 = vmatprep.subr.bf16.mxu0 %v16910_v16 }
 0x421   : > { %v4846_v11 = vpop.permute.xlu1 %4845  ;;  %7277 = vrot.lane.b32.xlu0 %v4948_v28, %s16937_s18  ;;  %15254 = vmatprep.mubr.msk.f32.mxu0 %vm21016_vm13, %v19092_v2  ;;  %s21010_s18 = smov 77  }
 0x422   : > { %v4883_v56 = vsel %vm2778_vm7, %v4844_v54, %v4846_v11 }
 0x423   : > { %v4949_v5 = vmax.f32 %v19365_v55, %v4883_v56  ;;  %16146 = vmatpush3.bf16.msk.msra.mxu1 %vm18875_vm14, %v16911_v21  ;;  %16155 = vmatpush3.bf16.msk.msra.mxu0 %vm18861_vm6, %v16911_v21 }
 0x424   : > { %16147 = vmatprep.subr.bf16.mxu1 %v16910_v16  ;;  %16156 = vmatprep.subr.bf16.mxu0 %v16910_v16 }
 0x425   : > { %7358 = vrot.lane.b32.xlu1 %v4949_v5, %s21010_s18 }
 0x427   : > { %16149 = vmatpush3.bf16.msk.msra.mxu1 %vm18889_vm2, %v16911_v21  ;;  %16158 = vmatpush3.bf16.msk.msra.mxu0 %vm18875_vm14, %v16911_v21 }
 0x428   : > { %16159 = vmatprep.subr.bf16.mxu0 %v16910_v16  ;;  %16162 = vmatprep.subr.bf16.mxu1 %v16910_v16 }
 0x429   : > { %v6782_v55 = vpop.permute.xlu0 %6781 }
 0x42a   : > { %15236 = vmatmul.mubr.msk.f32.vlgmr.msra.gmra.mrb[52].mxu1 %vm21021_vm11, %v6782_v55 }
 0x42b   : > { %16161 = vmatpush3.bf16.msk.msra.mxu0 %vm18889_vm2, %v16911_v21  ;;  %16164 = vmatpush3.bf16.msk.msra.mxu1 %vm18850_vm3, %v16911_v21 }
 0x42c   : > { %16165 = vmatprep.subr.bf16.mxu1 %v16910_v16  ;;  %15273 = vmatprep.mubr.msk.f32.mxu1 %vm21016_vm13, %v19092_v2 }
 0x42d   : > { %v6868_v20 = vpop.permute.xlu1 %6867  ;;  %v4848_v13 = vpop.permute.xlu0 %4847  ;;  %16174 = vmatprep.subr.bf16.mxu0 %v16910_v16 }
 0x42e   : > { %v4884_v62 = vsel %vm2778_vm7, %v4846_v11, %v4848_v13  ;;  %15255 = vmatmul.mubr.msk.f32.vlgmr.msra.gmra.mrb[62].mxu0 %vm21021_vm11, %v6868_v20 }
 0x42f   : > { %v4950_v42 = vmax.f32 %v19381_v17, %v4884_v62  ;;  %16167 = vmatpush3.bf16.msk.msra.mxu1 %vm18861_vm6, %v16911_v21  ;;  %16176 = vmatpush3.bf16.msk.msra.mxu0 %vm18850_vm3, %v16911_v21 }
 0x430   : > { %16168 = vmatprep.subr.bf16.mxu1 %v16910_v16  ;;  %16177 = vmatprep.subr.bf16.mxu0 %v16910_v16 }
 0x431   : > { %v4850_v44 = vpop.permute.xlu1 %4849  ;;  %7439 = vrot.lane.b32.xlu0 %v4950_v42, %s21006_s25  ;;  %15292 = vmatprep.mubr.msk.f32.mxu0 %vm21016_vm13, %v19092_v2  ;;  %s21009_s25 = smov 69  }
 0x432   : > { %v4885_v17 = vsel %vm2778_vm7, %v4848_v13, %v4850_v44 }
 0x433   : > { %v4951_v52 = vmax.f32 %v19423_v51, %v4885_v17  ;;  %16170 = vmatpush3.bf16.msk.msra.mxu1 %vm18875_vm14, %v16911_v21  ;;  %16179 = vmatpush3.bf16.msk.msra.mxu0 %vm18861_vm6, %v16911_v21 }
 0x434   : > { %16171 = vmatprep.subr.bf16.mxu1 %v16910_v16  ;;  %16180 = vmatprep.subr.bf16.mxu0 %v16910_v16 }
 0x435   : > { %7525 = vrot.lane.b32.xlu1 %v4951_v52, %s21009_s25 }
 0x437   : > { %16173 = vmatpush3.bf16.msk.msra.mxu1 %vm18889_vm2, %v16911_v21  ;;  %16182 = vmatpush3.bf16.msk.msra.mxu0 %vm18875_vm14, %v16911_v21 }
 0x438   : > { %16183 = vmatprep.subr.bf16.mxu0 %v16910_v16  ;;  %16186 = vmatprep.subr.bf16.mxu1 %v16910_v16 }
 0x439   : > { %5156 = vrot.lane.b32.xlu1 %v19493_v35, %s21009_s25  ;;  %v6949_v51 = vpop.permute.xlu0 %6948  ;;  %s16943_s25 = smov 35  }
 0x43a   : > { %15274 = vmatmul.mubr.msk.f32.vlgmr.msra.gmra.mrb[54].mxu1 %vm21021_vm11, %v6949_v51 }
 0x43b   : > { %16185 = vmatpush3.bf16.msk.msra.mxu0 %vm18889_vm2, %v16911_v21  ;;  %16188 = vmatpush3.bf16.msk.msra.mxu1 %vm18850_vm3, %v16911_v21 }
 0x43c   : > { %16189 = vmatprep.subr.bf16.mxu1 %v16910_v16  ;;  %16198 = vmatprep.subr.bf16.mxu0 %v16910_v16 }
 0x43d   : > { %5241 = vrot.lane.b32.xlu1 %v19495_v18, %s16941_s20  ;;  %v4852_v46 = vpop.permute.xlu0 %4851  ;;  %15311 = vmatprep.mubr.msk.f32.mxu1 %vm21016_vm13, %v19092_v2  ;;  %s21011_s20 = smov 111  }
 0x43e   : > { %v4886_v10 = vsel %vm2778_vm7, %v4850_v44, %v4852_v46  ;;  %vm5247_vm7 = vcmask 1044280  }
 0x43f   : > { %v4952_v37 = vmax.f32 %v19438_v60, %v4886_v10  ;;  %16191 = vmatpush3.bf16.msk.msra.mxu1 %vm18861_vm6, %v16911_v21 }
 0x440   : > { %16192 = vmatprep.subr.bf16.mxu1 %v16910_v16 }
 0x441   : > { %5501 = vrot.lane.b32.xlu1 %v19519_v15, %s21010_s18  ;;  %7606 = vrot.lane.b32.xlu0 %v4952_v37, %s21013_s22  ;;  %s16944_s18 = smov 43   ;;  %s16946_s22 = smov 119  }
 0x443   : > { %16194 = vmatpush3.bf16.msk.msra.mxu1 %vm18875_vm14, %v16911_v21 }
 0x444   : > { %16195 = vmatprep.subr.bf16.mxu1 %v16910_v16 }
 0x445   : > { %5586 = vrot.lane.b32.xlu1 %v19557_v8, %s21011_s20  ;;  %5071 = vrot.lane.b32.xlu0 %v19491_v19, %s16943_s25  ;;  %s16945_s20 = smov 51  }
 0x447   : > { %16197 = vmatpush3.bf16.msk.msra.mxu1 %vm18889_vm2, %v16911_v21 }
 0x448   : > { %16210 = vmatprep.subr.bf16.mxu1 %v16910_v16 }
 0x449   : > { %5331 = vrot.lane.b32.xlu0 %v19497_v27, %s21025_s13  ;;  %s16955_s13 = smov 34  }
 0x44d   : > { %5416 = vrot.lane.b32.xlu0 %v19513_v38, %s16944_s18  ;;  %v19764_v38 = vld [vmem:[#allocation5] sm:$0xff]  ;;  %s16948_s18 = smov 7  }
 0x451   : > { %5676 = vrot.lane.b32.xlu0 %v19567_v23, %s21032_s17 }
 0x458   : > { %v5756_v60 = vpop.f32.mrb[48].mxu0 }
 0x459   : > { %v14990_v63 = vpop.f32.mrb[49].mxu0  ;;  %5761 = vrot.lane.b32.xlu0 %v5756_v60, %s16945_s20  ;;  %s21024_s20 = smov 15  }
 0x464   : > { %v5841_v53 = vpop.f32.mrb[40].mxu1 }
 0x465   : > { %v15009_v25 = vpop.f32.mrb[41].mxu1  ;;  %5846 = vrot.lane.b32.xlu1 %v5841_v53, %s21028_s19  ;;  %s16956_s19 = smov 95  }
 0x470   : > { %v5926_v43 = vpop.f32.mrb[50].mxu0 }
 0x471   : > { %v15028_v22 = vpop.f32.mrb[51].mxu0  ;;  %5931 = vrot.lane.b32.xlu1 %v5926_v43, %s16946_s22  ;;  %s16947_s22 = smov 59  }
 0x474   : > { %v6016_v39 = vpop.f32.mrb[42].mxu1 }
 0x475   : > { %v15047_v14 = vpop.f32.mrb[43].mxu1  ;;  %6021 = vrot.lane.b32.xlu0 %v6016_v39, %s16920_s21 }
 0x477   : > { %v7030_v19 = vpop.permute.xlu1 %7029 }
 0x478   : > { %15293 = vmatmul.mubr.msk.f32.vlgmr.msra.gmra.mrb[64].mxu0 %vm21021_vm11, %v7030_v19 }
 0x479   : > { %16200 = vmatpush3.bf16.msk.msra.mxu0 %vm18850_vm3, %v16911_v21  ;;  %15330 = vmatprep.mubr.msk.f32.mxu0 %vm21016_vm13, %v19092_v2 }
 0x47a   : > { %16201 = vmatprep.subr.bf16.mxu0 %v16910_v16 }
 0x47d   : > { %16203 = vmatpush3.bf16.msk.msra.mxu0 %vm18861_vm6, %v16911_v21 }
 0x47e   : > { %16204 = vmatprep.subr.bf16.mxu0 %v16910_v16 }
 0x480   : > { %v6101_v47 = vpop.f32.mrb[52].mxu0 }
 0x481   : > { %v15066_v35 = vpop.f32.mrb[53].mxu0  ;;  %16206 = vmatpush3.bf16.msk.msra.mxu0 %vm18875_vm14, %v16911_v21  ;;  %6106 = vrot.lane.b32.xlu0 %v6101_v47, %s16947_s22  ;;  %s16950_s22 = smov 75  }
 0x482   : > { %16207 = vmatprep.subr.bf16.mxu0 %v16910_v16 }
 0x483   : > { %v7111_v59 = vpop.permute.xlu0 %7110 }
 0x484   : > { %v6186_v18 = vpop.f32.mrb[44].mxu1  ;;  %15312 = vmatmul.mubr.msk.f32.vlgmr.msra.gmra.mrb[56].mxu1 %vm21021_vm11, %v7111_v59 }
 0x485   : > { %v15085_v40 = vpop.f32.mrb[45].mxu1  ;;  %16209 = vmatpush3.bf16.msk.msra.mxu0 %vm18889_vm2, %v16911_v21  ;;  %6191 = vrot.lane.b32.xlu1 %v6186_v18, %s21029_s12 }
 0x486   : > { %16212 = vmatpush3.bf16.msk.msra.mxu1 %vm18850_vm3, %v16911_v21  ;;  %16222 = vmatprep.subr.bf16.mxu0 %v16910_v16 }
 0x487   : > { %v7197_v27 = vpop.permute.xlu1 %7196  ;;  %16213 = vmatprep.subr.bf16.mxu1 %v16910_v16  ;;  %15349 = vmatprep.mubr.msk.f32.mxu1 %vm21016_vm13, %v19092_v2 }
 0x488   : > { %15331 = vmatmul.mubr.msk.f32.vlgmr.msra.gmra.mrb[66].mxu0 %vm21021_vm11, %v7197_v27 }
 0x489   : > { %16224 = vmatpush3.bf16.msk.msra.mxu0 %vm18850_vm3, %v16911_v21  ;;  %15368 = vmatprep.mubr.msk.f32.mxu0 %vm21016_vm13, %v19092_v2 }
 0x48a   : > { %16215 = vmatpush3.bf16.msk.msra.mxu1 %vm18861_vm6, %v16911_v21  ;;  %16225 = vmatprep.subr.bf16.mxu0 %v16910_v16 }
 0x48b   : > { %16216 = vmatprep.subr.bf16.mxu1 %v16910_v16 }
 0x48d   : > { %16227 = vmatpush3.bf16.msk.msra.mxu0 %vm18861_vm6, %v16911_v21 }
 0x48e   : > { %16218 = vmatpush3.bf16.msk.msra.mxu1 %vm18875_vm14, %v16911_v21  ;;  %16228 = vmatprep.subr.bf16.mxu0 %v16910_v16 }
 0x48f   : > { %16219 = vmatprep.subr.bf16.mxu1 %v16910_v16 }
 0x490   : > { %v6271_v2 = vpop.f32.mrb[54].mxu0 }
 0x491   : > { %v15104_v0 = vpop.f32.mrb[55].mxu0  ;;  %16230 = vmatpush3.bf16.msk.msra.mxu0 %vm18875_vm14, %v16911_v21  ;;  %6276 = vrot.lane.b32.xlu1 %v6271_v2, %s21034_s26 }
 0x492   : > { %16221 = vmatpush3.bf16.msk.msra.mxu1 %vm18889_vm2, %v16911_v21  ;;  %16231 = vmatprep.subr.bf16.mxu0 %v16910_v16 }
 0x493   : > { %v7278_v58 = vpop.permute.xlu0 %7277  ;;  %16234 = vmatprep.subr.bf16.mxu1 %v16910_v16 }
 0x494   : > { %v6360_v33 = vpop.f32.mrb[46].mxu1 }
 0x495   : > { %15350 = vmatmul.mubr.msk.f32.vlgmr.msra.gmra.mrb[58].mxu1 %vm21021_vm11, %v7278_v58  ;;  %v15123_v57 = vpop.f32.mrb[47].mxu1  ;;  %16233 = vmatpush3.bf16.msk.msra.mxu0 %vm18889_vm2, %v16911_v21 }
 0x496   : > { %6365 = vrot.lane.b32.xlu1 %v6360_v33, %s21031_s24  ;;  %16236 = vmatpush3.bf16.msk.msra.mxu1 %vm18850_vm3, %v16911_v21 }
 0x497   : > { %v7359_v45 = vpop.permute.xlu1 %7358  ;;  %16237 = vmatprep.subr.bf16.mxu1 %v16910_v16  ;;  %16246 = vmatprep.subr.bf16.mxu0 %v16910_v16 }
 0x498   : > { %15369 = vmatmul.mubr.msk.f32.vlgmr.msra.gmra.mrb[68].mxu0 %vm21021_vm11, %v7359_v45  ;;  %15387 = vmatprep.mubr.msk.f32.mxu1 %vm21016_vm13, %v19764_v38 }
 0x499   : > { %16248 = vmatpush3.bf16.msk.msra.mxu0 %vm18850_vm3, %v16911_v21  ;;  %15406 = vmatprep.mubr.msk.f32.mxu0 %vm21016_vm13, %v19764_v38 }
 0x49a   : > { %16239 = vmatpush3.bf16.msk.msra.mxu1 %vm18861_vm6, %v16911_v21  ;;  %16249 = vmatprep.subr.bf16.mxu0 %v16910_v16 }
 0x49b   : > { %16240 = vmatprep.subr.bf16.mxu1 %v16910_v16 }
 0x49d   : > { %16251 = vmatpush3.bf16.msk.msra.mxu0 %vm18861_vm6, %v16911_v21 }
 0x49e   : > { %16242 = vmatpush3.bf16.msk.msra.mxu1 %vm18875_vm14, %v16911_v21  ;;  %16252 = vmatprep.subr.bf16.mxu0 %v16910_v16 }
 0x49f   : > { %16243 = vmatprep.subr.bf16.mxu1 %v16910_v16 }
 0x4a1   : > { %16254 = vmatpush3.bf16.msk.msra.mxu0 %vm18875_vm14, %v16911_v21 }
 0x4a2   : > { %16245 = vmatpush3.bf16.msk.msra.mxu1 %vm18889_vm2, %v16911_v21  ;;  %16255 = vmatprep.subr.bf16.mxu0 %v16910_v16 }
 0x4a3   : > { %v7440_v12 = vpop.permute.xlu0 %7439  ;;  %16258 = vmatprep.subr.bf16.mxu1 %v16910_v16 }
 0x4a5   : > { %15388 = vmatmul.mubr.msk.f32.vlgmr.msra.gmra.mrb[60].mxu1 %vm21021_vm11, %v7440_v12  ;;  %16257 = vmatpush3.bf16.msk.msra.mxu0 %vm18889_vm2, %v16911_v21 }
 0x4a6   : > { %16260 = vmatpush3.bf16.msk.msra.mxu1 %vm18850_vm3, %v16911_v21  ;;  %15425 = vmatprep.mubr.msk.f32.mxu1 %vm21016_vm13, %v19764_v38  ;;  %vm5159_vm13 = vcmask 822824  }
 0x4a7   : > { %v7526_v50 = vpop.permute.xlu1 %7525  ;;  %16261 = vmatprep.subr.bf16.mxu1 %v16910_v16 }
 0x4a8   : > { %15407 = vmatmul.mubr.msk.f32.vlgmr.msra.gmra.mrb[70].mxu0 %vm21021_vm11, %v7526_v50 }
 0x4a9   : > { %8720 = vmatprep.mubr.bf16.mxu0 %v16907_v24 }
 0x4aa   : > { %16263 = vmatpush3.bf16.msk.msra.mxu1 %vm18861_vm6, %v16911_v21 }
 0x4ab   : > { %v5157_v15 = vpop.permute.xlu1 %5156  ;;  %16264 = vmatprep.subr.bf16.mxu1 %v16910_v16 }
 0x4ae   : > { %16266 = vmatpush3.bf16.msk.msra.mxu1 %vm18875_vm14, %v16911_v21  ;;  %vm5249_vm14 = vmor %vm5248_vm12, %vm5247_vm7  ;;  %vm6109_vm7 = vcmask 740824   ;;  %vm6194_vm12 = vcmask 1019624  }
 0x4af   : > { %v5242_v61 = vpop.permute.xlu1 %5241  ;;  %16267 = vmatprep.subr.bf16.mxu1 %v16910_v16 }
 0x4b0   : > { %v5243_v3 = vrot.slane %v5242_v61, 4 }
 0x4b2   : > { %16269 = vmatpush3.bf16.msk.msra.mxu1 %vm18889_vm2, %v16911_v21  ;;  %v5245_v36 = vsel %vm5244_vm8, %v5243_v3, %v5242_v61  ;;  %vm5592_vm2 = vcmask 1044344   ;;  %vm6024_vm8 = vcmask 462024  }
 0x4b3   : > { %v7607_v26 = vpop.permute.xlu0 %7606  ;;  %v5502_v30 = vpop.permute.xlu1 %5501  ;;  %vm5594_vm0 = vmor %vm5593_vm4, %vm5592_vm2  ;;  %vm5849_vm4 = vcmask 954024   ;;  %vm6282_vm2 = vcmask 252932  }
 0x4b5   : > { %15426 = vmatmul.mubr.msk.f32.vlgmr.msra.gmra.mrb[62].mxu1 %vm21021_vm11, %v7607_v26  ;;  %vm5589_vm11 = vcmask 908288  }
 0x4b6   : > { %8761 = vmatprep.mubr.bf16.mxu1 %v16907_v24 }
 0x4b7   : > { %v5072_v9 = vpop.permute.xlu0 %5071  ;;  %v5587_v6 = vpop.permute.xlu1 %5586 }
 0x4b8   : > { %5075 = vst.msk [vmem:[#allocation5 + $0x4] sm:$0xf] %vm5074_vm1, %v5072_v9  ;;  %v5588_v32 = vrot.slane %v5587_v6, 4  ;;  %vm5679_vm1 = vcmask 396424  }
 0x4b9   : > { %5160 = vst.msk [vmem:[#allocation5 + $0x4] sm:$0xf] %vm5159_vm13, %v5157_v15  ;;  %vm5764_vm13 = vcmask 675224  }
 0x4ba   : > { %5250 = vst.msk [vmem:[#allocation5 + $0x4] sm:$0xff] %vm5249_vm14, %v5245_v36  ;;  %v5590_v8 = vsel %vm5589_vm11, %v5588_v32, %v5587_v6  ;;  %vm6281_vm14 = vcmask 1044472  }
 0x4bb   : > { %v5332_v49 = vpop.permute.xlu0 %5331 }
 0x4bc   : > { %5335 = vst.msk [vmem:[#allocation5 + $0x8] sm:$0xf] %vm5334_vm10, %v5332_v49  ;;  %vm5934_vm10 = vcmask 973824  }
 0x4bf   : > { %v5417_v34 = vpop.permute.xlu0 %5416 }
 0x4c0   : > { %5420 = vst.msk [vmem:[#allocation5 + $0x8] sm:$0xf] %vm5419_vm15, %v5417_v34 }
 0x4c1   : > { %5505 = vst.msk [vmem:[#allocation5 + $0x8] sm:$0xf] %vm5504_vm9, %v5502_v30  ;;  %vm5938_vm9 = vcmask 187396   ;;  %v7686_v34 = vld [vmem:[#allocation5] sm:$0xff] }
 0x4c2   : > { %5595 = vst.msk [vmem:[#allocation5 + $0x8] sm:$0xff] %vm5594_vm0, %v5590_v8  ;;  %vm5937_vm0 = vcmask 1044408  }
 0x4c3   : > { %v5677_v4 = vpop.permute.xlu0 %5676  ;;  %vm5939_vm15 = vmor %vm5938_vm9, %vm5937_vm0  ;;  %vm6533_vm0 = vcmask 1044264   ;;  %vm6534_vm9 = vcmask 39940  }
 0x4c4   : > { %5680 = vst.msk [vmem:[#allocation5 + $0xc] sm:$0xf] %vm5679_vm1, %v5677_v4  ;;  %vm6283_vm1 = vmor %vm6282_vm2, %vm6281_vm14  ;;  %vm6863_vm14 = vcmask 105476   ;;  %vm6859_vm2 = vcmask 891904  }
 0x4c9   : > { %v8135_v48 = vld [vmem:[#allocation5 + $0x4] sm:$0xff] }
 0x4ca   : > { %v8145_v23 = vcombine.high %v8135_v48, %v8135_v48 }
 0x4cb   : > { %v5762_v29 = vpop.permute.xlu0 %5761 }
 0x4cc   : > { %5765 = vst.msk [vmem:[#allocation5 + $0xc] sm:$0xf] %vm5764_vm13, %v5762_v29  ;;  %v19820_v31 = vpack.c.bf16 %v8145_v23, %v8135_v48  ;;  %vm6368_vm13 = vcmask 527624   ;;  %v7696_v48 = vcombine.high %v7686_v34, %v7686_v34 }
 0x4ce   : > { %8130 = vst [vmem:[#allocation3 + $0x50] sm:$0x33] %v19820_v31 }
 0x4d1   : > { %v6441_v54 = vpop.f32.mrb[56].mxu0 }
 0x4d2   : > { %v15142_v1 = vpop.f32.mrb[57].mxu0  ;;  %6446 = vrot.lane.b32.xlu0 %v6441_v54, %s16900_s23  ;;  %s21048_s23 = smov 41  }
 0x4d7   : > { %v5847_v28 = vpop.permute.xlu1 %5846 }
 0x4d8   : > { %5850 = vst.msk [vmem:[#allocation5 + $0xc] sm:$0xf] %vm5849_vm4, %v5847_v28  ;;  %vm6449_vm4 = vcmask 806424   ;;  %v14247_v28 = vpack.c.bf16 %v7696_v48, %v7686_v34 }
 0x4dd   : > { %v6522_v11 = vpop.f32.mrb[48].mxu1 }
 0x4de   : > { %v15161_v56 = vpop.f32.mrb[49].mxu1  ;;  %6527 = vrot.lane.b32.xlu0 %v6522_v11, %s16932_s10  ;;  %s21049_s10 = smov 109  }
 0x4e1   : > { %v6608_v5 = vpop.f32.mrb[58].mxu0 }
 0x4e2   : > { %v15180_v55 = vpop.f32.mrb[59].mxu0  ;;  %6613 = vrot.lane.b32.xlu1 %v6608_v5, %s16948_s18  ;;  %s21050_s18 = smov 49   ;;  %v7833_v5 = vrot.slane %v14247_v28, 6 }
 0x4e3   : > { %v5932_v20 = vpop.permute.xlu1 %5931 }
 0x4e4   : > { %v5933_v13 = vrot.slane %v5932_v20, 4 }
 0x4e6   : > { %v5935_v62 = vsel %vm5934_vm10, %v5933_v13, %v5932_v20  ;;  %vm6530_vm10 = vcmask 826368  }
 0x4e7   : > { %5940 = vst.msk [vmem:[#allocation5 + $0xc] sm:$0xff] %vm5939_vm15, %v5935_v62  ;;  %v6022_v42 = vpop.permute.xlu0 %6021  ;;  %vm6535_vm15 = vmor %vm6534_vm9, %vm6533_vm0  ;;  %vm310_vm0 = vcmask 31748   ;;  %vm21054_vm9 = vcmask 1043456  }
 0x4e8   : > { %6025 = vst.msk [vmem:[#allocation5 + $0x10] sm:$0xf] %vm6024_vm8, %v6022_v42  ;;  %vm6616_vm8 = vcmask 314424   ;;  %v8190_v42 = vrot.slane %v19820_v31, 6 }
 0x4ed   : > { %v6689_v44 = vpop.f32.mrb[50].mxu1 }
 0x4ee   : > { %v15199_v17 = vpop.f32.mrb[51].mxu1  ;;  %6694 = vrot.lane.b32.xlu1 %v6689_v44, %s21048_s23  ;;  %s16951_s23 = smov 83   ;;  %v7687_v55 = vld [vmem:[#allocation5 + $0x8] sm:$0xff] }
 0x4ef   : > { %v7697_v20 = vcombine.high %v7687_v55, %v7687_v55 }
 0x4f1   : > { %v6770_v52 = vpop.f32.mrb[60].mxu0  ;;  %v14248_v62 = vpack.c.bf16 %v7697_v20, %v7687_v55 }
 0x4f2   : > { %v15218_v51 = vpop.f32.mrb[61].mxu0 }
 0x4f3   : > { %v6107_v46 = vpop.permute.xlu0 %6106  ;;  %v7834_v44 = vrot.slane %v14248_v62, 6 }
 0x4f4   : > { %6110 = vst.msk [vmem:[#allocation5 + $0x10] sm:$0xf] %vm6109_vm7, %v6107_v46  ;;  %vm6697_vm7 = vcmask 593224  }
 0x4f7   : > { %v6192_v10 = vpop.permute.xlu1 %6191 }
 0x4f8   : > { %6195 = vst.msk [vmem:[#allocation5 + $0x10] sm:$0xf] %vm6194_vm12, %v6192_v10  ;;  %vm6862_vm12 = vcmask 1044328  }
 0x4fd   : > { %v6851_v37 = vpop.f32.mrb[52].mxu1 }
 0x4fe   : > { %v15237_v60 = vpop.f32.mrb[53].mxu1  ;;  %6856 = vrot.lane.b32.xlu0 %v6851_v37, %s21049_s10 }
 0x501   : > { %v6937_v63 = vpop.f32.mrb[62].mxu0 }
 0x502   : > { %v15256_v53 = vpop.f32.mrb[63].mxu0  ;;  %6942 = vrot.lane.b32.xlu1 %v6937_v63, %s21024_s20  ;;  %6775 = vrot.lane.b32.xlu0 %v6770_v52, %s16950_s22  ;;  %s21051_s22 = smov 117   ;;  %s21027_s20 = smov 91  }
 0x503   : > { %v6277_v25 = vpop.permute.xlu1 %6276 }
 0x504   : > { %v6278_v43 = vrot.slane %v6277_v25, 4 }
 0x506   : > { %v6279_v22 = vsel %vm2126_vm5, %v6278_v43, %v6277_v25 }
 0x507   : > { %6284 = vst.msk [vmem:[#allocation5 + $0x10] sm:$0xff] %vm6283_vm1, %v6279_v22  ;;  %vm6778_vm1 = vcmask 872024  }
 0x508   : > { %v6366_v39 = vpop.permute.xlu1 %6365 }
 0x509   : > { %6369 = vst.msk [vmem:[#allocation5 + $0x14] sm:$0xf] %vm6368_vm13, %v6366_v39  ;;  %vm6864_vm13 = vmor %vm6863_vm14, %vm6862_vm12  ;;  %vm7192_vm12 = vcmask 171012   ;;  %vm7188_vm14 = vcmask 957440  }
 0x50d   : > { %v7018_v14 = vpop.f32.mrb[54].mxu1 }
 0x50e   : > { %7023 = vrot.lane.b32.xlu1 %v7018_v14, %s21050_s18  ;;  %v15275_v19 = vpop.f32.mrb[55].mxu1  ;;  %v8415_v47 = vld [vmem:[#allocation5 + $0xc] sm:$0xff]  ;;  %s16952_s18 = smov 23  }
 0x50f   : > { %v8425_v35 = vcombine.high %v8415_v47, %v8415_v47 }
 0x511   : > { %v19830_v59 = vpack.c.bf16 %v8425_v35, %v8415_v47 }
 0x513   : > { %8131 = vst [vmem:[#allocation3 + $0x58] sm:$0x33] %v19830_v59  ;;  %v8191_v51 = vrot.slane %v19830_v59, 6 }
 0x544   : > { %v6447_v18 = vpop.permute.xlu0 %6446 }
 0x545   : > { %6450 = vst.msk [vmem:[#allocation5 + $0x14] sm:$0xf] %vm6449_vm4, %v6447_v18  ;;  %vm6945_vm4 = vcmask 380024  }
 0x54b   : > { %v7099_v40 = vpop.f32.mrb[64].mxu0 }
 0x54c   : > { %v15294_v27 = vpop.f32.mrb[65].mxu0  ;;  %7104 = vrot.lane.b32.xlu0 %v7099_v40, %s16951_s23  ;;  %s21052_s23 = smov 57  }
 0x550   : > { %v6528_v2 = vpop.permute.xlu0 %6527 }
 0x551   : > { %v6529_v0 = vrot.slane %v6528_v2, 4 }
 0x553   : > { %v6531_v58 = vsel %vm6530_vm10, %v6529_v0, %v6528_v2  ;;  %vm311_vm10 = vmor %vm310_vm0, %vm21054_vm9  ;;  %vm7520_vm0 = vcmask 1044456   ;;  %vm7521_vm9 = vcmask 236548  }
 0x554   : > { %6536 = vst.msk [vmem:[#allocation5 + $0x14] sm:$0xff] %vm6535_vm15, %v6531_v58  ;;  %v6614_v33 = vpop.permute.xlu1 %6613  ;;  %vm7026_vm15 = vcmask 658824  }
 0x555   : > { %6617 = vst.msk [vmem:[#allocation5 + $0x18] sm:$0xf] %vm6616_vm8, %v6614_v33  ;;  %vm7107_vm8 = vcmask 937624  }
 0x556   : > { %312 = vst.msk [vmem:[#allocation5 + $0x28] sm:$0xff] %vm311_vm10, %v19764_v38  ;;  %vm7517_vm10 = vcmask 1022976  }
 0x557   : > { %v7180_v57 = vpop.f32.mrb[56].mxu1 }
 0x558   : > { %7185 = vrot.lane.b32.xlu0 %v7180_v57, %s21051_s22  ;;  %v15313_v45 = vpop.f32.mrb[57].mxu1  ;;  %s21053_s22 = smov 125  }
 0x55b   : > { %v7266_v12 = vpop.f32.mrb[66].mxu0  ;;  %v7688_v17 = vld [vmem:[#allocation5 + $0x10] sm:$0xff] }
 0x55c   : > { %v15332_v50 = vpop.f32.mrb[67].mxu0  ;;  %7271 = vrot.lane.b32.xlu1 %v7266_v12, %s16952_s18  ;;  %s16953_s18 = smov 31   ;;  %v7698_v52 = vcombine.high %v7688_v17, %v7688_v17 }
 0x55e   : > { %v14249_v46 = vpack.c.bf16 %v7698_v52, %v7688_v17  ;;  %v7971_v17 = vld [vmem:[#allocation5 + $0x28] sm:$0xf] }
 0x560   : > { %v6695_v15 = vpop.permute.xlu1 %6694  ;;  %v7835_v37 = vrot.slane %v14249_v46, 6 }
 0x561   : > { %6698 = vst.msk [vmem:[#allocation5 + $0x18] sm:$0xf] %vm6697_vm7, %v6695_v15  ;;  %vm7191_vm7 = vcmask 1044392  }
 0x568   : > { %v7347_v61 = vpop.f32.mrb[58].mxu1 }
 0x569   : > { %7352 = vrot.lane.b32.xlu1 %v7347_v61, %s21052_s23  ;;  %v15351_v26 = vpop.f32.mrb[59].mxu1 }
 0x56b   : > { %v7428_v30 = vpop.f32.mrb[68].mxu0 }
 0x56c   : > { %v15370_v3 = vpop.f32.mrb[69].mxu0 }
 0x570   : > { %v6857_v9 = vpop.permute.xlu0 %6856 }
 0x571   : > { %v6858_v36 = vrot.slane %v6857_v9, 4 }
 0x573   : > { %v6860_v49 = vsel %vm6859_vm2, %v6858_v36, %v6857_v9 }
 0x574   : > { %v6776_v6 = vpop.permute.xlu0 %6775  ;;  %v6943_v32 = vpop.permute.xlu1 %6942 }
 0x575   : > { %6779 = vst.msk [vmem:[#allocation5 + $0x18] sm:$0xf] %vm6778_vm1, %v6776_v6  ;;  %vm7193_vm1 = vmor %vm7192_vm12, %vm7191_vm7  ;;  %vm7603_vm7 = vcmask 511224   ;;  %vm7684_vm12 = vcmask 790024  }
 0x576   : > { %6865 = vst.msk [vmem:[#allocation5 + $0x18] sm:$0xff] %vm6864_vm13, %v6860_v49  ;;  %vm7274_vm13 = vcmask 445624  }
 0x577   : > { %6946 = vst.msk [vmem:[#allocation5 + $0x1c] sm:$0xf] %vm6945_vm4, %v6943_v32  ;;  %vm7355_vm4 = vcmask 724424  }
 0x578   : > { %v7509_v8 = vpop.f32.mrb[60].mxu1 }
 0x579   : > { %7514 = vrot.lane.b32.xlu0 %v7509_v8, %s21053_s22  ;;  %v15389_v4 = vpop.f32.mrb[61].mxu1 }
 0x57b   : > { %v7595_v23 = vpop.f32.mrb[70].mxu0 }
 0x57c   : > { %v15408_v29 = vpop.f32.mrb[71].mxu0  ;;  %7600 = vrot.lane.b32.xlu1 %v7595_v23, %s16953_s18  ;;  %s21055_s18 = smov 65  }
 0x57d   : > { %v8072_v54 = vld [vmem:[#allocation5 + $0x14] sm:$0xff]  ;;  %7433 = vrot.lane.b32.xlu0 %v7428_v30, %s21027_s20  ;;  %s21056_s20 = smov 1  }
 0x57e   : > { %v8082_v1 = vcombine.high %v8072_v54, %v8072_v54 }
 0x580   : > { %v7024_v11 = vpop.permute.xlu1 %7023  ;;  %7741 = vrot.lane.b32.xlu1 %v14247_v28, %s16943_s25  ;;  %v14275_v56 = vpack.c.bf16 %v8082_v1, %v8072_v54 }
 0x581   : > { %7027 = vst.msk [vmem:[#allocation5 + $0x1c] sm:$0xf] %vm7026_vm15, %v7024_v11  ;;  %vm7436_vm15 = vcmask 1003224  }
 0x582   : > { %8132 = vst [vmem:[#allocation3 + $0x60] sm:$0x33] %v14275_v56  ;;  %v8192_v10 = vrot.slane %v14275_v56, 6 }
 0x584   : > { %7838 = vrot.lane.b32.xlu1 %v7833_v5, %s16955_s13 }
 0x588   : > { %v7676_v38 = vpop.f32.mrb[62].mxu1  ;;  %7931 = vrot.lane.b32.xlu1 %v14247_v28, %s21031_s24 }
 0x589   : > { %7681 = vrot.lane.b32.xlu0 %v7676_v38, %s21055_s18  ;;  %v15427_v13 = vpop.f32.mrb[63].mxu1  ;;  %s16957_s18 = smov 94  }
 0x58c   : > { %8032 = vrot.lane.b32.xlu1 %v7833_v5, %s21056_s20 }
 0x58d   : > { %7743 = vrot.lane.b32.xlu0 %v14248_v62, %s16943_s25 }
 0x590   : > { %8195 = vrot.lane.b32.xlu1 %v8190_v42, %s21034_s26 }
 0x591   : > { %7840 = vrot.lane.b32.xlu0 %v7834_v44, %s16955_s13 }
 0x594   : > { %8284 = vrot.lane.b32.xlu1 %v19820_v31, %s16956_s19 }
 0x595   : > { %7933 = vrot.lane.b32.xlu0 %v14248_v62, %s21031_s24 }
 0x598   : > { %8379 = vrot.lane.b32.xlu1 %v8190_v42, %s16957_s18 }
 0x599   : > { %8034 = vrot.lane.b32.xlu0 %v7834_v44, %s21056_s20 }
 0x59c   : > { %8471 = vrot.lane.b32.xlu1 %v19830_v59, %s21029_s12 }
 0x59d   : > { %8197 = vrot.lane.b32.xlu0 %v8191_v51, %s21034_s26 }
 0x5a0   : > { %7745 = vrot.lane.b32.xlu1 %v14249_v46, %s16943_s25 }
 0x5a1   : > { %8286 = vrot.lane.b32.xlu0 %v19830_v59, %s16956_s19 }
 0x5a4   : > { %7935 = vrot.lane.b32.xlu1 %v14249_v46, %s21031_s24 }
 0x5a5   : > { %8381 = vrot.lane.b32.xlu0 %v8191_v51, %s16957_s18 }
 0x5a8   : > { %8199 = vrot.lane.b32.xlu1 %v8192_v10, %s21034_s26 }
 0x5a9   : > { %8469 = vrot.lane.b32.xlu0 %v19820_v31, %s21029_s12 }
 0x5ac   : > { %8383 = vrot.lane.b32.xlu1 %v8192_v10, %s16957_s18 }
 0x5ad   : > { %7842 = vrot.lane.b32.xlu0 %v7835_v37, %s16955_s13 }
 0x5b1   : > { %8036 = vrot.lane.b32.xlu0 %v7835_v37, %s21056_s20 }
 0x5b5   : > { %8288 = vrot.lane.b32.xlu0 %v14275_v56, %s16956_s19 }
 0x5b9   : > { %8473 = vrot.lane.b32.xlu0 %v14275_v56, %s21029_s12 }
 0x5be   : > { %v7105_v60 = vpop.permute.xlu0 %7104 }
 0x5bf   : > { %7108 = vst.msk [vmem:[#allocation5 + $0x1c] sm:$0xf] %vm7107_vm8, %v7105_v60  ;;  %vm7522_vm8 = vmor %vm7521_vm9, %vm7520_vm0  ;;  %vm21058_vm0 = vcmask 1041408  }
 0x5ca   : > { %v7186_v63 = vpop.permute.xlu0 %7185 }
 0x5cb   : > { %v7187_v31 = vrot.slane %v7186_v63, 4 }
 0x5cd   : > { %v7189_v53 = vsel %vm7188_vm14, %v7187_v31, %v7186_v63  ;;  %vm7757_vm14 = vcmask 285696   ;;  %v14267_v31 = vpack.c.bf16 %v7971_v17, %v7971_v17 }
 0x5ce   : > { %7194 = vst.msk [vmem:[#allocation5 + $0x1c] sm:$0xff] %vm7193_vm1, %v7189_v53  ;;  %v7272_v25 = vpop.permute.xlu1 %7271  ;;  %vm21057_vm1 = vcmask 1043456  }
 0x5cf   : > { %7275 = vst.msk [vmem:[#allocation5 + $0x20] sm:$0xf] %vm7274_vm13, %v7272_v25  ;;  %vm7775_vm13 = vcmask 29700  }
 0x5d0   : > { %vm19890_vm9 = vmor %vm7775_vm13, %vm21058_vm0  ;;  %vm8300_vm13 = vcmask 777216  }
 0x5d1   : > { %vm21066_vm0 = vmmov %vm21057_vm1 }
 0x5d5   : > { %v7689_v43 = vld [vmem:[#allocation5 + $0x18] sm:$0xff] }
 0x5d6   : > { %v7699_v22 = vcombine.high %v7689_v43, %v7689_v43 }
 0x5d8   : > { %v14250_v39 = vpack.c.bf16 %v7699_v22, %v7689_v43 }
 0x5da   : > { %7747 = vrot.lane.b32.xlu1 %v14250_v39, %s16943_s25  ;;  %v7836_v14 = vrot.slane %v14250_v39, 6 }
 0x5db   : > { %v7353_v19 = vpop.permute.xlu1 %7352 }
 0x5dc   : > { %7356 = vst.msk [vmem:[#allocation5 + $0x20] sm:$0xf] %vm7355_vm4, %v7353_v19  ;;  %7844 = vrot.lane.b32.xlu0 %v7836_v14, %s16955_s13  ;;  %vm7854_vm4 = vcmask 277504  }
 0x5de   : > { %7937 = vrot.lane.b32.xlu1 %v14250_v39, %s21031_s24 }
 0x5e0   : > { %8038 = vrot.lane.b32.xlu0 %v7836_v14, %s21056_s20 }
 0x5eb   : > { %v7515_v47 = vpop.permute.xlu0 %7514 }
 0x5ec   : > { %v7516_v35 = vrot.slane %v7515_v47, 4 }
 0x5ee   : > { %v7601_v59 = vpop.permute.xlu1 %7600  ;;  %v7518_v40 = vsel %vm7517_vm10, %v7516_v35, %v7515_v47  ;;  %vm21061_vm10 = vmmov %vm21057_vm1  ;;  %v8031_v47 = vrot.slane %v14267_v31, 6 }
 0x5ef   : > { %v7434_v18 = vpop.permute.xlu0 %7433 }
 0x5f0   : > { %7437 = vst.msk [vmem:[#allocation5 + $0x20] sm:$0xf] %vm7436_vm15, %v7434_v18  ;;  %vm21062_vm15 = vmmov %vm21057_vm1 }
 0x5f1   : > { %7523 = vst.msk [vmem:[#allocation5 + $0x20] sm:$0xff] %vm7522_vm8, %v7518_v40  ;;  %vm21063_vm8 = vcmask 269312  }
 0x5f2   : > { %v7742_v27 = vpop.permute.xlu1 %7741  ;;  %7604 = vst.msk [vmem:[#allocation5 + $0x24] sm:$0xf] %vm7603_vm7, %v7601_v59  ;;  %vm21064_vm7 = vmmov %vm21057_vm1 }
 0x5f3   : > { %v7751_v61 = vrot.slane %v7742_v27, 4 }
 0x5f6   : > { %v7839_v2 = vpop.permute.xlu1 %7838 }
 0x5f7   : > { %v7848_v32 = vrot.slane %v7839_v2, 4 }
 0x5f8   : > { %v8073_v0 = vld [vmem:[#allocation5 + $0x1c] sm:$0xff] }
 0x5f9   : > { %v8083_v58 = vcombine.high %v8073_v0, %v8073_v0 }
 0x5fa   : > { %v7932_v33 = vpop.permute.xlu1 %7931 }
 0x5fb   : > { %v7682_v57 = vpop.permute.xlu0 %7681  ;;  %v14281_v45 = vpack.c.bf16 %v8083_v58, %v8073_v0  ;;  %v7941_v56 = vrot.slane %v7932_v33, 4 }
 0x5fc   : > { %7685 = vst.msk [vmem:[#allocation5 + $0x24] sm:$0xf] %vm7684_vm12, %v7682_v57  ;;  %vm21065_vm12 = vcmask 7168  }
 0x5fd   : > { %8290 = vrot.lane.b32.xlu0 %v14281_v45, %s16956_s19  ;;  %v8193_v12 = vrot.slane %v14281_v45, 6  ;;  %8133 = vst [vmem:[#allocation3 + $0x68] sm:$0x33] %v14281_v45 }
 0x5fe   : > { %v8033_v50 = vpop.permute.xlu1 %8032 }
 0x5ff   : > { %8201 = vrot.lane.b32.xlu1 %v8193_v12, %s21034_s26  ;;  %v19877_v15 = vpop.permute.xlu0 %7743  ;;  %v8044_v42 = vrot.slane %v8033_v50, 4 }
 0x600   : > { %v7752_v26 = vrot.slane %v19877_v15, 4 }
 0x601   : > { %8475 = vrot.lane.b32.xlu0 %v14281_v45, %s21029_s12 }
 0x602   : > { %v7756_v30 = vsel %vm21057_vm1, %v7751_v61, %v7752_v26  ;;  %v8196_v3 = vpop.permute.xlu1 %8195 }
 0x603   : > { %v7758_v9 = vsel %vm7757_vm14, %v7742_v27, %v7756_v30  ;;  %8385 = vrot.lane.b32.xlu1 %v8193_v12, %s16957_s18  ;;  %v19886_v36 = vpop.permute.xlu0 %7840  ;;  %v7690_v6 = vld [vmem:[#allocation5 + $0x20] sm:$0xff]  ;;  %v8205_v60 = vrot.slane %v8196_v3, 4 }
 0x604   : > { %v8139_v49 = vld [vmem:[#allocation5 + $0x24] sm:$0xff]  ;;  %7771 = vst [vmem:[#allocation3] sm:$0x33] %v7758_v9  ;;  %v7849_v34 = vrot.slane %v19886_v36, 4  ;;  %v7700_v8 = vcombine.high %v7690_v6, %v7690_v6 }
 0x605   : > { %v8149_v4 = vcombine.high %v8139_v49, %v8139_v49 }
 0x606   : > { %v7853_v23 = vsel %vm21061_vm10, %v7848_v32, %v7849_v34  ;;  %v8285_v29 = vpop.permute.xlu1 %8284  ;;  %v14251_v54 = vpack.c.bf16 %v7700_v8, %v7690_v6  ;;  %vm21067_vm10 = vmmov %vm21066_vm0 }
 0x607   : > { %v14277_v1 = vpack.c.bf16 %v8149_v4, %v8139_v49  ;;  %v7855_v28 = vsel %vm7854_vm4, %v7839_v2, %v7853_v23  ;;  %v7934_v11 = vpop.permute.xlu0 %7933  ;;  %v8294_v14 = vrot.slane %v8285_v29, 4 }
 0x608   : > { %7868 = vst [vmem:[#allocation3] sm:$0xcc] %v7855_v28  ;;  %v7942_v5 = vrot.slane %v7934_v11, 4  ;;  %7749 = vrot.lane.b32.xlu1 %v14251_v54, %s16943_s25  ;;  %v7837_v55 = vrot.slane %v14251_v54, 6 }
 0x609   : > { %8134 = vst.msk [vmem:[#allocation3 + $0x70] sm:$0x33] %vm19890_vm9, %v14277_v1  ;;  %v8194_v46 = vrot.slane %v14277_v1, 6 }
 0x60a   : > { %v7946_v20 = vsel %vm21062_vm15, %v7941_v56, %v7942_v5  ;;  %7846 = vrot.lane.b32.xlu0 %v7837_v55, %s16955_s13  ;;  %v8380_v38 = vpop.permute.xlu1 %8379  ;;  %vm8395_vm15 = vcmask 769024   ;;  %s21115_s13 = smov 85  }
 0x60b   : > { %v7948_v13 = vsel %vm21063_vm8, %v7932_v33, %v7946_v20  ;;  %v19904_v62 = vpop.permute.xlu0 %8034  ;;  %v8389_v57 = vrot.slane %v8380_v38, 4  ;;  %vm21068_vm8 = vmmov %vm21066_vm0 }
 0x60c   : > { %7961 = vst [vmem:[#allocation3 + $0x28] sm:$0x33] %v7948_v13  ;;  %v8045_v44 = vrot.slane %v19904_v62, 4  ;;  %7939 = vrot.lane.b32.xlu1 %v14251_v54, %s21031_s24  ;;  %s21125_s24 = smov 105  }
 0x60e   : > { %v8050_v52 = vsel %vm21064_vm7, %v8044_v42, %v8045_v44  ;;  %8040 = vrot.lane.b32.xlu0 %v7837_v55, %s21056_s20  ;;  %v19912_v51 = vpop.permute.xlu1 %8471  ;;  %vm21069_vm7 = vcmask 269312  }
 0x60f   : > { %v8051_v10 = vsel %vm21065_vm12, %v8033_v50, %v8050_v52  ;;  %v8198_v37 = vpop.permute.xlu0 %8197  ;;  %vm21070_vm12 = vmmov %vm21066_vm0  ;;  %v8480_v9 = vrot.slane %v19912_v51, 4 }
 0x610   : > { %8065 = vst [vmem:[#allocation3 + $0x28] sm:$0xcc] %v8051_v10  ;;  %v8206_v63 = vrot.slane %v8198_v37, 4  ;;  %8203 = vrot.lane.b32.xlu1 %v8194_v46, %s21034_s26 }
 0x612   : > { %v8210_v53 = vsel %vm21057_vm1, %v8205_v60, %v8206_v63  ;;  %8292 = vrot.lane.b32.xlu0 %v14277_v1, %s16956_s19  ;;  %v19918_v25 = vpop.permute.xlu1 %7745  ;;  %vm8485_vm1 = vcmask 760832   ;;  %s21117_s19 = smov 9  }
 0x613   : > { %v8211_v43 = vsel %vm2126_vm5, %v8196_v3, %v8210_v53  ;;  %v7753_v22 = vrot.slane %v19918_v25, 4  ;;  %v19922_v39 = vpop.permute.xlu0 %8286 }
 0x614   : > { %8224 = vst [vmem:[#allocation3 + $0x50] sm:$0xcc] %v8211_v43  ;;  %v8295_v19 = vrot.slane %v19922_v39, 4  ;;  %8387 = vrot.lane.b32.xlu1 %v8194_v46, %s16957_s18 }
 0x615   : > { %v7759_v35 = vsel %vm21066_vm0, %v7752_v26, %v7753_v22 }
 0x616   : > { %v7760_v59 = vsel %vm7757_vm14, %v19877_v15, %v7759_v35  ;;  %v8299_v18 = vsel %vm21067_vm10, %v8294_v14, %v8295_v19  ;;  %8477 = vrot.lane.b32.xlu0 %v14277_v1, %s21029_s12  ;;  %v19937_v40 = vpop.permute.xlu1 %7935  ;;  %vm21071_vm10 = vmmov %vm21066_vm0 }
 0x617   : > { %7772 = vst [vmem:[#allocation3 + $0x8] sm:$0x33] %v7760_v59  ;;  %v8301_v27 = vsel %vm8300_vm13, %v8285_v29, %v8299_v18  ;;  %v7943_v2 = vrot.slane %v19937_v40, 4  ;;  %v8382_v0 = vpop.permute.xlu0 %8381  ;;  %v16704_v58 = vld [vmem:[#allocation3] ss:$40 sps:$4 sm:$0xff]  }
 0x618   : > { %v16706_v33 = vld [vmem:[#allocation3 + $0x4] ss:$40 sps:$4 sm:$0xff]   ;;  %8314 = vst [vmem:[#allocation3 + $0x78] sm:$0x33] %v8301_v27  ;;  %v8390_v45 = vrot.slane %v8382_v0, 4  ;;  %8042 = vrot.lane.b32.xlu1 %v8031_v47, %s21056_s20 }
 0x619   : > { %v7949_v12 = vsel %vm21068_vm8, %v7942_v5, %v7943_v2  ;;  %8688 = vmatprep.subr.bf16.mxu0 %v16706_v33  ;;  %vm21072_vm8 = vmmov %vm21066_vm0 }
 0x61a   : > { %v7950_v50 = vsel %vm21069_vm7, %v7934_v11, %v7949_v12  ;;  %v8394_v15 = vsel %vm21070_vm12, %v8389_v57, %v8390_v45  ;;  %v19947_v61 = vpop.permute.xlu1 %8199  ;;  %8689 = vmatpush1.bf16.msra.mxu0 %v16704_v58  ;;  %vm21073_vm7 = vmmov %vm21066_vm0 }
 0x61b   : > { %7962 = vst [vmem:[#allocation3 + $0x30] sm:$0x33] %v7950_v50  ;;  %v8396_v26 = vsel %vm8395_vm15, %v8380_v38, %v8394_v15  ;;  %v8207_v30 = vrot.slane %v19947_v61, 4  ;;  %v8470_v3 = vpop.permute.xlu0 %8469  ;;  %vm21074_vm12 = vmmov %vm21066_vm0 }
 0x61c   : > { %8409 = vst [vmem:[#allocation3 + $0x78] sm:$0xcc] %v8396_v26  ;;  %v8479_v6 = vrot.slane %v8470_v3, 4 }
 0x61d   : > { %v8212_v49 = vsel %vm21066_vm0, %v8206_v63, %v8207_v30  ;;  %vm21075_vm0 = vcmask 7168   ;;  %v19996_v63 = vld [vmem:[%s20973_s2] sm:$0xf] }
 0x61e   : > { %v8213_v32 = vsel %vm2126_vm5, %v8198_v37, %v8212_v49  ;;  %v8484_v8 = vsel %vm21071_vm10, %v8479_v6, %v8480_v9  ;;  %v19957_v4 = vpop.permute.xlu1 %8383  ;;  %vm21076_vm10 = vmmov %vm21073_vm7 }
 0x61f   : > { %8225 = vst [vmem:[#allocation3 + $0x58] sm:$0xcc] %v8213_v32  ;;  %v8486_v23 = vsel %vm8485_vm1, %v8470_v3, %v8484_v8  ;;  %v8391_v29 = vrot.slane %v19957_v4, 4  ;;  %v19961_v54 = vpop.permute.xlu0 %7842 }
 0x620   : > { %8499 = vst [vmem:[#allocation3 + $0xa0] sm:$0x33] %v8486_v23  ;;  %v7850_v1 = vrot.slane %v19961_v54, 4 }
 0x621   : > { %v8397_v28 = vsel %vm21072_vm8, %v8390_v45, %v8391_v29  ;;  %vm21077_vm8 = vcmask 1041408  }
 0x622   : > { %v8398_v11 = vsel %vm8395_vm15, %v8382_v0, %v8397_v28  ;;  %v7856_v56 = vsel %vm21073_vm7, %v7849_v34, %v7850_v1  ;;  %vm21078_vm7 = vmmov %vm21077_vm8 }
 0x623   : > { %8410 = vst [vmem:[#allocation3 + $0x80] sm:$0xcc] %v8398_v11  ;;  %v7857_v5 = vsel %vm7854_vm4, %v19886_v36, %v7856_v56  ;;  %v19973_v55 = vpop.permute.xlu0 %8036  ;;  %v16707_v20 = vld [vmem:[#allocation3 + $0x50] ss:$40 sps:$4 sm:$0xff]   ;;  %v16709_v38 = vld [vmem:[#allocation3 + $0x54] ss:$40 sps:$4 sm:$0xff]  }
 0x624   : > { %7869 = vst [vmem:[#allocation3 + $0x8] sm:$0xcc] %v7857_v5  ;;  %v8046_v13 = vrot.slane %v19973_v55, 4  ;;  %8690 = vmatprep.subr.bf16.mxu0 %v16709_v38 }
 0x625   : > { %8691 = vmatpush1.bf16.msra.mxu0 %v16707_v20 }
 0x626   : > { %v8052_v42 = vsel %vm21074_vm12, %v8045_v44, %v8046_v13  ;;  %vm21079_vm12 = vmmov %vm21076_vm10 }
 0x627   : > { %v8053_v34 = vsel %vm21075_vm0, %v19904_v62, %v8052_v42  ;;  %v19981_v17 = vpop.permute.xlu0 %8288  ;;  %v8525_v52 = vld [vmem:[#allocation3 + $0xa0] sm:$0x33]  ;;  %vm21080_vm0 = vcmask 293888  }
 0x628   : > { %8066 = vst [vmem:[#allocation3 + $0x30] sm:$0xcc] %v8053_v34  ;;  %v8296_v36 = vrot.slane %v19981_v17, 4  ;;  %v13706_v46 = vcombine.high %v8525_v52, %v8525_v52  ;;  %v13705_v10 = vcombine.low %v8525_v52, %v8525_v52 }
 0x62a   : > { %v8302_v37 = vsel %vm21076_vm10, %v8295_v19, %v8296_v36  ;;  %13715 = vmatprep.subr.msk.bf16.mxu0 %vm21077_vm8, %v13706_v46  ;;  %v8659_v44 = vsel %vm21078_vm7, %v13705_v10, 0  ;;  %vm21081_vm10 = vmmov %vm21078_vm7 }
 0x62b   : > { %v8303_v60 = vsel %vm8300_vm13, %v19922_v39, %v8302_v37  ;;  %8693 = vmatpush1.bf16.msra.mxu0 %v8659_v44  ;;  %v19991_v62 = vpop.permute.xlu0 %8473  ;;  %vm21082_vm8 = vmmov %vm21078_vm7 }
 0x62c   : > { %8315 = vst [vmem:[#allocation3 + $0x80] sm:$0x33] %v8303_v60  ;;  %v8481_v31 = vrot.slane %v19991_v62, 4  ;;  %vm21083_vm7 = vmmov %vm21080_vm0 }
 0x62e   : > { %v8487_v53 = vsel %vm21079_vm12, %v8480_v9, %v8481_v31  ;;  %13716 = vmatmul.mubr.msk.bf16.vlgmr.msra.gmra.mrb[72].mxu0 %vm21080_vm0, %v19996_v63  ;;  %vm21084_vm0 = vmmov %vm21079_vm12 }
 0x62f   : > { %v8488_v43 = vsel %vm8485_vm1, %v19912_v51, %v8487_v53  ;;  %v16712_v39 = vld [vmem:[#allocation3 + $0x8] ss:$40 sps:$4 sm:$0xff]   ;;  %v16714_v14 = vld [vmem:[#allocation3 + $0xc] ss:$40 sps:$4 sm:$0xff]   ;;  %8802 = vmatprep.mubr.bf16.mxu0 %v16907_v24 }
 0x630   : > { %8500 = vst [vmem:[#allocation3 + $0xa8] sm:$0x33] %v8488_v43  ;;  %8729 = vmatprep.subr.bf16.mxu1 %v16714_v14 }
 0x631   : > { %8730 = vmatpush1.bf16.msra.mxu1 %v16712_v39 }
 0x633   : > { %v16715_v19 = vld [vmem:[#allocation3 + $0x58] ss:$40 sps:$4 sm:$0xff]   ;;  %v16717_v47 = vld [vmem:[#allocation3 + $0x5c] ss:$40 sps:$4 sm:$0xff]  }
 0x634   : > { %8731 = vmatprep.subr.bf16.mxu1 %v16717_v47 }
 0x635   : > { %8732 = vmatpush1.bf16.msra.mxu1 %v16715_v19 }
 0x637   : > { %v8526_v35 = vld [vmem:[#allocation3 + $0xa8] sm:$0x33] }
 0x638   : > { %v13708_v59 = vcombine.high %v8526_v35, %v8526_v35  ;;  %v13707_v18 = vcombine.low %v8526_v35, %v8526_v35 }
 0x63a   : > { %13717 = vmatprep.subr.msk.bf16.mxu1 %vm21081_vm10, %v13708_v59  ;;  %v8665_v27 = vsel %vm21082_vm8, %v13707_v18, 0  ;;  %vm21085_vm10 = vmmov %vm21084_vm0  ;;  %vm21086_vm8 = vcmask 269312  }
 0x63b   : > { %8734 = vmatpush1.bf16.msra.mxu1 %v8665_v27 }
 0x63e   : > { %13718 = vmatmul.mubr.msk.bf16.vlgmr.msra.gmra.mrb[64].mxu1 %vm21083_vm7, %v19996_v63  ;;  %vm21087_vm7 = vmmov %vm21084_vm0 }
 0x63f   : > { %8843 = vmatprep.mubr.bf16.mxu1 %v16907_v24 }
 0x64c   : > { %v7748_v51 = vpop.permute.xlu1 %7747 }
 0x64d   : > { %v7754_v0 = vrot.slane %v7748_v51, 4 }
 0x64e   : > { %v7845_v58 = vpop.permute.xlu0 %7844 }
 0x64f   : > { %v7761_v33 = vsel %vm21079_vm12, %v7753_v22, %v7754_v0  ;;  %v7851_v57 = vrot.slane %v7845_v58, 4  ;;  %vm21088_vm12 = vcmask 7168  }
 0x650   : > { %v7762_v45 = vsel %vm7757_vm14, %v19918_v25, %v7761_v33  ;;  %v20015_v12 = vpop.permute.xlu1 %7937 }
 0x651   : > { %7773 = vst [vmem:[#allocation3 + $0x10] sm:$0x33] %v7762_v45  ;;  %v7858_v50 = vsel %vm21084_vm0, %v7850_v1, %v7851_v57  ;;  %v7944_v15 = vrot.slane %v20015_v12, 4 }
 0x652   : > { %v7859_v26 = vsel %vm7854_vm4, %v19961_v54, %v7858_v50  ;;  %v20021_v3 = vpop.permute.xlu0 %8038 }
 0x653   : > { %7870 = vst [vmem:[#allocation3 + $0x10] sm:$0xcc] %v7859_v26  ;;  %v7951_v22 = vsel %vm21085_vm10, %v7943_v2, %v7944_v15  ;;  %v8047_v9 = vrot.slane %v20021_v3, 4  ;;  %vm21089_vm10 = vmmov %vm21084_vm0 }
 0x654   : > { %v7952_v25 = vsel %vm21086_vm8, %v19937_v40, %v7951_v22  ;;  %vm21090_vm8 = vmmov %vm21084_vm0 }
 0x655   : > { %7963 = vst [vmem:[#allocation3 + $0x38] sm:$0x33] %v7952_v25  ;;  %v8054_v6 = vsel %vm21087_vm7, %v8046_v13, %v8047_v9  ;;  %vm21091_vm7 = vmmov %vm21084_vm0 }
 0x656   : > { %v8055_v49 = vsel %vm21088_vm12, %v19973_v55, %v8054_v6  ;;  %vm7872_vm12 = vcmask 1043458  }
 0x657   : > { %8067 = vst [vmem:[#allocation3 + $0x38] sm:$0xcc] %v8055_v49 }
 0x65e   : > { %v16720_v32 = vld [vmem:[#allocation3 + $0x10] ss:$40 sps:$4 sm:$0xff]   ;;  %v16722_v8 = vld [vmem:[#allocation3 + $0x14] ss:$40 sps:$4 sm:$0xff]  }
 0x65f   : > { %8770 = vmatprep.subr.bf16.mxu0 %v16722_v8 }
 0x660   : > { %8771 = vmatpush1.bf16.msra.mxu0 %v16720_v32 }
 0x66f   : > { %v20032_v23 = vpop.permute.xlu0 %8290 }
 0x670   : > { %v8297_v2 = vrot.slane %v20032_v23, 4 }
 0x671   : > { %v8202_v54 = vpop.permute.xlu1 %8201 }
 0x672   : > { %v8304_v40 = vsel %vm21084_vm0, %v8296_v36, %v8297_v2  ;;  %v8208_v1 = vrot.slane %v8202_v54, 4  ;;  %vm7873_vm0 = vcmask 31750  }
 0x673   : > { %v8305_v28 = vsel %vm8300_vm13, %v19981_v17, %v8304_v40  ;;  %v20040_v11 = vpop.permute.xlu0 %8475 }
 0x674   : > { %8316 = vst [vmem:[#allocation3 + $0x88] sm:$0x33] %v8305_v28  ;;  %v8214_v56 = vsel %vm21089_vm10, %v8207_v30, %v8208_v1  ;;  %v8482_v5 = vrot.slane %v20040_v11, 4  ;;  %vm21092_vm10 = vmmov %vm21091_vm7 }
 0x675   : > { %v8215_v55 = vsel %vm2126_vm5, %v19947_v61, %v8214_v56  ;;  %v20048_v20 = vpop.permute.xlu1 %8385 }
 0x676   : > { %8226 = vst [vmem:[#allocation3 + $0x60] sm:$0xcc] %v8215_v55  ;;  %v8489_v38 = vsel %vm21090_vm8, %v8481_v31, %v8482_v5  ;;  %v8392_v13 = vrot.slane %v20048_v20, 4  ;;  %vm20065_vm8 = vmor %vm7873_vm0, %vm7872_vm12 }
 0x677   : > { %v8490_v42 = vsel %vm8485_vm1, %v19991_v62, %v8489_v38  ;;  %vm21095_vm12 = vmmov %vm21091_vm7 }
 0x678   : > { %8501 = vst [vmem:[#allocation3 + $0xb0] sm:$0x33] %v8490_v42  ;;  %v8399_v30 = vsel %vm21091_vm7, %v8391_v29, %v8392_v13 }
 0x679   : > { %v8400_v61 = vsel %vm8395_vm15, %v19957_v4, %v8399_v30 }
 0x67a   : > { %8411 = vst [vmem:[#allocation3 + $0x88] sm:$0xcc] %v8400_v61  ;;  %v7750_v34 = vpop.permute.xlu1 %7749 }
 0x67b   : > { %v7755_v17 = vrot.slane %v7750_v34, 4 }
 0x67c   : > { %v7847_v52 = vpop.permute.xlu0 %7846 }
 0x67d   : > { %v7763_v36 = vsel %vm21092_vm10, %v7754_v0, %v7755_v17  ;;  %v7765_v46 = vsel %vm7757_vm14, %v7750_v34, %v7755_v17  ;;  %v7852_v37 = vrot.slane %v7847_v52, 4  ;;  %vm21099_vm10 = vcmask 7168  }
 0x67e   : > { %v7764_v29 = vsel %vm7757_vm14, %v7748_v51, %v7763_v36  ;;  %7777 = vst.msk [vmem:[#allocation3 + $0x20] sm:$0x33] %vm19890_vm9, %v7765_v46  ;;  %v7940_v4 = vpop.permute.xlu1 %7939  ;;  %vm21096_vm14 = vcmask 269312  }
 0x67f   : > { %7774 = vst [vmem:[#allocation3 + $0x18] sm:$0x33] %v7764_v29  ;;  %v7860_v44 = vsel %vm21091_vm7, %v7851_v57, %v7852_v37  ;;  %v7862_v60 = vsel %vm7854_vm4, %v7847_v52, %v7852_v37  ;;  %v7945_v62 = vrot.slane %v7940_v4, 4  ;;  %v8527_v43 = vld [vmem:[#allocation3 + $0xb0] sm:$0x33]  ;;  %vm21097_vm0 = vmmov %vm21096_vm14  ;;  %v20134_v29 = vld [vmem:[#allocation6] sm:$0xff] }
 0x680   : > { %v7861_v31 = vsel %vm7854_vm4, %v7845_v58, %v7860_v44  ;;  %7875 = vst.msk [vmem:[#allocation3 + $0x20] sm:$0xcc] %vm20065_vm8, %v7862_v60  ;;  %v8041_v53 = vpop.permute.xlu0 %8040  ;;  %vm21098_vm4 = vmmov %vm21091_vm7  ;;  %v13710_v0 = vcombine.high %v8527_v43, %v8527_v43  ;;  %v13709_v58 = vcombine.low %v8527_v43, %v8527_v43 }
 0x681   : > { %7871 = vst [vmem:[#allocation3 + $0x18] sm:$0xcc] %v7861_v31  ;;  %v7953_v39 = vsel %vm21095_vm12, %v7944_v15, %v7945_v62  ;;  %v7955_v14 = vsel %vm21096_vm14, %v7940_v4, %v7945_v62  ;;  %v8048_v19 = vrot.slane %v8041_v53, 4  ;;  %v16723_v47 = vld [vmem:[#allocation3 + $0x60] ss:$40 sps:$4 sm:$0xff]   ;;  %vm21100_vm7 = vmmov %vm21098_vm4  ;;  %vm21101_vm12 = vcmask 1041408  }
 0x682   : > { %v16725_v35 = vld [vmem:[#allocation3 + $0x64] ss:$40 sps:$4 sm:$0xff]   ;;  %v7954_v59 = vsel %vm21097_vm0, %v20015_v12, %v7953_v39  ;;  %7965 = vst.msk [vmem:[#allocation3 + $0x48] sm:$0x33] %vm19890_vm9, %v7955_v14  ;;  %v8204_v18 = vpop.permute.xlu1 %8203  ;;  %vm21102_vm14 = vmmov %vm21098_vm4 }
 0x683   : > { %7964 = vst [vmem:[#allocation3 + $0x40] sm:$0x33] %v7954_v59  ;;  %v8056_v27 = vsel %vm21098_vm4, %v8047_v9, %v8048_v19  ;;  %v8209_v51 = vrot.slane %v8204_v18, 4  ;;  %8772 = vmatprep.subr.bf16.mxu0 %v16725_v35  ;;  %vm21103_vm0 = vmmov %vm21101_vm12 }
 0x684   : > { %v8057_v33 = vsel %vm21099_vm10, %v20021_v3, %v8056_v27  ;;  %v8293_v57 = vpop.permute.xlu0 %8292  ;;  %8773 = vmatpush1.bf16.msra.mxu0 %v16723_v47  ;;  %v8671_v25 = vsel %vm21103_vm0, %v13709_v58, 0  ;;  %vm21105_vm10 = vcmask 293888  }
 0x685   : > { %8068 = vst [vmem:[#allocation3 + $0x40] sm:$0xcc] %v8057_v33  ;;  %v8216_v45 = vsel %vm21100_vm7, %v8208_v1, %v8209_v51  ;;  %v8218_v12 = vsel %vm2126_vm5, %v8204_v18, %v8209_v51  ;;  %v8298_v50 = vrot.slane %v8293_v57, 4  ;;  %13719 = vmatprep.subr.msk.bf16.mxu0 %vm21101_vm12, %v13710_v0  ;;  %vm21106_vm7 = vmmov %vm21098_vm4  ;;  %vm21107_vm12 = vcmask 7168  }
 0x686   : > { %v8217_v15 = vsel %vm2126_vm5, %v8202_v54, %v8216_v45  ;;  %8228 = vst.msk [vmem:[#allocation3 + $0x70] sm:$0xcc] %vm20065_vm8, %v8218_v12  ;;  %v8388_v26 = vpop.permute.xlu1 %8387 }
 0x687   : > { %8227 = vst [vmem:[#allocation3 + $0x68] sm:$0xcc] %v8217_v15  ;;  %v8306_v3 = vsel %vm21102_vm14, %v8297_v2, %v8298_v50  ;;  %v8308_v22 = vsel %vm8300_vm13, %v8293_v57, %v8298_v50  ;;  %v8393_v9 = vrot.slane %v8388_v26, 4  ;;  %vm21111_vm14 = vmmov %vm21103_vm0 }
 0x688   : > { %v8307_v6 = vsel %vm8300_vm13, %v20032_v23, %v8306_v3  ;;  %8318 = vst.msk [vmem:[#allocation3 + $0x98] sm:$0x33] %vm19890_vm9, %v8308_v22  ;;  %v8478_v49 = vpop.permute.xlu0 %8477  ;;  %8775 = vmatpush1.bf16.msra.mxu0 %v8671_v25  ;;  %vm21104_vm13 = vmmov %vm21098_vm4 }
 0x689   : > { %8317 = vst [vmem:[#allocation3 + $0x90] sm:$0x33] %v8307_v6  ;;  %v8401_v32 = vsel %vm21098_vm4, %v8392_v13, %v8393_v9  ;;  %v8403_v8 = vsel %vm8395_vm15, %v8388_v26, %v8393_v9  ;;  %v8483_v2 = vrot.slane %v8478_v49, 4 }
 0x68a   : > { %v8402_v54 = vsel %vm8395_vm15, %v20048_v20, %v8401_v32  ;;  %8413 = vst.msk [vmem:[#allocation3 + $0x98] sm:$0xcc] %vm20065_vm8, %v8403_v8  ;;  %v8043_v23 = vpop.permute.xlu1 %8042 }
 0x68b   : > { %8412 = vst [vmem:[#allocation3 + $0x90] sm:$0xcc] %v8402_v54  ;;  %v8491_v40 = vsel %vm21104_vm13, %v8482_v5, %v8483_v2  ;;  %v8493_v1 = vsel %vm8485_vm1, %v8478_v49, %v8483_v2  ;;  %v8049_v28 = vrot.slane %v8043_v23, 4  ;;  %13720 = vmatmul.mubr.msk.bf16.vlgmr.msra.gmra.mrb[76].mxu0 %vm21105_vm10, %v19996_v63 }
 0x68c   : > { %v8492_v56 = vsel %vm8485_vm1, %v20040_v11, %v8491_v40  ;;  %8503 = vst.msk [vmem:[#allocation3 + $0xc0] sm:$0x33] %vm19890_vm9, %v8493_v1  ;;  %v16727_v55 = vld [vmem:[#allocation3 + $0x18] ss:$40 sps:$4 sm:$0xff]   ;;  %v16729_v20 = vld [vmem:[#allocation3 + $0x1c] ss:$40 sps:$4 sm:$0xff]   ;;  %8884 = vmatprep.mubr.bf16.mxu0 %v16907_v24  ;;  %vm21108_vm9 = vmmov %vm21103_vm0 }
 0x68d   : > { %8502 = vst [vmem:[#allocation3 + $0xb8] sm:$0x33] %v8492_v56  ;;  %v8058_v38 = vsel %vm21106_vm7, %v8048_v19, %v8049_v28  ;;  %8811 = vmatprep.subr.bf16.mxu1 %v16729_v20  ;;  %vm21109_vm1 = vmmov %vm21103_vm0  ;;  %vm21112_vm0 = vmmov 0   ;;  %vm21128_vm7 = vcmask 138240  }
 0x68e   : > { %v8059_v5 = vsel %vm21107_vm12, %v8041_v53, %v8058_v38  ;;  %8812 = vmatpush1.bf16.msra.mxu1 %v16727_v55  ;;  %vm21113_vm4 = vmmov %vm21109_vm1  ;;  %vm21129_vm12 = vcmask 72704  }
 0x68f   : > { %8069 = vst.msk [vmem:[#allocation3 + $0x48] sm:$0xcc] %vm20065_vm8, %v8059_v5  ;;  %vm21110_vm8 = vmmov %vm21105_vm10  ;;  %vm9013_vm10 = vcmask 261120  }
 0x690   : > { %vm21114_vm13 = vmmov %vm21110_vm8 }
 0x691   : > { %v16740_v52 = vld [vmem:[#allocation3 + $0x74] ss:$40 sps:$4 sm:$0xff]   ;;  %v16738_v46 = vld [vmem:[#allocation3 + $0x70] ss:$40 sps:$4 sm:$0xff]  }
 0x692   : > { %v16730_v13 = vld [vmem:[#allocation3 + $0x68] ss:$40 sps:$4 sm:$0xff]   ;;  %v16732_v42 = vld [vmem:[#allocation3 + $0x6c] ss:$40 sps:$4 sm:$0xff]  }
 0x693   : > { %8813 = vmatprep.subr.bf16.mxu1 %v16732_v42  ;;  %v8529_v36 = vld [vmem:[#allocation3 + $0xc0] sm:$0x33] }
 0x694   : > { %v8528_v11 = vld [vmem:[#allocation3 + $0xb8] sm:$0x33]  ;;  %8814 = vmatpush1.bf16.msra.mxu1 %v16730_v13  ;;  %v13714_v10 = vcombine.high %v8529_v36, %v8529_v36  ;;  %v13713_v37 = vcombine.low %v8529_v36, %v8529_v36 }
 0x695   : > { %v13712_v48 = vcombine.high %v8528_v11, %v8528_v11  ;;  %v13711_v30 = vcombine.low %v8528_v11, %v8528_v11 }
 0x696   : > { %v16734_v61 = vld [vmem:[#allocation3 + $0x20] ss:$40 sps:$4 sm:$0xff]   ;;  %v16736_v34 = vld [vmem:[#allocation3 + $0x24] ss:$40 sps:$4 sm:$0xff]   ;;  %v8683_v4 = vsel %vm21113_vm4, %v13713_v37, 0  ;;  %vm9418_vm4 = vcmask 876248  }
 0x697   : > { %13721 = vmatprep.subr.msk.bf16.mxu1 %vm21108_vm9, %v13712_v48  ;;  %v8677_v17 = vsel %vm21109_vm1, %v13711_v30, 0  ;;  %8852 = vmatprep.subr.bf16.mxu0 %v16736_v34  ;;  %vm21130_vm9 = vcmask 7168   ;;  %vm9174_vm1 = vcmask 433448  }
 0x698   : > { %8816 = vmatpush1.bf16.msra.mxu1 %v8677_v17  ;;  %8853 = vmatpush1.bf16.msra.mxu0 %v16734_v61 }
 0x699   : > { %8854 = vmatprep.subr.bf16.mxu0 %v16740_v52  ;;  %16270 = vmatprep.subr.bf16.mxu1 %v16910_v16 }
 0x69b   : > { %13722 = vmatmul.mubr.msk.bf16.vlgmr.msra.gmra.mrb[68].mxu1 %vm21110_vm8, %v19996_v63  ;;  %vm9254_vm8 = vcmask 581048  }
 0x69c   : > { %8855 = vmatpush1.bf16.msra.mxu0 %v16738_v46  ;;  %16272 = vmatpush3.bf16.msk.msra.mxu1 %vm18850_vm3, %v16911_v21 }
 0x69d   : > { %13723 = vmatprep.subr.msk.bf16.mxu0 %vm21111_vm14, %v13714_v10  ;;  %16273 = vmatprep.subr.bf16.mxu1 %v16910_v16  ;;  %vm9338_vm14 = vcmask 728648  }
 0x69e   : > { %15436 = vmatprep.mubr.msk.f32.mxu1 %vm21112_vm0, %v20134_v29 }
 0x6a0   : > { %8857 = vmatpush1.bf16.msra.mxu0 %v8683_v4  ;;  %16275 = vmatpush3.bf16.msk.msra.mxu1 %vm18861_vm6, %v16911_v21 }
 0x6a1   : > { %16276 = vmatprep.subr.bf16.mxu1 %v16910_v16  ;;  %16282 = vmatprep.subr.bf16.mxu0 %v16910_v16 }
 0x6a3   : > { %13724 = vmatmul.mubr.msk.bf16.vlgmr.msra.gmra.mrb[80].mxu0 %vm21114_vm13, %v19996_v63  ;;  %vm9584_vm13 = vcmask 121856  }
 0x6a4   : > { %16284 = vmatpush3.bf16.msk.msra.mxu0 %vm18850_vm3, %v16911_v21  ;;  %15458 = vmatprep.mubr.msk.f32.mxu0 %vm21112_vm0, %v20134_v29 }
 0x6a5   : > { %16285 = vmatprep.subr.bf16.mxu0 %v16910_v16 }
 0x6a8   : > { %16287 = vmatpush3.bf16.msk.msra.mxu0 %vm18861_vm6, %v16911_v21 }
 0x6a9   : > { %16294 = vmatprep.subr.bf16.mxu0 %v16910_v16 }
 0x701   : > { %v8722_v44 = vpop.f32.mrb[72].mxu0 }
 0x702   : > { %v8724_v60 = vpop.f32.mrb[73].mxu0  ;;  %8903 = vrot.lane.b32.xlu0 %v8722_v44, %s21034_s26 }
 0x703   : > { %8905 = vrot.lane.b32.xlu1 %v8724_v60, %s21034_s26  ;;  %v8726_v63 = vpop.f32.mrb[74].mxu0 }
 0x704   : > { %v8727_v62 = vpop.f32.mrb[75].mxu0 }
 0x711   : > { %v8763_v31 = vpop.f32.mrb[64].mxu1 }
 0x712   : > { %8907 = vrot.lane.b32.xlu0 %v8763_v31, %s21034_s26  ;;  %v8765_v53 = vpop.f32.mrb[65].mxu1 }
 0x713   : > { %8909 = vrot.lane.b32.xlu1 %v8765_v53, %s21034_s26  ;;  %v8767_v43 = vpop.f32.mrb[66].mxu1 }
 0x714   : > { %v8768_v39 = vpop.f32.mrb[67].mxu1 }
 0x75e   : > { %v8804_v14 = vpop.f32.mrb[76].mxu0 }
 0x75f   : > { %8911 = vrot.lane.b32.xlu0 %v8804_v14, %s21034_s26  ;;  %v8806_v19 = vpop.f32.mrb[77].mxu0 }
 0x760   : > { %8913 = vrot.lane.b32.xlu1 %v8806_v19, %s21034_s26  ;;  %v8808_v47 = vpop.f32.mrb[78].mxu0 }
 0x761   : > { %v8809_v35 = vpop.f32.mrb[79].mxu0 }
 0x76e   : > { %v8845_v59 = vpop.f32.mrb[68].mxu1 }
 0x76f   : > { %8915 = vrot.lane.b32.xlu0 %v8845_v59, %s21034_s26  ;;  %v8847_v18 = vpop.f32.mrb[69].mxu1 }
 0x770   : > { %8917 = vrot.lane.b32.xlu1 %v8847_v18, %s21034_s26  ;;  %v8849_v27 = vpop.f32.mrb[70].mxu1 }
 0x771   : > { %v8850_v51 = vpop.f32.mrb[71].mxu1 }
 0x774   : > { %v8904_v0 = vpop.permute.xlu0 %8903 }
 0x775   : > { %v8906_v58 = vpop.permute.xlu1 %8905 }
 0x776   : > { %v8923_v33 = vsel %vm2126_vm5, %v8904_v0, %v8906_v58  ;;  %v8886_v57 = vpop.f32.mrb[80].mxu0 }
 0x777   : > { %v8888_v45 = vpop.f32.mrb[81].mxu0  ;;  %8919 = vrot.lane.b32.xlu0 %v8886_v57, %s21034_s26  ;;  %v8942_v50 = vmax.f32 %v8722_v44, %v8923_v33 }
 0x778   : > { %8921 = vrot.lane.b32.xlu1 %v8888_v45, %s21034_s26  ;;  %v8890_v12 = vpop.f32.mrb[82].mxu0 }
 0x779   : > { %v8891_v15 = vpop.f32.mrb[83].mxu0 }
 0x77b   : > { %8962 = vrot.lane.b32.xlu0 %v8942_v50, %s16957_s18 }
 0x784   : > { %v8908_v26 = vpop.permute.xlu0 %8907 }
 0x785   : > { %v8924_v3 = vsel %vm2126_vm5, %v8906_v58, %v8908_v26  ;;  %v8910_v22 = vpop.permute.xlu1 %8909 }
 0x786   : > { %v8943_v9 = vmax.f32 %v8724_v60, %v8924_v3  ;;  %v8925_v25 = vsel %vm2126_vm5, %v8908_v26, %v8910_v22 }
 0x787   : > { %v8944_v6 = vmax.f32 %v8763_v31, %v8925_v25 }
 0x788   : > { %8964 = vrot.lane.b32.xlu1 %v8943_v9, %s16957_s18 }
 0x789   : > { %8966 = vrot.lane.b32.xlu0 %v8944_v6, %s16957_s18 }
 0x7d1   : > { %v8912_v49 = vpop.permute.xlu0 %8911 }
 0x7d2   : > { %v8926_v32 = vsel %vm2126_vm5, %v8910_v22, %v8912_v49  ;;  %v8914_v8 = vpop.permute.xlu1 %8913 }
 0x7d3   : > { %v8945_v2 = vmax.f32 %v8765_v53, %v8926_v32  ;;  %v8927_v54 = vsel %vm2126_vm5, %v8912_v49, %v8914_v8 }
 0x7d4   : > { %v8946_v23 = vmax.f32 %v8804_v14, %v8927_v54 }
 0x7d5   : > { %8968 = vrot.lane.b32.xlu1 %v8945_v2, %s16957_s18 }
 0x7d6   : > { %8970 = vrot.lane.b32.xlu0 %v8946_v23, %s16957_s18 }
 0x7e1   : > { %v8916_v40 = vpop.permute.xlu0 %8915 }
 0x7e2   : > { %v8928_v1 = vsel %vm2126_vm5, %v8914_v8, %v8916_v40  ;;  %v8918_v28 = vpop.permute.xlu1 %8917 }
 0x7e3   : > { %v8947_v56 = vmax.f32 %v8806_v19, %v8928_v1  ;;  %v8929_v55 = vsel %vm2126_vm5, %v8916_v40, %v8918_v28 }
 0x7e4   : > { %v8948_v20 = vmax.f32 %v8845_v59, %v8929_v55 }
 0x7e5   : > { %8972 = vrot.lane.b32.xlu1 %v8947_v56, %s16957_s18 }
 0x7e6   : > { %8974 = vrot.lane.b32.xlu0 %v8948_v20, %s16957_s18 }
 0x7e9   : > { %v8920_v38 = vpop.permute.xlu0 %8919 }
 0x7ea   : > { %v8930_v5 = vsel %vm2126_vm5, %v8918_v28, %v8920_v38  ;;  %v8922_v13 = vpop.permute.xlu1 %8921 }
 0x7eb   : > { %v8949_v42 = vmax.f32 %v8847_v18, %v8930_v5  ;;  %v8931_v11 = vsel %vm2126_vm5, %v8920_v38, %v8922_v13  ;;  %v8951_v30 = vmax.f32 %v8888_v45, %v8922_v13 }
 0x7ec   : > { %v8950_v48 = vmax.f32 %v8886_v57, %v8931_v11 }
 0x7ed   : > { %8976 = vrot.lane.b32.xlu1 %v8949_v42, %s16957_s18  ;;  %v8963_v61 = vpop.permute.xlu0 %8962 }
 0x7ee   : > { %8978 = vrot.lane.b32.xlu0 %v8950_v48, %s16957_s18 }
 0x7f2   : > { %8980 = vrot.lane.b32.xlu0 %v8951_v30, %s16957_s18  ;;  %s21116_s18 = smov 77  }
 0x7fa   : > { %v8965_v34 = vpop.permute.xlu1 %8964 }
 0x7fb   : > { %v8983_v17 = vsel %vm8395_vm15, %v8963_v61, %v8965_v34  ;;  %v8967_v52 = vpop.permute.xlu0 %8966 }
 0x7fc   : > { %v9001_v36 = vmax.f32 %v8942_v50, %v8983_v17  ;;  %v8984_v46 = vsel %vm8395_vm15, %v8965_v34, %v8967_v52 }
 0x7fd   : > { %v9002_v10 = vmax.f32 %v8943_v9, %v8984_v46 }
 0x7fe   : > { %9011 = vrot.lane.b32.xlu1 %v9001_v36, %s21029_s12  ;;  %s21123_s12 = smov 113  }
 0x7ff   : > { %9095 = vrot.lane.b32.xlu0 %v9002_v10, %s16920_s21 }
 0x802   : > { %9093 = vrot.lane.b32.xlu1 %v9001_v36, %s16920_s21  ;;  %s21118_s21 = smov 69  }
 0x803   : > { %9257 = vrot.lane.b32.xlu0 %v9002_v10, %s21032_s17 }
 0x806   : > { %9176 = vrot.lane.b32.xlu1 %v9002_v10, %s21115_s13  ;;  %s21119_s13 = smov 61  }
 0x847   : > { %v8969_v37 = vpop.permute.xlu1 %8968 }
 0x848   : > { %v8985_v4 = vsel %vm8395_vm15, %v8967_v52, %v8969_v37  ;;  %v8971_v44 = vpop.permute.xlu0 %8970 }
 0x849   : > { %v9003_v60 = vmax.f32 %v8944_v6, %v8985_v4  ;;  %v8986_v63 = vsel %vm8395_vm15, %v8969_v37, %v8971_v44 }
 0x84a   : > { %v9004_v62 = vmax.f32 %v8945_v2, %v8986_v63 }
 0x84b   : > { %9259 = vrot.lane.b32.xlu1 %v9003_v60, %s21032_s17  ;;  %9340 = vrot.lane.b32.xlu0 %v9003_v60, %s21116_s18  ;;  %s21120_s18 = smov 53   ;;  %s21132_s17 = smov 73  }
 0x84f   : > { %9421 = vrot.lane.b32.xlu1 %v9003_v60, %s21117_s19  ;;  %9423 = vrot.lane.b32.xlu0 %v9004_v62, %s21117_s19  ;;  %s21121_s19 = smov 121  }
 0x853   : > { %9504 = vrot.lane.b32.xlu1 %v9004_v62, %s21118_s21  ;;  %9587 = vrot.lane.b32.xlu0 %v9004_v62, %s21056_s20  ;;  %s21122_s21 = smov 45  }
 0x857   : > { %v8973_v31 = vpop.permute.xlu1 %8972 }
 0x858   : > { %v8987_v53 = vsel %vm8395_vm15, %v8971_v44, %v8973_v31  ;;  %v8975_v43 = vpop.permute.xlu0 %8974 }
 0x859   : > { %v9005_v39 = vmax.f32 %v8946_v23, %v8987_v53  ;;  %v8988_v14 = vsel %vm8395_vm15, %v8973_v31, %v8975_v43 }
 0x85a   : > { %v9006_v19 = vmax.f32 %v8947_v56, %v8988_v14 }
 0x85b   : > { %9589 = vrot.lane.b32.xlu1 %v9005_v39, %s21056_s20  ;;  %9670 = vrot.lane.b32.xlu0 %v9005_v39, %s21119_s13  ;;  %s21124_s13 = smov 37  }
 0x85f   : > { %v8977_v47 = vpop.permute.xlu1 %8976  ;;  %9831 = vrot.lane.b32.xlu0 %v9006_v19, %s21120_s18  ;;  %9751 = vrot.lane.b32.xlu1 %v9006_v19, %s21121_s19  ;;  %s21126_s19 = smov 97  }
 0x860   : > { %v8989_v35 = vsel %vm8395_vm15, %v8975_v43, %v8977_v47  ;;  %v8979_v59 = vpop.permute.xlu0 %8978 }
 0x861   : > { %v9007_v18 = vmax.f32 %v8948_v20, %v8989_v35  ;;  %v8990_v27 = vsel %vm8395_vm15, %v8977_v47, %v8979_v59 }
 0x862   : > { %v9008_v0 = vmax.f32 %v8949_v42, %v8990_v27 }
 0x863   : > { %9992 = vrot.lane.b32.xlu0 %v9007_v18, %s21122_s21  ;;  %9912 = vrot.lane.b32.xlu1 %v9007_v18, %s21123_s12  ;;  %s16959_s21 = smov 55  }
 0x864   : > { %v8981_v51 = vpop.permute.xlu0 %8980 }
 0x865   : > { %v8991_v58 = vsel %vm8395_vm15, %v8979_v59, %v8981_v51  ;;  %vm21127_vm15 = vcmask 203776  }
 0x866   : > { %v9009_v33 = vmax.f32 %v8950_v48, %v8991_v58 }
 0x867   : > { %10154 = vrot.lane.b32.xlu0 %v9008_v0, %s21124_s13  ;;  %10073 = vrot.lane.b32.xlu1 %v9008_v0, %s21125_s24  ;;  %s21036_s24 = smov 19  }
 0x86b   : > { %10235 = vrot.lane.b32.xlu1 %v9009_v33, %s21126_s19  ;;  %s21131_s19 = smov 91  }
 0x870   : > { %v9012_v57 = vpop.permute.xlu1 %9011 }
 0x871   : > { %15437 = vmatmul.mubr.msk.f32.vlgmr.msra.gmra.mrb[72].mxu1 %vm9013_vm10, %v9012_v57  ;;  %v9096_v12 = vpop.permute.xlu0 %9095 }
 0x872   : > { %16278 = vmatpush3.bf16.msk.msra.mxu1 %vm18850_vm3, %v16911_v21  ;;  %15447 = vmatprep.mubr.msk.f32.mxu1 %vm21112_vm0, %v20134_v29 }
 0x873   : > { %16279 = vmatprep.subr.bf16.mxu1 %v16910_v16 }
 0x874   : > { %v9094_v45 = vpop.permute.xlu1 %9093 }
 0x875   : > { %v9097_v50 = vsel %vm21127_vm15, %v9094_v45, %v9096_v12  ;;  %v9258_v26 = vpop.permute.xlu0 %9257  ;;  %vm9582_vm15 = vcmask 1048568  }
 0x876   : > { %16281 = vmatpush3.bf16.msk.msra.mxu1 %vm18861_vm6, %v16911_v21 }
 0x877   : > { %16288 = vmatprep.subr.bf16.mxu1 %v16910_v16 }
 0x878   : > { %v9177_v15 = vpop.permute.xlu1 %9176 }
 0x879   : > { %15448 = vmatmul.mubr.msk.f32.vlgmr.msra.gmra.mrb[74].mxu1 %vm9013_vm10, %v9097_v50  ;;  %15459 = vmatmul.mubr.msk.f32.vlgmr.msra.gmra.mrb[84].mxu0 %vm9013_vm10, %v9177_v15 }
 0x87a   : > { %16290 = vmatpush3.bf16.msk.msra.mxu1 %vm18850_vm3, %v16911_v21  ;;  %16296 = vmatpush3.bf16.msk.msra.mxu0 %vm18850_vm3, %v16911_v21 }
 0x87b   : > { %16291 = vmatprep.subr.bf16.mxu1 %v16910_v16  ;;  %16297 = vmatprep.subr.bf16.mxu0 %v16910_v16 }
 0x87c   : > { %15480 = vmatprep.mubr.msk.f32.mxu0 %vm21112_vm0, %v20134_v29  ;;  %15469 = vmatprep.mubr.msk.f32.mxu1 %vm21112_vm0, %v20134_v29 }
 0x87e   : > { %16293 = vmatpush3.bf16.msk.msra.mxu1 %vm18861_vm6, %v16911_v21  ;;  %16299 = vmatpush3.bf16.msk.msra.mxu0 %vm18861_vm6, %v16911_v21 }
 0x87f   : > { %16300 = vmatprep.subr.bf16.mxu1 %v16910_v16  ;;  %16306 = vmatprep.subr.bf16.mxu0 %v16910_v16 }
 0x8bd   : > { %v9260_v3 = vpop.permute.xlu1 %9259  ;;  %v9341_v22 = vpop.permute.xlu0 %9340 }
 0x8be   : > { %v9261_v9 = vsel %vm21128_vm7, %v9258_v26, %v9260_v3  ;;  %15481 = vmatmul.mubr.msk.f32.vlgmr.msra.gmra.mrb[86].mxu0 %vm9013_vm10, %v9341_v22  ;;  %vm9668_vm7 = vcmask 269448  }
 0x8bf   : > { %15470 = vmatmul.mubr.msk.f32.vlgmr.msra.gmra.mrb[76].mxu1 %vm9013_vm10, %v9261_v9  ;;  %16308 = vmatpush3.bf16.msk.msra.mxu0 %vm18850_vm3, %v16911_v21 }
 0x8c0   : > { %16302 = vmatpush3.bf16.msk.msra.mxu1 %vm18850_vm3, %v16911_v21  ;;  %16309 = vmatprep.subr.bf16.mxu0 %v16910_v16 }
 0x8c1   : > { %v9422_v25 = vpop.permute.xlu1 %9421  ;;  %16303 = vmatprep.subr.bf16.mxu1 %v16910_v16  ;;  %15491 = vmatprep.mubr.msk.f32.mxu1 %vm21112_vm0, %v20134_v29  ;;  %v9424_v6 = vpop.permute.xlu0 %9423 }
 0x8c2   : > { %15502 = vmatprep.mubr.msk.f32.mxu0 %vm21112_vm0, %v20134_v29  ;;  %v9425_v32 = vsel %vm21129_vm12, %v9422_v25, %v9424_v6  ;;  %vm9748_vm12 = vcmask 417048  }
 0x8c3   : > { %16311 = vmatpush3.bf16.msk.msra.mxu0 %vm18861_vm6, %v16911_v21 }
 0x8c4   : > { %16305 = vmatpush3.bf16.msk.msra.mxu1 %vm18861_vm6, %v16911_v21  ;;  %16318 = vmatprep.subr.bf16.mxu0 %v16910_v16 }
 0x8c5   : > { %v9505_v49 = vpop.permute.xlu1 %9504  ;;  %16312 = vmatprep.subr.bf16.mxu1 %v16910_v16  ;;  %v9588_v8 = vpop.permute.xlu0 %9587 }
 0x8c6   : > { %15503 = vmatmul.mubr.msk.f32.vlgmr.msra.gmra.mrb[88].mxu0 %vm9013_vm10, %v9505_v49 }
 0x8c7   : > { %15492 = vmatmul.mubr.msk.f32.vlgmr.msra.gmra.mrb[78].mxu1 %vm9013_vm10, %v9425_v32  ;;  %16320 = vmatpush3.bf16.msk.msra.mxu0 %vm18850_vm3, %v16911_v21 }
 0x8c8   : > { %16314 = vmatpush3.bf16.msk.msra.mxu1 %vm18850_vm3, %v16911_v21  ;;  %16321 = vmatprep.subr.bf16.mxu0 %v16910_v16 }
 0x8c9   : > { %16315 = vmatprep.subr.bf16.mxu1 %v16910_v16  ;;  %15524 = vmatprep.mubr.msk.f32.mxu0 %vm21112_vm0, %v20134_v29 }
 0x8ca   : > { %15513 = vmatprep.mubr.msk.f32.mxu1 %vm21112_vm0, %v20134_v29 }
 0x8cb   : > { %16323 = vmatpush3.bf16.msk.msra.mxu0 %vm18861_vm6, %v16911_v21 }
 0x8cc   : > { %16317 = vmatpush3.bf16.msk.msra.mxu1 %vm18861_vm6, %v16911_v21  ;;  %16330 = vmatprep.subr.bf16.mxu0 %v16910_v16 }
 0x8cd   : > { %16324 = vmatprep.subr.bf16.mxu1 %v16910_v16  ;;  %v9590_v2 = vpop.permute.xlu1 %9589  ;;  %v9671_v54 = vpop.permute.xlu0 %9670 }
 0x8ce   : > { %v9591_v23 = vsel %vm21130_vm9, %v9588_v8, %v9590_v2  ;;  %15525 = vmatmul.mubr.msk.f32.vlgmr.msra.gmra.mrb[90].mxu0 %vm9013_vm10, %v9671_v54  ;;  %vm9829_vm9 = vcmask 564648  }
 0x8cf   : > { %16332 = vmatpush3.bf16.msk.msra.mxu0 %vm18850_vm3, %v16911_v21  ;;  %15514 = vmatmul.mubr.msk.f32.vlgmr.msra.gmra.mrb[80].mxu1 %vm9013_vm10, %v9591_v23 }
 0x8d0   : > { %16326 = vmatpush3.bf16.msk.msra.mxu1 %vm18850_vm3, %v16911_v21  ;;  %16333 = vmatprep.subr.bf16.mxu0 %v16910_v16 }
 0x8d1   : > { %16327 = vmatprep.subr.bf16.mxu1 %v16910_v16  ;;  %15546 = vmatprep.mubr.msk.f32.mxu0 %vm21112_vm0, %v20134_v29  ;;  %v9832_v40 = vpop.permute.xlu0 %9831  ;;  %v9752_v1 = vpop.permute.xlu1 %9751 }
 0x8d2   : > { %15535 = vmatprep.mubr.msk.f32.mxu1 %vm21112_vm0, %v20134_v29 }
 0x8d3   : > { %16335 = vmatpush3.bf16.msk.msra.mxu0 %vm18861_vm6, %v16911_v21 }
 0x8d4   : > { %16329 = vmatpush3.bf16.msk.msra.mxu1 %vm18861_vm6, %v16911_v21  ;;  %16342 = vmatprep.subr.bf16.mxu0 %v16910_v16 }
 0x8d5   : > { %16336 = vmatprep.subr.bf16.mxu1 %v16910_v16  ;;  %v9993_v28 = vpop.permute.xlu0 %9992  ;;  %v9913_v56 = vpop.permute.xlu1 %9912 }
 0x8d6   : > { %15547 = vmatmul.mubr.msk.f32.vlgmr.msra.gmra.mrb[92].mxu0 %vm9013_vm10, %v9832_v40 }
 0x8d7   : > { %15536 = vmatmul.mubr.msk.f32.vlgmr.msra.gmra.mrb[82].mxu1 %vm9013_vm10, %v9752_v1  ;;  %16344 = vmatpush3.bf16.msk.msra.mxu0 %vm18850_vm3, %v16911_v21 }
 0x8d8   : > { %16338 = vmatpush3.bf16.msk.msra.mxu1 %vm18850_vm3, %v16911_v21  ;;  %16345 = vmatprep.subr.bf16.mxu0 %v16910_v16 }
 0x8d9   : > { %16339 = vmatprep.subr.bf16.mxu1 %v16910_v16  ;;  %15568 = vmatprep.mubr.msk.f32.mxu0 %vm21112_vm0, %v20134_v29  ;;  %v10155_v55 = vpop.permute.xlu0 %10154  ;;  %v10074_v20 = vpop.permute.xlu1 %10073 }
 0x8da   : > { %15557 = vmatprep.mubr.msk.f32.mxu1 %vm21112_vm0, %v20134_v29 }
 0x8db   : > { %16347 = vmatpush3.bf16.msk.msra.mxu0 %vm18861_vm6, %v16911_v21 }
 0x8dc   : > { %16341 = vmatpush3.bf16.msk.msra.mxu1 %vm18861_vm6, %v16911_v21  ;;  %16354 = vmatprep.subr.bf16.mxu0 %v16910_v16 }
 0x8dd   : > { %16348 = vmatprep.subr.bf16.mxu1 %v16910_v16  ;;  %v10236_v38 = vpop.permute.xlu1 %10235 }
 0x8de   : > { %15569 = vmatmul.mubr.msk.f32.vlgmr.msra.gmra.mrb[94].mxu0 %vm9013_vm10, %v9993_v28 }
 0x8df   : > { %15558 = vmatmul.mubr.msk.f32.vlgmr.msra.gmra.mrb[84].mxu1 %vm9013_vm10, %v9913_v56  ;;  %16356 = vmatpush3.bf16.msk.msra.mxu0 %vm18850_vm3, %v16911_v21 }
 0x8e0   : > { %16350 = vmatpush3.bf16.msk.msra.mxu1 %vm18850_vm3, %v16911_v21  ;;  %16357 = vmatprep.subr.bf16.mxu0 %v16910_v16 }
 0x8e1   : > { %16351 = vmatprep.subr.bf16.mxu1 %v16910_v16  ;;  %15590 = vmatprep.mubr.msk.f32.mxu0 %vm21112_vm0, %v20134_v29 }
 0x8e2   : > { %15579 = vmatprep.mubr.msk.f32.mxu1 %vm21112_vm0, %v20134_v29 }
 0x8e3   : > { %16359 = vmatpush3.bf16.msk.msra.mxu0 %vm18861_vm6, %v16911_v21 }
 0x8e4   : > { %16353 = vmatpush3.bf16.msk.msra.mxu1 %vm18861_vm6, %v16911_v21 }
 0x8e5   : > { %16360 = vmatprep.subr.bf16.mxu1 %v16910_v16 }
 0x8e6   : > { %15591 = vmatmul.mubr.msk.f32.vlgmr.msra.gmra.mrb[96].mxu0 %vm9013_vm10, %v10155_v55 }
 0x8e7   : > { %15580 = vmatmul.mubr.msk.f32.vlgmr.msra.gmra.mrb[86].mxu1 %vm9013_vm10, %v10074_v20  ;;  %10710 = vmatprep.mubr.bf16.mxu0 %v16907_v24 }
 0x8e8   : > { %16362 = vmatpush3.bf16.msk.msra.mxu1 %vm18850_vm3, %v16911_v21  ;;  %15601 = vmatprep.mubr.msk.f32.mxu1 %vm21112_vm0, %v20134_v29 }
 0x8e9   : > { %16363 = vmatprep.subr.bf16.mxu1 %v16910_v16 }
 0x8ec   : > { %16365 = vmatpush3.bf16.msk.msra.mxu1 %vm18861_vm6, %v16911_v21  ;;  %vm9090_vm6 = vcmask 285848  }
 0x8ed   : > { %15604 = vmatprep.subr.bf16.mxu1 %v20134_v29 }
 0x8ef   : > { %15602 = vmatmul.mubr.msk.f32.vlgmr.msra.gmra.mrb[88].mxu1 %vm9013_vm10, %v10236_v38  ;;  %vm9502_vm10 = vcmask 1023848  }
 0x8f0   : > { %15614 = vmatprep.mubr.msk.bf16.mxu1 %vm21112_vm0, %v20134_v29 }
 0x944   : > { %v9082_v24 = vpop.f32.mrb[72].mxu1 }
 0x945   : > { %v15438_v5 = vpop.f32.mrb[73].mxu1  ;;  %9087 = vrot.lane.b32.xlu1 %v9082_v24, %s21036_s24  ;;  %s21134_s24 = smov 89  }
 0x94c   : > { %v9166_v13 = vpop.f32.mrb[74].mxu1  ;;  %v9246_v42 = vpop.f32.mrb[84].mxu0 }
 0x94d   : > { %v15449_v16 = vpop.f32.mrb[75].mxu1  ;;  %v15460_v11 = vpop.f32.mrb[85].mxu0  ;;  %9251 = vrot.lane.b32.xlu1 %v9246_v42, %s16959_s21  ;;  %s21133_s21 = smov 17  }
 0x951   : > { %9171 = vrot.lane.b32.xlu1 %v9166_v13, %s21124_s13 }
 0x991   : > { %v9410_v41 = vpop.f32.mrb[86].mxu0 }
 0x992   : > { %v9330_v48 = vpop.f32.mrb[76].mxu1  ;;  %9415 = vrot.lane.b32.xlu1 %v9410_v41, %s21131_s19  ;;  %v15482_v30 = vpop.f32.mrb[87].mxu0  ;;  %s16960_s19 = smov 71  }
 0x993   : > { %v15471_v61 = vpop.f32.mrb[77].mxu1 }
 0x996   : > { %9335 = vrot.lane.b32.xlu1 %v9330_v48, %s21132_s17 }
 0x999   : > { %v9574_v34 = vpop.f32.mrb[88].mxu0 }
 0x99a   : > { %v9494_v17 = vpop.f32.mrb[78].mxu1  ;;  %9579 = vrot.lane.b32.xlu0 %v9574_v34, %s21034_s26  ;;  %v15504_v52 = vpop.f32.mrb[89].mxu0  ;;  %s16961_s26 = smov 107  }
 0x99b   : > { %v15493_v36 = vpop.f32.mrb[79].mxu1 }
 0x99e   : > { %9499 = vrot.lane.b32.xlu0 %v9494_v17, %s21049_s10 }
 0x9a1   : > { %v9740_v46 = vpop.f32.mrb[90].mxu0 }
 0x9a2   : > { %v9660_v10 = vpop.f32.mrb[80].mxu1  ;;  %9745 = vrot.lane.b32.xlu0 %v9740_v46, %s16943_s25  ;;  %v15526_v37 = vpop.f32.mrb[91].mxu0  ;;  %s21135_s25 = smov 15  }
 0x9a3   : > { %v15515_v4 = vpop.f32.mrb[81].mxu1 }
 0x9a6   : > { %9665 = vrot.lane.b32.xlu0 %v9660_v10, %s21133_s21 }
 0x9a9   : > { %v9901_v44 = vpop.f32.mrb[92].mxu0 }
 0x9aa   : > { %v9821_v60 = vpop.f32.mrb[82].mxu1  ;;  %v15548_v63 = vpop.f32.mrb[93].mxu0  ;;  %9906 = vrot.lane.b32.xlu0 %v9901_v44, %s16960_s19  ;;  %s21140_s19 = smov 111  }
 0x9ab   : > { %v15537_v62 = vpop.f32.mrb[83].mxu1 }
 0x9ae   : > { %9826 = vrot.lane.b32.xlu0 %v9821_v60, %s21120_s18  ;;  %s16962_s18 = smov 18  }
 0x9b1   : > { %v10062_v31 = vpop.f32.mrb[94].mxu0 }
 0x9b2   : > { %v9982_v53 = vpop.f32.mrb[84].mxu1  ;;  %10067 = vrot.lane.b32.xlu1 %v10062_v31, %s16961_s26  ;;  %v15570_v43 = vpop.f32.mrb[95].mxu0  ;;  %s21136_s26 = smov 33  }
 0x9b3   : > { %v15559_v39 = vpop.f32.mrb[85].mxu1  ;;  %9987 = vrot.lane.b32.xlu0 %v9982_v53, %s21134_s24  ;;  %s21139_s24 = smov 127  }
 0x9b7   : > { %v9088_v14 = vpop.permute.xlu1 %9087 }
 0x9b8   : > { %9091 = vst.msk [vmem:[#allocation6 + $0x8] sm:$0xff] %vm9090_vm6, %v9088_v14  ;;  %vm9909_vm6 = vcmask 712248  }
 0x9b9   : > { %v10224_v19 = vpop.f32.mrb[96].mxu0 }
 0x9ba   : > { %v10143_v47 = vpop.f32.mrb[86].mxu1  ;;  %10229 = vrot.lane.b32.xlu0 %v10224_v19, %s21135_s25  ;;  %v15592_v35 = vpop.f32.mrb[97].mxu0  ;;  %s16963_s25 = smov 110  }
 0x9bb   : > { %v15581_v59 = vpop.f32.mrb[87].mxu1  ;;  %10148 = vrot.lane.b32.xlu1 %v10143_v47, %s21053_s22  ;;  %s21137_s22 = smov 19  }
 0x9bf   : > { %v9252_v18 = vpop.permute.xlu1 %9251 }
 0x9c2   : > { %v10305_v51 = vpop.f32.mrb[88].mxu1 }
 0x9c3   : > { %v9172_v27 = vpop.permute.xlu1 %9171  ;;  %v15603_v0 = vpop.f32.mrb[89].mxu1  ;;  %10310 = vrot.lane.b32.xlu1 %v10305_v51, %s21136_s26 }
 0x9c4   : > { %9175 = vst.msk [vmem:[#allocation6 + $0x8] sm:$0xff] %vm9174_vm1, %v9172_v27  ;;  %vm9990_vm1 = vcmask 859848  }
 0x9c5   : > { %9255 = vst.msk [vmem:[#allocation6 + $0x8] sm:$0xff] %vm9254_vm8, %v9252_v18  ;;  %vm10070_vm8 = vcmask 1007448  }
 0xa04   : > { %v9416_v58 = vpop.permute.xlu1 %9415 }
 0xa08   : > { %v9336_v33 = vpop.permute.xlu1 %9335 }
 0xa09   : > { %9339 = vst.msk [vmem:[#allocation6 + $0x8] sm:$0xff] %vm9338_vm14, %v9336_v33  ;;  %vm10151_vm14 = vcmask 1048552  }
 0xa0a   : > { %9419 = vst.msk [vmem:[#allocation6 + $0x8] sm:$0xff] %vm9418_vm4, %v9416_v58  ;;  %vm10232_vm4 = vcmask 253048  }
 0xa0c   : > { %v9580_v57 = vpop.permute.xlu0 %9579 }
 0xa0d   : > { %9585 = vst.msk [vmem:[#allocation6 + $0x10] sm:$0xff] %vm9584_vm13, %v9580_v57  ;;  %vm21138_vm13 = vcmask 105472  }
 0xa10   : > { %v9500_v45 = vpop.permute.xlu0 %9499 }
 0xa11   : > { %9503 = vst.msk [vmem:[#allocation6 + $0x8] sm:$0xff] %vm9502_vm10, %v9500_v45  ;;  %vm10313_vm10 = vcmask 400648  }
 0xa12   : > { %9583 = vst.msk [vmem:[#allocation6 + $0x8] sm:$0xff] %vm9582_vm15, %v9580_v57  ;;  %vm10346_vm15 = vcmask 551936  }
 0xa14   : > { %v9746_v12 = vpop.permute.xlu0 %9745 }
 0xa18   : > { %v9666_v50 = vpop.permute.xlu0 %9665 }
 0xa19   : > { %v10316_v15 = vld [vmem:[#allocation6 + $0x8] sm:$0xff]  ;;  %9669 = vst.msk [vmem:[#allocation6 + $0x10] sm:$0xff] %vm9668_vm7, %v9666_v50  ;;  %vm10340_vm7 = vcmask 154624  }
 0xa1a   : > { %v14293_v26 = vpack.c.bf16 %v10316_v15, %v20134_v29  ;;  %9749 = vst.msk [vmem:[#allocation6 + $0x10] sm:$0xff] %vm9748_vm12, %v9746_v12  ;;  %vm21141_vm12 = vcmask 1043456  }
 0xa1c   : > { %10333 = vrot.lane.b32.xlu0 %v14293_v26, %s21137_s22  ;;  %v9907_v3 = vpop.permute.xlu0 %9906 }
 0xa20   : > { %10366 = vrot.lane.b32.xlu0 %v14293_v26, %s16962_s18  ;;  %v9827_v22 = vpop.permute.xlu0 %9826 }
 0xa21   : > { %9830 = vst.msk [vmem:[#allocation6 + $0x10] sm:$0xff] %vm9829_vm9, %v9827_v22  ;;  %vm10373_vm9 = vcmask 146432  }
 0xa22   : > { %9910 = vst.msk [vmem:[#allocation6 + $0x10] sm:$0xff] %vm9909_vm6, %v9907_v3  ;;  %vm21142_vm6 = vmmov %vm21141_vm12 }
 0xa24   : > { %10398 = vrot.lane.b32.xlu0 %v14293_v26, %s21133_s21  ;;  %v10068_v25 = vpop.permute.xlu1 %10067 }
 0xa25   : > { %v9988_v9 = vpop.permute.xlu0 %9987 }
 0xa26   : > { %9991 = vst.msk [vmem:[#allocation6 + $0x10] sm:$0xff] %vm9990_vm1, %v9988_v9  ;;  %vm21143_vm1 = vmmov %vm21142_vm6 }
 0xa27   : > { %10071 = vst.msk [vmem:[#allocation6 + $0x10] sm:$0xff] %vm10070_vm8, %v10068_v25  ;;  %vm21144_vm8 = vcmask 138240  }
 0xa28   : > { %10430 = vrot.lane.b32.xlu0 %v14293_v26, %s21056_s20 }
 0xa2c   : > { %v10230_v49 = vpop.permute.xlu0 %10229 }
 0xa2d   : > { %v10149_v6 = vpop.permute.xlu1 %10148 }
 0xa2e   : > { %10152 = vst.msk [vmem:[#allocation6 + $0x10] sm:$0xff] %vm10151_vm14, %v10149_v6  ;;  %vm21145_vm14 = vmmov %vm21144_vm8 }
 0xa2f   : > { %10153 = vst.msk [vmem:[#allocation6 + $0x18] sm:$0xff] %vm21138_vm13, %v10149_v6  ;;  %vm21147_vm13 = vcmask 7168  }
 0xa30   : > { %10233 = vst.msk [vmem:[#allocation6 + $0x18] sm:$0xff] %vm10232_vm4, %v10230_v49  ;;  %vm21146_vm4 = vmmov %vm21143_vm1 }
 0xa35   : > { %v10444_v32 = vld [vmem:[#allocation6 + $0x10] sm:$0xff]  ;;  %v10311_v8 = vpop.permute.xlu1 %10310 }
 0xa36   : > { %v20395_v2 = vpack.c.bf16 %v10444_v32, %v10316_v15  ;;  %10314 = vst.msk [vmem:[#allocation6 + $0x18] sm:$0xff] %vm10313_vm10, %v10311_v8  ;;  %vm21148_vm10 = vmmov %vm21147_vm13 }
 0xa38   : > { %10475 = vrot.lane.b32.xlu0 %v20395_v2, %s21139_s24 }
 0xa3c   : > { %10501 = vrot.lane.b32.xlu0 %v20395_v2, %s21140_s19 }
 0xa3d   : > { %v10445_v54 = vld [vmem:[#allocation6 + $0x18] sm:$0xff] }
 0xa3e   : > { %v14302_v23 = vpack.c.bf16 %v10445_v54, %v10445_v54  ;;  %v14294_v40 = vpack.c.bf16 %v10445_v54, %v10444_v32 }
 0xa40   : > { %10528 = vrot.lane.b32.xlu0 %v20395_v2, %s16963_s25  ;;  %10335 = vrot.lane.b32.xlu1 %v14294_v40, %s21137_s22  ;;  %10460 = vst.msk [vmem:[#allocation4 + $0x38] sm:$0xf] %vm10346_vm15, %v14302_v23  ;;  %s21155_s22 = smov 93  }
 0xa44   : > { %10555 = vrot.lane.b32.xlu0 %v20395_v2, %s21049_s10  ;;  %10368 = vrot.lane.b32.xlu1 %v14294_v40, %s16962_s18 }
 0xa48   : > { %10400 = vrot.lane.b32.xlu1 %v14294_v40, %s21133_s21  ;;  %s16970_s21 = smov 56  }
 0xa4c   : > { %10432 = vrot.lane.b32.xlu1 %v14294_v40, %s21056_s20 }
 0xa50   : > { %10477 = vrot.lane.b32.xlu1 %v14302_v23, %s21139_s24 }
 0xa54   : > { %10503 = vrot.lane.b32.xlu1 %v14302_v23, %s21140_s19 }
 0xa58   : > { %10530 = vrot.lane.b32.xlu1 %v14302_v23, %s16963_s25 }
 0xa5c   : > { %10557 = vrot.lane.b32.xlu1 %v14302_v23, %s21049_s10 }
 0xa8e   : > { %v10334_v1 = vpop.permute.xlu0 %10333 }
 0xa8f   : > { %v10337_v20 = vrot.slane %v10334_v1, 4 }
 0xa92   : > { %v10367_v28 = vpop.permute.xlu0 %10366 }
 0xa93   : > { %v10370_v11 = vrot.slane %v10367_v28, 4 }
 0xa96   : > { %v10399_v56 = vpop.permute.xlu0 %10398 }
 0xa97   : > { %v10402_v52 = vrot.slane %v10399_v56, 4 }
 0xa9a   : > { %v10431_v13 = vpop.permute.xlu0 %10430 }
 0xa9b   : > { %v10434_v63 = vrot.slane %v10431_v13, 4 }
 0xaaa   : > { %v10476_v61 = vpop.permute.xlu0 %10475 }
 0xaab   : > { %v10479_v47 = vrot.slane %v10476_v61, 4 }
 0xaae   : > { %v10502_v31 = vpop.permute.xlu0 %10501 }
 0xaaf   : > { %v10505_v33 = vrot.slane %v10502_v31, 4 }
 0xab2   : > { %v10336_v55 = vpop.permute.xlu1 %10335  ;;  %v10529_v51 = vpop.permute.xlu0 %10528 }
 0xab3   : > { %v10338_v38 = vrot.slane %v10336_v55, 4  ;;  %v10532_v22 = vrot.slane %v10529_v51, 4 }
 0xab5   : > { %v10339_v24 = vsel %vm21141_vm12, %v10337_v20, %v10338_v38  ;;  %v10342_v5 = vsel %vm10340_vm7, %v10336_v55, %v10338_v38  ;;  %vm21150_vm12 = vmmov %vm21143_vm1  ;;  %v16748_v38 = vld [vmem:[%s20974_s3] sm:$0xff]  }
 0xab6   : > { %v10341_v42 = vsel %vm10340_vm7, %v10334_v1, %v10339_v24  ;;  %10347 = vst.msk [vmem:[#allocation4 + $0x8] sm:$0xf] %vm10346_vm15, %v10342_v5  ;;  %v10369_v16 = vpop.permute.xlu1 %10368  ;;  %vm21149_vm7 = vmmov %vm21143_vm1  ;;  %v10556_v25 = vpop.permute.xlu0 %10555 }
 0xab7   : > { %v10371_v41 = vrot.slane %v10369_v16, 4 }
 0xab9   : > { %v10372_v48 = vsel %vm21142_vm6, %v10370_v11, %v10371_v41  ;;  %v10375_v30 = vsel %vm10373_vm9, %v10369_v16, %v10371_v41  ;;  %vm21151_vm6 = vmmov %vm21143_vm1 }
 0xaba   : > { %v10374_v34 = vsel %vm10373_vm9, %v10367_v28, %v10372_v48  ;;  %10379 = vst.msk [vmem:[#allocation4 + $0x14] sm:$0xf] %vm10346_vm15, %v10375_v30  ;;  %v10401_v17 = vpop.permute.xlu1 %10400  ;;  %vm10535_vm9 = vcmask 900096  }
 0xabb   : > { %v10403_v36 = vrot.slane %v10401_v17, 4  ;;  %v13824_v46 = vcombine.low %v10341_v42, %v10374_v34  ;;  %v13825_v10 = vcombine.high %v10341_v42, %v10374_v34 }
 0xabd   : > { %v10404_v37 = vsel %vm21143_vm1, %v10402_v52, %v10403_v36  ;;  %v10407_v4 = vsel %vm21144_vm8, %v10401_v17, %v10403_v36  ;;  %10678 = vmatprep.subr.bf16.mxu0 %v13825_v10  ;;  %vm10665_vm8 = vcmask 588800  }
 0xabe   : > { %v10406_v44 = vsel %vm21145_vm14, %v10399_v56, %v10404_v37  ;;  %10411 = vst.msk [vmem:[#allocation4 + $0x20] sm:$0xf] %vm10346_vm15, %v10407_v4  ;;  %v10433_v60 = vpop.permute.xlu1 %10432  ;;  %10679 = vmatpush1.bf16.msra.mxu0 %v13824_v46  ;;  %vm21157_vm14 = vmmov %vm21148_vm10 }
 0xabf   : > { %v10435_v62 = vrot.slane %v10433_v60, 4 }
 0xac1   : > { %v10436_v53 = vsel %vm21146_vm4, %v10434_v63, %v10435_v62  ;;  %v10438_v43 = vsel %vm21147_vm13, %v10433_v60, %v10435_v62  ;;  %v16743_v39 = vld [vmem:[#allocation4 + $0x8] ss:$12 sps:$4 sm:$0xff]   ;;  %vm21158_vm4 = vmmov %vm21148_vm10  ;;  %vm10917_vm13 = vcmask 64512  }
 0xac2   : > { %v10437_v14 = vsel %vm21148_vm10, %v10431_v13, %v10436_v53  ;;  %10442 = vst.msk [vmem:[#allocation4 + $0x2c] sm:$0xf] %vm10346_vm15, %v10438_v43  ;;  %v10478_v19 = vpop.permute.xlu1 %10477  ;;  %15605 = vmatpush3.bf16.msra.mxu1 %v16743_v39  ;;  %vm11105_vm10 = vcmask 195712  }
 0xac3   : > { %v10480_v35 = vrot.slane %v10478_v19, 4  ;;  %10486 = vst.msk [vmem:[#allocation4 + $0x44] sm:$0xf] %vm10346_vm15, %v10478_v19  ;;  %v13827_v59 = vcombine.low %v10406_v44, %v10437_v14  ;;  %v13828_v18 = vcombine.high %v10406_v44, %v10437_v14  ;;  %15606 = vmatprep.subr.bf16.mxu1 %v20134_v29 }
 0xac5   : > { %v10481_v27 = vsel %vm21149_vm7, %v10479_v47, %v10480_v35  ;;  %10680 = vmatprep.subr.bf16.mxu0 %v13828_v18  ;;  %vm11207_vm7 = vcmask 261312  }
 0xac6   : > { %v10482_v0 = vsel %vm2126_vm5, %v10476_v61, %v10481_v27  ;;  %v10504_v58 = vpop.permute.xlu1 %10503  ;;  %10681 = vmatpush1.bf16.msra.mxu0 %v13827_v59 }
 0xac7   : > { %v10506_v57 = vrot.slane %v10504_v58, 4  ;;  %10513 = vst.msk [vmem:[#allocation4 + $0x50] sm:$0xf] %vm10346_vm15, %v10504_v58  ;;  %v13830_v45 = vcombine.low %v20395_v2, %v10482_v0  ;;  %v13831_v12 = vcombine.high %v20395_v2, %v10482_v0  ;;  %v10559_v2 = vrot.slane %v10556_v25, 4 }
 0xac9   : > { %v10507_v50 = vsel %vm21150_vm12, %v10505_v33, %v10506_v57  ;;  %v16744_v15 = vld [vmem:[#allocation4 + $0x20] ss:$12 sps:$4 sm:$0xff]   ;;  %10682 = vmatprep.subr.bf16.mxu0 %v13831_v12  ;;  %vm11301_vm12 = vcmask 326912  }
 0xaca   : > { %v10509_v26 = vsel %vm5589_vm11, %v10502_v31, %v10507_v50  ;;  %v10531_v3 = vpop.permute.xlu1 %10530  ;;  %10683 = vmatpush1.bf16.msra.mxu0 %v13830_v45  ;;  %15607 = vmatpush3.bf16.msra.mxu1 %v16744_v15  ;;  %v16745_v49 = vld [vmem:[#allocation4 + $0x38] ss:$12 sps:$4 sm:$0xff]   ;;  %vm21152_vm11 = vmmov %vm21143_vm1 }
 0xacb   : > { %v10533_v9 = vrot.slane %v10531_v3, 4  ;;  %10540 = vst.msk [vmem:[#allocation4 + $0x5c] sm:$0xf] %vm10346_vm15, %v10531_v3  ;;  %15608 = vmatprep.subr.bf16.mxu1 %v20134_v29 }
 0xacd   : > { %v10534_v6 = vsel %vm21151_vm6, %v10532_v22, %v10533_v9  ;;  %vm11489_vm6 = vcmask 458112  }
 0xace   : > { %v10536_v32 = vsel %vm10535_vm9, %v10529_v51, %v10534_v6  ;;  %v10558_v8 = vpop.permute.xlu1 %10557  ;;  %15609 = vmatpush3.bf16.msra.mxu1 %v16745_v49 }
 0xacf   : > { %v10560_v54 = vrot.slane %v10558_v8, 4  ;;  %10567 = vst.msk [vmem:[#allocation4 + $0x68] sm:$0xf] %vm10346_vm15, %v10558_v8  ;;  %v13833_v23 = vcombine.low %v10509_v26, %v10536_v32  ;;  %v13834_v40 = vcombine.high %v10509_v26, %v10536_v32  ;;  %15610 = vmatprep.subr.bf16.mxu1 %v20134_v29  ;;  %vm21153_vm15 = vmmov %vm21143_vm1 }
 0xad1   : > { %v10561_v1 = vsel %vm21152_vm11, %v10559_v2, %v10560_v54  ;;  %10684 = vmatprep.subr.bf16.mxu0 %v13834_v40  ;;  %vm11585_vm11 = vcmask 523712  }
 0xad2   : > { %v10563_v28 = vsel %vm6859_vm2, %v10556_v25, %v10561_v1  ;;  %v16746_v56 = vld [vmem:[#allocation4 + $0x50] ss:$12 sps:$4 sm:$0xff]   ;;  %10685 = vmatpush1.bf16.msra.mxu0 %v13833_v23  ;;  %vm21154_vm2 = vmmov %vm21143_vm1 }
 0xad3   : > { %v13837_v55 = vcombine.high %v10563_v28, %v10563_v28  ;;  %v13836_v20 = vcombine.low %v10563_v28, %v10563_v28  ;;  %15611 = vmatpush3.bf16.msra.mxu1 %v16746_v56  ;;  %v20537_v1 = vld [vmem:[#allocation6] sm:$0xff] }
 0xad4   : > { %15612 = vmatprep.subr.bf16.mxu1 %v20134_v29 }
 0xad5   : > { %13839 = vmatprep.subr.msk.bf16.mxu0 %vm21143_vm1, %v13837_v55  ;;  %v10670_v24 = vsel %vm21153_vm15, %v13836_v20, 0  ;;  %vm21159_vm1 = vcmask 523264  }
 0xad6   : > { %v16747_v5 = vld [vmem:[#allocation4 + $0x68] ss:$0 sps:$4 sm:$0xff]   ;;  %10687 = vmatpush1.bf16.msra.mxu0 %v10670_v24  ;;  %vm21160_vm15 = vmmov %vm21159_vm1 }
 0xad7   : > { %16367 = vmatprep.subr.msk.bf16.mxu0 %vm18850_vm3, %v16911_v21  ;;  %v10676_v13 = vsel %vm21154_vm2, %v16747_v5, 0  ;;  %vm21162_vm2 = vmmov %vm21159_vm1 }
 0xad8   : > { %15613 = vmatpush3.bf16.msra.mxu1 %v10676_v13 }
 0xad9   : > { %13840 = vmatmul.mubr.msk.bf16.vlgmr.msra.gmra.mrb[100].mxu0 %vm10665_vm8, %v16748_v38  ;;  %16375 = vmatprep.subr.msk.bf16.mxu1 %vm18850_vm3, %v16911_v21 }
 0xada   : > { %16369 = vmatpush3.bf16.msk.msra.mxu0 %vm18850_vm3, %v16911_v21 }
 0xadb   : > { %16371 = vmatprep.subr.msk.bf16.mxu0 %vm18850_vm3, %v16911_v21  ;;  %15615 = vmatmul.mubr.msk.bf16.vlgmr.msra.gmra.mrb[92].mxu1 %vm10665_vm8, %v16748_v38  ;;  %vm21161_vm8 = vmmov %vm21159_vm1 }
 0xadc   : > { %16377 = vmatpush3.bf16.msk.msra.mxu1 %vm18850_vm3, %v16911_v21 }
 0xadd   : > { %16383 = vmatprep.subr.msk.bf16.mxu1 %vm18850_vm3, %v16911_v21 }
 0xbac   : > { %v10712_v29 = vpop.f32.mrb[100].mxu0 }
 0xbad   : > { %v10714_v42 = vpop.f32.mrb[101].mxu0 }
 0xbae   : > { %10770 = vrot.lane.b32.xlu1 %v10714_v42, %s21139_s24  ;;  %v10716_v16 = vpop.f32.mrb[102].mxu0  ;;  %v10755_v11 = vpop.f32.mrb[92].mxu1 }
 0xbaf   : > { %v10718_v41 = vpop.f32.mrb[103].mxu0  ;;  %10772 = vrot.lane.b32.xlu0 %v10755_v11, %s21139_s24  ;;  %v15616_v48 = vpop.f32.mrb[93].mxu1 }
 0xbb0   : > { %v10758_v30 = vpop.f32.mrb[94].mxu1  ;;  %v16750_v48 = vld [vmem:[%s20975_s4 + $0x20] sm:$0xff]  }
 0xbb1   : > { %v15617_v61 = vpop.f32.mrb[95].mxu1 }
 0xbb2   : > { %10774 = vrot.lane.b32.xlu1 %v10716_v16, %s21139_s24  ;;  %v16751_v61 = vld [vmem:[%s20975_s4 + $0x8] sm:$0xff]  }
 0xbb3   : > { %10768 = vrot.lane.b32.xlu0 %v10712_v29, %s21139_s24 }
 0xbb6   : > { %10778 = vrot.lane.b32.xlu1 %v10758_v30, %s21139_s24 }
 0xbb7   : > { %10776 = vrot.lane.b32.xlu0 %v10718_v41, %s21139_s24  ;;  %s16966_s24 = smov 32  }
 0xc20   : > { %v10771_v34 = vpop.permute.xlu1 %10770 }
 0xc21   : > { %v10773_v17 = vpop.permute.xlu0 %10772 }
 0xc22   : > { %v10781_v52 = vsel %vm2126_vm5, %v10771_v34, %v10773_v17  ;;  %v10792_v43 = vmax.f32 %v10755_v11, %v10773_v17  ;;  %v16749_v11 = vld [vmem:[%s20975_s4] sm:$0xff]  }
 0xc23   : > { %v10791_v36 = vmax.f32 %v10714_v42, %v10781_v52 }
 0xc24   : > { %v10775_v46 = vpop.permute.xlu1 %10774 }
 0xc25   : > { %v10769_v10 = vpop.permute.xlu0 %10768  ;;  %10804 = vrot.lane.b32.xlu1 %v10791_v36, %s16963_s25 }
 0xc26   : > { %v10780_v37 = vsel %vm2126_vm5, %v10769_v10, %v10771_v34  ;;  %v16752_v34 = vld [vmem:[%s20975_s4 + $0x28] sm:$0xff]  }
 0xc27   : > { %v10790_v4 = vmax.f32 %v10712_v29, %v10780_v37 }
 0xc28   : > { %v10779_v60 = vpop.permute.xlu1 %10778 }
 0xc29   : > { %v10777_v44 = vpop.permute.xlu0 %10776  ;;  %10802 = vrot.lane.b32.xlu0 %v10790_v4, %s16963_s25  ;;  %v10795_v39 = vmax.f32 %v10758_v30, %v10779_v60 }
 0xc2a   : > { %v10782_v63 = vsel %vm2126_vm5, %v10775_v46, %v10777_v44  ;;  %v10783_v62 = vsel %vm2126_vm5, %v10777_v44, %v10779_v60  ;;  %vm10837_vm5 = vcmask 130048   ;;  %v16754_v46 = vld [vmem:[%s20975_s4 + $0x30] sm:$0xff]   ;;  %v16755_v60 = vld [vmem:[%s20975_s4 + $0x18] sm:$0xff]  }
 0xc2b   : > { %v10793_v31 = vmax.f32 %v10716_v16, %v10782_v63  ;;  %v10794_v53 = vmax.f32 %v10718_v41, %v10783_v62  ;;  %v16756_v63 = vld [vmem:[%s20975_s4 + $0x38] sm:$0xff]  }
 0xc2d   : > { %10808 = vrot.lane.b32.xlu0 %v10793_v31, %s16963_s25  ;;  %10810 = vrot.lane.b32.xlu1 %v10794_v53, %s16963_s25 }
 0xc31   : > { %10806 = vrot.lane.b32.xlu0 %v10792_v43, %s16963_s25  ;;  %10812 = vrot.lane.b32.xlu1 %v10795_v39, %s16963_s25  ;;  %s16969_s25 = smov 40  }
 0xc97   : > { %v10805_v14 = vpop.permute.xlu1 %10804 }
 0xc9b   : > { %v10803_v19 = vpop.permute.xlu0 %10802 }
 0xc9c   : > { %v10815_v47 = vsel %vm10535_vm9, %v10803_v19, %v10805_v14 }
 0xc9d   : > { %v10825_v35 = vmax.f32 %v10790_v4, %v10815_v47 }
 0xc9f   : > { %11110 = vrot.lane.b32.xlu1 %v10825_v35, %s21056_s20  ;;  %10833 = vrot.lane.b32.xlu0 %v10825_v35, %s21049_s10  ;;  %v10809_v59 = vpop.permute.xlu0 %10808  ;;  %v10811_v18 = vpop.permute.xlu1 %10810 }
 0xca0   : > { %v10817_v27 = vsel %vm10535_vm9, %v10809_v59, %v10811_v18 }
 0xca1   : > { %v10828_v51 = vmax.f32 %v10793_v31, %v10817_v27 }
 0xca3   : > { %10920 = vrot.lane.b32.xlu0 %v10825_v35, %s21132_s17  ;;  %v10807_v0 = vpop.permute.xlu0 %10806  ;;  %10835 = vrot.lane.b32.xlu1 %v10828_v51, %s21049_s10  ;;  %v10813_v33 = vpop.permute.xlu1 %10812  ;;  %s16965_s10 = smov 8  }
 0xca4   : > { %v10816_v58 = vsel %vm10535_vm9, %v10805_v14, %v10807_v0  ;;  %v10818_v45 = vsel %vm10535_vm9, %v10811_v18, %v10813_v33  ;;  %v10827_v50 = vmax.f32 %v10792_v43, %v10807_v0  ;;  %v10830_v15 = vmax.f32 %v10795_v39, %v10813_v33 }
 0xca5   : > { %v10826_v57 = vmax.f32 %v10791_v36, %v10816_v58  ;;  %v10829_v12 = vmax.f32 %v10794_v53, %v10818_v45  ;;  %v16753_v36 = vld [vmem:[%s20975_s4 + $0x10] sm:$0xff]   ;;  %vm11395_vm9 = vcmask 392512  }
 0xca7   : > { %11014 = vrot.lane.b32.xlu0 %v10825_v35, %s21124_s13  ;;  %10922 = vrot.lane.b32.xlu1 %v10828_v51, %s21132_s17  ;;  %s21156_s17 = smov 21  }
 0xcab   : > { %11112 = vrot.lane.b32.xlu0 %v10826_v57, %s21056_s20  ;;  %11016 = vrot.lane.b32.xlu1 %v10828_v51, %s21124_s13 }
 0xcaf   : > { %11210 = vrot.lane.b32.xlu0 %v10826_v57, %s21155_s22  ;;  %11116 = vrot.lane.b32.xlu1 %v10829_v12, %s21056_s20 }
 0xcb3   : > { %11304 = vrot.lane.b32.xlu0 %v10826_v57, %s21052_s23  ;;  %11212 = vrot.lane.b32.xlu1 %v10829_v12, %s21155_s22  ;;  %s16967_s22 = smov 24  }
 0xcb7   : > { %11114 = vrot.lane.b32.xlu0 %v10828_v51, %s21056_s20  ;;  %11306 = vrot.lane.b32.xlu1 %v10829_v12, %s21052_s23  ;;  %s16968_s23 = smov 48  }
 0xcbb   : > { %11398 = vrot.lane.b32.xlu0 %v10826_v57, %s21156_s17  ;;  %11400 = vrot.lane.b32.xlu1 %v10829_v12, %s21156_s17  ;;  %v16757_v12 = vld [vmem:[%s20975_s4 + $0x60] sm:$0xff]   ;;  %s296_s17 = sand.u32 1, %s16889_s28  }
 0xcbf   : > { %11494 = vrot.lane.b32.xlu0 %v10827_v50, %s21123_s12  ;;  %11496 = vrot.lane.b32.xlu1 %v10830_v15, %s21123_s12  ;;  %s16964_s12 = smov 16   ;;  %v16758_v15 = vld [vmem:[%s20975_s4 + $0x40] sm:$0xff]  }
 0xd11   : > { %v11111_v26 = vpop.permute.xlu1 %11110  ;;  %v10834_v3 = vpop.permute.xlu0 %10833 }
 0xd12   : > { %15622 = vmatprep.mubr.msk.f32.mxu0 %vm10837_vm5, %v10834_v3  ;;  %v16759_v3 = vld [vmem:[%s20975_s4 + $0x68] sm:$0xff]  }
 0xd15   : > { %v10921_v22 = vpop.permute.xlu0 %10920  ;;  %v10836_v9 = vpop.permute.xlu1 %10835 }
 0xd16   : > { %15623 = vmatmul.mubr.msk.f32.vlgmr.msra.gmra.mrb[98].mxu0 %vm10837_vm5, %v10836_v9  ;;  %v16761_v9 = vld [vmem:[%s20975_s4 + $0x70] sm:$0xff]  }
 0xd17   : > { %16373 = vmatpush3.bf16.msk.msra.mxu0 %vm18850_vm3, %v16911_v21  ;;  %15629 = vmatprep.mubr.msk.f32.mxu0 %vm10837_vm5, %v10921_v22  ;;  %v16760_v22 = vld [vmem:[%s20975_s4 + $0x48] sm:$0xff]  }
 0xd18   : > { %16379 = vmatprep.subr.msk.bf16.mxu0 %vm18850_vm3, %v16911_v21 }
 0xd19   : > { %v11015_v25 = vpop.permute.xlu0 %11014  ;;  %v10923_v6 = vpop.permute.xlu1 %10922 }
 0xd1a   : > { %15636 = vmatprep.mubr.msk.f32.mxu1 %vm10837_vm5, %v11015_v25  ;;  %15630 = vmatmul.mubr.msk.f32.vlgmr.msra.gmra.mrb[104].mxu0 %vm10837_vm5, %v10923_v6  ;;  %v16762_v25 = vld [vmem:[%s20975_s4 + $0x50] sm:$0xff]   ;;  %v16763_v6 = vld [vmem:[%s20975_s4 + $0x78] sm:$0xff]  }
 0xd1b   : > { %16381 = vmatpush3.bf16.msk.msra.mxu0 %vm18850_vm3, %v16911_v21 }
 0xd1c   : > { %16387 = vmatprep.subr.msk.bf16.mxu0 %vm18850_vm3, %v16911_v21 }
 0xd1d   : > { %v11113_v49 = vpop.permute.xlu0 %11112  ;;  %v11017_v32 = vpop.permute.xlu1 %11016 }
 0xd1e   : > { %v11118_v8 = vsel %vm21157_vm14, %v11111_v26, %v11113_v49  ;;  %15637 = vmatmul.mubr.msk.f32.vlgmr.msra.gmra.mrb[90].mxu1 %vm10837_vm5, %v11017_v32  ;;  %v16764_v49 = vld [vmem:[%s20975_s4 + $0x58] sm:$0xff]   ;;  %v16765_v32 = vld [vmem:[%s20975_s4 + $0xa0] sm:$0xff]   ;;  %vm21164_vm14 = vmmov %vm21159_vm1 }
 0xd1f   : > { %15643 = vmatprep.mubr.msk.f32.mxu0 %vm10837_vm5, %v11118_v8  ;;  %16385 = vmatpush3.bf16.msk.msra.mxu1 %vm18850_vm3, %v16911_v21 }
 0xd20   : > { %16391 = vmatprep.subr.msk.bf16.mxu1 %vm18850_vm3, %v16911_v21 }
 0xd21   : > { %v11211_v2 = vpop.permute.xlu0 %11210  ;;  %v11117_v54 = vpop.permute.xlu1 %11116 }
 0xd22   : > { %15650 = vmatprep.mubr.msk.f32.mxu1 %vm10837_vm5, %v11211_v2  ;;  %v16766_v2 = vld [vmem:[%s20975_s4 + $0x80] sm:$0xff]  }
 0xd25   : > { %v11305_v23 = vpop.permute.xlu0 %11304  ;;  %v11213_v40 = vpop.permute.xlu1 %11212 }
 0xd26   : > { %15651 = vmatmul.mubr.msk.f32.vlgmr.msra.gmra.mrb[96].mxu1 %vm10837_vm5, %v11213_v40  ;;  %v16768_v40 = vld [vmem:[%s20975_s4 + $0x88] sm:$0xff]  }
 0xd27   : > { %16393 = vmatpush3.bf16.msk.msra.mxu1 %vm18850_vm3, %v16911_v21 }
 0xd28   : > { %15674 = vmatprep.subr.bf16.mxu1 %v20537_v1 }
 0xd29   : > { %v11115_v28 = vpop.permute.xlu0 %11114  ;;  %v11307_v56 = vpop.permute.xlu1 %11306 }
 0xd2a   : > { %v11119_v55 = vsel %vm21158_vm4, %v11115_v28, %v11117_v54  ;;  %v16769_v28 = vld [vmem:[%s20975_s4 + $0xb0] sm:$0xff]   ;;  %vm21165_vm4 = vmmov %vm21159_vm1 }
 0xd2b   : > { %15644 = vmatmul.mubr.msk.f32.vlgmr.msra.gmra.mrb[106].mxu0 %vm10837_vm5, %v11119_v55  ;;  %v16771_v55 = vld [vmem:[%s20975_s4 + $0xb8] sm:$0xff]  }
 0xd2c   : > { %16389 = vmatpush3.bf16.msk.msra.mxu0 %vm18850_vm3, %v16911_v21  ;;  %15657 = vmatprep.mubr.msk.f32.mxu0 %vm10837_vm5, %v11305_v23  ;;  %v16767_v23 = vld [vmem:[%s20975_s4 + $0xa8] sm:$0xff]  }
 0xd2d   : > { %v11399_v20 = vpop.permute.xlu0 %11398  ;;  %v11401_v38 = vpop.permute.xlu1 %11400  ;;  %16395 = vmatprep.subr.msk.bf16.mxu0 %vm18850_vm3, %v16911_v21 }
 0xd2e   : > { %15664 = vmatprep.mubr.msk.f32.mxu1 %vm10837_vm5, %v11399_v20  ;;  %v16772_v20 = vld [vmem:[%s20975_s4 + $0x98] sm:$0xff]  }
 0xd2f   : > { %15658 = vmatmul.mubr.msk.f32.vlgmr.msra.gmra.mrb[108].mxu0 %vm10837_vm5, %v11307_v56  ;;  %15665 = vmatmul.mubr.msk.f32.vlgmr.msra.gmra.mrb[98].mxu1 %vm10837_vm5, %v11401_v38  ;;  %v16770_v56 = vld [vmem:[%s20975_s4 + $0x90] sm:$0xff]   ;;  %v16773_v38 = vld [vmem:[%s20975_s4 + $0xe0] sm:$0xff]  }
 0xd30   : > { %16397 = vmatpush3.bf16.msk.msra.mxu0 %vm18850_vm3, %v16911_v21  ;;  %15682 = vmatprep.mubr.msk.bf16.mxu1 %vm21112_vm0, %v20537_v1  ;;  %vm11011_vm3 = vcmask 130112  }
 0xd31   : > { %v11495_v24 = vpop.permute.xlu0 %11494  ;;  %v11497_v5 = vpop.permute.xlu1 %11496  ;;  %15686 = vmatprep.subr.bf16.mxu0 %v20537_v1  ;;  %15675 = vmatpush3.bf16.msra.mxu1 %v16750_v48 }
 0xd32   : > { %15671 = vmatprep.mubr.msk.f32.mxu0 %vm10837_vm5, %v11495_v24  ;;  %15676 = vmatprep.subr.bf16.mxu1 %v20537_v1 }
 0xd33   : > { %15672 = vmatmul.mubr.msk.f32.vlgmr.msra.gmra.mrb[110].mxu0 %vm10837_vm5, %v11497_v5  ;;  %v16774_v5 = vld [vmem:[%s20975_s4 + $0xc0] sm:$0xff]   ;;  %vm21163_vm5 = vmmov %vm21159_vm1 }
 0xd34   : > { %15694 = vmatprep.mubr.msk.bf16.mxu0 %vm21112_vm0, %v20537_v1  ;;  %15687 = vmatpush3.bf16.msra.mxu0 %v16749_v11  ;;  %v16780_v11 = vld [vmem:[%s20975_s4 + $0xd8] sm:$0xff]  }
 0xd35   : > { %15688 = vmatprep.subr.bf16.mxu0 %v20537_v1  ;;  %15677 = vmatpush3.bf16.msra.mxu1 %v16752_v34  ;;  %v16783_v34 = vld [vmem:[%s20975_s4 + $0x128] sm:$0xff]  }
 0xd36   : > { %15678 = vmatprep.subr.bf16.mxu1 %v20537_v1 }
 0xd38   : > { %15689 = vmatpush3.bf16.msra.mxu0 %v16751_v61 }
 0xd39   : > { %15690 = vmatprep.subr.bf16.mxu0 %v20537_v1  ;;  %15679 = vmatpush3.bf16.msra.mxu1 %v16754_v46  ;;  %v16787_v46 = vld [vmem:[%s20975_s4 + $0x138] sm:$0xff]  }
 0xd3a   : > { %15680 = vmatprep.subr.bf16.mxu1 %v20537_v1 }
 0xd3c   : > { %15691 = vmatpush3.bf16.msra.mxu0 %v16753_v36  ;;  %v16786_v36 = vld [vmem:[%s20975_s4 + $0x110] sm:$0xff]  }
 0xd3d   : > { %15692 = vmatprep.subr.bf16.mxu0 %v20537_v1  ;;  %15681 = vmatpush3.bf16.msra.mxu1 %v16756_v63  ;;  %v16791_v63 = vld [vmem:[%s20975_s4 + $0x168] sm:$0xff]  }
 0xd3e   : > { %15698 = vmatprep.subr.bf16.mxu1 %v20537_v1 }
 0xd40   : > { %15693 = vmatpush3.bf16.msra.mxu0 %v16755_v60 }
 0xd41   : > { %15710 = vmatprep.subr.bf16.mxu0 %v20537_v1 }
 0xde9   : > { %v15624_v13 = vpop.f32.mrb[98].mxu0 }
 0xdea   : > { %10919 = vst.msk [vmem:[#allocation7 + $0x8] sm:$0xff] %vm10917_vm13, %v15624_v13  ;;  %v10908_v29 = vpop.f32.mrb[99].mxu0 }
 0xdeb   : > { %10918 = vst.msk [vmem:[#allocation7] sm:$0xff] %vm10917_vm13, %v10908_v29  ;;  %v16775_v29 = vld [vmem:[%s20975_s4 + $0xe8] sm:$0xff]   ;;  %vm21166_vm13 = vmmov %vm21159_vm1 }
 0xded   : > { %v15631_v7 = vpop.f32.mrb[104].mxu0 }
 0xdee   : > { %v10994_v21 = vpop.f32.mrb[105].mxu0 }
 0xdf1   : > { %v15638_v42 = vpop.f32.mrb[90].mxu1 }
 0xdf2   : > { %11101 = vrot.lane.b32.xlu1 %v15638_v42, %s16964_s12  ;;  %v11088_v16 = vpop.f32.mrb[91].mxu1  ;;  %v16778_v42 = vld [vmem:[%s20975_s4 + $0xd0] sm:$0xff]  }
 0xdf3   : > { %11099 = vrot.lane.b32.xlu0 %v11088_v16, %s16964_s12  ;;  %v16779_v16 = vld [vmem:[%s20975_s4 + $0xf8] sm:$0xff]   ;;  %s14082_s12 = sshll.u32 %s17038_s9, 4  ;;  %s16971_s9 = smov [#allocation8]  }
 0xdf4   : > { %s20928_s18 = scalar_lea.hbm %s20979_s8, %s14082_s12 }
 0xdf6   : > { %11007 = vrot.lane.b32.xlu1 %v15631_v7, %s16965_s10  ;;  %v16776_v7 = vld [vmem:[%s20975_s4 + $0xc8] sm:$0xff]  }
 0xdf7   : > { %11005 = vrot.lane.b32.xlu0 %v10994_v21, %s16965_s10  ;;  %v16777_v21 = vld [vmem:[%s20975_s4 + $0xf0] sm:$0xff]   ;;  %s297_s10 = scalar_lea.vmem [#allocation8], %s296_s17 }
 0xdf8   : > { %s12981_s20 = sshll.u32 %s297_s10, 4  ;;  %s20930_s20 = int_to_ptr.vmem [resolvable:$true] %s12981_s20 }
 0xdf9   : > { %v15652_v41 = vpop.f32.mrb[96].mxu1  ;;  %s16835_s19 = scalar_lea.vmem %s20930_s20, 16 }
 0xdfa   : > { %11297 = vrot.lane.b32.xlu1 %v15652_v41, %s16966_s24  ;;  %v11284_v30 = vpop.f32.mrb[97].mxu1  ;;  %v16781_v41 = vld [vmem:[%s20975_s4 + $0x120] sm:$0xff]   ;;  %p16836_p11 = scmp.ne.s32.totalorder %s20930_s20, %s16835_s19 }
 0xdfb   : > { %11295 = vrot.lane.b32.xlu0 %v11284_v30, %s16966_s24  ;;  %v16782_v30 = vld [vmem:[%s20975_s4 + $0x100] sm:$0xff]   ;;  %s12969_s24 = scalar_lea.sflag [#allocation9], %s296_s17 }
 0xdfc   : > { %p16837_p12 = pnand %p16836_p11, %p17055_p5 }
 0xdfe   : > { %v15645_v17 = vpop.f32.mrb[106].mxu0  ;;  %p16838_p13 = pneg %p16837_p12 }
 0xdff   : > { %v11190_v52 = vpop.f32.mrb[107].mxu0  ;;  %11203 = vrot.lane.b32.xlu1 %v15645_v17, %s16967_s22  ;;  %v16784_v17 = vld [vmem:[%s20975_s4 + $0x108] sm:$0xff]  }
 0xe00   : > { %11201 = vrot.lane.b32.xlu0 %v11190_v52, %s16967_s22  ;;  %v16785_v52 = vld [vmem:[%s20975_s4 + $0x130] sm:$0xff]  }
 0xe02   : > { %v15659_v10 = vpop.f32.mrb[108].mxu0  ;;  %v15666_v37 = vpop.f32.mrb[98].mxu1 }
 0xe03   : > { %v11378_v4 = vpop.f32.mrb[109].mxu0  ;;  %11485 = vrot.lane.b32.xlu1 %v15666_v37, %s16968_s23  ;;  %v11472_v44 = vpop.f32.mrb[99].mxu1  ;;  %v16789_v37 = vld [vmem:[%s20975_s4 + $0x160] sm:$0xff]  }
 0xe04   : > { %11483 = vrot.lane.b32.xlu0 %v11472_v44, %s16968_s23  ;;  %v16790_v44 = vld [vmem:[%s20975_s4 + $0x140] sm:$0xff]  }
 0xe06   : > { %v15673_v62 = vpop.f32.mrb[110].mxu0 }
 0xe07   : > { %11391 = vrot.lane.b32.xlu1 %v15659_v10, %s16969_s25  ;;  %v11568_v31 = vpop.f32.mrb[111].mxu0  ;;  %v16788_v10 = vld [vmem:[%s20975_s4 + $0x118] sm:$0xff]  }
 0xe08   : > { %11389 = vrot.lane.b32.xlu0 %v11378_v4, %s16969_s25  ;;  %s16839_s25 = sshll.u32 %s16971_s9, 4  ;;  %s16840_s25 = int_to_ptr.vmem [resolvable:$false] %s16839_s25 }
 0xe09   : > { %p16842_p0 = scmp.lt.s32.totalorder %s20930_s20, %s16840_s25 }
 0xe0b   : > { %11581 = vrot.lane.b32.xlu1 %v15673_v62, %s16970_s21  ;;  %v16792_v62 = vld [vmem:[%s20975_s4 + $0x148] sm:$0xff]  }
 0xe0c   : > { %11579 = vrot.lane.b32.xlu0 %v11568_v31, %s16970_s21  ;;  %v16793_v31 = vld [vmem:[%s20975_s4 + $0x170] sm:$0xff]   ;;  %s16841_s21 = scalar_lea.vmem %s16840_s25, 32 }
 0xe0d   : > { %p16843_p1 = scmp.lt.s32.totalorder %s16841_s21, %s16835_s19 }
 0xe0f   : > { %p16844_p2 = por %p16843_p1, %p16842_p0 }
 0xe11   : > { %p16845_p3 = pnand %p16844_p2, %p16838_p13 }
 0xe64   : > { %v11102_v53 = vpop.permute.xlu1 %11101 }
 0xe65   : > { %v11100_v43 = vpop.permute.xlu0 %11099 }
 0xe68   : > { %v11008_v39 = vpop.permute.xlu1 %11007 }
 0xe69   : > { %11013 = vst.msk [vmem:[#allocation7 + $0x8] sm:$0xff] %vm11011_vm3, %v11008_v39  ;;  %v11006_v14 = vpop.permute.xlu0 %11005  ;;  %v16796_v39 = vld [vmem:[%s20975_s4 + $0x158] sm:$0xff]  }
 0xe6a   : > { %11012 = vst.msk [vmem:[#allocation7] sm:$0xff] %vm11011_vm3, %v11006_v14  ;;  %vm21167_vm3 = vmmov %vm21159_vm1  ;;  %v16797_v14 = vld [vmem:[%s20975_s4 + $0x1a0] sm:$0xff]  }
 0xe6b   : > { %11107 = vst.msk [vmem:[#allocation7 + $0x8] sm:$0xff] %vm11105_vm10, %v11102_v53  ;;  %11106 = vst.msk [vmem:[#allocation7] sm:$0xff] %vm11105_vm10, %v11100_v43  ;;  %v16794_v53 = vld [vmem:[%s20975_s4 + $0x150] sm:$0xff]   ;;  %v16795_v43 = vld [vmem:[%s20975_s4 + $0x178] sm:$0xff]  }
 0xe6c   : > { %v11298_v19 = vpop.permute.xlu1 %11297  ;;  %vm21168_vm10 = vmmov %vm21159_vm1 }
 0xe6d   : > { %v11296_v47 = vpop.permute.xlu0 %11295 }
 0xe71   : > { %v11204_v35 = vpop.permute.xlu1 %11203 }
 0xe72   : > { %11209 = vst.msk [vmem:[#allocation7 + $0x8] sm:$0xff] %vm11207_vm7, %v11204_v35  ;;  %v11202_v59 = vpop.permute.xlu0 %11201 }
 0xe73   : > { %11208 = vst.msk [vmem:[#allocation7] sm:$0xff] %vm11207_vm7, %v11202_v59  ;;  %vm21169_vm7 = vmmov %vm21159_vm1  ;;  %v16799_v59 = vld [vmem:[%s20975_s4 + $0x1a8] sm:$0xff]  }
 0xe74   : > { %11303 = vst.msk [vmem:[#allocation7 + $0x8] sm:$0xff] %vm11301_vm12, %v11298_v19  ;;  %11302 = vst.msk [vmem:[#allocation7] sm:$0xff] %vm11301_vm12, %v11296_v47  ;;  %v16798_v47 = vld [vmem:[%s20975_s4 + $0x180] sm:$0xff]  }
 0xe75   : > { %v11486_v18 = vpop.permute.xlu1 %11485  ;;  %vm21170_vm12 = vmmov %vm21159_vm1 }
 0xe76   : > { %v11484_v27 = vpop.permute.xlu0 %11483 }
 0xe79   : > { %v11392_v51 = vpop.permute.xlu1 %11391 }
 0xe7a   : > { %11397 = vst.msk [vmem:[#allocation7 + $0x8] sm:$0xff] %vm11395_vm9, %v11392_v51  ;;  %v11390_v0 = vpop.permute.xlu0 %11389  ;;  %v16802_v51 = vld [vmem:[%s20975_s4 + $0x190] sm:$0xff]  }
 0xe7b   : > { %11396 = vst.msk [vmem:[#allocation7] sm:$0xff] %vm11395_vm9, %v11390_v0  ;;  %v16803_v0 = vld [vmem:[%s20975_s4 + $0x1b8] sm:$0xff]   ;;  %vm21171_vm9 = vmmov %vm21159_vm1 }
 0xe7c   : > { %11491 = vst.msk [vmem:[#allocation7 + $0x8] sm:$0xff] %vm11489_vm6, %v11486_v18  ;;  %11490 = vst.msk [vmem:[#allocation7] sm:$0xff] %vm11489_vm6, %v11484_v27  ;;  %v16800_v18 = vld [vmem:[%s20975_s4 + $0x188] sm:$0xff]   ;;  %v16801_v27 = vld [vmem:[%s20975_s4 + $0x1b0] sm:$0xff]  }
 0xe7d   : > { %v11582_v58 = vpop.permute.xlu1 %11581  ;;  %vm21172_vm6 = vmmov %vm21159_vm1 }
 0xe7e   : > { %11587 = vst.msk [vmem:[#allocation7 + $0x8] sm:$0xff] %vm11585_vm11, %v11582_v58  ;;  %v11580_v33 = vpop.permute.xlu0 %11579  ;;  %v16804_v58 = vld [vmem:[%s20975_s4 + $0x198] sm:$0xff]  }
 0xe7f   : > { %11586 = vst.msk [vmem:[#allocation7] sm:$0xff] %vm11585_vm11, %v11580_v33  ;;  %v16805_v33 = vld [vmem:[%s20975_s4 + $0x1e0] sm:$0xff]   ;;  %vm21173_vm11 = vmmov %vm21159_vm1 }
 0xe85   : > { %v11589_v57 = vld [vmem:[#allocation7 + $0x8] sm:$0xff] }
 0xe86   : > { %v11588_v45 = vld [vmem:[#allocation7] sm:$0xff] }
 0xe87   : > { %v20597_v50 = vpack.c.bf16 %v11589_v57, %v11588_v45  ;;  %v16806_v45 = vld [vmem:[%s20975_s4 + $0x1c0] sm:$0xff]  }
 0xe89   : > { %15695 = vmatmul.mubr.msk.bf16.vlgmr.msra.gmra.mrb[112].mxu0 %vm21159_vm1, %v20597_v50  ;;  %v20605_v26 = vshrl.u32 %v20597_v50, 16  ;;  %v11754_v54 = vrot.slane %v20597_v50, 1  ;;  %v11910_v13 = vrot.slane %v20597_v50, 2  ;;  %v12066_v61 = vrot.slane %v20597_v50, 3 }
 0xe8a   : > { %15711 = vmatpush3.bf16.msra.mxu0 %v16757_v12  ;;  %15718 = vmatprep.mubr.msk.bf16.mxu0 %vm21112_vm0, %v20537_v1  ;;  %v12222_v60 = vrot.slane %v20597_v50, 4  ;;  %v12378_v35 = vrot.slane %v20597_v50, 5  ;;  %v12534_v12 = vrot.slane %v20597_v50, 6 }
 0xe8b   : > { %15683 = vmatmul.mubr.msk.bf16.vlgmr.msra.gmra.mrb[100].mxu1 %vm21160_vm15, %v20605_v26  ;;  %15712 = vmatprep.subr.bf16.mxu0 %v20537_v1  ;;  %v11832_v8 = vrot.slane %v20605_v26, 1  ;;  %v11988_v24 = vrot.slane %v20605_v26, 2  ;;  %v12144_v48 = vrot.slane %v20605_v26, 3  ;;  %v12300_v4 = vrot.slane %v20605_v26, 4 }
 0xe8c   : > { %15699 = vmatpush3.bf16.msra.mxu1 %v16758_v15  ;;  %15706 = vmatprep.mubr.msk.bf16.mxu1 %vm21112_vm0, %v20537_v1  ;;  %v12456_v19 = vrot.slane %v20605_v26, 5  ;;  %v12612_v57 = vrot.slane %v20605_v26, 6  ;;  %v16807_v15 = vld [vmem:[%s20975_s4 + $0x1e8] sm:$0xff]   ;;  %vm12955_vm15 = vcmask 8192  }
 0xe8d   : > { %15700 = vmatprep.subr.bf16.mxu1 %v20537_v1 }
 0xe8e   : > { %15713 = vmatpush3.bf16.msra.mxu0 %v16759_v3  ;;  %v16808_v3 = vld [vmem:[%s20975_s4 + $0x1c8] sm:$0xff]  }
 0xe8f   : > { %15714 = vmatprep.subr.bf16.mxu0 %v20537_v1 }
 0xe90   : > { %15701 = vmatpush3.bf16.msra.mxu1 %v16760_v22  ;;  %v16809_v22 = vld [vmem:[%s20975_s4 + $0x1f0] sm:$0xff]  }
 0xe91   : > { %15702 = vmatprep.subr.bf16.mxu1 %v20537_v1 }
 0xe92   : > { %15715 = vmatpush3.bf16.msra.mxu0 %v16761_v9  ;;  %v16810_v9 = vld [vmem:[%s20975_s4 + $0x1d0] sm:$0xff]  }
 0xe93   : > { %15716 = vmatprep.subr.bf16.mxu0 %v20537_v1 }
 0xe94   : > { %15703 = vmatpush3.bf16.msra.mxu1 %v16762_v25  ;;  %v16811_v25 = vld [vmem:[%s20975_s4 + $0x1f8] sm:$0xff]  }
 0xe95   : > { %15704 = vmatprep.subr.bf16.mxu1 %v20537_v1 }
 0xe96   : > { %15717 = vmatpush3.bf16.msra.mxu0 %v16763_v6  ;;  %v16812_v6 = vld [vmem:[%s20975_s4 + $0x1d8] sm:$0xff]  }
 0xe97   : > { %15734 = vmatprep.subr.bf16.mxu0 %v20537_v1 }
 0xe98   : > { %15705 = vmatpush3.bf16.msra.mxu1 %v16764_v49  ;;  %v12768_v49 = vrot.slane %v20605_v26, 7  ;;  %v16814_v26 = vld [vmem:[%s20977_s6 + $0x8] sm:$0xff]  }
 0xe99   : > { %15719 = vmatmul.mubr.msk.bf16.vlgmr.msra.gmra.mrb[116].mxu0 %vm21161_vm8, %v11832_v8  ;;  %15722 = vmatprep.subr.bf16.mxu1 %v20537_v1  ;;  %v16813_v8 = vld [vmem:[%s20977_s6] sm:$0xff]  }
 0xe9a   : > { %15735 = vmatpush3.bf16.msra.mxu0 %v16765_v32  ;;  %15742 = vmatprep.mubr.msk.bf16.mxu0 %vm21112_vm0, %v20537_v1  ;;  %v12690_v32 = vrot.slane %v20597_v50, 7 }
 0xe9b   : > { %15707 = vmatmul.mubr.msk.bf16.vlgmr.msra.gmra.mrb[104].mxu1 %vm21162_vm2, %v11754_v54  ;;  %15736 = vmatprep.subr.bf16.mxu0 %v20537_v1 }
 0xe9c   : > { %15723 = vmatpush3.bf16.msra.mxu1 %v16766_v2  ;;  %15730 = vmatprep.mubr.msk.bf16.mxu1 %vm21112_vm0, %v20537_v1 }
 0xe9d   : > { %15724 = vmatprep.subr.bf16.mxu1 %v20537_v1 }
 0xe9e   : > { %15737 = vmatpush3.bf16.msra.mxu0 %v16767_v23 }
 0xe9f   : > { %15738 = vmatprep.subr.bf16.mxu0 %v20537_v1 }
 0xea0   : > { %15725 = vmatpush3.bf16.msra.mxu1 %v16768_v40 }
 0xea1   : > { %15726 = vmatprep.subr.bf16.mxu1 %v20537_v1 }
 0xea2   : > { %15739 = vmatpush3.bf16.msra.mxu0 %v16769_v28 }
 0xea3   : > { %15740 = vmatprep.subr.bf16.mxu0 %v20537_v1 }
 0xea4   : > { %15727 = vmatpush3.bf16.msra.mxu1 %v16770_v56 }
 0xea5   : > { %15728 = vmatprep.subr.bf16.mxu1 %v20537_v1 }
 0xea6   : > { %15741 = vmatpush3.bf16.msra.mxu0 %v16771_v55  ;;  %v16815_v55 = vld [vmem:[%s20977_s6 + $0x10] sm:$0xff]  }
 0xea7   : > { %15758 = vmatprep.subr.bf16.mxu0 %v20537_v1 }
 0xea8   : > { %15729 = vmatpush3.bf16.msra.mxu1 %v16772_v20 }
 0xea9   : > { %15743 = vmatmul.mubr.msk.bf16.vlgmr.msra.gmra.mrb[120].mxu0 %vm21163_vm5, %v11988_v24  ;;  %15746 = vmatprep.subr.bf16.mxu1 %v20537_v1  ;;  %v16816_v24 = vld [vmem:[%s20977_s6 + $0x18] sm:$0xff]  }
 0xeaa   : > { %15759 = vmatpush3.bf16.msra.mxu0 %v16773_v38  ;;  %15766 = vmatprep.mubr.msk.bf16.mxu0 %vm21112_vm0, %v20537_v1 }
 0xeab   : > { %15731 = vmatmul.mubr.msk.bf16.vlgmr.msra.gmra.mrb[108].mxu1 %vm21164_vm14, %v11910_v13  ;;  %15760 = vmatprep.subr.bf16.mxu0 %v20537_v1  ;;  %v16818_v13 = vld [vmem:[%s20977_s6 + $0x28] sm:$0xff]  }
 0xeac   : > { %15747 = vmatpush3.bf16.msra.mxu1 %v16774_v5  ;;  %15754 = vmatprep.mubr.msk.bf16.mxu1 %vm21112_vm0, %v20537_v1  ;;  %v16817_v5 = vld [vmem:[%s20977_s6 + $0x20] sm:$0xff]  }
 0xead   : > { %15748 = vmatprep.subr.bf16.mxu1 %v20537_v1 }
 0xeae   : > { %15761 = vmatpush3.bf16.msra.mxu0 %v16775_v29 }
 0xeaf   : > { %15762 = vmatprep.subr.bf16.mxu0 %v20537_v1 }
 0xeb0   : > { %15749 = vmatpush3.bf16.msra.mxu1 %v16776_v7 }
 0xeb1   : > { %15750 = vmatprep.subr.bf16.mxu1 %v20537_v1 }
 0xeb2   : > { %15763 = vmatpush3.bf16.msra.mxu0 %v16777_v21  ;;  %v16819_v21 = vld [vmem:[%s20977_s6 + $0x30] sm:$0xff]  }
 0xeb3   : > { %15764 = vmatprep.subr.bf16.mxu0 %v20537_v1 }
 0xeb4   : > { %15751 = vmatpush3.bf16.msra.mxu1 %v16778_v42 }
 0xeb5   : > { %15752 = vmatprep.subr.bf16.mxu1 %v20537_v1 }
 0xeb6   : > { %15765 = vmatpush3.bf16.msra.mxu0 %v16779_v16 }
 0xeb7   : > { %15782 = vmatprep.subr.bf16.mxu0 %v20537_v1 }
 0xeb8   : > { %15753 = vmatpush3.bf16.msra.mxu1 %v16780_v11 }
 0xeb9   : > { %15767 = vmatmul.mubr.msk.bf16.vlgmr.msra.gmra.mrb[124].mxu0 %vm21165_vm4, %v12144_v48  ;;  %15770 = vmatprep.subr.bf16.mxu1 %v20537_v1 }
 0xeba   : > { %15783 = vmatpush3.bf16.msra.mxu0 %v16781_v41  ;;  %15790 = vmatprep.mubr.msk.bf16.mxu0 %vm21112_vm0, %v20537_v1 }
 0xebb   : > { %15755 = vmatmul.mubr.msk.bf16.vlgmr.msra.gmra.mrb[112].mxu1 %vm21166_vm13, %v12066_v61  ;;  %15784 = vmatprep.subr.bf16.mxu0 %v20537_v1 }
 0xebc   : > { %15771 = vmatpush3.bf16.msra.mxu1 %v16782_v30  ;;  %15778 = vmatprep.mubr.msk.bf16.mxu1 %vm21112_vm0, %v20537_v1 }
 0xebd   : > { %15772 = vmatprep.subr.bf16.mxu1 %v20537_v1 }
 0xebe   : > { %15785 = vmatpush3.bf16.msra.mxu0 %v16783_v34 }
 0xebf   : > { %15786 = vmatprep.subr.bf16.mxu0 %v20537_v1 }
 0xec0   : > { %15773 = vmatpush3.bf16.msra.mxu1 %v16784_v17  ;;  %v16820_v17 = vld [vmem:[%s20977_s6 + $0x38] sm:$0xff]  }
 0xec1   : > { %15774 = vmatprep.subr.bf16.mxu1 %v20537_v1 }
 0xec2   : > { %15787 = vmatpush3.bf16.msra.mxu0 %v16785_v52 }
 0xec3   : > { %15788 = vmatprep.subr.bf16.mxu0 %v20537_v1 }
 0xec4   : > { %15775 = vmatpush3.bf16.msra.mxu1 %v16786_v36 }
 0xec5   : > { %15776 = vmatprep.subr.bf16.mxu1 %v20537_v1 }
 0xec6   : > { %15789 = vmatpush3.bf16.msra.mxu0 %v16787_v46 }
 0xec7   : > { %15806 = vmatprep.subr.bf16.mxu0 %v20537_v1 }
 0xec8   : > { %15777 = vmatpush3.bf16.msra.mxu1 %v16788_v10 }
 0xec9   : > { %15791 = vmatmul.mubr.msk.bf16.vlgmr.msra.gmra.mrb[128].mxu0 %vm21167_vm3, %v12300_v4  ;;  %15794 = vmatprep.subr.bf16.mxu1 %v20537_v1 }
 0xeca   : > { %15807 = vmatpush3.bf16.msra.mxu0 %v16789_v37  ;;  %15814 = vmatprep.mubr.msk.bf16.mxu0 %vm21112_vm0, %v20537_v1 }
 0xecb   : > { %15779 = vmatmul.mubr.msk.bf16.vlgmr.msra.gmra.mrb[116].mxu1 %vm21168_vm10, %v12222_v60  ;;  %15808 = vmatprep.subr.bf16.mxu0 %v20537_v1 }
 0xecc   : > { %15795 = vmatpush3.bf16.msra.mxu1 %v16790_v44  ;;  %15802 = vmatprep.mubr.msk.bf16.mxu1 %vm21112_vm0, %v20537_v1 }
 0xecd   : > { %15796 = vmatprep.subr.bf16.mxu1 %v20537_v1 }
 0xece   : > { %15809 = vmatpush3.bf16.msra.mxu0 %v16791_v63 }
 0xecf   : > { %15810 = vmatprep.subr.bf16.mxu0 %v20537_v1 }
 0xed0   : > { %15797 = vmatpush3.bf16.msra.mxu1 %v16792_v62 }
 0xed1   : > { %15798 = vmatprep.subr.bf16.mxu1 %v20537_v1 }
 0xed2   : > { %15811 = vmatpush3.bf16.msra.mxu0 %v16793_v31 }
 0xed3   : > { %15812 = vmatprep.subr.bf16.mxu0 %v20537_v1 }
 0xed4   : > { %15799 = vmatpush3.bf16.msra.mxu1 %v16794_v53 }
 0xed5   : > { %15800 = vmatprep.subr.bf16.mxu1 %v20537_v1 }
 0xed6   : > { %15813 = vmatpush3.bf16.msra.mxu0 %v16795_v43 }
 0xed7   : > { %15830 = vmatprep.subr.bf16.mxu0 %v20537_v1 }
 0xed8   : > { %15801 = vmatpush3.bf16.msra.mxu1 %v16796_v39 }
 0xed9   : > { %15815 = vmatmul.mubr.msk.bf16.vlgmr.msra.gmra.mrb[132].mxu0 %vm21169_vm7, %v12456_v19  ;;  %15818 = vmatprep.subr.bf16.mxu1 %v20537_v1 }
 0xeda   : > { %15831 = vmatpush3.bf16.msra.mxu0 %v16797_v14  ;;  %15838 = vmatprep.mubr.msk.bf16.mxu0 %vm21112_vm0, %v20537_v1 }
 0xedb   : > { %15803 = vmatmul.mubr.msk.bf16.vlgmr.msra.gmra.mrb[120].mxu1 %vm21170_vm12, %v12378_v35  ;;  %15832 = vmatprep.subr.bf16.mxu0 %v20537_v1 }
 0xedc   : > { %15819 = vmatpush3.bf16.msra.mxu1 %v16798_v47  ;;  %15826 = vmatprep.mubr.msk.bf16.mxu1 %vm21112_vm0, %v20537_v1 }
 0xedd   : > { %15820 = vmatprep.subr.bf16.mxu1 %v20537_v1 }
 0xede   : > { %15833 = vmatpush3.bf16.msra.mxu0 %v16799_v59 }
 0xedf   : > { %15834 = vmatprep.subr.bf16.mxu0 %v20537_v1 }
 0xee0   : > { %15821 = vmatpush3.bf16.msra.mxu1 %v16800_v18 }
 0xee1   : > { %15822 = vmatprep.subr.bf16.mxu1 %v20537_v1 }
 0xee2   : > { %15835 = vmatpush3.bf16.msra.mxu0 %v16801_v27 }
 0xee3   : > { %15836 = vmatprep.subr.bf16.mxu0 %v20537_v1 }
 0xee4   : > { %15823 = vmatpush3.bf16.msra.mxu1 %v16802_v51 }
 0xee5   : > { %15824 = vmatprep.subr.bf16.mxu1 %v20537_v1 }
 0xee6   : > { %15837 = vmatpush3.bf16.msra.mxu0 %v16803_v0 }
 0xee7   : > { %15854 = vmatprep.subr.bf16.mxu0 %v20537_v1 }
 0xee8   : > { %15825 = vmatpush3.bf16.msra.mxu1 %v16804_v58 }
 0xee9   : > { %15839 = vmatmul.mubr.msk.bf16.vlgmr.msra.gmra.mrb[136].mxu0 %vm21171_vm9, %v12612_v57  ;;  %15842 = vmatprep.subr.bf16.mxu1 %v20537_v1 }
 0xeea   : > { %15855 = vmatpush3.bf16.msra.mxu0 %v16805_v33  ;;  %15862 = vmatprep.mubr.msk.bf16.mxu0 %vm21112_vm0, %v20537_v1 }
 0xeeb   : > { %15827 = vmatmul.mubr.msk.bf16.vlgmr.msra.gmra.mrb[124].mxu1 %vm21172_vm6, %v12534_v12  ;;  %15856 = vmatprep.subr.bf16.mxu0 %v20537_v1 }
 0xeec   : > { %15843 = vmatpush3.bf16.msra.mxu1 %v16806_v45  ;;  %15850 = vmatprep.mubr.msk.bf16.mxu1 %vm21112_vm0, %v20537_v1 }
 0xeed   : > { %15844 = vmatprep.subr.bf16.mxu1 %v20537_v1 }
 0xeee   : > { %15857 = vmatpush3.bf16.msra.mxu0 %v16807_v15 }
 0xeef   : > { %15858 = vmatprep.subr.bf16.mxu0 %v20537_v1 }
 0xef0   : > { %15845 = vmatpush3.bf16.msra.mxu1 %v16808_v3 }
 0xef1   : > { %15846 = vmatprep.subr.bf16.mxu1 %v20537_v1 }
 0xef2   : > { %15859 = vmatpush3.bf16.msra.mxu0 %v16809_v22 }
 0xef3   : > { %15860 = vmatprep.subr.bf16.mxu0 %v20537_v1 }
 0xef4   : > { %15847 = vmatpush3.bf16.msra.mxu1 %v16810_v9 }
 0xef5   : > { %15848 = vmatprep.subr.bf16.mxu1 %v20537_v1 }
 0xef6   : > { %15861 = vmatpush3.bf16.msra.mxu0 %v16811_v25 }
 0xef8   : > { %15849 = vmatpush3.bf16.msra.mxu1 %v16812_v6 }
 0xef9   : > { %15863 = vmatmul.mubr.msk.bf16.vlgmr.msra.gmra.mrb[140].mxu0 %vm21173_vm11, %v12768_v49  ;;  %15866 = vmatprep.subr.bf16.mxu1 %v20537_v1 }
 0xefb   : > { %15851 = vmatmul.mubr.msk.bf16.vlgmr.msra.gmra.mrb[128].mxu1 %vm21159_vm1, %v12690_v32 }
 0xefc   : > { %15882 = vmatprep.mubr.msk.bf16.mxu1 %vm21112_vm0, %v20537_v1  ;;  %15867 = vmatpush3.bf16.msra.mxu1 %v16813_v8 }
 0xefd   : > { %15868 = vmatprep.subr.bf16.mxu1 %v20537_v1 }
 0xf00   : > { %15869 = vmatpush3.bf16.msra.mxu1 %v16814_v26 }
 0xf01   : > { %15870 = vmatprep.subr.bf16.mxu1 %v20537_v1 }
 0xf04   : > { %15871 = vmatpush3.bf16.msra.mxu1 %v16815_v55 }
 0xf05   : > { %15872 = vmatprep.subr.bf16.mxu1 %v20537_v1 }
 0xf08   : > { %15873 = vmatpush3.bf16.msra.mxu1 %v16816_v24 }
 0xf09   : > { %15874 = vmatprep.subr.bf16.mxu1 %v20537_v1 }
 0xf0c   : > { %15875 = vmatpush3.bf16.msra.mxu1 %v16817_v5 }
 0xf0d   : > { %15876 = vmatprep.subr.bf16.mxu1 %v20537_v1 }
 0xf10   : > { %15877 = vmatpush3.bf16.msra.mxu1 %v16818_v13 }
 0xf11   : > { %15878 = vmatprep.subr.bf16.mxu1 %v20537_v1 }
 0xf14   : > { %15879 = vmatpush3.bf16.msra.mxu1 %v16819_v21 }
 0xf15   : > { %15880 = vmatprep.subr.bf16.mxu1 %v20537_v1 }
 0xf18   : > { %15881 = vmatpush3.bf16.msra.mxu1 %v16820_v17 }
 0xf5c   : > { %v11738_v2 = vpop.f32.mrb[112].mxu0 }
 0xf5d   : > { %v15696_v50 = vpop.f32.mrb[113].mxu0 }
 0xf5e   : > { %v11672_v54 = vpop.f32.mrb[100].mxu1  ;;  %v11741_v23 = vpop.f32.mrb[114].mxu0 }
 0xf5f   : > { %v11739_v40 = vadd.f32 %v11738_v2, %v11672_v54  ;;  %v15684_v28 = vpop.f32.mrb[101].mxu1  ;;  %v15697_v56 = vpop.f32.mrb[115].mxu0 }
 0xf60   : > { %v11675_v20 = vpop.f32.mrb[102].mxu1 }
 0xf61   : > { %v15685_v38 = vpop.f32.mrb[103].mxu1 }
 0xf6c   : > { %v11894_v29 = vpop.f32.mrb[116].mxu0 }
 0xf6d   : > { %v15720_v7 = vpop.f32.mrb[117].mxu0 }
 0xf6e   : > { %v11816_v42 = vpop.f32.mrb[104].mxu1  ;;  %v11897_v16 = vpop.f32.mrb[118].mxu0 }
 0xf6f   : > { %v11822_v11 = vadd.f32 %v11816_v42, %v11739_v40  ;;  %v15708_v41 = vpop.f32.mrb[105].mxu1  ;;  %v15721_v48 = vpop.f32.mrb[119].mxu0 }
 0xf70   : > { %v11819_v30 = vpop.f32.mrb[106].mxu1 }
 0xf71   : > { %v15709_v61 = vpop.f32.mrb[107].mxu1  ;;  %v11900_v34 = vadd.f32 %v11894_v29, %v11822_v11  ;;  %v12837_v11 = vld [vmem:[%s20976_s5] sm:$0x1] }
 0xf7c   : > { %v12050_v52 = vpop.f32.mrb[120].mxu0 }
 0xf7d   : > { %v15744_v36 = vpop.f32.mrb[121].mxu0 }
 0xf7e   : > { %v11972_v46 = vpop.f32.mrb[108].mxu1  ;;  %v12053_v10 = vpop.f32.mrb[122].mxu0 }
 0xf7f   : > { %v11978_v37 = vadd.f32 %v11972_v46, %v11900_v34  ;;  %v15732_v4 = vpop.f32.mrb[109].mxu1  ;;  %v15745_v44 = vpop.f32.mrb[123].mxu0 }
 0xf80   : > { %v11975_v60 = vpop.f32.mrb[110].mxu1 }
 0xf81   : > { %v15733_v63 = vpop.f32.mrb[111].mxu1  ;;  %v12056_v62 = vadd.f32 %v12050_v52, %v11978_v37  ;;  %v12866_v60 = vld [vmem:[%s20978_s7] sm:$0x1] }
 0xf8c   : > { %v12206_v31 = vpop.f32.mrb[124].mxu0 }
 0xf8d   : > { %v15768_v53 = vpop.f32.mrb[125].mxu0 }
 0xf8e   : > { %v12128_v43 = vpop.f32.mrb[112].mxu1  ;;  %v12209_v39 = vpop.f32.mrb[126].mxu0 }
 0xf8f   : > { %v12134_v14 = vadd.f32 %v12128_v43, %v12056_v62  ;;  %v15756_v19 = vpop.f32.mrb[113].mxu1  ;;  %v15769_v47 = vpop.f32.mrb[127].mxu0 }
 0xf90   : > { %v12131_v35 = vpop.f32.mrb[114].mxu1 }
 0xf91   : > { %v15757_v1 = vpop.f32.mrb[115].mxu1  ;;  %v12212_v59 = vadd.f32 %v12206_v31, %v12134_v14 }
 0xf9c   : > { %v12362_v18 = vpop.f32.mrb[128].mxu0 }
 0xf9d   : > { %v15792_v27 = vpop.f32.mrb[129].mxu0 }
 0xf9e   : > { %v12284_v51 = vpop.f32.mrb[116].mxu1  ;;  %v12365_v0 = vpop.f32.mrb[130].mxu0 }
 0xf9f   : > { %v12290_v58 = vadd.f32 %v12284_v51, %v12212_v59  ;;  %v15780_v33 = vpop.f32.mrb[117].mxu1  ;;  %v15793_v57 = vpop.f32.mrb[131].mxu0 }
 0xfa0   : > { %v12287_v45 = vpop.f32.mrb[118].mxu1 }
 0xfa1   : > { %v15781_v12 = vpop.f32.mrb[119].mxu1  ;;  %v12368_v15 = vadd.f32 %v12362_v18, %v12290_v58 }
 0xfac   : > { %v12518_v3 = vpop.f32.mrb[132].mxu0 }
 0xfad   : > { %v15816_v22 = vpop.f32.mrb[133].mxu0 }
 0xfae   : > { %v12440_v9 = vpop.f32.mrb[120].mxu1  ;;  %v12521_v25 = vpop.f32.mrb[134].mxu0 }
 0xfaf   : > { %v12446_v6 = vadd.f32 %v12440_v9, %v12368_v15  ;;  %v15804_v49 = vpop.f32.mrb[121].mxu1  ;;  %v15817_v32 = vpop.f32.mrb[135].mxu0 }
 0xfb0   : > { %v12443_v8 = vpop.f32.mrb[122].mxu1 }
 0xfb1   : > { %v15805_v26 = vpop.f32.mrb[123].mxu1  ;;  %v12524_v2 = vadd.f32 %v12518_v3, %v12446_v6 }
 0xfbc   : > { %v12674_v50 = vpop.f32.mrb[136].mxu0 }
 0xfbd   : > { %v15840_v54 = vpop.f32.mrb[137].mxu0 }
 0xfbe   : > { %v12596_v23 = vpop.f32.mrb[124].mxu1  ;;  %v12677_v40 = vpop.f32.mrb[138].mxu0 }
 0xfbf   : > { %v12602_v28 = vadd.f32 %v12596_v23, %v12524_v2  ;;  %v15828_v56 = vpop.f32.mrb[125].mxu1  ;;  %v15841_v55 = vpop.f32.mrb[139].mxu0 }
 0xfc0   : > { %v12599_v20 = vpop.f32.mrb[126].mxu1 }
 0xfc1   : > { %v15829_v38 = vpop.f32.mrb[127].mxu1  ;;  %v12680_v24 = vadd.f32 %v12674_v50, %v12602_v28 }
 0xfcc   : > { %v12830_v5 = vpop.f32.mrb[140].mxu0 }
 0xfcd   : > { %v15864_v13 = vpop.f32.mrb[141].mxu0 }
 0xfce   : > { %v12752_v29 = vpop.f32.mrb[128].mxu1  ;;  %v12833_v7 = vpop.f32.mrb[142].mxu0 }
 0xfcf   : > { %v12758_v21 = vadd.f32 %v12752_v29, %v12680_v24  ;;  %v15852_v42 = vpop.f32.mrb[129].mxu1  ;;  %v15865_v16 = vpop.f32.mrb[143].mxu0 }
 0xfd0   : > { %v12755_v41 = vpop.f32.mrb[130].mxu1 }
 0xfd1   : > { %v12836_v48 = vadd.f32 %v12830_v5, %v12758_v21  ;;  %v15853_v30 = vpop.f32.mrb[131].mxu1 }
 0xfd3   : > { %v12838_v61 = vadd.f32 %v12837_v11, %v12836_v48 }
 0xfd5   : > { %v12839_v34 = vand.u32 2147483647, %v12838_v61  ;;  %vm12843_vm0 = vcmp.ge.f32.partialorder %v12838_v61, 0.0 }
 0xfd7   : > { %v12840_v17 = vsub.f32 0.0, %v12839_v34 }
 0xfd9   : > { %v12841_v52 = vmul.f32 1.442695, %v12840_v17 }
 0xfdb   : > { %16821 = vpow2.f32 %v12841_v52 }
 0xfe5   : > { %v16822_v36 = vpop.eup %16821 }
 0xfe6   : > { %v12844_v46 = vadd.f32 1.0, %v16822_v36 }
 0xfe8   : > { %16823 = vrcp.f32 %v12844_v46 }
 0xff2   : > { %v16824_v10 = vpop.eup %16823 }
 0xff3   : > { %v12847_v37 = vmul.f32 %v16824_v10, %v16822_v36 }
 0xff5   : > { %v12848_v4 = vsel %vm12843_vm0, %v16824_v10, %v12847_v37 }
 0xff6   : > { %v12849_v44 = vpack.c.bf16 %v12848_v4, %v12848_v4 }
 0xff8   : > { %15883 = vmatmul.mubr.bf16.vlgmr.msra.gmra.mrb[132].mxu1 %v12849_v44 }
0x10cb   : > { %v12949_v63 = vpop.f32.mrb[132].mxu1 }
0x10cc   : > { %v12950_v62 = vadd.f32 %v12949_v63, %v12866_v60  ;;  %v15884_v31 = vpop.f32.mrb[133].mxu1 }
0x10cd   : > { %v12952_v53 = vpop.f32.mrb[134].mxu1 }
0x10ce   : > { %v15885_v43 = vpop.f32.mrb[135].mxu1  ;;  %v12956_v39 = vsel %vm12955_vm15, %v12950_v62, -inf }
0x10cf   : > { %12957 = vmax.xlane.f32.xlu0 %v12956_v39 }
0x115c   : > { %v12958_v14 = vpop.xlane.xlu0 %12957 }
0x115d   : > { %v12959_v19 = vsub.f32 %v12950_v62, %v12958_v14 }
0x115f   : > { %v12960_v47 = vmul.f32 1.442695, %v12959_v19 }
0x1161   : > { %16825 = vpow2.f32 %v12960_v47 }
0x116b   : > { %v16826_v35 = vpop.eup %16825 }
0x116c   : > { %v12962_v1 = vsel %vm12955_vm15, %v16826_v35, 0.0 }
0x116d   : > { %12963 = vadd.xlane.f32.xlu1 %v12962_v1 }
0x11fa   : > { %v12964_v59 = vpop.xlane.xlu1 %12963 }
0x11fb   : > { %16827 = vrcp.f32 %v12964_v59 }
0x1205   : > { %v16828_v18 = vpop.eup %16827 }
0x1206   : > { %v12966_v27 = vmul.f32 %v16828_v18, %v16826_v35 }
0x1208   : > { %12967 = vst.msk [vmem:[%s297_s10] sm:$0x1] %vm12955_vm15, %v12966_v27 }
0x1209   : > { %16848 = shalt.err (!%p16845_p3)
}
0x120a   : > { %s16849_s26 = scalar_lea.hbm %s20928_s18, 16  ;;  %s16853_s12 = scalar_lea.hbm %s20979_s8, 32 }
0x120b   : > { %p16850_p4 = scmp.ne.s32.totalorder %s20928_s18, %s16849_s26  ;;  %p16854_p9 = scmp.lt.u32.totalorder %s20928_s18, %s20979_s8 }
0x120c   : > { %p16855_p10 = scmp.lt.u32.totalorder %s16853_s12, %s16849_s26  ;;  %p16857_p12 = scmp.lt.u32.totalorder %s16849_s26, %s20928_s18 }
0x120d   : > { %p16851_p7 = pnand %p16850_p4, %p17055_p5 }
0x120e   : > { %p16856_p11 = por %p16855_p10, %p16854_p9 }
0x120f   : > { %p16852_p8 = pneg %p16851_p7 }
0x1210   : > { %p16858_p13 = por %p16857_p12, %p16856_p11 }
0x1212   : > { %p16859_p0 = pnand %p16858_p13, %p16852_p8 }
0x1214   : > { %16862 = shalt.err (!%p16859_p0)
}
0x1215   : > { %16399 = dma.vmem_to_hbm [thread:$0]  (%p17055_p5), %s20930_s20, 16, %s20928_s18, %s12969_s24  }
0x1216 PF: > { %p16405_p1 = scmp.ge.s32.totalorder %s16897_s30, 2  ;;  %s12993_s13 = sand.u32 1, %s16885_s27  }
0x1217   : > { %s12994_s19 = scalar_lea.sflag [#allocation9], %s12993_s13 }
0x1218   : > { %p16402_p2 = pnand %p16405_p1, %p17059_p6 }
0x121a   : > { %16880 = dma.done.wait (!%p16402_p2), %s12994_s19, 16  }
0x121b   : > { %16882 = vsyncadd (!%p16402_p2), %s12994_s19, 4294967280  ;;  %p18_p3 = scmp.ge.s32.totalorder %s17042_s11, 4   ;;  %s21174_s27 = smov %s16889_s28 }
0x121c   : > { %s21175_s28 = smov %s16893_s29  ;;  %s21176_s29 = smov %s17053_s14 }
0x121d   : > { %s21177_s30 = smov %s17042_s11  ;;  %20 = sbr.rel (!%p18_p3) target bundleno = 3 (0x3), region = 102 }
0x1224   :  { %12998 = vsyncpa [#allocation9], 1 }
0x1225   :  { %13000 = vsyncpa [#allocation9 + $0x1], 1 }

</bundles_post_ra>
